<compile_context>
chip_gen: v6e
topology: v6e:2x2x1
jax: 0.10.0
libtpu: 0.0.40
codegen_flags: <defaults>
</compile_context>

<pallas_src>
import functools

import jax
import jax.numpy as jnp
from jax.experimental import pallas as pl
from jax.experimental.pallas import tpu as pltpu

KT, KD, KH, KW = 3, 3, 3, 3          # 4-D kernel (temporal, d, h, w)
K2 = KH * KW                         # 9 in-plane taps (materialized on host)
PT = (KT - 1) // 2                   # temporal 'same' padding
PD = (KD - 1) // 2                   # depth    'same' padding
PS = (KH - 1) // 2                   # in-plane 'same' padding


def _conv4d_kernel(cols_ref, w_ref, b_ref, o_ref, *, T_out, D_out):
    """One (batch, HW-tile) block: all output frames / depth planes computed here.

    cols_ref : (1, Tp, Dp, 9*Cin, HWt)  in-plane im2col, channels-minor K
    w_ref    : (KT, KD, Cout, 9*Cin)    VMEM-resident weights
    b_ref    : (T_out, Cout, 1)         per-output-frame bias (taps + top bias)
    o_ref    : (1, T_out, D_out, Cout, HWt)   lane-dense (HWt last)
    """
    for to in range(T_out):
        bias_to = b_ref[to]                                # (Cout, 1)
        for d in range(D_out):
            # register accumulator (Cout, HWt); single store at the end
            acc = jnp.zeros(o_ref.shape[-2:], jnp.float32)
            for tk in range(KT):
                for kd in range(KD):
                    acc = acc + jnp.dot(
                        w_ref[tk, kd],                     # (Cout, 9*Cin)
                        cols_ref[0, to + tk, d + kd],      # (9*Cin, HWt)
                        preferred_element_type=jnp.float32)
            o_ref[0, to, d] = (acc + bias_to).astype(o_ref.dtype)


def conv_layer_forward(x, weight, conv_bias, top_bias):
    """Pallas forward of `_ConvLayer` (default config -> identity heads).

    x        : (N, Cin, T, D, H, W)  float32
    weight   : (Cout, Cin, KT, KD, KH, KW)   (the _Conv4d hyper-cube weight)
    conv_bias: (KT, Cout)   per-temporal-tap Conv3d bias
    top_bias : (Cout,)      the _Conv4d.bias parameter
    returns  : (N, Cout, T, D, H, W)
    """
    N, Cin, T, D, H, W = x.shape
    Cout = weight.shape[0]
    To = T                              # 'same' padding, stride 1
    Tp, Dp = T + 2 * PT, D + 2 * PD
    HW = H * W
    KC = K2 * Cin                       # fused in-plane K dimension

    # --- host-side glue (only the 9 in-plane taps are duplicated) ------------
    xp = jnp.pad(x, ((0, 0), (0, 0), (PT, PT), (PD, PD), (PS, PS), (PS, PS)))
    xp = jnp.transpose(xp, (0, 2, 3, 1, 4, 5))          # (N,Tp,Dp,Cin,Hp,Wp)
    cols9 = jnp.stack(
        [xp[..., kh:kh + H, kw:kw + W] for kh in range(KH) for kw in range(KW)],
        axis=3)                                         # (N,Tp,Dp,9,Cin,H,W)
    cols9 = cols9.reshape(N, Tp, Dp, KC, HW)            # K = (kh,kw)-major, cin-minor

    # weights -> (KT, KD, Cout, 9*Cin); K ordering matches cols9
    w_t = jnp.transpose(weight, (2, 3, 0, 4, 5, 1)).reshape(KT, KD, Cout, KC)

    # Per-output-frame bias: every contributing temporal-tap Conv3d adds its own
    # bias, plus the single top-level _Conv4d bias (matches the PyTorch ref).
    contrib = jnp.array(
        [[1.0 if 0 <= to + n - PT < T else 0.0 for n in range(KT)]
         for to in range(To)], dtype=jnp.float32)       # (To, KT)
    b_frame = (contrib @ conv_bias + top_bias[None, :]).reshape(To, Cout, 1)

    # --- tiling: lane dim = flattened H*W plane, VMEM-budget aware -----------
    def working_set_bytes(hw_t):
        cols_blk = Tp * Dp * KC * hw_t                  # per-step cols tile
        out_blk = To * D * Cout * hw_t                  # per-step output tile
        const = KT * KD * Cout * KC + To * Cout         # resident weights/bias
        return 4 * (2 * cols_blk + 2 * out_blk + const)  # double-buffered

    budget = 48 * 1024 * 1024                           # safe for v7x 64 MiB VMEM
    candidates = [c for c in (2048, 1024, 512, 256, 128) if HW % c == 0]
    hw_tile = None
    for cand in candidates:
        if working_set_bytes(cand) <= budget:
            hw_tile = cand
            break
    if hw_tile is None:
        hw_tile = candidates[-1] if candidates else HW
    n_hw = HW // hw_tile

    vmem_limit = int(max(32 * 1024 * 1024,
                         working_set_bytes(hw_tile) + (4 << 20)))

    kernel = functools.partial(_conv4d_kernel, T_out=To, D_out=D)

    out = pl.pallas_call(
        kernel,
        out_shape=jax.ShapeDtypeStruct((N, To, D, Cout, HW), jnp.float32),
        grid_spec=pltpu.PrefetchScalarGridSpec(
            num_scalar_prefetch=0,
            grid=(N, n_hw),
            in_specs=[
                pl.BlockSpec((1, Tp, Dp, KC, hw_tile),
                             lambda n, h: (n, 0, 0, 0, h)),
                pl.BlockSpec((KT, KD, Cout, KC),        # weights: VMEM resident
                             lambda n, h: (0, 0, 0, 0)),
                pl.BlockSpec((To, Cout, 1),             # bias: VMEM resident
                             lambda n, h: (0, 0, 0)),
            ],
            out_specs=pl.BlockSpec((1, To, D, Cout, hw_tile),
                                   lambda n, h: (n, 0, 0, 0, h)),
        ),
        compiler_params=pltpu.CompilerParams(
            dimension_semantics=("parallel", "parallel"),
            vmem_limit_bytes=vmem_limit),
    )(cols9, w_t, b_frame)

    # TODO(synk): non-default norm_func / activ_func / dropout heads of
    # `_ConvLayer.layer_funcs` are Identity under the module defaults and are
    # therefore not implemented here.
    out = out.reshape(N, To, D, Cout, H, W)
    return jnp.transpose(out, (0, 3, 1, 2, 4, 5))       # (N,Cout,T,D,H,W)


def conv_layer_reference(x, weight, conv_bias, top_bias):
    """Pure-JAX reference reproducing the PyTorch forward exactly."""
    N, Cin, T, D, H, W = x.shape
    Cout = weight.shape[0]
    xp = jnp.pad(x, ((0, 0), (0, 0), (PT, PT), (PD, PD), (PS, PS), (PS, PS)))
    out = jnp.zeros((N, Cout, T, D, H, W), jnp.float32)
    for tk in range(KT):
        for kd in range(KD):
            for kh in range(KH):
                for kw in range(KW):
                    patch = xp[:, :, tk:tk + T, kd:kd + D, kh:kh + H, kw:kw + W]
                    out = out + jnp.einsum(
                        'nctdhw,oc->notdhw', patch, weight[:, :, tk, kd, kh, kw],
                        precision=jax.lax.Precision.HIGHEST)
    contrib = jnp.array(
        [[1.0 if 0 <= to + n - PT < T else 0.0 for n in range(KT)]
         for to in range(T)], dtype=jnp.float32)
    b_frame = contrib @ conv_bias + top_bias[None, :]             # (T, Cout)
    return out + b_frame.T[None, :, :, None, None, None]


if __name__ == "__main__":
    key = jax.random.PRNGKey(0)
    k_x, k_w, k_cb, k_tb = jax.random.split(key, 4)

    # small shapes: batch=2, Cin=4, Cout=8, temporal T=2 (module default),
    # spatial 8x16x16 so the flattened plane (H*W=256) is lane-dense.
    N, Cin, Cout, T, D, H, W = 2, 4, 8, 2, 8, 16, 16
    x = jax.random.normal(k_x, (N, Cin, T, D, H, W), jnp.float32)

    # deterministic parameter init (kaiming_uniform(a=sqrt(5))-style bounds)
    fan_in_4d = float(Cin * KT * KD * KH * KW)
    fan_in_3d = float(Cin * KD * KH * KW)
    bw = 1.0 / (fan_in_4d ** 0.5)
    bb = 1.0 / (fan_in_3d ** 0.5)
    weight = jax.random.uniform(k_w, (Cout, Cin, KT, KD, KH, KW),
                                jnp.float32, -bw, bw)
    conv_bias = jax.random.uniform(k_cb, (KT, Cout), jnp.float32, -bb, bb)
    top_bias = jax.random.uniform(k_tb, (Cout,), jnp.float32, -bw, bw)

    out = jax.jit(conv_layer_forward)(x, weight, conv_bias, top_bias)
    out = jax.block_until_ready(out)

    ref = conv_layer_reference(x, weight, conv_bias, top_bias)
    assert out.shape == (N, Cout, T, D, H, W), out.shape
    assert bool(jnp.allclose(out, ref, rtol=1e-2, atol=1e-2)), \
        float(jnp.max(jnp.abs(out - ref)))
    print("KERNEL_OK")
</pallas_src>

<mosaic_0001>
module attributes {stable_mosaic.version = 11 : i64} {
  func.func @_conv4d_kernel(%arg0: i32, %arg1: i32, %arg2: memref<1x4x10x36x256xf32, #tpu.memory_space<vmem>>, %arg3: memref<3x3x8x36xf32, #tpu.memory_space<vmem>>, %arg4: memref<2x8x1xf32, #tpu.memory_space<vmem>>, %arg5: memref<1x2x8x8x256xf32, #tpu.memory_space<vmem>>) attributes {dimension_semantics = [#tpu.dimension_semantics<parallel>, #tpu.dimension_semantics<parallel>], iteration_bounds = array<i64: 2, 1>, scalar_prefetch = 0 : i64, scratch_operands = 0 : i64, tpu.core_type = #tpu.core_type<tc>, window_params = [{transform_indices = @transform_0, window_bounds = array<i64: 1, 4, 10, 36, 256>}, {pipeline_mode = #tpu.pipeline_mode<synchronous>, transform_indices = @transform_1, window_bounds = array<i64: 3, 3, 8, 36>}, {pipeline_mode = #tpu.pipeline_mode<synchronous>, transform_indices = @transform_2, window_bounds = array<i64: 2, 8, 1>}, {transform_indices = @transform_3, window_bounds = array<i64: 1, 2, 8, 8, 256>}]} {
    %c0 = arith.constant 0 : index
    %c0_0 = arith.constant 0 : index
    %c0_1 = arith.constant 0 : index
    %0 = vector.load %arg4[%c0, %c0_0, %c0_1] : memref<2x8x1xf32, #tpu.memory_space<vmem>>, vector<1x8x1xf32>
    %1 = vector.shape_cast %0 : vector<1x8x1xf32> to vector<8x1xf32>
    %cst = arith.constant 0.000000e+00 : f32
    %2 = vector.broadcast %cst : f32 to vector<8x256xf32>
    %c0_2 = arith.constant 0 : index
    %c0_3 = arith.constant 0 : index
    %c0_4 = arith.constant 0 : index
    %c0_5 = arith.constant 0 : index
    %3 = vector.load %arg3[%c0_2, %c0_3, %c0_4, %c0_5] : memref<3x3x8x36xf32, #tpu.memory_space<vmem>>, vector<1x1x8x36xf32>
    %4 = vector.shape_cast %3 : vector<1x1x8x36xf32> to vector<8x36xf32>
    %c0_6 = arith.constant 0 : index
    %c0_7 = arith.constant 0 : index
    %c0_8 = arith.constant 0 : index
    %c0_9 = arith.constant 0 : index
    %c0_10 = arith.constant 0 : index
    %5 = vector.load %arg2[%c0_6, %c0_7, %c0_8, %c0_9, %c0_10] : memref<1x4x10x36x256xf32, #tpu.memory_space<vmem>>, vector<1x1x1x36x256xf32>
    %6 = vector.shape_cast %5 : vector<1x1x1x36x256xf32> to vector<36x256xf32>
    %cst_11 = arith.constant dense<0.000000e+00> : vector<8x256xf32>
    %7 = tpu.matmul %4, %6, %cst_11 {dimension_numbers = #tpu.dot_dimension_numbers<[1], [0], [0], [1], [0, 0, 1, 1], [], []>} : vector<8x36xf32>, vector<36x256xf32>, vector<8x256xf32> -> vector<8x256xf32>
    %8 = arith.addf %2, %7 : vector<8x256xf32>
    %c0_12 = arith.constant 0 : index
    %c1 = arith.constant 1 : index
    %c0_13 = arith.constant 0 : index
    %c0_14 = arith.constant 0 : index
    %9 = vector.load %arg3[%c0_12, %c1, %c0_13, %c0_14] : memref<3x3x8x36xf32, #tpu.memory_space<vmem>>, vector<1x1x8x36xf32>
    %10 = vector.shape_cast %9 : vector<1x1x8x36xf32> to vector<8x36xf32>
    %c0_15 = arith.constant 0 : index
    %c0_16 = arith.constant 0 : index
    %c1_17 = arith.constant 1 : index
    %c0_18 = arith.constant 0 : index
    %c0_19 = arith.constant 0 : index
    %11 = vector.load %arg2[%c0_15, %c0_16, %c1_17, %c0_18, %c0_19] : memref<1x4x10x36x256xf32, #tpu.memory_space<vmem>>, vector<1x1x1x36x256xf32>
    %12 = vector.shape_cast %11 : vector<1x1x1x36x256xf32> to vector<36x256xf32>
    %cst_20 = arith.constant dense<0.000000e+00> : vector<8x256xf32>
    %13 = tpu.matmul %10, %12, %cst_20 {dimension_numbers = #tpu.dot_dimension_numbers<[1], [0], [0], [1], [0, 0, 1, 1], [], []>} : vector<8x36xf32>, vector<36x256xf32>, vector<8x256xf32> -> vector<8x256xf32>
    %14 = arith.addf %8, %13 : vector<8x256xf32>
    %c0_21 = arith.constant 0 : index
    %c2 = arith.constant 2 : index
    %c0_22 = arith.constant 0 : index
    %c0_23 = arith.constant 0 : index
    %15 = vector.load %arg3[%c0_21, %c2, %c0_22, %c0_23] : memref<3x3x8x36xf32, #tpu.memory_space<vmem>>, vector<1x1x8x36xf32>
    %16 = vector.shape_cast %15 : vector<1x1x8x36xf32> to vector<8x36xf32>
    %c0_24 = arith.constant 0 : index
    %c0_25 = arith.constant 0 : index
    %c2_26 = arith.constant 2 : index
    %c0_27 = arith.constant 0 : index
    %c0_28 = arith.constant 0 : index
    %17 = vector.load %arg2[%c0_24, %c0_25, %c2_26, %c0_27, %c0_28] : memref<1x4x10x36x256xf32, #tpu.memory_space<vmem>>, vector<1x1x1x36x256xf32>
    %18 = vector.shape_cast %17 : vector<1x1x1x36x256xf32> to vector<36x256xf32>
    %cst_29 = arith.constant dense<0.000000e+00> : vector<8x256xf32>
    %19 = tpu.matmul %16, %18, %cst_29 {dimension_numbers = #tpu.dot_dimension_numbers<[1], [0], [0], [1], [0, 0, 1, 1], [], []>} : vector<8x36xf32>, vector<36x256xf32>, vector<8x256xf32> -> vector<8x256xf32>
    %20 = arith.addf %14, %19 : vector<8x256xf32>
    %c1_30 = arith.constant 1 : index
    %c0_31 = arith.constant 0 : index
    %c0_32 = arith.constant 0 : index
    %c0_33 = arith.constant 0 : index
    %21 = vector.load %arg3[%c1_30, %c0_31, %c0_32, %c0_33] : memref<3x3x8x36xf32, #tpu.memory_space<vmem>>, vector<1x1x8x36xf32>
    %22 = vector.shape_cast %21 : vector<1x1x8x36xf32> to vector<8x36xf32>
    %c0_34 = arith.constant 0 : index
    %c1_35 = arith.constant 1 : index
    %c0_36 = arith.constant 0 : index
    %c0_37 = arith.constant 0 : index
    %c0_38 = arith.constant 0 : index
    %23 = vector.load %arg2[%c0_34, %c1_35, %c0_36, %c0_37, %c0_38] : memref<1x4x10x36x256xf32, #tpu.memory_space<vmem>>, vector<1x1x1x36x256xf32>
    %24 = vector.shape_cast %23 : vector<1x1x1x36x256xf32> to vector<36x256xf32>
    %cst_39 = arith.constant dense<0.000000e+00> : vector<8x256xf32>
    %25 = tpu.matmul %22, %24, %cst_39 {dimension_numbers = #tpu.dot_dimension_numbers<[1], [0], [0], [1], [0, 0, 1, 1], [], []>} : vector<8x36xf32>, vector<36x256xf32>, vector<8x256xf32> -> vector<8x256xf32>
    %26 = arith.addf %20, %25 : vector<8x256xf32>
    %c1_40 = arith.constant 1 : index
    %c1_41 = arith.constant 1 : index
    %c0_42 = arith.constant 0 : index
    %c0_43 = arith.constant 0 : index
    %27 = vector.load %arg3[%c1_40, %c1_41, %c0_42, %c0_43] : memref<3x3x8x36xf32, #tpu.memory_space<vmem>>, vector<1x1x8x36xf32>
    %28 = vector.shape_cast %27 : vector<1x1x8x36xf32> to vector<8x36xf32>
    %c0_44 = arith.constant 0 : index
    %c1_45 = arith.constant 1 : index
    %c1_46 = arith.constant 1 : index
    %c0_47 = arith.constant 0 : index
    %c0_48 = arith.constant 0 : index
    %29 = vector.load %arg2[%c0_44, %c1_45, %c1_46, %c0_47, %c0_48] : memref<1x4x10x36x256xf32, #tpu.memory_space<vmem>>, vector<1x1x1x36x256xf32>
    %30 = vector.shape_cast %29 : vector<1x1x1x36x256xf32> to vector<36x256xf32>
    %cst_49 = arith.constant dense<0.000000e+00> : vector<8x256xf32>
    %31 = tpu.matmul %28, %30, %cst_49 {dimension_numbers = #tpu.dot_dimension_numbers<[1], [0], [0], [1], [0, 0, 1, 1], [], []>} : vector<8x36xf32>, vector<36x256xf32>, vector<8x256xf32> -> vector<8x256xf32>
    %32 = arith.addf %26, %31 : vector<8x256xf32>
    %c1_50 = arith.constant 1 : index
    %c2_51 = arith.constant 2 : index
    %c0_52 = arith.constant 0 : index
    %c0_53 = arith.constant 0 : index
    %33 = vector.load %arg3[%c1_50, %c2_51, %c0_52, %c0_53] : memref<3x3x8x36xf32, #tpu.memory_space<vmem>>, vector<1x1x8x36xf32>
    %34 = vector.shape_cast %33 : vector<1x1x8x36xf32> to vector<8x36xf32>
    %c0_54 = arith.constant 0 : index
    %c1_55 = arith.constant 1 : index
    %c2_56 = arith.constant 2 : index
    %c0_57 = arith.constant 0 : index
    %c0_58 = arith.constant 0 : index
    %35 = vector.load %arg2[%c0_54, %c1_55, %c2_56, %c0_57, %c0_58] : memref<1x4x10x36x256xf32, #tpu.memory_space<vmem>>, vector<1x1x1x36x256xf32>
    %36 = vector.shape_cast %35 : vector<1x1x1x36x256xf32> to vector<36x256xf32>
    %cst_59 = arith.constant dense<0.000000e+00> : vector<8x256xf32>
    %37 = tpu.matmul %34, %36, %cst_59 {dimension_numbers = #tpu.dot_dimension_numbers<[1], [0], [0], [1], [0, 0, 1, 1], [], []>} : vector<8x36xf32>, vector<36x256xf32>, vector<8x256xf32> -> vector<8x256xf32>
    %38 = arith.addf %32, %37 : vector<8x256xf32>
    %c2_60 = arith.constant 2 : index
    %c0_61 = arith.constant 0 : index
    %c0_62 = arith.constant 0 : index
    %c0_63 = arith.constant 0 : index
    %39 = vector.load %arg3[%c2_60, %c0_61, %c0_62, %c0_63] : memref<3x3x8x36xf32, #tpu.memory_space<vmem>>, vector<1x1x8x36xf32>
    %40 = vector.shape_cast %39 : vector<1x1x8x36xf32> to vector<8x36xf32>
    %c0_64 = arith.constant 0 : index
    %c2_65 = arith.constant 2 : index
    %c0_66 = arith.constant 0 : index
    %c0_67 = arith.constant 0 : index
    %c0_68 = arith.constant 0 : index
    %41 = vector.load %arg2[%c0_64, %c2_65, %c0_66, %c0_67, %c0_68] : memref<1x4x10x36x256xf32, #tpu.memory_space<vmem>>, vector<1x1x1x36x256xf32>
    %42 = vector.shape_cast %41 : vector<1x1x1x36x256xf32> to vector<36x256xf32>
    %cst_69 = arith.constant dense<0.000000e+00> : vector<8x256xf32>
    %43 = tpu.matmul %40, %42, %cst_69 {dimension_numbers = #tpu.dot_dimension_numbers<[1], [0], [0], [1], [0, 0, 1, 1], [], []>} : vector<8x36xf32>, vector<36x256xf32>, vector<8x256xf32> -> vector<8x256xf32>
    %44 = arith.addf %38, %43 : vector<8x256xf32>
    %c2_70 = arith.constant 2 : index
    %c1_71 = arith.constant 1 : index
    %c0_72 = arith.constant 0 : index
    %c0_73 = arith.constant 0 : index
    %45 = vector.load %arg3[%c2_70, %c1_71, %c0_72, %c0_73] : memref<3x3x8x36xf32, #tpu.memory_space<vmem>>, vector<1x1x8x36xf32>
    %46 = vector.shape_cast %45 : vector<1x1x8x36xf32> to vector<8x36xf32>
    %c0_74 = arith.constant 0 : index
    %c2_75 = arith.constant 2 : index
    %c1_76 = arith.constant 1 : index
    %c0_77 = arith.constant 0 : index
    %c0_78 = arith.constant 0 : index
    %47 = vector.load %arg2[%c0_74, %c2_75, %c1_76, %c0_77, %c0_78] : memref<1x4x10x36x256xf32, #tpu.memory_space<vmem>>, vector<1x1x1x36x256xf32>
    %48 = vector.shape_cast %47 : vector<1x1x1x36x256xf32> to vector<36x256xf32>
    %cst_79 = arith.constant dense<0.000000e+00> : vector<8x256xf32>
    %49 = tpu.matmul %46, %48, %cst_79 {dimension_numbers = #tpu.dot_dimension_numbers<[1], [0], [0], [1], [0, 0, 1, 1], [], []>} : vector<8x36xf32>, vector<36x256xf32>, vector<8x256xf32> -> vector<8x256xf32>
    %50 = arith.addf %44, %49 : vector<8x256xf32>
    %c2_80 = arith.constant 2 : index
    %c2_81 = arith.constant 2 : index
    %c0_82 = arith.constant 0 : index
    %c0_83 = arith.constant 0 : index
    %51 = vector.load %arg3[%c2_80, %c2_81, %c0_82, %c0_83] : memref<3x3x8x36xf32, #tpu.memory_space<vmem>>, vector<1x1x8x36xf32>
    %52 = vector.shape_cast %51 : vector<1x1x8x36xf32> to vector<8x36xf32>
    %c0_84 = arith.constant 0 : index
    %c2_85 = arith.constant 2 : index
    %c2_86 = arith.constant 2 : index
    %c0_87 = arith.constant 0 : index
    %c0_88 = arith.constant 0 : index
    %53 = vector.load %arg2[%c0_84, %c2_85, %c2_86, %c0_87, %c0_88] : memref<1x4x10x36x256xf32, #tpu.memory_space<vmem>>, vector<1x1x1x36x256xf32>
    %54 = vector.shape_cast %53 : vector<1x1x1x36x256xf32> to vector<36x256xf32>
    %cst_89 = arith.constant dense<0.000000e+00> : vector<8x256xf32>
    %55 = tpu.matmul %52, %54, %cst_89 {dimension_numbers = #tpu.dot_dimension_numbers<[1], [0], [0], [1], [0, 0, 1, 1], [], []>} : vector<8x36xf32>, vector<36x256xf32>, vector<8x256xf32> -> vector<8x256xf32>
    %56 = arith.addf %50, %55 : vector<8x256xf32>
    %57 = vector.broadcast %1 : vector<8x1xf32> to vector<8x256xf32>
    %58 = arith.addf %56, %57 : vector<8x256xf32>
    %c0_90 = arith.constant 0 : index
    %c0_91 = arith.constant 0 : index
    %c0_92 = arith.constant 0 : index
    %c0_93 = arith.constant 0 : index
    %c0_94 = arith.constant 0 : index
    %59 = vector.load %arg5[%c0_90, %c0_91, %c0_92, %c0_93, %c0_94] : memref<1x2x8x8x256xf32, #tpu.memory_space<vmem>>, vector<1x1x1x8x256xf32>
    %60 = vector.shape_cast %59 : vector<1x1x1x8x256xf32> to vector<8x256xf32>
    %61 = vector.shape_cast %58 : vector<8x256xf32> to vector<1x1x1x8x256xf32>
    tpu.vector_store %arg5[%c0_90, %c0_91, %c0_92, %c0_93, %c0_94], %61 {strides = array<i32>} : memref<1x2x8x8x256xf32, #tpu.memory_space<vmem>>, vector<1x1x1x8x256xf32>,
    %cst_95 = arith.constant 0.000000e+00 : f32
    %62 = vector.broadcast %cst_95 : f32 to vector<8x256xf32>
    %c0_96 = arith.constant 0 : index
    %c0_97 = arith.constant 0 : index
    %c0_98 = arith.constant 0 : index
    %c0_99 = arith.constant 0 : index
    %63 = vector.load %arg3[%c0_96, %c0_97, %c0_98, %c0_99] : memref<3x3x8x36xf32, #tpu.memory_space<vmem>>, vector<1x1x8x36xf32>
    %64 = vector.shape_cast %63 : vector<1x1x8x36xf32> to vector<8x36xf32>
    %c0_100 = arith.constant 0 : index
    %c0_101 = arith.constant 0 : index
    %c1_102 = arith.constant 1 : index
    %c0_103 = arith.constant 0 : index
    %c0_104 = arith.constant 0 : index
    %65 = vector.load %arg2[%c0_100, %c0_101, %c1_102, %c0_103, %c0_104] : memref<1x4x10x36x256xf32, #tpu.memory_space<vmem>>, vector<1x1x1x36x256xf32>
    %66 = vector.shape_cast %65 : vector<1x1x1x36x256xf32> to vector<36x256xf32>
    %cst_105 = arith.constant dense<0.000000e+00> : vector<8x256xf32>
    %67 = tpu.matmul %64, %66, %cst_105 {dimension_numbers = #tpu.dot_dimension_numbers<[1], [0], [0], [1], [0, 0, 1, 1], [], []>} : vector<8x36xf32>, vector<36x256xf32>, vector<8x256xf32> -> vector<8x256xf32>
    %68 = arith.addf %62, %67 : vector<8x256xf32>
    %c0_106 = arith.constant 0 : index
    %c1_107 = arith.constant 1 : index
    %c0_108 = arith.constant 0 : index
    %c0_109 = arith.constant 0 : index
    %69 = vector.load %arg3[%c0_106, %c1_107, %c0_108, %c0_109] : memref<3x3x8x36xf32, #tpu.memory_space<vmem>>, vector<1x1x8x36xf32>
    %70 = vector.shape_cast %69 : vector<1x1x8x36xf32> to vector<8x36xf32>
    %c0_110 = arith.constant 0 : index
    %c0_111 = arith.constant 0 : index
    %c2_112 = arith.constant 2 : index
    %c0_113 = arith.constant 0 : index
    %c0_114 = arith.constant 0 : index
    %71 = vector.load %arg2[%c0_110, %c0_111, %c2_112, %c0_113, %c0_114] : memref<1x4x10x36x256xf32, #tpu.memory_space<vmem>>, vector<1x1x1x36x256xf32>
    %72 = vector.shape_cast %71 : vector<1x1x1x36x256xf32> to vector<36x256xf32>
    %cst_115 = arith.constant dense<0.000000e+00> : vector<8x256xf32>
    %73 = tpu.matmul %70, %72, %cst_115 {dimension_numbers = #tpu.dot_dimension_numbers<[1], [0], [0], [1], [0, 0, 1, 1], [], []>} : vector<8x36xf32>, vector<36x256xf32>, vector<8x256xf32> -> vector<8x256xf32>
    %74 = arith.addf %68, %73 : vector<8x256xf32>
    %c0_116 = arith.constant 0 : index
    %c2_117 = arith.constant 2 : index
    %c0_118 = arith.constant 0 : index
    %c0_119 = arith.constant 0 : index
    %75 = vector.load %arg3[%c0_116, %c2_117, %c0_118, %c0_119] : memref<3x3x8x36xf32, #tpu.memory_space<vmem>>, vector<1x1x8x36xf32>
    %76 = vector.shape_cast %75 : vector<1x1x8x36xf32> to vector<8x36xf32>
    %c0_120 = arith.constant 0 : index
    %c0_121 = arith.constant 0 : index
    %c3 = arith.constant 3 : index
    %c0_122 = arith.constant 0 : index
    %c0_123 = arith.constant 0 : index
    %77 = vector.load %arg2[%c0_120, %c0_121, %c3, %c0_122, %c0_123] : memref<1x4x10x36x256xf32, #tpu.memory_space<vmem>>, vector<1x1x1x36x256xf32>
    %78 = vector.shape_cast %77 : vector<1x1x1x36x256xf32> to vector<36x256xf32>
    %cst_124 = arith.constant dense<0.000000e+00> : vector<8x256xf32>
    %79 = tpu.matmul %76, %78, %cst_124 {dimension_numbers = #tpu.dot_dimension_numbers<[1], [0], [0], [1], [0, 0, 1, 1], [], []>} : vector<8x36xf32>, vector<36x256xf32>, vector<8x256xf32> -> vector<8x256xf32>
    %80 = arith.addf %74, %79 : vector<8x256xf32>
    %c1_125 = arith.constant 1 : index
    %c0_126 = arith.constant 0 : index
    %c0_127 = arith.constant 0 : index
    %c0_128 = arith.constant 0 : index
    %81 = vector.load %arg3[%c1_125, %c0_126, %c0_127, %c0_128] : memref<3x3x8x36xf32, #tpu.memory_space<vmem>>, vector<1x1x8x36xf32>
    %82 = vector.shape_cast %81 : vector<1x1x8x36xf32> to vector<8x36xf32>
    %c0_129 = arith.constant 0 : index
    %c1_130 = arith.constant 1 : index
    %c1_131 = arith.constant 1 : index
    %c0_132 = arith.constant 0 : index
    %c0_133 = arith.constant 0 : index
    %83 = vector.load %arg2[%c0_129, %c1_130, %c1_131, %c0_132, %c0_133] : memref<1x4x10x36x256xf32, #tpu.memory_space<vmem>>, vector<1x1x1x36x256xf32>
    %84 = vector.shape_cast %83 : vector<1x1x1x36x256xf32> to vector<36x256xf32>
    %cst_134 = arith.constant dense<0.000000e+00> : vector<8x256xf32>
    %85 = tpu.matmul %82, %84, %cst_134 {dimension_numbers = #tpu.dot_dimension_numbers<[1], [0], [0], [1], [0, 0, 1, 1], [], []>} : vector<8x36xf32>, vector<36x256xf32>, vector<8x256xf32> -> vector<8x256xf32>
    %86 = arith.addf %80, %85 : vector<8x256xf32>
    %c1_135 = arith.constant 1 : index
    %c1_136 = arith.constant 1 : index
    %c0_137 = arith.constant 0 : index
    %c0_138 = arith.constant 0 : index
    %87 = vector.load %arg3[%c1_135, %c1_136, %c0_137, %c0_138] : memref<3x3x8x36xf32, #tpu.memory_space<vmem>>, vector<1x1x8x36xf32>
    %88 = vector.shape_cast %87 : vector<1x1x8x36xf32> to vector<8x36xf32>
    %c0_139 = arith.constant 0 : index
    %c1_140 = arith.constant 1 : index
    %c2_141 = arith.constant 2 : index
    %c0_142 = arith.constant 0 : index
    %c0_143 = arith.constant 0 : index
    %89 = vector.load %arg2[%c0_139, %c1_140, %c2_141, %c0_142, %c0_143] : memref<1x4x10x36x256xf32, #tpu.memory_space<vmem>>, vector<1x1x1x36x256xf32>
    %90 = vector.shape_cast %89 : vector<1x1x1x36x256xf32> to vector<36x256xf32>
    %cst_144 = arith.constant dense<0.000000e+00> : vector<8x256xf32>
    %91 = tpu.matmul %88, %90, %cst_144 {dimension_numbers = #tpu.dot_dimension_numbers<[1], [0], [0], [1], [0, 0, 1, 1], [], []>} : vector<8x36xf32>, vector<36x256xf32>, vector<8x256xf32> -> vector<8x256xf32>
    %92 = arith.addf %86, %91 : vector<8x256xf32>
    %c1_145 = arith.constant 1 : index
    %c2_146 = arith.constant 2 : index
    %c0_147 = arith.constant 0 : index
    %c0_148 = arith.constant 0 : index
    %93 = vector.load %arg3[%c1_145, %c2_146, %c0_147, %c0_148] : memref<3x3x8x36xf32, #tpu.memory_space<vmem>>, vector<1x1x8x36xf32>
    %94 = vector.shape_cast %93 : vector<1x1x8x36xf32> to vector<8x36xf32>
    %c0_149 = arith.constant 0 : index
    %c1_150 = arith.constant 1 : index
    %c3_151 = arith.constant 3 : index
    %c0_152 = arith.constant 0 : index
    %c0_153 = arith.constant 0 : index
    %95 = vector.load %arg2[%c0_149, %c1_150, %c3_151, %c0_152, %c0_153] : memref<1x4x10x36x256xf32, #tpu.memory_space<vmem>>, vector<1x1x1x36x256xf32>
    %96 = vector.shape_cast %95 : vector<1x1x1x36x256xf32> to vector<36x256xf32>
    %cst_154 = arith.constant dense<0.000000e+00> : vector<8x256xf32>
    %97 = tpu.matmul %94, %96, %cst_154 {dimension_numbers = #tpu.dot_dimension_numbers<[1], [0], [0], [1], [0, 0, 1, 1], [], []>} : vector<8x36xf32>, vector<36x256xf32>, vector<8x256xf32> -> vector<8x256xf32>
    %98 = arith.addf %92, %97 : vector<8x256xf32>
    %c2_155 = arith.constant 2 : index
    %c0_156 = arith.constant 0 : index
    %c0_157 = arith.constant 0 : index
    %c0_158 = arith.constant 0 : index
    %99 = vector.load %arg3[%c2_155, %c0_156, %c0_157, %c0_158] : memref<3x3x8x36xf32, #tpu.memory_space<vmem>>, vector<1x1x8x36xf32>
    %100 = vector.shape_cast %99 : vector<1x1x8x36xf32> to vector<8x36xf32>
    %c0_159 = arith.constant 0 : index
    %c2_160 = arith.constant 2 : index
    %c1_161 = arith.constant 1 : index
    %c0_162 = arith.constant 0 : index
    %c0_163 = arith.constant 0 : index
    %101 = vector.load %arg2[%c0_159, %c2_160, %c1_161, %c0_162, %c0_163] : memref<1x4x10x36x256xf32, #tpu.memory_space<vmem>>, vector<1x1x1x36x256xf32>
    %102 = vector.shape_cast %101 : vector<1x1x1x36x256xf32> to vector<36x256xf32>
    %cst_164 = arith.constant dense<0.000000e+00> : vector<8x256xf32>
    %103 = tpu.matmul %100, %102, %cst_164 {dimension_numbers = #tpu.dot_dimension_numbers<[1], [0], [0], [1], [0, 0, 1, 1], [], []>} : vector<8x36xf32>, vector<36x256xf32>, vector<8x256xf32> -> vector<8x256xf32>
    %104 = arith.addf %98, %103 : vector<8x256xf32>
    %c2_165 = arith.constant 2 : index
    %c1_166 = arith.constant 1 : index
    %c0_167 = arith.constant 0 : index
    %c0_168 = arith.constant 0 : index
    %105 = vector.load %arg3[%c2_165, %c1_166, %c0_167, %c0_168] : memref<3x3x8x36xf32, #tpu.memory_space<vmem>>, vector<1x1x8x36xf32>
    %106 = vector.shape_cast %105 : vector<1x1x8x36xf32> to vector<8x36xf32>
    %c0_169 = arith.constant 0 : index
    %c2_170 = arith.constant 2 : index
    %c2_171 = arith.constant 2 : index
    %c0_172 = arith.constant 0 : index
    %c0_173 = arith.constant 0 : index
    %107 = vector.load %arg2[%c0_169, %c2_170, %c2_171, %c0_172, %c0_173] : memref<1x4x10x36x256xf32, #tpu.memory_space<vmem>>, vector<1x1x1x36x256xf32>
    %108 = vector.shape_cast %107 : vector<1x1x1x36x256xf32> to vector<36x256xf32>
    %cst_174 = arith.constant dense<0.000000e+00> : vector<8x256xf32>
    %109 = tpu.matmul %106, %108, %cst_174 {dimension_numbers = #tpu.dot_dimension_numbers<[1], [0], [0], [1], [0, 0, 1, 1], [], []>} : vector<8x36xf32>, vector<36x256xf32>, vector<8x256xf32> -> vector<8x256xf32>
    %110 = arith.addf %104, %109 : vector<8x256xf32>
    %c2_175 = arith.constant 2 : index
    %c2_176 = arith.constant 2 : index
    %c0_177 = arith.constant 0 : index
    %c0_178 = arith.constant 0 : index
    %111 = vector.load %arg3[%c2_175, %c2_176, %c0_177, %c0_178] : memref<3x3x8x36xf32, #tpu.memory_space<vmem>>, vector<1x1x8x36xf32>
    %112 = vector.shape_cast %111 : vector<1x1x8x36xf32> to vector<8x36xf32>
    %c0_179 = arith.constant 0 : index
    %c2_180 = arith.constant 2 : index
    %c3_181 = arith.constant 3 : index
    %c0_182 = arith.constant 0 : index
    %c0_183 = arith.constant 0 : index
    %113 = vector.load %arg2[%c0_179, %c2_180, %c3_181, %c0_182, %c0_183] : memref<1x4x10x36x256xf32, #tpu.memory_space<vmem>>, vector<1x1x1x36x256xf32>
    %114 = vector.shape_cast %113 : vector<1x1x1x36x256xf32> to vector<36x256xf32>
    %cst_184 = arith.constant dense<0.000000e+00> : vector<8x256xf32>
    %115 = tpu.matmul %112, %114, %cst_184 {dimension_numbers = #tpu.dot_dimension_numbers<[1], [0], [0], [1], [0, 0, 1, 1], [], []>} : vector<8x36xf32>, vector<36x256xf32>, vector<8x256xf32> -> vector<8x256xf32>
    %116 = arith.addf %110, %115 : vector<8x256xf32>
    %117 = vector.broadcast %1 : vector<8x1xf32> to vector<8x256xf32>
    %118 = arith.addf %116, %117 : vector<8x256xf32>
    %c0_185 = arith.constant 0 : index
    %c0_186 = arith.constant 0 : index
    %c1_187 = arith.constant 1 : index
    %c0_188 = arith.constant 0 : index
    %c0_189 = arith.constant 0 : index
    %119 = vector.load %arg5[%c0_185, %c0_186, %c1_187, %c0_188, %c0_189] : memref<1x2x8x8x256xf32, #tpu.memory_space<vmem>>, vector<1x1x1x8x256xf32>
    %120 = vector.shape_cast %119 : vector<1x1x1x8x256xf32> to vector<8x256xf32>
    %121 = vector.shape_cast %118 : vector<8x256xf32> to vector<1x1x1x8x256xf32>
    tpu.vector_store %arg5[%c0_185, %c0_186, %c1_187, %c0_188, %c0_189], %121 {strides = array<i32>} : memref<1x2x8x8x256xf32, #tpu.memory_space<vmem>>, vector<1x1x1x8x256xf32>,
    %cst_190 = arith.constant 0.000000e+00 : f32
    %122 = vector.broadcast %cst_190 : f32 to vector<8x256xf32>
    %c0_191 = arith.constant 0 : index
    %c0_192 = arith.constant 0 : index
    %c0_193 = arith.constant 0 : index
    %c0_194 = arith.constant 0 : index
    %123 = vector.load %arg3[%c0_191, %c0_192, %c0_193, %c0_194] : memref<3x3x8x36xf32, #tpu.memory_space<vmem>>, vector<1x1x8x36xf32>
    %124 = vector.shape_cast %123 : vector<1x1x8x36xf32> to vector<8x36xf32>
    %c0_195 = arith.constant 0 : index
    %c0_196 = arith.constant 0 : index
    %c2_197 = arith.constant 2 : index
    %c0_198 = arith.constant 0 : index
    %c0_199 = arith.constant 0 : index
    %125 = vector.load %arg2[%c0_195, %c0_196, %c2_197, %c0_198, %c0_199] : memref<1x4x10x36x256xf32, #tpu.memory_space<vmem>>, vector<1x1x1x36x256xf32>
    %126 = vector.shape_cast %125 : vector<1x1x1x36x256xf32> to vector<36x256xf32>
    %cst_200 = arith.constant dense<0.000000e+00> : vector<8x256xf32>
    %127 = tpu.matmul %124, %126, %cst_200 {dimension_numbers = #tpu.dot_dimension_numbers<[1], [0], [0], [1], [0, 0, 1, 1], [], []>} : vector<8x36xf32>, vector<36x256xf32>, vector<8x256xf32> -> vector<8x256xf32>
    %128 = arith.addf %122, %127 : vector<8x256xf32>
    %c0_201 = arith.constant 0 : index
    %c1_202 = arith.constant 1 : index
    %c0_203 = arith.constant 0 : index
    %c0_204 = arith.constant 0 : index
    %129 = vector.load %arg3[%c0_201, %c1_202, %c0_203, %c0_204] : memref<3x3x8x36xf32, #tpu.memory_space<vmem>>, vector<1x1x8x36xf32>
    %130 = vector.shape_cast %129 : vector<1x1x8x36xf32> to vector<8x36xf32>
    %c0_205 = arith.constant 0 : index
    %c0_206 = arith.constant 0 : index
    %c3_207 = arith.constant 3 : index
    %c0_208 = arith.constant 0 : index
    %c0_209 = arith.constant 0 : index
    %131 = vector.load %arg2[%c0_205, %c0_206, %c3_207, %c0_208, %c0_209] : memref<1x4x10x36x256xf32, #tpu.memory_space<vmem>>, vector<1x1x1x36x256xf32>
    %132 = vector.shape_cast %131 : vector<1x1x1x36x256xf32> to vector<36x256xf32>
    %cst_210 = arith.constant dense<0.000000e+00> : vector<8x256xf32>
    %133 = tpu.matmul %130, %132, %cst_210 {dimension_numbers = #tpu.dot_dimension_numbers<[1], [0], [0], [1], [0, 0, 1, 1], [], []>} : vector<8x36xf32>, vector<36x256xf32>, vector<8x256xf32> -> vector<8x256xf32>
    %134 = arith.addf %128, %133 : vector<8x256xf32>
    %c0_211 = arith.constant 0 : index
    %c2_212 = arith.constant 2 : index
    %c0_213 = arith.constant 0 : index
    %c0_214 = arith.constant 0 : index
    %135 = vector.load %arg3[%c0_211, %c2_212, %c0_213, %c0_214] : memref<3x3x8x36xf32, #tpu.memory_space<vmem>>, vector<1x1x8x36xf32>
    %136 = vector.shape_cast %135 : vector<1x1x8x36xf32> to vector<8x36xf32>
    %c0_215 = arith.constant 0 : index
    %c0_216 = arith.constant 0 : index
    %c4 = arith.constant 4 : index
    %c0_217 = arith.constant 0 : index
    %c0_218 = arith.constant 0 : index
    %137 = vector.load %arg2[%c0_215, %c0_216, %c4, %c0_217, %c0_218] : memref<1x4x10x36x256xf32, #tpu.memory_space<vmem>>, vector<1x1x1x36x256xf32>
    %138 = vector.shape_cast %137 : vector<1x1x1x36x256xf32> to vector<36x256xf32>
    %cst_219 = arith.constant dense<0.000000e+00> : vector<8x256xf32>
    %139 = tpu.matmul %136, %138, %cst_219 {dimension_numbers = #tpu.dot_dimension_numbers<[1], [0], [0], [1], [0, 0, 1, 1], [], []>} : vector<8x36xf32>, vector<36x256xf32>, vector<8x256xf32> -> vector<8x256xf32>
    %140 = arith.addf %134, %139 : vector<8x256xf32>
    %c1_220 = arith.constant 1 : index
    %c0_221 = arith.constant 0 : index
    %c0_222 = arith.constant 0 : index
    %c0_223 = arith.constant 0 : index
    %141 = vector.load %arg3[%c1_220, %c0_221, %c0_222, %c0_223] : memref<3x3x8x36xf32, #tpu.memory_space<vmem>>, vector<1x1x8x36xf32>
    %142 = vector.shape_cast %141 : vector<1x1x8x36xf32> to vector<8x36xf32>
    %c0_224 = arith.constant 0 : index
    %c1_225 = arith.constant 1 : index
    %c2_226 = arith.constant 2 : index
    %c0_227 = arith.constant 0 : index
    %c0_228 = arith.constant 0 : index
    %143 = vector.load %arg2[%c0_224, %c1_225, %c2_226, %c0_227, %c0_228] : memref<1x4x10x36x256xf32, #tpu.memory_space<vmem>>, vector<1x1x1x36x256xf32>
    %144 = vector.shape_cast %143 : vector<1x1x1x36x256xf32> to vector<36x256xf32>
    %cst_229 = arith.constant dense<0.000000e+00> : vector<8x256xf32>
    %145 = tpu.matmul %142, %144, %cst_229 {dimension_numbers = #tpu.dot_dimension_numbers<[1], [0], [0], [1], [0, 0, 1, 1], [], []>} : vector<8x36xf32>, vector<36x256xf32>, vector<8x256xf32> -> vector<8x256xf32>
    %146 = arith.addf %140, %145 : vector<8x256xf32>
    %c1_230 = arith.constant 1 : index
    %c1_231 = arith.constant 1 : index
    %c0_232 = arith.constant 0 : index
    %c0_233 = arith.constant 0 : index
    %147 = vector.load %arg3[%c1_230, %c1_231, %c0_232, %c0_233] : memref<3x3x8x36xf32, #tpu.memory_space<vmem>>, vector<1x1x8x36xf32>
    %148 = vector.shape_cast %147 : vector<1x1x8x36xf32> to vector<8x36xf32>
    %c0_234 = arith.constant 0 : index
    %c1_235 = arith.constant 1 : index
    %c3_236 = arith.constant 3 : index
    %c0_237 = arith.constant 0 : index
    %c0_238 = arith.constant 0 : index
    %149 = vector.load %arg2[%c0_234, %c1_235, %c3_236, %c0_237, %c0_238] : memref<1x4x10x36x256xf32, #tpu.memory_space<vmem>>, vector<1x1x1x36x256xf32>
    %150 = vector.shape_cast %149 : vector<1x1x1x36x256xf32> to vector<36x256xf32>
    %cst_239 = arith.constant dense<0.000000e+00> : vector<8x256xf32>
    %151 = tpu.matmul %148, %150, %cst_239 {dimension_numbers = #tpu.dot_dimension_numbers<[1], [0], [0], [1], [0, 0, 1, 1], [], []>} : vector<8x36xf32>, vector<36x256xf32>, vector<8x256xf32> -> vector<8x256xf32>
    %152 = arith.addf %146, %151 : vector<8x256xf32>
    %c1_240 = arith.constant 1 : index
    %c2_241 = arith.constant 2 : index
    %c0_242 = arith.constant 0 : index
    %c0_243 = arith.constant 0 : index
    %153 = vector.load %arg3[%c1_240, %c2_241, %c0_242, %c0_243] : memref<3x3x8x36xf32, #tpu.memory_space<vmem>>, vector<1x1x8x36xf32>
    %154 = vector.shape_cast %153 : vector<1x1x8x36xf32> to vector<8x36xf32>
    %c0_244 = arith.constant 0 : index
    %c1_245 = arith.constant 1 : index
    %c4_246 = arith.constant 4 : index
    %c0_247 = arith.constant 0 : index
    %c0_248 = arith.constant 0 : index
    %155 = vector.load %arg2[%c0_244, %c1_245, %c4_246, %c0_247, %c0_248] : memref<1x4x10x36x256xf32, #tpu.memory_space<vmem>>, vector<1x1x1x36x256xf32>
    %156 = vector.shape_cast %155 : vector<1x1x1x36x256xf32> to vector<36x256xf32>
    %cst_249 = arith.constant dense<0.000000e+00> : vector<8x256xf32>
    %157 = tpu.matmul %154, %156, %cst_249 {dimension_numbers = #tpu.dot_dimension_numbers<[1], [0], [0], [1], [0, 0, 1, 1], [], []>} : vector<8x36xf32>, vector<36x256xf32>, vector<8x256xf32> -> vector<8x256xf32>
    %158 = arith.addf %152, %157 : vector<8x256xf32>
    %c2_250 = arith.constant 2 : index
    %c0_251 = arith.constant 0 : index
    %c0_252 = arith.constant 0 : index
    %c0_253 = arith.constant 0 : index
    %159 = vector.load %arg3[%c2_250, %c0_251, %c0_252, %c0_253] : memref<3x3x8x36xf32, #tpu.memory_space<vmem>>, vector<1x1x8x36xf32>
    %160 = vector.shape_cast %159 : vector<1x1x8x36xf32> to vector<8x36xf32>
    %c0_254 = arith.constant 0 : index
    %c2_255 = arith.constant 2 : index
    %c2_256 = arith.constant 2 : index
    %c0_257 = arith.constant 0 : index
    %c0_258 = arith.constant 0 : index
    %161 = vector.load %arg2[%c0_254, %c2_255, %c2_256, %c0_257, %c0_258] : memref<1x4x10x36x256xf32, #tpu.memory_space<vmem>>, vector<1x1x1x36x256xf32>
    %162 = vector.shape_cast %161 : vector<1x1x1x36x256xf32> to vector<36x256xf32>
    %cst_259 = arith.constant dense<0.000000e+00> : vector<8x256xf32>
    %163 = tpu.matmul %160, %162, %cst_259 {dimension_numbers = #tpu.dot_dimension_numbers<[1], [0], [0], [1], [0, 0, 1, 1], [], []>} : vector<8x36xf32>, vector<36x256xf32>, vector<8x256xf32> -> vector<8x256xf32>
    %164 = arith.addf %158, %163 : vector<8x256xf32>
    %c2_260 = arith.constant 2 : index
    %c1_261 = arith.constant 1 : index
    %c0_262 = arith.constant 0 : index
    %c0_263 = arith.constant 0 : index
    %165 = vector.load %arg3[%c2_260, %c1_261, %c0_262, %c0_263] : memref<3x3x8x36xf32, #tpu.memory_space<vmem>>, vector<1x1x8x36xf32>
    %166 = vector.shape_cast %165 : vector<1x1x8x36xf32> to vector<8x36xf32>
    %c0_264 = arith.constant 0 : index
    %c2_265 = arith.constant 2 : index
    %c3_266 = arith.constant 3 : index
    %c0_267 = arith.constant 0 : index
    %c0_268 = arith.constant 0 : index
    %167 = vector.load %arg2[%c0_264, %c2_265, %c3_266, %c0_267, %c0_268] : memref<1x4x10x36x256xf32, #tpu.memory_space<vmem>>, vector<1x1x1x36x256xf32>
    %168 = vector.shape_cast %167 : vector<1x1x1x36x256xf32> to vector<36x256xf32>
    %cst_269 = arith.constant dense<0.000000e+00> : vector<8x256xf32>
    %169 = tpu.matmul %166, %168, %cst_269 {dimension_numbers = #tpu.dot_dimension_numbers<[1], [0], [0], [1], [0, 0, 1, 1], [], []>} : vector<8x36xf32>, vector<36x256xf32>, vector<8x256xf32> -> vector<8x256xf32>
    %170 = arith.addf %164, %169 : vector<8x256xf32>
    %c2_270 = arith.constant 2 : index
    %c2_271 = arith.constant 2 : index
    %c0_272 = arith.constant 0 : index
    %c0_273 = arith.constant 0 : index
    %171 = vector.load %arg3[%c2_270, %c2_271, %c0_272, %c0_273] : memref<3x3x8x36xf32, #tpu.memory_space<vmem>>, vector<1x1x8x36xf32>
    %172 = vector.shape_cast %171 : vector<1x1x8x36xf32> to vector<8x36xf32>
    %c0_274 = arith.constant 0 : index
    %c2_275 = arith.constant 2 : index
    %c4_276 = arith.constant 4 : index
    %c0_277 = arith.constant 0 : index
    %c0_278 = arith.constant 0 : index
    %173 = vector.load %arg2[%c0_274, %c2_275, %c4_276, %c0_277, %c0_278] : memref<1x4x10x36x256xf32, #tpu.memory_space<vmem>>, vector<1x1x1x36x256xf32>
    %174 = vector.shape_cast %173 : vector<1x1x1x36x256xf32> to vector<36x256xf32>
    %cst_279 = arith.constant dense<0.000000e+00> : vector<8x256xf32>
    %175 = tpu.matmul %172, %174, %cst_279 {dimension_numbers = #tpu.dot_dimension_numbers<[1], [0], [0], [1], [0, 0, 1, 1], [], []>} : vector<8x36xf32>, vector<36x256xf32>, vector<8x256xf32> -> vector<8x256xf32>
    %176 = arith.addf %170, %175 : vector<8x256xf32>
    %177 = vector.broadcast %1 : vector<8x1xf32> to vector<8x256xf32>
    %178 = arith.addf %176, %177 : vector<8x256xf32>
    %c0_280 = arith.constant 0 : index
    %c0_281 = arith.constant 0 : index
    %c2_282 = arith.constant 2 : index
    %c0_283 = arith.constant 0 : index
    %c0_284 = arith.constant 0 : index
    %179 = vector.load %arg5[%c0_280, %c0_281, %c2_282, %c0_283, %c0_284] : memref<1x2x8x8x256xf32, #tpu.memory_space<vmem>>, vector<1x1x1x8x256xf32>
    %180 = vector.shape_cast %179 : vector<1x1x1x8x256xf32> to vector<8x256xf32>
    %181 = vector.shape_cast %178 : vector<8x256xf32> to vector<1x1x1x8x256xf32>
    tpu.vector_store %arg5[%c0_280, %c0_281, %c2_282, %c0_283, %c0_284], %181 {strides = array<i32>} : memref<1x2x8x8x256xf32, #tpu.memory_space<vmem>>, vector<1x1x1x8x256xf32>,
    %cst_285 = arith.constant 0.000000e+00 : f32
    %182 = vector.broadcast %cst_285 : f32 to vector<8x256xf32>
    %c0_286 = arith.constant 0 : index
    %c0_287 = arith.constant 0 : index
    %c0_288 = arith.constant 0 : index
    %c0_289 = arith.constant 0 : index
    %183 = vector.load %arg3[%c0_286, %c0_287, %c0_288, %c0_289] : memref<3x3x8x36xf32, #tpu.memory_space<vmem>>, vector<1x1x8x36xf32>
    %184 = vector.shape_cast %183 : vector<1x1x8x36xf32> to vector<8x36xf32>
    %c0_290 = arith.constant 0 : index
    %c0_291 = arith.constant 0 : index
    %c3_292 = arith.constant 3 : index
    %c0_293 = arith.constant 0 : index
    %c0_294 = arith.constant 0 : index
    %185 = vector.load %arg2[%c0_290, %c0_291, %c3_292, %c0_293, %c0_294] : memref<1x4x10x36x256xf32, #tpu.memory_space<vmem>>, vector<1x1x1x36x256xf32>
    %186 = vector.shape_cast %185 : vector<1x1x1x36x256xf32> to vector<36x256xf32>
    %cst_295 = arith.constant dense<0.000000e+00> : vector<8x256xf32>
    %187 = tpu.matmul %184, %186, %cst_295 {dimension_numbers = #tpu.dot_dimension_numbers<[1], [0], [0], [1], [0, 0, 1, 1], [], []>} : vector<8x36xf32>, vector<36x256xf32>, vector<8x256xf32> -> vector<8x256xf32>
    %188 = arith.addf %182, %187 : vector<8x256xf32>
    %c0_296 = arith.constant 0 : index
    %c1_297 = arith.constant 1 : index
    %c0_298 = arith.constant 0 : index
    %c0_299 = arith.constant 0 : index
    %189 = vector.load %arg3[%c0_296, %c1_297, %c0_298, %c0_299] : memref<3x3x8x36xf32, #tpu.memory_space<vmem>>, vector<1x1x8x36xf32>
    %190 = vector.shape_cast %189 : vector<1x1x8x36xf32> to vector<8x36xf32>
    %c0_300 = arith.constant 0 : index
    %c0_301 = arith.constant 0 : index
    %c4_302 = arith.constant 4 : index
    %c0_303 = arith.constant 0 : index
    %c0_304 = arith.constant 0 : index
    %191 = vector.load %arg2[%c0_300, %c0_301, %c4_302, %c0_303, %c0_304] : memref<1x4x10x36x256xf32, #tpu.memory_space<vmem>>, vector<1x1x1x36x256xf32>
    %192 = vector.shape_cast %191 : vector<1x1x1x36x256xf32> to vector<36x256xf32>
    %cst_305 = arith.constant dense<0.000000e+00> : vector<8x256xf32>
    %193 = tpu.matmul %190, %192, %cst_305 {dimension_numbers = #tpu.dot_dimension_numbers<[1], [0], [0], [1], [0, 0, 1, 1], [], []>} : vector<8x36xf32>, vector<36x256xf32>, vector<8x256xf32> -> vector<8x256xf32>
    %194 = arith.addf %188, %193 : vector<8x256xf32>
    %c0_306 = arith.constant 0 : index
    %c2_307 = arith.constant 2 : index
    %c0_308 = arith.constant 0 : index
    %c0_309 = arith.constant 0 : index
    %195 = vector.load %arg3[%c0_306, %c2_307, %c0_308, %c0_309] : memref<3x3x8x36xf32, #tpu.memory_space<vmem>>, vector<1x1x8x36xf32>
    %196 = vector.shape_cast %195 : vector<1x1x8x36xf32> to vector<8x36xf32>
    %c0_310 = arith.constant 0 : index
    %c0_311 = arith.constant 0 : index
    %c5 = arith.constant 5 : index
    %c0_312 = arith.constant 0 : index
    %c0_313 = arith.constant 0 : index
    %197 = vector.load %arg2[%c0_310, %c0_311, %c5, %c0_312, %c0_313] : memref<1x4x10x36x256xf32, #tpu.memory_space<vmem>>, vector<1x1x1x36x256xf32>
    %198 = vector.shape_cast %197 : vector<1x1x1x36x256xf32> to vector<36x256xf32>
    %cst_314 = arith.constant dense<0.000000e+00> : vector<8x256xf32>
    %199 = tpu.matmul %196, %198, %cst_314 {dimension_numbers = #tpu.dot_dimension_numbers<[1], [0], [0], [1], [0, 0, 1, 1], [], []>} : vector<8x36xf32>, vector<36x256xf32>, vector<8x256xf32> -> vector<8x256xf32>
    %200 = arith.addf %194, %199 : vector<8x256xf32>
    %c1_315 = arith.constant 1 : index
    %c0_316 = arith.constant 0 : index
    %c0_317 = arith.constant 0 : index
    %c0_318 = arith.constant 0 : index
    %201 = vector.load %arg3[%c1_315, %c0_316, %c0_317, %c0_318] : memref<3x3x8x36xf32, #tpu.memory_space<vmem>>, vector<1x1x8x36xf32>
    %202 = vector.shape_cast %201 : vector<1x1x8x36xf32> to vector<8x36xf32>
    %c0_319 = arith.constant 0 : index
    %c1_320 = arith.constant 1 : index
    %c3_321 = arith.constant 3 : index
    %c0_322 = arith.constant 0 : index
    %c0_323 = arith.constant 0 : index
    %203 = vector.load %arg2[%c0_319, %c1_320, %c3_321, %c0_322, %c0_323] : memref<1x4x10x36x256xf32, #tpu.memory_space<vmem>>, vector<1x1x1x36x256xf32>
    %204 = vector.shape_cast %203 : vector<1x1x1x36x256xf32> to vector<36x256xf32>
    %cst_324 = arith.constant dense<0.000000e+00> : vector<8x256xf32>
    %205 = tpu.matmul %202, %204, %cst_324 {dimension_numbers = #tpu.dot_dimension_numbers<[1], [0], [0], [1], [0, 0, 1, 1], [], []>} : vector<8x36xf32>, vector<36x256xf32>, vector<8x256xf32> -> vector<8x256xf32>
    %206 = arith.addf %200, %205 : vector<8x256xf32>
    %c1_325 = arith.constant 1 : index
    %c1_326 = arith.constant 1 : index
    %c0_327 = arith.constant 0 : index
    %c0_328 = arith.constant 0 : index
    %207 = vector.load %arg3[%c1_325, %c1_326, %c0_327, %c0_328] : memref<3x3x8x36xf32, #tpu.memory_space<vmem>>, vector<1x1x8x36xf32>
    %208 = vector.shape_cast %207 : vector<1x1x8x36xf32> to vector<8x36xf32>
    %c0_329 = arith.constant 0 : index
    %c1_330 = arith.constant 1 : index
    %c4_331 = arith.constant 4 : index
    %c0_332 = arith.constant 0 : index
    %c0_333 = arith.constant 0 : index
    %209 = vector.load %arg2[%c0_329, %c1_330, %c4_331, %c0_332, %c0_333] : memref<1x4x10x36x256xf32, #tpu.memory_space<vmem>>, vector<1x1x1x36x256xf32>
    %210 = vector.shape_cast %209 : vector<1x1x1x36x256xf32> to vector<36x256xf32>
    %cst_334 = arith.constant dense<0.000000e+00> : vector<8x256xf32>
    %211 = tpu.matmul %208, %210, %cst_334 {dimension_numbers = #tpu.dot_dimension_numbers<[1], [0], [0], [1], [0, 0, 1, 1], [], []>} : vector<8x36xf32>, vector<36x256xf32>, vector<8x256xf32> -> vector<8x256xf32>
    %212 = arith.addf %206, %211 : vector<8x256xf32>
    %c1_335 = arith.constant 1 : index
    %c2_336 = arith.constant 2 : index
    %c0_337 = arith.constant 0 : index
    %c0_338 = arith.constant 0 : index
    %213 = vector.load %arg3[%c1_335, %c2_336, %c0_337, %c0_338] : memref<3x3x8x36xf32, #tpu.memory_space<vmem>>, vector<1x1x8x36xf32>
    %214 = vector.shape_cast %213 : vector<1x1x8x36xf32> to vector<8x36xf32>
    %c0_339 = arith.constant 0 : index
    %c1_340 = arith.constant 1 : index
    %c5_341 = arith.constant 5 : index
    %c0_342 = arith.constant 0 : index
    %c0_343 = arith.constant 0 : index
    %215 = vector.load %arg2[%c0_339, %c1_340, %c5_341, %c0_342, %c0_343] : memref<1x4x10x36x256xf32, #tpu.memory_space<vmem>>, vector<1x1x1x36x256xf32>
    %216 = vector.shape_cast %215 : vector<1x1x1x36x256xf32> to vector<36x256xf32>
    %cst_344 = arith.constant dense<0.000000e+00> : vector<8x256xf32>
    %217 = tpu.matmul %214, %216, %cst_344 {dimension_numbers = #tpu.dot_dimension_numbers<[1], [0], [0], [1], [0, 0, 1, 1], [], []>} : vector<8x36xf32>, vector<36x256xf32>, vector<8x256xf32> -> vector<8x256xf32>
    %218 = arith.addf %212, %217 : vector<8x256xf32>
    %c2_345 = arith.constant 2 : index
    %c0_346 = arith.constant 0 : index
    %c0_347 = arith.constant 0 : index
    %c0_348 = arith.constant 0 : index
    %219 = vector.load %arg3[%c2_345, %c0_346, %c0_347, %c0_348] : memref<3x3x8x36xf32, #tpu.memory_space<vmem>>, vector<1x1x8x36xf32>
    %220 = vector.shape_cast %219 : vector<1x1x8x36xf32> to vector<8x36xf32>
    %c0_349 = arith.constant 0 : index
    %c2_350 = arith.constant 2 : index
    %c3_351 = arith.constant 3 : index
    %c0_352 = arith.constant 0 : index
    %c0_353 = arith.constant 0 : index
    %221 = vector.load %arg2[%c0_349, %c2_350, %c3_351, %c0_352, %c0_353] : memref<1x4x10x36x256xf32, #tpu.memory_space<vmem>>, vector<1x1x1x36x256xf32>
    %222 = vector.shape_cast %221 : vector<1x1x1x36x256xf32> to vector<36x256xf32>
    %cst_354 = arith.constant dense<0.000000e+00> : vector<8x256xf32>
    %223 = tpu.matmul %220, %222, %cst_354 {dimension_numbers = #tpu.dot_dimension_numbers<[1], [0], [0], [1], [0, 0, 1, 1], [], []>} : vector<8x36xf32>, vector<36x256xf32>, vector<8x256xf32> -> vector<8x256xf32>
    %224 = arith.addf %218, %223 : vector<8x256xf32>
    %c2_355 = arith.constant 2 : index
    %c1_356 = arith.constant 1 : index
    %c0_357 = arith.constant 0 : index
    %c0_358 = arith.constant 0 : index
    %225 = vector.load %arg3[%c2_355, %c1_356, %c0_357, %c0_358] : memref<3x3x8x36xf32, #tpu.memory_space<vmem>>, vector<1x1x8x36xf32>
    %226 = vector.shape_cast %225 : vector<1x1x8x36xf32> to vector<8x36xf32>
    %c0_359 = arith.constant 0 : index
    %c2_360 = arith.constant 2 : index
    %c4_361 = arith.constant 4 : index
    %c0_362 = arith.constant 0 : index
    %c0_363 = arith.constant 0 : index
    %227 = vector.load %arg2[%c0_359, %c2_360, %c4_361, %c0_362, %c0_363] : memref<1x4x10x36x256xf32, #tpu.memory_space<vmem>>, vector<1x1x1x36x256xf32>
    %228 = vector.shape_cast %227 : vector<1x1x1x36x256xf32> to vector<36x256xf32>
    %cst_364 = arith.constant dense<0.000000e+00> : vector<8x256xf32>
    %229 = tpu.matmul %226, %228, %cst_364 {dimension_numbers = #tpu.dot_dimension_numbers<[1], [0], [0], [1], [0, 0, 1, 1], [], []>} : vector<8x36xf32>, vector<36x256xf32>, vector<8x256xf32> -> vector<8x256xf32>
    %230 = arith.addf %224, %229 : vector<8x256xf32>
    %c2_365 = arith.constant 2 : index
    %c2_366 = arith.constant 2 : index
    %c0_367 = arith.constant 0 : index
    %c0_368 = arith.constant 0 : index
    %231 = vector.load %arg3[%c2_365, %c2_366, %c0_367, %c0_368] : memref<3x3x8x36xf32, #tpu.memory_space<vmem>>, vector<1x1x8x36xf32>
    %232 = vector.shape_cast %231 : vector<1x1x8x36xf32> to vector<8x36xf32>
    %c0_369 = arith.constant 0 : index
    %c2_370 = arith.constant 2 : index
    %c5_371 = arith.constant 5 : index
    %c0_372 = arith.constant 0 : index
    %c0_373 = arith.constant 0 : index
    %233 = vector.load %arg2[%c0_369, %c2_370, %c5_371, %c0_372, %c0_373] : memref<1x4x10x36x256xf32, #tpu.memory_space<vmem>>, vector<1x1x1x36x256xf32>
    %234 = vector.shape_cast %233 : vector<1x1x1x36x256xf32> to vector<36x256xf32>
    %cst_374 = arith.constant dense<0.000000e+00> : vector<8x256xf32>
    %235 = tpu.matmul %232, %234, %cst_374 {dimension_numbers = #tpu.dot_dimension_numbers<[1], [0], [0], [1], [0, 0, 1, 1], [], []>} : vector<8x36xf32>, vector<36x256xf32>, vector<8x256xf32> -> vector<8x256xf32>
    %236 = arith.addf %230, %235 : vector<8x256xf32>
    %237 = vector.broadcast %1 : vector<8x1xf32> to vector<8x256xf32>
    %238 = arith.addf %236, %237 : vector<8x256xf32>
    %c0_375 = arith.constant 0 : index
    %c0_376 = arith.constant 0 : index
    %c3_377 = arith.constant 3 : index
    %c0_378 = arith.constant 0 : index
    %c0_379 = arith.constant 0 : index
    %239 = vector.load %arg5[%c0_375, %c0_376, %c3_377, %c0_378, %c0_379] : memref<1x2x8x8x256xf32, #tpu.memory_space<vmem>>, vector<1x1x1x8x256xf32>
    %240 = vector.shape_cast %239 : vector<1x1x1x8x256xf32> to vector<8x256xf32>
    %241 = vector.shape_cast %238 : vector<8x256xf32> to vector<1x1x1x8x256xf32>
    tpu.vector_store %arg5[%c0_375, %c0_376, %c3_377, %c0_378, %c0_379], %241 {strides = array<i32>} : memref<1x2x8x8x256xf32, #tpu.memory_space<vmem>>, vector<1x1x1x8x256xf32>,
    %cst_380 = arith.constant 0.000000e+00 : f32
    %242 = vector.broadcast %cst_380 : f32 to vector<8x256xf32>
    %c0_381 = arith.constant 0 : index
    %c0_382 = arith.constant 0 : index
    %c0_383 = arith.constant 0 : index
    %c0_384 = arith.constant 0 : index
    %243 = vector.load %arg3[%c0_381, %c0_382, %c0_383, %c0_384] : memref<3x3x8x36xf32, #tpu.memory_space<vmem>>, vector<1x1x8x36xf32>
    %244 = vector.shape_cast %243 : vector<1x1x8x36xf32> to vector<8x36xf32>
    %c0_385 = arith.constant 0 : index
    %c0_386 = arith.constant 0 : index
    %c4_387 = arith.constant 4 : index
    %c0_388 = arith.constant 0 : index
    %c0_389 = arith.constant 0 : index
    %245 = vector.load %arg2[%c0_385, %c0_386, %c4_387, %c0_388, %c0_389] : memref<1x4x10x36x256xf32, #tpu.memory_space<vmem>>, vector<1x1x1x36x256xf32>
    %246 = vector.shape_cast %245 : vector<1x1x1x36x256xf32> to vector<36x256xf32>
    %cst_390 = arith.constant dense<0.000000e+00> : vector<8x256xf32>
    %247 = tpu.matmul %244, %246, %cst_390 {dimension_numbers = #tpu.dot_dimension_numbers<[1], [0], [0], [1], [0, 0, 1, 1], [], []>} : vector<8x36xf32>, vector<36x256xf32>, vector<8x256xf32> -> vector<8x256xf32>
    %248 = arith.addf %242, %247 : vector<8x256xf32>
    %c0_391 = arith.constant 0 : index
    %c1_392 = arith.constant 1 : index
    %c0_393 = arith.constant 0 : index
    %c0_394 = arith.constant 0 : index
    %249 = vector.load %arg3[%c0_391, %c1_392, %c0_393, %c0_394] : memref<3x3x8x36xf32, #tpu.memory_space<vmem>>, vector<1x1x8x36xf32>
    %250 = vector.shape_cast %249 : vector<1x1x8x36xf32> to vector<8x36xf32>
    %c0_395 = arith.constant 0 : index
    %c0_396 = arith.constant 0 : index
    %c5_397 = arith.constant 5 : index
    %c0_398 = arith.constant 0 : index
    %c0_399 = arith.constant 0 : index
    %251 = vector.load %arg2[%c0_395, %c0_396, %c5_397, %c0_398, %c0_399] : memref<1x4x10x36x256xf32, #tpu.memory_space<vmem>>, vector<1x1x1x36x256xf32>
    %252 = vector.shape_cast %251 : vector<1x1x1x36x256xf32> to vector<36x256xf32>
    %cst_400 = arith.constant dense<0.000000e+00> : vector<8x256xf32>
    %253 = tpu.matmul %250, %252, %cst_400 {dimension_numbers = #tpu.dot_dimension_numbers<[1], [0], [0], [1], [0, 0, 1, 1], [], []>} : vector<8x36xf32>, vector<36x256xf32>, vector<8x256xf32> -> vector<8x256xf32>
    %254 = arith.addf %248, %253 : vector<8x256xf32>
    %c0_401 = arith.constant 0 : index
    %c2_402 = arith.constant 2 : index
    %c0_403 = arith.constant 0 : index
    %c0_404 = arith.constant 0 : index
    %255 = vector.load %arg3[%c0_401, %c2_402, %c0_403, %c0_404] : memref<3x3x8x36xf32, #tpu.memory_space<vmem>>, vector<1x1x8x36xf32>
    %256 = vector.shape_cast %255 : vector<1x1x8x36xf32> to vector<8x36xf32>
    %c0_405 = arith.constant 0 : index
    %c0_406 = arith.constant 0 : index
    %c6 = arith.constant 6 : index
    %c0_407 = arith.constant 0 : index
    %c0_408 = arith.constant 0 : index
    %257 = vector.load %arg2[%c0_405, %c0_406, %c6, %c0_407, %c0_408] : memref<1x4x10x36x256xf32, #tpu.memory_space<vmem>>, vector<1x1x1x36x256xf32>
    %258 = vector.shape_cast %257 : vector<1x1x1x36x256xf32> to vector<36x256xf32>
    %cst_409 = arith.constant dense<0.000000e+00> : vector<8x256xf32>
    %259 = tpu.matmul %256, %258, %cst_409 {dimension_numbers = #tpu.dot_dimension_numbers<[1], [0], [0], [1], [0, 0, 1, 1], [], []>} : vector<8x36xf32>, vector<36x256xf32>, vector<8x256xf32> -> vector<8x256xf32>
    %260 = arith.addf %254, %259 : vector<8x256xf32>
    %c1_410 = arith.constant 1 : index
    %c0_411 = arith.constant 0 : index
    %c0_412 = arith.constant 0 : index
    %c0_413 = arith.constant 0 : index
    %261 = vector.load %arg3[%c1_410, %c0_411, %c0_412, %c0_413] : memref<3x3x8x36xf32, #tpu.memory_space<vmem>>, vector<1x1x8x36xf32>
    %262 = vector.shape_cast %261 : vector<1x1x8x36xf32> to vector<8x36xf32>
    %c0_414 = arith.constant 0 : index
    %c1_415 = arith.constant 1 : index
    %c4_416 = arith.constant 4 : index
    %c0_417 = arith.constant 0 : index
    %c0_418 = arith.constant 0 : index
    %263 = vector.load %arg2[%c0_414, %c1_415, %c4_416, %c0_417, %c0_418] : memref<1x4x10x36x256xf32, #tpu.memory_space<vmem>>, vector<1x1x1x36x256xf32>
    %264 = vector.shape_cast %263 : vector<1x1x1x36x256xf32> to vector<36x256xf32>
    %cst_419 = arith.constant dense<0.000000e+00> : vector<8x256xf32>
    %265 = tpu.matmul %262, %264, %cst_419 {dimension_numbers = #tpu.dot_dimension_numbers<[1], [0], [0], [1], [0, 0, 1, 1], [], []>} : vector<8x36xf32>, vector<36x256xf32>, vector<8x256xf32> -> vector<8x256xf32>
    %266 = arith.addf %260, %265 : vector<8x256xf32>
    %c1_420 = arith.constant 1 : index
    %c1_421 = arith.constant 1 : index
    %c0_422 = arith.constant 0 : index
    %c0_423 = arith.constant 0 : index
    %267 = vector.load %arg3[%c1_420, %c1_421, %c0_422, %c0_423] : memref<3x3x8x36xf32, #tpu.memory_space<vmem>>, vector<1x1x8x36xf32>
    %268 = vector.shape_cast %267 : vector<1x1x8x36xf32> to vector<8x36xf32>
    %c0_424 = arith.constant 0 : index
    %c1_425 = arith.constant 1 : index
    %c5_426 = arith.constant 5 : index
    %c0_427 = arith.constant 0 : index
    %c0_428 = arith.constant 0 : index
    %269 = vector.load %arg2[%c0_424, %c1_425, %c5_426, %c0_427, %c0_428] : memref<1x4x10x36x256xf32, #tpu.memory_space<vmem>>, vector<1x1x1x36x256xf32>
    %270 = vector.shape_cast %269 : vector<1x1x1x36x256xf32> to vector<36x256xf32>
    %cst_429 = arith.constant dense<0.000000e+00> : vector<8x256xf32>
    %271 = tpu.matmul %268, %270, %cst_429 {dimension_numbers = #tpu.dot_dimension_numbers<[1], [0], [0], [1], [0, 0, 1, 1], [], []>} : vector<8x36xf32>, vector<36x256xf32>, vector<8x256xf32> -> vector<8x256xf32>
    %272 = arith.addf %266, %271 : vector<8x256xf32>
    %c1_430 = arith.constant 1 : index
    %c2_431 = arith.constant 2 : index
    %c0_432 = arith.constant 0 : index
    %c0_433 = arith.constant 0 : index
    %273 = vector.load %arg3[%c1_430, %c2_431, %c0_432, %c0_433] : memref<3x3x8x36xf32, #tpu.memory_space<vmem>>, vector<1x1x8x36xf32>
    %274 = vector.shape_cast %273 : vector<1x1x8x36xf32> to vector<8x36xf32>
    %c0_434 = arith.constant 0 : index
    %c1_435 = arith.constant 1 : index
    %c6_436 = arith.constant 6 : index
    %c0_437 = arith.constant 0 : index
    %c0_438 = arith.constant 0 : index
    %275 = vector.load %arg2[%c0_434, %c1_435, %c6_436, %c0_437, %c0_438] : memref<1x4x10x36x256xf32, #tpu.memory_space<vmem>>, vector<1x1x1x36x256xf32>
    %276 = vector.shape_cast %275 : vector<1x1x1x36x256xf32> to vector<36x256xf32>
    %cst_439 = arith.constant dense<0.000000e+00> : vector<8x256xf32>
    %277 = tpu.matmul %274, %276, %cst_439 {dimension_numbers = #tpu.dot_dimension_numbers<[1], [0], [0], [1], [0, 0, 1, 1], [], []>} : vector<8x36xf32>, vector<36x256xf32>, vector<8x256xf32> -> vector<8x256xf32>
    %278 = arith.addf %272, %277 : vector<8x256xf32>
    %c2_440 = arith.constant 2 : index
    %c0_441 = arith.constant 0 : index
    %c0_442 = arith.constant 0 : index
    %c0_443 = arith.constant 0 : index
    %279 = vector.load %arg3[%c2_440, %c0_441, %c0_442, %c0_443] : memref<3x3x8x36xf32, #tpu.memory_space<vmem>>, vector<1x1x8x36xf32>
    %280 = vector.shape_cast %279 : vector<1x1x8x36xf32> to vector<8x36xf32>
    %c0_444 = arith.constant 0 : index
    %c2_445 = arith.constant 2 : index
    %c4_446 = arith.constant 4 : index
    %c0_447 = arith.constant 0 : index
    %c0_448 = arith.constant 0 : index
    %281 = vector.load %arg2[%c0_444, %c2_445, %c4_446, %c0_447, %c0_448] : memref<1x4x10x36x256xf32, #tpu.memory_space<vmem>>, vector<1x1x1x36x256xf32>
    %282 = vector.shape_cast %281 : vector<1x1x1x36x256xf32> to vector<36x256xf32>
    %cst_449 = arith.constant dense<0.000000e+00> : vector<8x256xf32>
    %283 = tpu.matmul %280, %282, %cst_449 {dimension_numbers = #tpu.dot_dimension_numbers<[1], [0], [0], [1], [0, 0, 1, 1], [], []>} : vector<8x36xf32>, vector<36x256xf32>, vector<8x256xf32> -> vector<8x256xf32>
    %284 = arith.addf %278, %283 : vector<8x256xf32>
    %c2_450 = arith.constant 2 : index
    %c1_451 = arith.constant 1 : index
    %c0_452 = arith.constant 0 : index
    %c0_453 = arith.constant 0 : index
    %285 = vector.load %arg3[%c2_450, %c1_451, %c0_452, %c0_453] : memref<3x3x8x36xf32, #tpu.memory_space<vmem>>, vector<1x1x8x36xf32>
    %286 = vector.shape_cast %285 : vector<1x1x8x36xf32> to vector<8x36xf32>
    %c0_454 = arith.constant 0 : index
    %c2_455 = arith.constant 2 : index
    %c5_456 = arith.constant 5 : index
    %c0_457 = arith.constant 0 : index
    %c0_458 = arith.constant 0 : index
    %287 = vector.load %arg2[%c0_454, %c2_455, %c5_456, %c0_457, %c0_458] : memref<1x4x10x36x256xf32, #tpu.memory_space<vmem>>, vector<1x1x1x36x256xf32>
    %288 = vector.shape_cast %287 : vector<1x1x1x36x256xf32> to vector<36x256xf32>
    %cst_459 = arith.constant dense<0.000000e+00> : vector<8x256xf32>
    %289 = tpu.matmul %286, %288, %cst_459 {dimension_numbers = #tpu.dot_dimension_numbers<[1], [0], [0], [1], [0, 0, 1, 1], [], []>} : vector<8x36xf32>, vector<36x256xf32>, vector<8x256xf32> -> vector<8x256xf32>
    %290 = arith.addf %284, %289 : vector<8x256xf32>
    %c2_460 = arith.constant 2 : index
    %c2_461 = arith.constant 2 : index
    %c0_462 = arith.constant 0 : index
    %c0_463 = arith.constant 0 : index
    %291 = vector.load %arg3[%c2_460, %c2_461, %c0_462, %c0_463] : memref<3x3x8x36xf32, #tpu.memory_space<vmem>>, vector<1x1x8x36xf32>
    %292 = vector.shape_cast %291 : vector<1x1x8x36xf32> to vector<8x36xf32>
    %c0_464 = arith.constant 0 : index
    %c2_465 = arith.constant 2 : index
    %c6_466 = arith.constant 6 : index
    %c0_467 = arith.constant 0 : index
    %c0_468 = arith.constant 0 : index
    %293 = vector.load %arg2[%c0_464, %c2_465, %c6_466, %c0_467, %c0_468] : memref<1x4x10x36x256xf32, #tpu.memory_space<vmem>>, vector<1x1x1x36x256xf32>
    %294 = vector.shape_cast %293 : vector<1x1x1x36x256xf32> to vector<36x256xf32>
    %cst_469 = arith.constant dense<0.000000e+00> : vector<8x256xf32>
    %295 = tpu.matmul %292, %294, %cst_469 {dimension_numbers = #tpu.dot_dimension_numbers<[1], [0], [0], [1], [0, 0, 1, 1], [], []>} : vector<8x36xf32>, vector<36x256xf32>, vector<8x256xf32> -> vector<8x256xf32>
    %296 = arith.addf %290, %295 : vector<8x256xf32>
    %297 = vector.broadcast %1 : vector<8x1xf32> to vector<8x256xf32>
    %298 = arith.addf %296, %297 : vector<8x256xf32>
    %c0_470 = arith.constant 0 : index
    %c0_471 = arith.constant 0 : index
    %c4_472 = arith.constant 4 : index
    %c0_473 = arith.constant 0 : index
    %c0_474 = arith.constant 0 : index
    %299 = vector.load %arg5[%c0_470, %c0_471, %c4_472, %c0_473, %c0_474] : memref<1x2x8x8x256xf32, #tpu.memory_space<vmem>>, vector<1x1x1x8x256xf32>
    %300 = vector.shape_cast %299 : vector<1x1x1x8x256xf32> to vector<8x256xf32>
    %301 = vector.shape_cast %298 : vector<8x256xf32> to vector<1x1x1x8x256xf32>
    tpu.vector_store %arg5[%c0_470, %c0_471, %c4_472, %c0_473, %c0_474], %301 {strides = array<i32>} : memref<1x2x8x8x256xf32, #tpu.memory_space<vmem>>, vector<1x1x1x8x256xf32>,
    %cst_475 = arith.constant 0.000000e+00 : f32
    %302 = vector.broadcast %cst_475 : f32 to vector<8x256xf32>
    %c0_476 = arith.constant 0 : index
    %c0_477 = arith.constant 0 : index
    %c0_478 = arith.constant 0 : index
    %c0_479 = arith.constant 0 : index
    %303 = vector.load %arg3[%c0_476, %c0_477, %c0_478, %c0_479] : memref<3x3x8x36xf32, #tpu.memory_space<vmem>>, vector<1x1x8x36xf32>
    %304 = vector.shape_cast %303 : vector<1x1x8x36xf32> to vector<8x36xf32>
    %c0_480 = arith.constant 0 : index
    %c0_481 = arith.constant 0 : index
    %c5_482 = arith.constant 5 : index
    %c0_483 = arith.constant 0 : index
    %c0_484 = arith.constant 0 : index
    %305 = vector.load %arg2[%c0_480, %c0_481, %c5_482, %c0_483, %c0_484] : memref<1x4x10x36x256xf32, #tpu.memory_space<vmem>>, vector<1x1x1x36x256xf32>
    %306 = vector.shape_cast %305 : vector<1x1x1x36x256xf32> to vector<36x256xf32>
    %cst_485 = arith.constant dense<0.000000e+00> : vector<8x256xf32>
    %307 = tpu.matmul %304, %306, %cst_485 {dimension_numbers = #tpu.dot_dimension_numbers<[1], [0], [0], [1], [0, 0, 1, 1], [], []>} : vector<8x36xf32>, vector<36x256xf32>, vector<8x256xf32> -> vector<8x256xf32>
    %308 = arith.addf %302, %307 : vector<8x256xf32>
    %c0_486 = arith.constant 0 : index
    %c1_487 = arith.constant 1 : index
    %c0_488 = arith.constant 0 : index
    %c0_489 = arith.constant 0 : index
    %309 = vector.load %arg3[%c0_486, %c1_487, %c0_488, %c0_489] : memref<3x3x8x36xf32, #tpu.memory_space<vmem>>, vector<1x1x8x36xf32>
    %310 = vector.shape_cast %309 : vector<1x1x8x36xf32> to vector<8x36xf32>
    %c0_490 = arith.constant 0 : index
    %c0_491 = arith.constant 0 : index
    %c6_492 = arith.constant 6 : index
    %c0_493 = arith.constant 0 : index
    %c0_494 = arith.constant 0 : index
    %311 = vector.load %arg2[%c0_490, %c0_491, %c6_492, %c0_493, %c0_494] : memref<1x4x10x36x256xf32, #tpu.memory_space<vmem>>, vector<1x1x1x36x256xf32>
    %312 = vector.shape_cast %311 : vector<1x1x1x36x256xf32> to vector<36x256xf32>
    %cst_495 = arith.constant dense<0.000000e+00> : vector<8x256xf32>
    %313 = tpu.matmul %310, %312, %cst_495 {dimension_numbers = #tpu.dot_dimension_numbers<[1], [0], [0], [1], [0, 0, 1, 1], [], []>} : vector<8x36xf32>, vector<36x256xf32>, vector<8x256xf32> -> vector<8x256xf32>
    %314 = arith.addf %308, %313 : vector<8x256xf32>
    %c0_496 = arith.constant 0 : index
    %c2_497 = arith.constant 2 : index
    %c0_498 = arith.constant 0 : index
    %c0_499 = arith.constant 0 : index
    %315 = vector.load %arg3[%c0_496, %c2_497, %c0_498, %c0_499] : memref<3x3x8x36xf32, #tpu.memory_space<vmem>>, vector<1x1x8x36xf32>
    %316 = vector.shape_cast %315 : vector<1x1x8x36xf32> to vector<8x36xf32>
    %c0_500 = arith.constant 0 : index
    %c0_501 = arith.constant 0 : index
    %c7 = arith.constant 7 : index
    %c0_502 = arith.constant 0 : index
    %c0_503 = arith.constant 0 : index
    %317 = vector.load %arg2[%c0_500, %c0_501, %c7, %c0_502, %c0_503] : memref<1x4x10x36x256xf32, #tpu.memory_space<vmem>>, vector<1x1x1x36x256xf32>
    %318 = vector.shape_cast %317 : vector<1x1x1x36x256xf32> to vector<36x256xf32>
    %cst_504 = arith.constant dense<0.000000e+00> : vector<8x256xf32>
    %319 = tpu.matmul %316, %318, %cst_504 {dimension_numbers = #tpu.dot_dimension_numbers<[1], [0], [0], [1], [0, 0, 1, 1], [], []>} : vector<8x36xf32>, vector<36x256xf32>, vector<8x256xf32> -> vector<8x256xf32>
    %320 = arith.addf %314, %319 : vector<8x256xf32>
    %c1_505 = arith.constant 1 : index
    %c0_506 = arith.constant 0 : index
    %c0_507 = arith.constant 0 : index
    %c0_508 = arith.constant 0 : index
    %321 = vector.load %arg3[%c1_505, %c0_506, %c0_507, %c0_508] : memref<3x3x8x36xf32, #tpu.memory_space<vmem>>, vector<1x1x8x36xf32>
    %322 = vector.shape_cast %321 : vector<1x1x8x36xf32> to vector<8x36xf32>
    %c0_509 = arith.constant 0 : index
    %c1_510 = arith.constant 1 : index
    %c5_511 = arith.constant 5 : index
    %c0_512 = arith.constant 0 : index
    %c0_513 = arith.constant 0 : index
    %323 = vector.load %arg2[%c0_509, %c1_510, %c5_511, %c0_512, %c0_513] : memref<1x4x10x36x256xf32, #tpu.memory_space<vmem>>, vector<1x1x1x36x256xf32>
    %324 = vector.shape_cast %323 : vector<1x1x1x36x256xf32> to vector<36x256xf32>
    %cst_514 = arith.constant dense<0.000000e+00> : vector<8x256xf32>
    %325 = tpu.matmul %322, %324, %cst_514 {dimension_numbers = #tpu.dot_dimension_numbers<[1], [0], [0], [1], [0, 0, 1, 1], [], []>} : vector<8x36xf32>, vector<36x256xf32>, vector<8x256xf32> -> vector<8x256xf32>
    %326 = arith.addf %320, %325 : vector<8x256xf32>
    %c1_515 = arith.constant 1 : index
    %c1_516 = arith.constant 1 : index
    %c0_517 = arith.constant 0 : index
    %c0_518 = arith.constant 0 : index
    %327 = vector.load %arg3[%c1_515, %c1_516, %c0_517, %c0_518] : memref<3x3x8x36xf32, #tpu.memory_space<vmem>>, vector<1x1x8x36xf32>
    %328 = vector.shape_cast %327 : vector<1x1x8x36xf32> to vector<8x36xf32>
    %c0_519 = arith.constant 0 : index
    %c1_520 = arith.constant 1 : index
    %c6_521 = arith.constant 6 : index
    %c0_522 = arith.constant 0 : index
    %c0_523 = arith.constant 0 : index
    %329 = vector.load %arg2[%c0_519, %c1_520, %c6_521, %c0_522, %c0_523] : memref<1x4x10x36x256xf32, #tpu.memory_space<vmem>>, vector<1x1x1x36x256xf32>
    %330 = vector.shape_cast %329 : vector<1x1x1x36x256xf32> to vector<36x256xf32>
    %cst_524 = arith.constant dense<0.000000e+00> : vector<8x256xf32>
    %331 = tpu.matmul %328, %330, %cst_524 {dimension_numbers = #tpu.dot_dimension_numbers<[1], [0], [0], [1], [0, 0, 1, 1], [], []>} : vector<8x36xf32>, vector<36x256xf32>, vector<8x256xf32> -> vector<8x256xf32>
    %332 = arith.addf %326, %331 : vector<8x256xf32>
    %c1_525 = arith.constant 1 : index
    %c2_526 = arith.constant 2 : index
    %c0_527 = arith.constant 0 : index
    %c0_528 = arith.constant 0 : index
    %333 = vector.load %arg3[%c1_525, %c2_526, %c0_527, %c0_528] : memref<3x3x8x36xf32, #tpu.memory_space<vmem>>, vector<1x1x8x36xf32>
    %334 = vector.shape_cast %333 : vector<1x1x8x36xf32> to vector<8x36xf32>
    %c0_529 = arith.constant 0 : index
    %c1_530 = arith.constant 1 : index
    %c7_531 = arith.constant 7 : index
    %c0_532 = arith.constant 0 : index
    %c0_533 = arith.constant 0 : index
    %335 = vector.load %arg2[%c0_529, %c1_530, %c7_531, %c0_532, %c0_533] : memref<1x4x10x36x256xf32, #tpu.memory_space<vmem>>, vector<1x1x1x36x256xf32>
    %336 = vector.shape_cast %335 : vector<1x1x1x36x256xf32> to vector<36x256xf32>
    %cst_534 = arith.constant dense<0.000000e+00> : vector<8x256xf32>
    %337 = tpu.matmul %334, %336, %cst_534 {dimension_numbers = #tpu.dot_dimension_numbers<[1], [0], [0], [1], [0, 0, 1, 1], [], []>} : vector<8x36xf32>, vector<36x256xf32>, vector<8x256xf32> -> vector<8x256xf32>
    %338 = arith.addf %332, %337 : vector<8x256xf32>
    %c2_535 = arith.constant 2 : index
    %c0_536 = arith.constant 0 : index
    %c0_537 = arith.constant 0 : index
    %c0_538 = arith.constant 0 : index
    %339 = vector.load %arg3[%c2_535, %c0_536, %c0_537, %c0_538] : memref<3x3x8x36xf32, #tpu.memory_space<vmem>>, vector<1x1x8x36xf32>
    %340 = vector.shape_cast %339 : vector<1x1x8x36xf32> to vector<8x36xf32>
    %c0_539 = arith.constant 0 : index
    %c2_540 = arith.constant 2 : index
    %c5_541 = arith.constant 5 : index
    %c0_542 = arith.constant 0 : index
    %c0_543 = arith.constant 0 : index
    %341 = vector.load %arg2[%c0_539, %c2_540, %c5_541, %c0_542, %c0_543] : memref<1x4x10x36x256xf32, #tpu.memory_space<vmem>>, vector<1x1x1x36x256xf32>
    %342 = vector.shape_cast %341 : vector<1x1x1x36x256xf32> to vector<36x256xf32>
    %cst_544 = arith.constant dense<0.000000e+00> : vector<8x256xf32>
    %343 = tpu.matmul %340, %342, %cst_544 {dimension_numbers = #tpu.dot_dimension_numbers<[1], [0], [0], [1], [0, 0, 1, 1], [], []>} : vector<8x36xf32>, vector<36x256xf32>, vector<8x256xf32> -> vector<8x256xf32>
    %344 = arith.addf %338, %343 : vector<8x256xf32>
    %c2_545 = arith.constant 2 : index
    %c1_546 = arith.constant 1 : index
    %c0_547 = arith.constant 0 : index
    %c0_548 = arith.constant 0 : index
    %345 = vector.load %arg3[%c2_545, %c1_546, %c0_547, %c0_548] : memref<3x3x8x36xf32, #tpu.memory_space<vmem>>, vector<1x1x8x36xf32>
    %346 = vector.shape_cast %345 : vector<1x1x8x36xf32> to vector<8x36xf32>
    %c0_549 = arith.constant 0 : index
    %c2_550 = arith.constant 2 : index
    %c6_551 = arith.constant 6 : index
    %c0_552 = arith.constant 0 : index
    %c0_553 = arith.constant 0 : index
    %347 = vector.load %arg2[%c0_549, %c2_550, %c6_551, %c0_552, %c0_553] : memref<1x4x10x36x256xf32, #tpu.memory_space<vmem>>, vector<1x1x1x36x256xf32>
    %348 = vector.shape_cast %347 : vector<1x1x1x36x256xf32> to vector<36x256xf32>
    %cst_554 = arith.constant dense<0.000000e+00> : vector<8x256xf32>
    %349 = tpu.matmul %346, %348, %cst_554 {dimension_numbers = #tpu.dot_dimension_numbers<[1], [0], [0], [1], [0, 0, 1, 1], [], []>} : vector<8x36xf32>, vector<36x256xf32>, vector<8x256xf32> -> vector<8x256xf32>
    %350 = arith.addf %344, %349 : vector<8x256xf32>
    %c2_555 = arith.constant 2 : index
    %c2_556 = arith.constant 2 : index
    %c0_557 = arith.constant 0 : index
    %c0_558 = arith.constant 0 : index
    %351 = vector.load %arg3[%c2_555, %c2_556, %c0_557, %c0_558] : memref<3x3x8x36xf32, #tpu.memory_space<vmem>>, vector<1x1x8x36xf32>
    %352 = vector.shape_cast %351 : vector<1x1x8x36xf32> to vector<8x36xf32>
    %c0_559 = arith.constant 0 : index
    %c2_560 = arith.constant 2 : index
    %c7_561 = arith.constant 7 : index
    %c0_562 = arith.constant 0 : index
    %c0_563 = arith.constant 0 : index
    %353 = vector.load %arg2[%c0_559, %c2_560, %c7_561, %c0_562, %c0_563] : memref<1x4x10x36x256xf32, #tpu.memory_space<vmem>>, vector<1x1x1x36x256xf32>
    %354 = vector.shape_cast %353 : vector<1x1x1x36x256xf32> to vector<36x256xf32>
    %cst_564 = arith.constant dense<0.000000e+00> : vector<8x256xf32>
    %355 = tpu.matmul %352, %354, %cst_564 {dimension_numbers = #tpu.dot_dimension_numbers<[1], [0], [0], [1], [0, 0, 1, 1], [], []>} : vector<8x36xf32>, vector<36x256xf32>, vector<8x256xf32> -> vector<8x256xf32>
    %356 = arith.addf %350, %355 : vector<8x256xf32>
    %357 = vector.broadcast %1 : vector<8x1xf32> to vector<8x256xf32>
    %358 = arith.addf %356, %357 : vector<8x256xf32>
    %c0_565 = arith.constant 0 : index
    %c0_566 = arith.constant 0 : index
    %c5_567 = arith.constant 5 : index
    %c0_568 = arith.constant 0 : index
    %c0_569 = arith.constant 0 : index
    %359 = vector.load %arg5[%c0_565, %c0_566, %c5_567, %c0_568, %c0_569] : memref<1x2x8x8x256xf32, #tpu.memory_space<vmem>>, vector<1x1x1x8x256xf32>
    %360 = vector.shape_cast %359 : vector<1x1x1x8x256xf32> to vector<8x256xf32>
    %361 = vector.shape_cast %358 : vector<8x256xf32> to vector<1x1x1x8x256xf32>
    tpu.vector_store %arg5[%c0_565, %c0_566, %c5_567, %c0_568, %c0_569], %361 {strides = array<i32>} : memref<1x2x8x8x256xf32, #tpu.memory_space<vmem>>, vector<1x1x1x8x256xf32>,
    %cst_570 = arith.constant 0.000000e+00 : f32
    %362 = vector.broadcast %cst_570 : f32 to vector<8x256xf32>
    %c0_571 = arith.constant 0 : index
    %c0_572 = arith.constant 0 : index
    %c0_573 = arith.constant 0 : index
    %c0_574 = arith.constant 0 : index
    %363 = vector.load %arg3[%c0_571, %c0_572, %c0_573, %c0_574] : memref<3x3x8x36xf32, #tpu.memory_space<vmem>>, vector<1x1x8x36xf32>
    %364 = vector.shape_cast %363 : vector<1x1x8x36xf32> to vector<8x36xf32>
    %c0_575 = arith.constant 0 : index
    %c0_576 = arith.constant 0 : index
    %c6_577 = arith.constant 6 : index
    %c0_578 = arith.constant 0 : index
    %c0_579 = arith.constant 0 : index
    %365 = vector.load %arg2[%c0_575, %c0_576, %c6_577, %c0_578, %c0_579] : memref<1x4x10x36x256xf32, #tpu.memory_space<vmem>>, vector<1x1x1x36x256xf32>
    %366 = vector.shape_cast %365 : vector<1x1x1x36x256xf32> to vector<36x256xf32>
    %cst_580 = arith.constant dense<0.000000e+00> : vector<8x256xf32>
    %367 = tpu.matmul %364, %366, %cst_580 {dimension_numbers = #tpu.dot_dimension_numbers<[1], [0], [0], [1], [0, 0, 1, 1], [], []>} : vector<8x36xf32>, vector<36x256xf32>, vector<8x256xf32> -> vector<8x256xf32>
    %368 = arith.addf %362, %367 : vector<8x256xf32>
    %c0_581 = arith.constant 0 : index
    %c1_582 = arith.constant 1 : index
    %c0_583 = arith.constant 0 : index
    %c0_584 = arith.constant 0 : index
    %369 = vector.load %arg3[%c0_581, %c1_582, %c0_583, %c0_584] : memref<3x3x8x36xf32, #tpu.memory_space<vmem>>, vector<1x1x8x36xf32>
    %370 = vector.shape_cast %369 : vector<1x1x8x36xf32> to vector<8x36xf32>
    %c0_585 = arith.constant 0 : index
    %c0_586 = arith.constant 0 : index
    %c7_587 = arith.constant 7 : index
    %c0_588 = arith.constant 0 : index
    %c0_589 = arith.constant 0 : index
    %371 = vector.load %arg2[%c0_585, %c0_586, %c7_587, %c0_588, %c0_589] : memref<1x4x10x36x256xf32, #tpu.memory_space<vmem>>, vector<1x1x1x36x256xf32>
    %372 = vector.shape_cast %371 : vector<1x1x1x36x256xf32> to vector<36x256xf32>
    %cst_590 = arith.constant dense<0.000000e+00> : vector<8x256xf32>
    %373 = tpu.matmul %370, %372, %cst_590 {dimension_numbers = #tpu.dot_dimension_numbers<[1], [0], [0], [1], [0, 0, 1, 1], [], []>} : vector<8x36xf32>, vector<36x256xf32>, vector<8x256xf32> -> vector<8x256xf32>
    %374 = arith.addf %368, %373 : vector<8x256xf32>
    %c0_591 = arith.constant 0 : index
    %c2_592 = arith.constant 2 : index
    %c0_593 = arith.constant 0 : index
    %c0_594 = arith.constant 0 : index
    %375 = vector.load %arg3[%c0_591, %c2_592, %c0_593, %c0_594] : memref<3x3x8x36xf32, #tpu.memory_space<vmem>>, vector<1x1x8x36xf32>
    %376 = vector.shape_cast %375 : vector<1x1x8x36xf32> to vector<8x36xf32>
    %c0_595 = arith.constant 0 : index
    %c0_596 = arith.constant 0 : index
    %c8 = arith.constant 8 : index
    %c0_597 = arith.constant 0 : index
    %c0_598 = arith.constant 0 : index
    %377 = vector.load %arg2[%c0_595, %c0_596, %c8, %c0_597, %c0_598] : memref<1x4x10x36x256xf32, #tpu.memory_space<vmem>>, vector<1x1x1x36x256xf32>
    %378 = vector.shape_cast %377 : vector<1x1x1x36x256xf32> to vector<36x256xf32>
    %cst_599 = arith.constant dense<0.000000e+00> : vector<8x256xf32>
    %379 = tpu.matmul %376, %378, %cst_599 {dimension_numbers = #tpu.dot_dimension_numbers<[1], [0], [0], [1], [0, 0, 1, 1], [], []>} : vector<8x36xf32>, vector<36x256xf32>, vector<8x256xf32> -> vector<8x256xf32>
    %380 = arith.addf %374, %379 : vector<8x256xf32>
    %c1_600 = arith.constant 1 : index
    %c0_601 = arith.constant 0 : index
    %c0_602 = arith.constant 0 : index
    %c0_603 = arith.constant 0 : index
    %381 = vector.load %arg3[%c1_600, %c0_601, %c0_602, %c0_603] : memref<3x3x8x36xf32, #tpu.memory_space<vmem>>, vector<1x1x8x36xf32>
    %382 = vector.shape_cast %381 : vector<1x1x8x36xf32> to vector<8x36xf32>
    %c0_604 = arith.constant 0 : index
    %c1_605 = arith.constant 1 : index
    %c6_606 = arith.constant 6 : index
    %c0_607 = arith.constant 0 : index
    %c0_608 = arith.constant 0 : index
    %383 = vector.load %arg2[%c0_604, %c1_605, %c6_606, %c0_607, %c0_608] : memref<1x4x10x36x256xf32, #tpu.memory_space<vmem>>, vector<1x1x1x36x256xf32>
    %384 = vector.shape_cast %383 : vector<1x1x1x36x256xf32> to vector<36x256xf32>
    %cst_609 = arith.constant dense<0.000000e+00> : vector<8x256xf32>
    %385 = tpu.matmul %382, %384, %cst_609 {dimension_numbers = #tpu.dot_dimension_numbers<[1], [0], [0], [1], [0, 0, 1, 1], [], []>} : vector<8x36xf32>, vector<36x256xf32>, vector<8x256xf32> -> vector<8x256xf32>
    %386 = arith.addf %380, %385 : vector<8x256xf32>
    %c1_610 = arith.constant 1 : index
    %c1_611 = arith.constant 1 : index
    %c0_612 = arith.constant 0 : index
    %c0_613 = arith.constant 0 : index
    %387 = vector.load %arg3[%c1_610, %c1_611, %c0_612, %c0_613] : memref<3x3x8x36xf32, #tpu.memory_space<vmem>>, vector<1x1x8x36xf32>
    %388 = vector.shape_cast %387 : vector<1x1x8x36xf32> to vector<8x36xf32>
    %c0_614 = arith.constant 0 : index
    %c1_615 = arith.constant 1 : index
    %c7_616 = arith.constant 7 : index
    %c0_617 = arith.constant 0 : index
    %c0_618 = arith.constant 0 : index
    %389 = vector.load %arg2[%c0_614, %c1_615, %c7_616, %c0_617, %c0_618] : memref<1x4x10x36x256xf32, #tpu.memory_space<vmem>>, vector<1x1x1x36x256xf32>
    %390 = vector.shape_cast %389 : vector<1x1x1x36x256xf32> to vector<36x256xf32>
    %cst_619 = arith.constant dense<0.000000e+00> : vector<8x256xf32>
    %391 = tpu.matmul %388, %390, %cst_619 {dimension_numbers = #tpu.dot_dimension_numbers<[1], [0], [0], [1], [0, 0, 1, 1], [], []>} : vector<8x36xf32>, vector<36x256xf32>, vector<8x256xf32> -> vector<8x256xf32>
    %392 = arith.addf %386, %391 : vector<8x256xf32>
    %c1_620 = arith.constant 1 : index
    %c2_621 = arith.constant 2 : index
    %c0_622 = arith.constant 0 : index
    %c0_623 = arith.constant 0 : index
    %393 = vector.load %arg3[%c1_620, %c2_621, %c0_622, %c0_623] : memref<3x3x8x36xf32, #tpu.memory_space<vmem>>, vector<1x1x8x36xf32>
    %394 = vector.shape_cast %393 : vector<1x1x8x36xf32> to vector<8x36xf32>
    %c0_624 = arith.constant 0 : index
    %c1_625 = arith.constant 1 : index
    %c8_626 = arith.constant 8 : index
    %c0_627 = arith.constant 0 : index
    %c0_628 = arith.constant 0 : index
    %395 = vector.load %arg2[%c0_624, %c1_625, %c8_626, %c0_627, %c0_628] : memref<1x4x10x36x256xf32, #tpu.memory_space<vmem>>, vector<1x1x1x36x256xf32>
    %396 = vector.shape_cast %395 : vector<1x1x1x36x256xf32> to vector<36x256xf32>
    %cst_629 = arith.constant dense<0.000000e+00> : vector<8x256xf32>
    %397 = tpu.matmul %394, %396, %cst_629 {dimension_numbers = #tpu.dot_dimension_numbers<[1], [0], [0], [1], [0, 0, 1, 1], [], []>} : vector<8x36xf32>, vector<36x256xf32>, vector<8x256xf32> -> vector<8x256xf32>
    %398 = arith.addf %392, %397 : vector<8x256xf32>
    %c2_630 = arith.constant 2 : index
    %c0_631 = arith.constant 0 : index
    %c0_632 = arith.constant 0 : index
    %c0_633 = arith.constant 0 : index
    %399 = vector.load %arg3[%c2_630, %c0_631, %c0_632, %c0_633] : memref<3x3x8x36xf32, #tpu.memory_space<vmem>>, vector<1x1x8x36xf32>
    %400 = vector.shape_cast %399 : vector<1x1x8x36xf32> to vector<8x36xf32>
    %c0_634 = arith.constant 0 : index
    %c2_635 = arith.constant 2 : index
    %c6_636 = arith.constant 6 : index
    %c0_637 = arith.constant 0 : index
    %c0_638 = arith.constant 0 : index
    %401 = vector.load %arg2[%c0_634, %c2_635, %c6_636, %c0_637, %c0_638] : memref<1x4x10x36x256xf32, #tpu.memory_space<vmem>>, vector<1x1x1x36x256xf32>
    %402 = vector.shape_cast %401 : vector<1x1x1x36x256xf32> to vector<36x256xf32>
    %cst_639 = arith.constant dense<0.000000e+00> : vector<8x256xf32>
    %403 = tpu.matmul %400, %402, %cst_639 {dimension_numbers = #tpu.dot_dimension_numbers<[1], [0], [0], [1], [0, 0, 1, 1], [], []>} : vector<8x36xf32>, vector<36x256xf32>, vector<8x256xf32> -> vector<8x256xf32>
    %404 = arith.addf %398, %403 : vector<8x256xf32>
    %c2_640 = arith.constant 2 : index
    %c1_641 = arith.constant 1 : index
    %c0_642 = arith.constant 0 : index
    %c0_643 = arith.constant 0 : index
    %405 = vector.load %arg3[%c2_640, %c1_641, %c0_642, %c0_643] : memref<3x3x8x36xf32, #tpu.memory_space<vmem>>, vector<1x1x8x36xf32>
    %406 = vector.shape_cast %405 : vector<1x1x8x36xf32> to vector<8x36xf32>
    %c0_644 = arith.constant 0 : index
    %c2_645 = arith.constant 2 : index
    %c7_646 = arith.constant 7 : index
    %c0_647 = arith.constant 0 : index
    %c0_648 = arith.constant 0 : index
    %407 = vector.load %arg2[%c0_644, %c2_645, %c7_646, %c0_647, %c0_648] : memref<1x4x10x36x256xf32, #tpu.memory_space<vmem>>, vector<1x1x1x36x256xf32>
    %408 = vector.shape_cast %407 : vector<1x1x1x36x256xf32> to vector<36x256xf32>
    %cst_649 = arith.constant dense<0.000000e+00> : vector<8x256xf32>
    %409 = tpu.matmul %406, %408, %cst_649 {dimension_numbers = #tpu.dot_dimension_numbers<[1], [0], [0], [1], [0, 0, 1, 1], [], []>} : vector<8x36xf32>, vector<36x256xf32>, vector<8x256xf32> -> vector<8x256xf32>
    %410 = arith.addf %404, %409 : vector<8x256xf32>
    %c2_650 = arith.constant 2 : index
    %c2_651 = arith.constant 2 : index
    %c0_652 = arith.constant 0 : index
    %c0_653 = arith.constant 0 : index
    %411 = vector.load %arg3[%c2_650, %c2_651, %c0_652, %c0_653] : memref<3x3x8x36xf32, #tpu.memory_space<vmem>>, vector<1x1x8x36xf32>
    %412 = vector.shape_cast %411 : vector<1x1x8x36xf32> to vector<8x36xf32>
    %c0_654 = arith.constant 0 : index
    %c2_655 = arith.constant 2 : index
    %c8_656 = arith.constant 8 : index
    %c0_657 = arith.constant 0 : index
    %c0_658 = arith.constant 0 : index
    %413 = vector.load %arg2[%c0_654, %c2_655, %c8_656, %c0_657, %c0_658] : memref<1x4x10x36x256xf32, #tpu.memory_space<vmem>>, vector<1x1x1x36x256xf32>
    %414 = vector.shape_cast %413 : vector<1x1x1x36x256xf32> to vector<36x256xf32>
    %cst_659 = arith.constant dense<0.000000e+00> : vector<8x256xf32>
    %415 = tpu.matmul %412, %414, %cst_659 {dimension_numbers = #tpu.dot_dimension_numbers<[1], [0], [0], [1], [0, 0, 1, 1], [], []>} : vector<8x36xf32>, vector<36x256xf32>, vector<8x256xf32> -> vector<8x256xf32>
    %416 = arith.addf %410, %415 : vector<8x256xf32>
    %417 = vector.broadcast %1 : vector<8x1xf32> to vector<8x256xf32>
    %418 = arith.addf %416, %417 : vector<8x256xf32>
    %c0_660 = arith.constant 0 : index
    %c0_661 = arith.constant 0 : index
    %c6_662 = arith.constant 6 : index
    %c0_663 = arith.constant 0 : index
    %c0_664 = arith.constant 0 : index
    %419 = vector.load %arg5[%c0_660, %c0_661, %c6_662, %c0_663, %c0_664] : memref<1x2x8x8x256xf32, #tpu.memory_space<vmem>>, vector<1x1x1x8x256xf32>
    %420 = vector.shape_cast %419 : vector<1x1x1x8x256xf32> to vector<8x256xf32>
    %421 = vector.shape_cast %418 : vector<8x256xf32> to vector<1x1x1x8x256xf32>
    tpu.vector_store %arg5[%c0_660, %c0_661, %c6_662, %c0_663, %c0_664], %421 {strides = array<i32>} : memref<1x2x8x8x256xf32, #tpu.memory_space<vmem>>, vector<1x1x1x8x256xf32>,
    %cst_665 = arith.constant 0.000000e+00 : f32
    %422 = vector.broadcast %cst_665 : f32 to vector<8x256xf32>
    %c0_666 = arith.constant 0 : index
    %c0_667 = arith.constant 0 : index
    %c0_668 = arith.constant 0 : index
    %c0_669 = arith.constant 0 : index
    %423 = vector.load %arg3[%c0_666, %c0_667, %c0_668, %c0_669] : memref<3x3x8x36xf32, #tpu.memory_space<vmem>>, vector<1x1x8x36xf32>
    %424 = vector.shape_cast %423 : vector<1x1x8x36xf32> to vector<8x36xf32>
    %c0_670 = arith.constant 0 : index
    %c0_671 = arith.constant 0 : index
    %c7_672 = arith.constant 7 : index
    %c0_673 = arith.constant 0 : index
    %c0_674 = arith.constant 0 : index
    %425 = vector.load %arg2[%c0_670, %c0_671, %c7_672, %c0_673, %c0_674] : memref<1x4x10x36x256xf32, #tpu.memory_space<vmem>>, vector<1x1x1x36x256xf32>
    %426 = vector.shape_cast %425 : vector<1x1x1x36x256xf32> to vector<36x256xf32>
    %cst_675 = arith.constant dense<0.000000e+00> : vector<8x256xf32>
    %427 = tpu.matmul %424, %426, %cst_675 {dimension_numbers = #tpu.dot_dimension_numbers<[1], [0], [0], [1], [0, 0, 1, 1], [], []>} : vector<8x36xf32>, vector<36x256xf32>, vector<8x256xf32> -> vector<8x256xf32>
    %428 = arith.addf %422, %427 : vector<8x256xf32>
    %c0_676 = arith.constant 0 : index
    %c1_677 = arith.constant 1 : index
    %c0_678 = arith.constant 0 : index
    %c0_679 = arith.constant 0 : index
    %429 = vector.load %arg3[%c0_676, %c1_677, %c0_678, %c0_679] : memref<3x3x8x36xf32, #tpu.memory_space<vmem>>, vector<1x1x8x36xf32>
    %430 = vector.shape_cast %429 : vector<1x1x8x36xf32> to vector<8x36xf32>
    %c0_680 = arith.constant 0 : index
    %c0_681 = arith.constant 0 : index
    %c8_682 = arith.constant 8 : index
    %c0_683 = arith.constant 0 : index
    %c0_684 = arith.constant 0 : index
    %431 = vector.load %arg2[%c0_680, %c0_681, %c8_682, %c0_683, %c0_684] : memref<1x4x10x36x256xf32, #tpu.memory_space<vmem>>, vector<1x1x1x36x256xf32>
    %432 = vector.shape_cast %431 : vector<1x1x1x36x256xf32> to vector<36x256xf32>
    %cst_685 = arith.constant dense<0.000000e+00> : vector<8x256xf32>
    %433 = tpu.matmul %430, %432, %cst_685 {dimension_numbers = #tpu.dot_dimension_numbers<[1], [0], [0], [1], [0, 0, 1, 1], [], []>} : vector<8x36xf32>, vector<36x256xf32>, vector<8x256xf32> -> vector<8x256xf32>
    %434 = arith.addf %428, %433 : vector<8x256xf32>
    %c0_686 = arith.constant 0 : index
    %c2_687 = arith.constant 2 : index
    %c0_688 = arith.constant 0 : index
    %c0_689 = arith.constant 0 : index
    %435 = vector.load %arg3[%c0_686, %c2_687, %c0_688, %c0_689] : memref<3x3x8x36xf32, #tpu.memory_space<vmem>>, vector<1x1x8x36xf32>
    %436 = vector.shape_cast %435 : vector<1x1x8x36xf32> to vector<8x36xf32>
    %c0_690 = arith.constant 0 : index
    %c0_691 = arith.constant 0 : index
    %c9 = arith.constant 9 : index
    %c0_692 = arith.constant 0 : index
    %c0_693 = arith.constant 0 : index
    %437 = vector.load %arg2[%c0_690, %c0_691, %c9, %c0_692, %c0_693] : memref<1x4x10x36x256xf32, #tpu.memory_space<vmem>>, vector<1x1x1x36x256xf32>
    %438 = vector.shape_cast %437 : vector<1x1x1x36x256xf32> to vector<36x256xf32>
    %cst_694 = arith.constant dense<0.000000e+00> : vector<8x256xf32>
    %439 = tpu.matmul %436, %438, %cst_694 {dimension_numbers = #tpu.dot_dimension_numbers<[1], [0], [0], [1], [0, 0, 1, 1], [], []>} : vector<8x36xf32>, vector<36x256xf32>, vector<8x256xf32> -> vector<8x256xf32>
    %440 = arith.addf %434, %439 : vector<8x256xf32>
    %c1_695 = arith.constant 1 : index
    %c0_696 = arith.constant 0 : index
    %c0_697 = arith.constant 0 : index
    %c0_698 = arith.constant 0 : index
    %441 = vector.load %arg3[%c1_695, %c0_696, %c0_697, %c0_698] : memref<3x3x8x36xf32, #tpu.memory_space<vmem>>, vector<1x1x8x36xf32>
    %442 = vector.shape_cast %441 : vector<1x1x8x36xf32> to vector<8x36xf32>
    %c0_699 = arith.constant 0 : index
    %c1_700 = arith.constant 1 : index
    %c7_701 = arith.constant 7 : index
    %c0_702 = arith.constant 0 : index
    %c0_703 = arith.constant 0 : index
    %443 = vector.load %arg2[%c0_699, %c1_700, %c7_701, %c0_702, %c0_703] : memref<1x4x10x36x256xf32, #tpu.memory_space<vmem>>, vector<1x1x1x36x256xf32>
    %444 = vector.shape_cast %443 : vector<1x1x1x36x256xf32> to vector<36x256xf32>
    %cst_704 = arith.constant dense<0.000000e+00> : vector<8x256xf32>
    %445 = tpu.matmul %442, %444, %cst_704 {dimension_numbers = #tpu.dot_dimension_numbers<[1], [0], [0], [1], [0, 0, 1, 1], [], []>} : vector<8x36xf32>, vector<36x256xf32>, vector<8x256xf32> -> vector<8x256xf32>
    %446 = arith.addf %440, %445 : vector<8x256xf32>
    %c1_705 = arith.constant 1 : index
    %c1_706 = arith.constant 1 : index
    %c0_707 = arith.constant 0 : index
    %c0_708 = arith.constant 0 : index
    %447 = vector.load %arg3[%c1_705, %c1_706, %c0_707, %c0_708] : memref<3x3x8x36xf32, #tpu.memory_space<vmem>>, vector<1x1x8x36xf32>
    %448 = vector.shape_cast %447 : vector<1x1x8x36xf32> to vector<8x36xf32>
    %c0_709 = arith.constant 0 : index
    %c1_710 = arith.constant 1 : index
    %c8_711 = arith.constant 8 : index
    %c0_712 = arith.constant 0 : index
    %c0_713 = arith.constant 0 : index
    %449 = vector.load %arg2[%c0_709, %c1_710, %c8_711, %c0_712, %c0_713] : memref<1x4x10x36x256xf32, #tpu.memory_space<vmem>>, vector<1x1x1x36x256xf32>
    %450 = vector.shape_cast %449 : vector<1x1x1x36x256xf32> to vector<36x256xf32>
    %cst_714 = arith.constant dense<0.000000e+00> : vector<8x256xf32>
    %451 = tpu.matmul %448, %450, %cst_714 {dimension_numbers = #tpu.dot_dimension_numbers<[1], [0], [0], [1], [0, 0, 1, 1], [], []>} : vector<8x36xf32>, vector<36x256xf32>, vector<8x256xf32> -> vector<8x256xf32>
    %452 = arith.addf %446, %451 : vector<8x256xf32>
    %c1_715 = arith.constant 1 : index
    %c2_716 = arith.constant 2 : index
    %c0_717 = arith.constant 0 : index
    %c0_718 = arith.constant 0 : index
    %453 = vector.load %arg3[%c1_715, %c2_716, %c0_717, %c0_718] : memref<3x3x8x36xf32, #tpu.memory_space<vmem>>, vector<1x1x8x36xf32>
    %454 = vector.shape_cast %453 : vector<1x1x8x36xf32> to vector<8x36xf32>
    %c0_719 = arith.constant 0 : index
    %c1_720 = arith.constant 1 : index
    %c9_721 = arith.constant 9 : index
    %c0_722 = arith.constant 0 : index
    %c0_723 = arith.constant 0 : index
    %455 = vector.load %arg2[%c0_719, %c1_720, %c9_721, %c0_722, %c0_723] : memref<1x4x10x36x256xf32, #tpu.memory_space<vmem>>, vector<1x1x1x36x256xf32>
    %456 = vector.shape_cast %455 : vector<1x1x1x36x256xf32> to vector<36x256xf32>
    %cst_724 = arith.constant dense<0.000000e+00> : vector<8x256xf32>
    %457 = tpu.matmul %454, %456, %cst_724 {dimension_numbers = #tpu.dot_dimension_numbers<[1], [0], [0], [1], [0, 0, 1, 1], [], []>} : vector<8x36xf32>, vector<36x256xf32>, vector<8x256xf32> -> vector<8x256xf32>
    %458 = arith.addf %452, %457 : vector<8x256xf32>
    %c2_725 = arith.constant 2 : index
    %c0_726 = arith.constant 0 : index
    %c0_727 = arith.constant 0 : index
    %c0_728 = arith.constant 0 : index
    %459 = vector.load %arg3[%c2_725, %c0_726, %c0_727, %c0_728] : memref<3x3x8x36xf32, #tpu.memory_space<vmem>>, vector<1x1x8x36xf32>
    %460 = vector.shape_cast %459 : vector<1x1x8x36xf32> to vector<8x36xf32>
    %c0_729 = arith.constant 0 : index
    %c2_730 = arith.constant 2 : index
    %c7_731 = arith.constant 7 : index
    %c0_732 = arith.constant 0 : index
    %c0_733 = arith.constant 0 : index
    %461 = vector.load %arg2[%c0_729, %c2_730, %c7_731, %c0_732, %c0_733] : memref<1x4x10x36x256xf32, #tpu.memory_space<vmem>>, vector<1x1x1x36x256xf32>
    %462 = vector.shape_cast %461 : vector<1x1x1x36x256xf32> to vector<36x256xf32>
    %cst_734 = arith.constant dense<0.000000e+00> : vector<8x256xf32>
    %463 = tpu.matmul %460, %462, %cst_734 {dimension_numbers = #tpu.dot_dimension_numbers<[1], [0], [0], [1], [0, 0, 1, 1], [], []>} : vector<8x36xf32>, vector<36x256xf32>, vector<8x256xf32> -> vector<8x256xf32>
    %464 = arith.addf %458, %463 : vector<8x256xf32>
    %c2_735 = arith.constant 2 : index
    %c1_736 = arith.constant 1 : index
    %c0_737 = arith.constant 0 : index
    %c0_738 = arith.constant 0 : index
    %465 = vector.load %arg3[%c2_735, %c1_736, %c0_737, %c0_738] : memref<3x3x8x36xf32, #tpu.memory_space<vmem>>, vector<1x1x8x36xf32>
    %466 = vector.shape_cast %465 : vector<1x1x8x36xf32> to vector<8x36xf32>
    %c0_739 = arith.constant 0 : index
    %c2_740 = arith.constant 2 : index
    %c8_741 = arith.constant 8 : index
    %c0_742 = arith.constant 0 : index
    %c0_743 = arith.constant 0 : index
    %467 = vector.load %arg2[%c0_739, %c2_740, %c8_741, %c0_742, %c0_743] : memref<1x4x10x36x256xf32, #tpu.memory_space<vmem>>, vector<1x1x1x36x256xf32>
    %468 = vector.shape_cast %467 : vector<1x1x1x36x256xf32> to vector<36x256xf32>
    %cst_744 = arith.constant dense<0.000000e+00> : vector<8x256xf32>
    %469 = tpu.matmul %466, %468, %cst_744 {dimension_numbers = #tpu.dot_dimension_numbers<[1], [0], [0], [1], [0, 0, 1, 1], [], []>} : vector<8x36xf32>, vector<36x256xf32>, vector<8x256xf32> -> vector<8x256xf32>
    %470 = arith.addf %464, %469 : vector<8x256xf32>
    %c2_745 = arith.constant 2 : index
    %c2_746 = arith.constant 2 : index
    %c0_747 = arith.constant 0 : index
    %c0_748 = arith.constant 0 : index
    %471 = vector.load %arg3[%c2_745, %c2_746, %c0_747, %c0_748] : memref<3x3x8x36xf32, #tpu.memory_space<vmem>>, vector<1x1x8x36xf32>
    %472 = vector.shape_cast %471 : vector<1x1x8x36xf32> to vector<8x36xf32>
    %c0_749 = arith.constant 0 : index
    %c2_750 = arith.constant 2 : index
    %c9_751 = arith.constant 9 : index
    %c0_752 = arith.constant 0 : index
    %c0_753 = arith.constant 0 : index
    %473 = vector.load %arg2[%c0_749, %c2_750, %c9_751, %c0_752, %c0_753] : memref<1x4x10x36x256xf32, #tpu.memory_space<vmem>>, vector<1x1x1x36x256xf32>
    %474 = vector.shape_cast %473 : vector<1x1x1x36x256xf32> to vector<36x256xf32>
    %cst_754 = arith.constant dense<0.000000e+00> : vector<8x256xf32>
    %475 = tpu.matmul %472, %474, %cst_754 {dimension_numbers = #tpu.dot_dimension_numbers<[1], [0], [0], [1], [0, 0, 1, 1], [], []>} : vector<8x36xf32>, vector<36x256xf32>, vector<8x256xf32> -> vector<8x256xf32>
    %476 = arith.addf %470, %475 : vector<8x256xf32>
    %477 = vector.broadcast %1 : vector<8x1xf32> to vector<8x256xf32>
    %478 = arith.addf %476, %477 : vector<8x256xf32>
    %c0_755 = arith.constant 0 : index
    %c0_756 = arith.constant 0 : index
    %c7_757 = arith.constant 7 : index
    %c0_758 = arith.constant 0 : index
    %c0_759 = arith.constant 0 : index
    %479 = vector.load %arg5[%c0_755, %c0_756, %c7_757, %c0_758, %c0_759] : memref<1x2x8x8x256xf32, #tpu.memory_space<vmem>>, vector<1x1x1x8x256xf32>
    %480 = vector.shape_cast %479 : vector<1x1x1x8x256xf32> to vector<8x256xf32>
    %481 = vector.shape_cast %478 : vector<8x256xf32> to vector<1x1x1x8x256xf32>
    tpu.vector_store %arg5[%c0_755, %c0_756, %c7_757, %c0_758, %c0_759], %481 {strides = array<i32>} : memref<1x2x8x8x256xf32, #tpu.memory_space<vmem>>, vector<1x1x1x8x256xf32>,
    %c1_760 = arith.constant 1 : index
    %c0_761 = arith.constant 0 : index
    %c0_762 = arith.constant 0 : index
    %482 = vector.load %arg4[%c1_760, %c0_761, %c0_762] : memref<2x8x1xf32, #tpu.memory_space<vmem>>, vector<1x8x1xf32>
    %483 = vector.shape_cast %482 : vector<1x8x1xf32> to vector<8x1xf32>
    %cst_763 = arith.constant 0.000000e+00 : f32
    %484 = vector.broadcast %cst_763 : f32 to vector<8x256xf32>
    %c0_764 = arith.constant 0 : index
    %c0_765 = arith.constant 0 : index
    %c0_766 = arith.constant 0 : index
    %c0_767 = arith.constant 0 : index
    %485 = vector.load %arg3[%c0_764, %c0_765, %c0_766, %c0_767] : memref<3x3x8x36xf32, #tpu.memory_space<vmem>>, vector<1x1x8x36xf32>
    %486 = vector.shape_cast %485 : vector<1x1x8x36xf32> to vector<8x36xf32>
    %c0_768 = arith.constant 0 : index
    %c1_769 = arith.constant 1 : index
    %c0_770 = arith.constant 0 : index
    %c0_771 = arith.constant 0 : index
    %c0_772 = arith.constant 0 : index
    %487 = vector.load %arg2[%c0_768, %c1_769, %c0_770, %c0_771, %c0_772] : memref<1x4x10x36x256xf32, #tpu.memory_space<vmem>>, vector<1x1x1x36x256xf32>
    %488 = vector.shape_cast %487 : vector<1x1x1x36x256xf32> to vector<36x256xf32>
    %cst_773 = arith.constant dense<0.000000e+00> : vector<8x256xf32>
    %489 = tpu.matmul %486, %488, %cst_773 {dimension_numbers = #tpu.dot_dimension_numbers<[1], [0], [0], [1], [0, 0, 1, 1], [], []>} : vector<8x36xf32>, vector<36x256xf32>, vector<8x256xf32> -> vector<8x256xf32>
    %490 = arith.addf %484, %489 : vector<8x256xf32>
    %c0_774 = arith.constant 0 : index
    %c1_775 = arith.constant 1 : index
    %c0_776 = arith.constant 0 : index
    %c0_777 = arith.constant 0 : index
    %491 = vector.load %arg3[%c0_774, %c1_775, %c0_776, %c0_777] : memref<3x3x8x36xf32, #tpu.memory_space<vmem>>, vector<1x1x8x36xf32>
    %492 = vector.shape_cast %491 : vector<1x1x8x36xf32> to vector<8x36xf32>
    %c0_778 = arith.constant 0 : index
    %c1_779 = arith.constant 1 : index
    %c1_780 = arith.constant 1 : index
    %c0_781 = arith.constant 0 : index
    %c0_782 = arith.constant 0 : index
    %493 = vector.load %arg2[%c0_778, %c1_779, %c1_780, %c0_781, %c0_782] : memref<1x4x10x36x256xf32, #tpu.memory_space<vmem>>, vector<1x1x1x36x256xf32>
    %494 = vector.shape_cast %493 : vector<1x1x1x36x256xf32> to vector<36x256xf32>
    %cst_783 = arith.constant dense<0.000000e+00> : vector<8x256xf32>
    %495 = tpu.matmul %492, %494, %cst_783 {dimension_numbers = #tpu.dot_dimension_numbers<[1], [0], [0], [1], [0, 0, 1, 1], [], []>} : vector<8x36xf32>, vector<36x256xf32>, vector<8x256xf32> -> vector<8x256xf32>
    %496 = arith.addf %490, %495 : vector<8x256xf32>
    %c0_784 = arith.constant 0 : index
    %c2_785 = arith.constant 2 : index
    %c0_786 = arith.constant 0 : index
    %c0_787 = arith.constant 0 : index
    %497 = vector.load %arg3[%c0_784, %c2_785, %c0_786, %c0_787] : memref<3x3x8x36xf32, #tpu.memory_space<vmem>>, vector<1x1x8x36xf32>
    %498 = vector.shape_cast %497 : vector<1x1x8x36xf32> to vector<8x36xf32>
    %c0_788 = arith.constant 0 : index
    %c1_789 = arith.constant 1 : index
    %c2_790 = arith.constant 2 : index
    %c0_791 = arith.constant 0 : index
    %c0_792 = arith.constant 0 : index
    %499 = vector.load %arg2[%c0_788, %c1_789, %c2_790, %c0_791, %c0_792] : memref<1x4x10x36x256xf32, #tpu.memory_space<vmem>>, vector<1x1x1x36x256xf32>
    %500 = vector.shape_cast %499 : vector<1x1x1x36x256xf32> to vector<36x256xf32>
    %cst_793 = arith.constant dense<0.000000e+00> : vector<8x256xf32>
    %501 = tpu.matmul %498, %500, %cst_793 {dimension_numbers = #tpu.dot_dimension_numbers<[1], [0], [0], [1], [0, 0, 1, 1], [], []>} : vector<8x36xf32>, vector<36x256xf32>, vector<8x256xf32> -> vector<8x256xf32>
    %502 = arith.addf %496, %501 : vector<8x256xf32>
    %c1_794 = arith.constant 1 : index
    %c0_795 = arith.constant 0 : index
    %c0_796 = arith.constant 0 : index
    %c0_797 = arith.constant 0 : index
    %503 = vector.load %arg3[%c1_794, %c0_795, %c0_796, %c0_797] : memref<3x3x8x36xf32, #tpu.memory_space<vmem>>, vector<1x1x8x36xf32>
    %504 = vector.shape_cast %503 : vector<1x1x8x36xf32> to vector<8x36xf32>
    %c0_798 = arith.constant 0 : index
    %c2_799 = arith.constant 2 : index
    %c0_800 = arith.constant 0 : index
    %c0_801 = arith.constant 0 : index
    %c0_802 = arith.constant 0 : index
    %505 = vector.load %arg2[%c0_798, %c2_799, %c0_800, %c0_801, %c0_802] : memref<1x4x10x36x256xf32, #tpu.memory_space<vmem>>, vector<1x1x1x36x256xf32>
    %506 = vector.shape_cast %505 : vector<1x1x1x36x256xf32> to vector<36x256xf32>
    %cst_803 = arith.constant dense<0.000000e+00> : vector<8x256xf32>
    %507 = tpu.matmul %504, %506, %cst_803 {dimension_numbers = #tpu.dot_dimension_numbers<[1], [0], [0], [1], [0, 0, 1, 1], [], []>} : vector<8x36xf32>, vector<36x256xf32>, vector<8x256xf32> -> vector<8x256xf32>
    %508 = arith.addf %502, %507 : vector<8x256xf32>
    %c1_804 = arith.constant 1 : index
    %c1_805 = arith.constant 1 : index
    %c0_806 = arith.constant 0 : index
    %c0_807 = arith.constant 0 : index
    %509 = vector.load %arg3[%c1_804, %c1_805, %c0_806, %c0_807] : memref<3x3x8x36xf32, #tpu.memory_space<vmem>>, vector<1x1x8x36xf32>
    %510 = vector.shape_cast %509 : vector<1x1x8x36xf32> to vector<8x36xf32>
    %c0_808 = arith.constant 0 : index
    %c2_809 = arith.constant 2 : index
    %c1_810 = arith.constant 1 : index
    %c0_811 = arith.constant 0 : index
    %c0_812 = arith.constant 0 : index
    %511 = vector.load %arg2[%c0_808, %c2_809, %c1_810, %c0_811, %c0_812] : memref<1x4x10x36x256xf32, #tpu.memory_space<vmem>>, vector<1x1x1x36x256xf32>
    %512 = vector.shape_cast %511 : vector<1x1x1x36x256xf32> to vector<36x256xf32>
    %cst_813 = arith.constant dense<0.000000e+00> : vector<8x256xf32>
    %513 = tpu.matmul %510, %512, %cst_813 {dimension_numbers = #tpu.dot_dimension_numbers<[1], [0], [0], [1], [0, 0, 1, 1], [], []>} : vector<8x36xf32>, vector<36x256xf32>, vector<8x256xf32> -> vector<8x256xf32>
    %514 = arith.addf %508, %513 : vector<8x256xf32>
    %c1_814 = arith.constant 1 : index
    %c2_815 = arith.constant 2 : index
    %c0_816 = arith.constant 0 : index
    %c0_817 = arith.constant 0 : index
    %515 = vector.load %arg3[%c1_814, %c2_815, %c0_816, %c0_817] : memref<3x3x8x36xf32, #tpu.memory_space<vmem>>, vector<1x1x8x36xf32>
    %516 = vector.shape_cast %515 : vector<1x1x8x36xf32> to vector<8x36xf32>
    %c0_818 = arith.constant 0 : index
    %c2_819 = arith.constant 2 : index
    %c2_820 = arith.constant 2 : index
    %c0_821 = arith.constant 0 : index
    %c0_822 = arith.constant 0 : index
    %517 = vector.load %arg2[%c0_818, %c2_819, %c2_820, %c0_821, %c0_822] : memref<1x4x10x36x256xf32, #tpu.memory_space<vmem>>, vector<1x1x1x36x256xf32>
    %518 = vector.shape_cast %517 : vector<1x1x1x36x256xf32> to vector<36x256xf32>
    %cst_823 = arith.constant dense<0.000000e+00> : vector<8x256xf32>
    %519 = tpu.matmul %516, %518, %cst_823 {dimension_numbers = #tpu.dot_dimension_numbers<[1], [0], [0], [1], [0, 0, 1, 1], [], []>} : vector<8x36xf32>, vector<36x256xf32>, vector<8x256xf32> -> vector<8x256xf32>
    %520 = arith.addf %514, %519 : vector<8x256xf32>
    %c2_824 = arith.constant 2 : index
    %c0_825 = arith.constant 0 : index
    %c0_826 = arith.constant 0 : index
    %c0_827 = arith.constant 0 : index
    %521 = vector.load %arg3[%c2_824, %c0_825, %c0_826, %c0_827] : memref<3x3x8x36xf32, #tpu.memory_space<vmem>>, vector<1x1x8x36xf32>
    %522 = vector.shape_cast %521 : vector<1x1x8x36xf32> to vector<8x36xf32>
    %c0_828 = arith.constant 0 : index
    %c3_829 = arith.constant 3 : index
    %c0_830 = arith.constant 0 : index
    %c0_831 = arith.constant 0 : index
    %c0_832 = arith.constant 0 : index
    %523 = vector.load %arg2[%c0_828, %c3_829, %c0_830, %c0_831, %c0_832] : memref<1x4x10x36x256xf32, #tpu.memory_space<vmem>>, vector<1x1x1x36x256xf32>
    %524 = vector.shape_cast %523 : vector<1x1x1x36x256xf32> to vector<36x256xf32>
    %cst_833 = arith.constant dense<0.000000e+00> : vector<8x256xf32>
    %525 = tpu.matmul %522, %524, %cst_833 {dimension_numbers = #tpu.dot_dimension_numbers<[1], [0], [0], [1], [0, 0, 1, 1], [], []>} : vector<8x36xf32>, vector<36x256xf32>, vector<8x256xf32> -> vector<8x256xf32>
    %526 = arith.addf %520, %525 : vector<8x256xf32>
    %c2_834 = arith.constant 2 : index
    %c1_835 = arith.constant 1 : index
    %c0_836 = arith.constant 0 : index
    %c0_837 = arith.constant 0 : index
    %527 = vector.load %arg3[%c2_834, %c1_835, %c0_836, %c0_837] : memref<3x3x8x36xf32, #tpu.memory_space<vmem>>, vector<1x1x8x36xf32>
    %528 = vector.shape_cast %527 : vector<1x1x8x36xf32> to vector<8x36xf32>
    %c0_838 = arith.constant 0 : index
    %c3_839 = arith.constant 3 : index
    %c1_840 = arith.constant 1 : index
    %c0_841 = arith.constant 0 : index
    %c0_842 = arith.constant 0 : index
    %529 = vector.load %arg2[%c0_838, %c3_839, %c1_840, %c0_841, %c0_842] : memref<1x4x10x36x256xf32, #tpu.memory_space<vmem>>, vector<1x1x1x36x256xf32>
    %530 = vector.shape_cast %529 : vector<1x1x1x36x256xf32> to vector<36x256xf32>
    %cst_843 = arith.constant dense<0.000000e+00> : vector<8x256xf32>
    %531 = tpu.matmul %528, %530, %cst_843 {dimension_numbers = #tpu.dot_dimension_numbers<[1], [0], [0], [1], [0, 0, 1, 1], [], []>} : vector<8x36xf32>, vector<36x256xf32>, vector<8x256xf32> -> vector<8x256xf32>
    %532 = arith.addf %526, %531 : vector<8x256xf32>
    %c2_844 = arith.constant 2 : index
    %c2_845 = arith.constant 2 : index
    %c0_846 = arith.constant 0 : index
    %c0_847 = arith.constant 0 : index
    %533 = vector.load %arg3[%c2_844, %c2_845, %c0_846, %c0_847] : memref<3x3x8x36xf32, #tpu.memory_space<vmem>>, vector<1x1x8x36xf32>
    %534 = vector.shape_cast %533 : vector<1x1x8x36xf32> to vector<8x36xf32>
    %c0_848 = arith.constant 0 : index
    %c3_849 = arith.constant 3 : index
    %c2_850 = arith.constant 2 : index
    %c0_851 = arith.constant 0 : index
    %c0_852 = arith.constant 0 : index
    %535 = vector.load %arg2[%c0_848, %c3_849, %c2_850, %c0_851, %c0_852] : memref<1x4x10x36x256xf32, #tpu.memory_space<vmem>>, vector<1x1x1x36x256xf32>
    %536 = vector.shape_cast %535 : vector<1x1x1x36x256xf32> to vector<36x256xf32>
    %cst_853 = arith.constant dense<0.000000e+00> : vector<8x256xf32>
    %537 = tpu.matmul %534, %536, %cst_853 {dimension_numbers = #tpu.dot_dimension_numbers<[1], [0], [0], [1], [0, 0, 1, 1], [], []>} : vector<8x36xf32>, vector<36x256xf32>, vector<8x256xf32> -> vector<8x256xf32>
    %538 = arith.addf %532, %537 : vector<8x256xf32>
    %539 = vector.broadcast %483 : vector<8x1xf32> to vector<8x256xf32>
    %540 = arith.addf %538, %539 : vector<8x256xf32>
    %c0_854 = arith.constant 0 : index
    %c1_855 = arith.constant 1 : index
    %c0_856 = arith.constant 0 : index
    %c0_857 = arith.constant 0 : index
    %c0_858 = arith.constant 0 : index
    %541 = vector.load %arg5[%c0_854, %c1_855, %c0_856, %c0_857, %c0_858] : memref<1x2x8x8x256xf32, #tpu.memory_space<vmem>>, vector<1x1x1x8x256xf32>
    %542 = vector.shape_cast %541 : vector<1x1x1x8x256xf32> to vector<8x256xf32>
    %543 = vector.shape_cast %540 : vector<8x256xf32> to vector<1x1x1x8x256xf32>
    tpu.vector_store %arg5[%c0_854, %c1_855, %c0_856, %c0_857, %c0_858], %543 {strides = array<i32>} : memref<1x2x8x8x256xf32, #tpu.memory_space<vmem>>, vector<1x1x1x8x256xf32>,
    %cst_859 = arith.constant 0.000000e+00 : f32
    %544 = vector.broadcast %cst_859 : f32 to vector<8x256xf32>
    %c0_860 = arith.constant 0 : index
    %c0_861 = arith.constant 0 : index
    %c0_862 = arith.constant 0 : index
    %c0_863 = arith.constant 0 : index
    %545 = vector.load %arg3[%c0_860, %c0_861, %c0_862, %c0_863] : memref<3x3x8x36xf32, #tpu.memory_space<vmem>>, vector<1x1x8x36xf32>
    %546 = vector.shape_cast %545 : vector<1x1x8x36xf32> to vector<8x36xf32>
    %c0_864 = arith.constant 0 : index
    %c1_865 = arith.constant 1 : index
    %c1_866 = arith.constant 1 : index
    %c0_867 = arith.constant 0 : index
    %c0_868 = arith.constant 0 : index
    %547 = vector.load %arg2[%c0_864, %c1_865, %c1_866, %c0_867, %c0_868] : memref<1x4x10x36x256xf32, #tpu.memory_space<vmem>>, vector<1x1x1x36x256xf32>
    %548 = vector.shape_cast %547 : vector<1x1x1x36x256xf32> to vector<36x256xf32>
    %cst_869 = arith.constant dense<0.000000e+00> : vector<8x256xf32>
    %549 = tpu.matmul %546, %548, %cst_869 {dimension_numbers = #tpu.dot_dimension_numbers<[1], [0], [0], [1], [0, 0, 1, 1], [], []>} : vector<8x36xf32>, vector<36x256xf32>, vector<8x256xf32> -> vector<8x256xf32>
    %550 = arith.addf %544, %549 : vector<8x256xf32>
    %c0_870 = arith.constant 0 : index
    %c1_871 = arith.constant 1 : index
    %c0_872 = arith.constant 0 : index
    %c0_873 = arith.constant 0 : index
    %551 = vector.load %arg3[%c0_870, %c1_871, %c0_872, %c0_873] : memref<3x3x8x36xf32, #tpu.memory_space<vmem>>, vector<1x1x8x36xf32>
    %552 = vector.shape_cast %551 : vector<1x1x8x36xf32> to vector<8x36xf32>
    %c0_874 = arith.constant 0 : index
    %c1_875 = arith.constant 1 : index
    %c2_876 = arith.constant 2 : index
    %c0_877 = arith.constant 0 : index
    %c0_878 = arith.constant 0 : index
    %553 = vector.load %arg2[%c0_874, %c1_875, %c2_876, %c0_877, %c0_878] : memref<1x4x10x36x256xf32, #tpu.memory_space<vmem>>, vector<1x1x1x36x256xf32>
    %554 = vector.shape_cast %553 : vector<1x1x1x36x256xf32> to vector<36x256xf32>
    %cst_879 = arith.constant dense<0.000000e+00> : vector<8x256xf32>
    %555 = tpu.matmul %552, %554, %cst_879 {dimension_numbers = #tpu.dot_dimension_numbers<[1], [0], [0], [1], [0, 0, 1, 1], [], []>} : vector<8x36xf32>, vector<36x256xf32>, vector<8x256xf32> -> vector<8x256xf32>
    %556 = arith.addf %550, %555 : vector<8x256xf32>
    %c0_880 = arith.constant 0 : index
    %c2_881 = arith.constant 2 : index
    %c0_882 = arith.constant 0 : index
    %c0_883 = arith.constant 0 : index
    %557 = vector.load %arg3[%c0_880, %c2_881, %c0_882, %c0_883] : memref<3x3x8x36xf32, #tpu.memory_space<vmem>>, vector<1x1x8x36xf32>
    %558 = vector.shape_cast %557 : vector<1x1x8x36xf32> to vector<8x36xf32>
    %c0_884 = arith.constant 0 : index
    %c1_885 = arith.constant 1 : index
    %c3_886 = arith.constant 3 : index
    %c0_887 = arith.constant 0 : index
    %c0_888 = arith.constant 0 : index
    %559 = vector.load %arg2[%c0_884, %c1_885, %c3_886, %c0_887, %c0_888] : memref<1x4x10x36x256xf32, #tpu.memory_space<vmem>>, vector<1x1x1x36x256xf32>
    %560 = vector.shape_cast %559 : vector<1x1x1x36x256xf32> to vector<36x256xf32>
    %cst_889 = arith.constant dense<0.000000e+00> : vector<8x256xf32>
    %561 = tpu.matmul %558, %560, %cst_889 {dimension_numbers = #tpu.dot_dimension_numbers<[1], [0], [0], [1], [0, 0, 1, 1], [], []>} : vector<8x36xf32>, vector<36x256xf32>, vector<8x256xf32> -> vector<8x256xf32>
    %562 = arith.addf %556, %561 : vector<8x256xf32>
    %c1_890 = arith.constant 1 : index
    %c0_891 = arith.constant 0 : index
    %c0_892 = arith.constant 0 : index
    %c0_893 = arith.constant 0 : index
    %563 = vector.load %arg3[%c1_890, %c0_891, %c0_892, %c0_893] : memref<3x3x8x36xf32, #tpu.memory_space<vmem>>, vector<1x1x8x36xf32>
    %564 = vector.shape_cast %563 : vector<1x1x8x36xf32> to vector<8x36xf32>
    %c0_894 = arith.constant 0 : index
    %c2_895 = arith.constant 2 : index
    %c1_896 = arith.constant 1 : index
    %c0_897 = arith.constant 0 : index
    %c0_898 = arith.constant 0 : index
    %565 = vector.load %arg2[%c0_894, %c2_895, %c1_896, %c0_897, %c0_898] : memref<1x4x10x36x256xf32, #tpu.memory_space<vmem>>, vector<1x1x1x36x256xf32>
    %566 = vector.shape_cast %565 : vector<1x1x1x36x256xf32> to vector<36x256xf32>
    %cst_899 = arith.constant dense<0.000000e+00> : vector<8x256xf32>
    %567 = tpu.matmul %564, %566, %cst_899 {dimension_numbers = #tpu.dot_dimension_numbers<[1], [0], [0], [1], [0, 0, 1, 1], [], []>} : vector<8x36xf32>, vector<36x256xf32>, vector<8x256xf32> -> vector<8x256xf32>
    %568 = arith.addf %562, %567 : vector<8x256xf32>
    %c1_900 = arith.constant 1 : index
    %c1_901 = arith.constant 1 : index
    %c0_902 = arith.constant 0 : index
    %c0_903 = arith.constant 0 : index
    %569 = vector.load %arg3[%c1_900, %c1_901, %c0_902, %c0_903] : memref<3x3x8x36xf32, #tpu.memory_space<vmem>>, vector<1x1x8x36xf32>
    %570 = vector.shape_cast %569 : vector<1x1x8x36xf32> to vector<8x36xf32>
    %c0_904 = arith.constant 0 : index
    %c2_905 = arith.constant 2 : index
    %c2_906 = arith.constant 2 : index
    %c0_907 = arith.constant 0 : index
    %c0_908 = arith.constant 0 : index
    %571 = vector.load %arg2[%c0_904, %c2_905, %c2_906, %c0_907, %c0_908] : memref<1x4x10x36x256xf32, #tpu.memory_space<vmem>>, vector<1x1x1x36x256xf32>
    %572 = vector.shape_cast %571 : vector<1x1x1x36x256xf32> to vector<36x256xf32>
    %cst_909 = arith.constant dense<0.000000e+00> : vector<8x256xf32>
    %573 = tpu.matmul %570, %572, %cst_909 {dimension_numbers = #tpu.dot_dimension_numbers<[1], [0], [0], [1], [0, 0, 1, 1], [], []>} : vector<8x36xf32>, vector<36x256xf32>, vector<8x256xf32> -> vector<8x256xf32>
    %574 = arith.addf %568, %573 : vector<8x256xf32>
    %c1_910 = arith.constant 1 : index
    %c2_911 = arith.constant 2 : index
    %c0_912 = arith.constant 0 : index
    %c0_913 = arith.constant 0 : index
    %575 = vector.load %arg3[%c1_910, %c2_911, %c0_912, %c0_913] : memref<3x3x8x36xf32, #tpu.memory_space<vmem>>, vector<1x1x8x36xf32>
    %576 = vector.shape_cast %575 : vector<1x1x8x36xf32> to vector<8x36xf32>
    %c0_914 = arith.constant 0 : index
    %c2_915 = arith.constant 2 : index
    %c3_916 = arith.constant 3 : index
    %c0_917 = arith.constant 0 : index
    %c0_918 = arith.constant 0 : index
    %577 = vector.load %arg2[%c0_914, %c2_915, %c3_916, %c0_917, %c0_918] : memref<1x4x10x36x256xf32, #tpu.memory_space<vmem>>, vector<1x1x1x36x256xf32>
    %578 = vector.shape_cast %577 : vector<1x1x1x36x256xf32> to vector<36x256xf32>
    %cst_919 = arith.constant dense<0.000000e+00> : vector<8x256xf32>
    %579 = tpu.matmul %576, %578, %cst_919 {dimension_numbers = #tpu.dot_dimension_numbers<[1], [0], [0], [1], [0, 0, 1, 1], [], []>} : vector<8x36xf32>, vector<36x256xf32>, vector<8x256xf32> -> vector<8x256xf32>
    %580 = arith.addf %574, %579 : vector<8x256xf32>
    %c2_920 = arith.constant 2 : index
    %c0_921 = arith.constant 0 : index
    %c0_922 = arith.constant 0 : index
    %c0_923 = arith.constant 0 : index
    %581 = vector.load %arg3[%c2_920, %c0_921, %c0_922, %c0_923] : memref<3x3x8x36xf32, #tpu.memory_space<vmem>>, vector<1x1x8x36xf32>
    %582 = vector.shape_cast %581 : vector<1x1x8x36xf32> to vector<8x36xf32>
    %c0_924 = arith.constant 0 : index
    %c3_925 = arith.constant 3 : index
    %c1_926 = arith.constant 1 : index
    %c0_927 = arith.constant 0 : index
    %c0_928 = arith.constant 0 : index
    %583 = vector.load %arg2[%c0_924, %c3_925, %c1_926, %c0_927, %c0_928] : memref<1x4x10x36x256xf32, #tpu.memory_space<vmem>>, vector<1x1x1x36x256xf32>
    %584 = vector.shape_cast %583 : vector<1x1x1x36x256xf32> to vector<36x256xf32>
    %cst_929 = arith.constant dense<0.000000e+00> : vector<8x256xf32>
    %585 = tpu.matmul %582, %584, %cst_929 {dimension_numbers = #tpu.dot_dimension_numbers<[1], [0], [0], [1], [0, 0, 1, 1], [], []>} : vector<8x36xf32>, vector<36x256xf32>, vector<8x256xf32> -> vector<8x256xf32>
    %586 = arith.addf %580, %585 : vector<8x256xf32>
    %c2_930 = arith.constant 2 : index
    %c1_931 = arith.constant 1 : index
    %c0_932 = arith.constant 0 : index
    %c0_933 = arith.constant 0 : index
    %587 = vector.load %arg3[%c2_930, %c1_931, %c0_932, %c0_933] : memref<3x3x8x36xf32, #tpu.memory_space<vmem>>, vector<1x1x8x36xf32>
    %588 = vector.shape_cast %587 : vector<1x1x8x36xf32> to vector<8x36xf32>
    %c0_934 = arith.constant 0 : index
    %c3_935 = arith.constant 3 : index
    %c2_936 = arith.constant 2 : index
    %c0_937 = arith.constant 0 : index
    %c0_938 = arith.constant 0 : index
    %589 = vector.load %arg2[%c0_934, %c3_935, %c2_936, %c0_937, %c0_938] : memref<1x4x10x36x256xf32, #tpu.memory_space<vmem>>, vector<1x1x1x36x256xf32>
    %590 = vector.shape_cast %589 : vector<1x1x1x36x256xf32> to vector<36x256xf32>
    %cst_939 = arith.constant dense<0.000000e+00> : vector<8x256xf32>
    %591 = tpu.matmul %588, %590, %cst_939 {dimension_numbers = #tpu.dot_dimension_numbers<[1], [0], [0], [1], [0, 0, 1, 1], [], []>} : vector<8x36xf32>, vector<36x256xf32>, vector<8x256xf32> -> vector<8x256xf32>
    %592 = arith.addf %586, %591 : vector<8x256xf32>
    %c2_940 = arith.constant 2 : index
    %c2_941 = arith.constant 2 : index
    %c0_942 = arith.constant 0 : index
    %c0_943 = arith.constant 0 : index
    %593 = vector.load %arg3[%c2_940, %c2_941, %c0_942, %c0_943] : memref<3x3x8x36xf32, #tpu.memory_space<vmem>>, vector<1x1x8x36xf32>
    %594 = vector.shape_cast %593 : vector<1x1x8x36xf32> to vector<8x36xf32>
    %c0_944 = arith.constant 0 : index
    %c3_945 = arith.constant 3 : index
    %c3_946 = arith.constant 3 : index
    %c0_947 = arith.constant 0 : index
    %c0_948 = arith.constant 0 : index
    %595 = vector.load %arg2[%c0_944, %c3_945, %c3_946, %c0_947, %c0_948] : memref<1x4x10x36x256xf32, #tpu.memory_space<vmem>>, vector<1x1x1x36x256xf32>
    %596 = vector.shape_cast %595 : vector<1x1x1x36x256xf32> to vector<36x256xf32>
    %cst_949 = arith.constant dense<0.000000e+00> : vector<8x256xf32>
    %597 = tpu.matmul %594, %596, %cst_949 {dimension_numbers = #tpu.dot_dimension_numbers<[1], [0], [0], [1], [0, 0, 1, 1], [], []>} : vector<8x36xf32>, vector<36x256xf32>, vector<8x256xf32> -> vector<8x256xf32>
    %598 = arith.addf %592, %597 : vector<8x256xf32>
    %599 = vector.broadcast %483 : vector<8x1xf32> to vector<8x256xf32>
    %600 = arith.addf %598, %599 : vector<8x256xf32>
    %c0_950 = arith.constant 0 : index
    %c1_951 = arith.constant 1 : index
    %c1_952 = arith.constant 1 : index
    %c0_953 = arith.constant 0 : index
    %c0_954 = arith.constant 0 : index
    %601 = vector.load %arg5[%c0_950, %c1_951, %c1_952, %c0_953, %c0_954] : memref<1x2x8x8x256xf32, #tpu.memory_space<vmem>>, vector<1x1x1x8x256xf32>
    %602 = vector.shape_cast %601 : vector<1x1x1x8x256xf32> to vector<8x256xf32>
    %603 = vector.shape_cast %600 : vector<8x256xf32> to vector<1x1x1x8x256xf32>
    tpu.vector_store %arg5[%c0_950, %c1_951, %c1_952, %c0_953, %c0_954], %603 {strides = array<i32>} : memref<1x2x8x8x256xf32, #tpu.memory_space<vmem>>, vector<1x1x1x8x256xf32>,
    %cst_955 = arith.constant 0.000000e+00 : f32
    %604 = vector.broadcast %cst_955 : f32 to vector<8x256xf32>
    %c0_956 = arith.constant 0 : index
    %c0_957 = arith.constant 0 : index
    %c0_958 = arith.constant 0 : index
    %c0_959 = arith.constant 0 : index
    %605 = vector.load %arg3[%c0_956, %c0_957, %c0_958, %c0_959] : memref<3x3x8x36xf32, #tpu.memory_space<vmem>>, vector<1x1x8x36xf32>
    %606 = vector.shape_cast %605 : vector<1x1x8x36xf32> to vector<8x36xf32>
    %c0_960 = arith.constant 0 : index
    %c1_961 = arith.constant 1 : index
    %c2_962 = arith.constant 2 : index
    %c0_963 = arith.constant 0 : index
    %c0_964 = arith.constant 0 : index
    %607 = vector.load %arg2[%c0_960, %c1_961, %c2_962, %c0_963, %c0_964] : memref<1x4x10x36x256xf32, #tpu.memory_space<vmem>>, vector<1x1x1x36x256xf32>
    %608 = vector.shape_cast %607 : vector<1x1x1x36x256xf32> to vector<36x256xf32>
    %cst_965 = arith.constant dense<0.000000e+00> : vector<8x256xf32>
    %609 = tpu.matmul %606, %608, %cst_965 {dimension_numbers = #tpu.dot_dimension_numbers<[1], [0], [0], [1], [0, 0, 1, 1], [], []>} : vector<8x36xf32>, vector<36x256xf32>, vector<8x256xf32> -> vector<8x256xf32>
    %610 = arith.addf %604, %609 : vector<8x256xf32>
    %c0_966 = arith.constant 0 : index
    %c1_967 = arith.constant 1 : index
    %c0_968 = arith.constant 0 : index
    %c0_969 = arith.constant 0 : index
    %611 = vector.load %arg3[%c0_966, %c1_967, %c0_968, %c0_969] : memref<3x3x8x36xf32, #tpu.memory_space<vmem>>, vector<1x1x8x36xf32>
    %612 = vector.shape_cast %611 : vector<1x1x8x36xf32> to vector<8x36xf32>
    %c0_970 = arith.constant 0 : index
    %c1_971 = arith.constant 1 : index
    %c3_972 = arith.constant 3 : index
    %c0_973 = arith.constant 0 : index
    %c0_974 = arith.constant 0 : index
    %613 = vector.load %arg2[%c0_970, %c1_971, %c3_972, %c0_973, %c0_974] : memref<1x4x10x36x256xf32, #tpu.memory_space<vmem>>, vector<1x1x1x36x256xf32>
    %614 = vector.shape_cast %613 : vector<1x1x1x36x256xf32> to vector<36x256xf32>
    %cst_975 = arith.constant dense<0.000000e+00> : vector<8x256xf32>
    %615 = tpu.matmul %612, %614, %cst_975 {dimension_numbers = #tpu.dot_dimension_numbers<[1], [0], [0], [1], [0, 0, 1, 1], [], []>} : vector<8x36xf32>, vector<36x256xf32>, vector<8x256xf32> -> vector<8x256xf32>
    %616 = arith.addf %610, %615 : vector<8x256xf32>
    %c0_976 = arith.constant 0 : index
    %c2_977 = arith.constant 2 : index
    %c0_978 = arith.constant 0 : index
    %c0_979 = arith.constant 0 : index
    %617 = vector.load %arg3[%c0_976, %c2_977, %c0_978, %c0_979] : memref<3x3x8x36xf32, #tpu.memory_space<vmem>>, vector<1x1x8x36xf32>
    %618 = vector.shape_cast %617 : vector<1x1x8x36xf32> to vector<8x36xf32>
    %c0_980 = arith.constant 0 : index
    %c1_981 = arith.constant 1 : index
    %c4_982 = arith.constant 4 : index
    %c0_983 = arith.constant 0 : index
    %c0_984 = arith.constant 0 : index
    %619 = vector.load %arg2[%c0_980, %c1_981, %c4_982, %c0_983, %c0_984] : memref<1x4x10x36x256xf32, #tpu.memory_space<vmem>>, vector<1x1x1x36x256xf32>
    %620 = vector.shape_cast %619 : vector<1x1x1x36x256xf32> to vector<36x256xf32>
    %cst_985 = arith.constant dense<0.000000e+00> : vector<8x256xf32>
    %621 = tpu.matmul %618, %620, %cst_985 {dimension_numbers = #tpu.dot_dimension_numbers<[1], [0], [0], [1], [0, 0, 1, 1], [], []>} : vector<8x36xf32>, vector<36x256xf32>, vector<8x256xf32> -> vector<8x256xf32>
    %622 = arith.addf %616, %621 : vector<8x256xf32>
    %c1_986 = arith.constant 1 : index
    %c0_987 = arith.constant 0 : index
    %c0_988 = arith.constant 0 : index
    %c0_989 = arith.constant 0 : index
    %623 = vector.load %arg3[%c1_986, %c0_987, %c0_988, %c0_989] : memref<3x3x8x36xf32, #tpu.memory_space<vmem>>, vector<1x1x8x36xf32>
    %624 = vector.shape_cast %623 : vector<1x1x8x36xf32> to vector<8x36xf32>
    %c0_990 = arith.constant 0 : index
    %c2_991 = arith.constant 2 : index
    %c2_992 = arith.constant 2 : index
    %c0_993 = arith.constant 0 : index
    %c0_994 = arith.constant 0 : index
    %625 = vector.load %arg2[%c0_990, %c2_991, %c2_992, %c0_993, %c0_994] : memref<1x4x10x36x256xf32, #tpu.memory_space<vmem>>, vector<1x1x1x36x256xf32>
    %626 = vector.shape_cast %625 : vector<1x1x1x36x256xf32> to vector<36x256xf32>
    %cst_995 = arith.constant dense<0.000000e+00> : vector<8x256xf32>
    %627 = tpu.matmul %624, %626, %cst_995 {dimension_numbers = #tpu.dot_dimension_numbers<[1], [0], [0], [1], [0, 0, 1, 1], [], []>} : vector<8x36xf32>, vector<36x256xf32>, vector<8x256xf32> -> vector<8x256xf32>
    %628 = arith.addf %622, %627 : vector<8x256xf32>
    %c1_996 = arith.constant 1 : index
    %c1_997 = arith.constant 1 : index
    %c0_998 = arith.constant 0 : index
    %c0_999 = arith.constant 0 : index
    %629 = vector.load %arg3[%c1_996, %c1_997, %c0_998, %c0_999] : memref<3x3x8x36xf32, #tpu.memory_space<vmem>>, vector<1x1x8x36xf32>
    %630 = vector.shape_cast %629 : vector<1x1x8x36xf32> to vector<8x36xf32>
    %c0_1000 = arith.constant 0 : index
    %c2_1001 = arith.constant 2 : index
    %c3_1002 = arith.constant 3 : index
    %c0_1003 = arith.constant 0 : index
    %c0_1004 = arith.constant 0 : index
    %631 = vector.load %arg2[%c0_1000, %c2_1001, %c3_1002, %c0_1003, %c0_1004] : memref<1x4x10x36x256xf32, #tpu.memory_space<vmem>>, vector<1x1x1x36x256xf32>
    %632 = vector.shape_cast %631 : vector<1x1x1x36x256xf32> to vector<36x256xf32>
    %cst_1005 = arith.constant dense<0.000000e+00> : vector<8x256xf32>
    %633 = tpu.matmul %630, %632, %cst_1005 {dimension_numbers = #tpu.dot_dimension_numbers<[1], [0], [0], [1], [0, 0, 1, 1], [], []>} : vector<8x36xf32>, vector<36x256xf32>, vector<8x256xf32> -> vector<8x256xf32>
    %634 = arith.addf %628, %633 : vector<8x256xf32>
    %c1_1006 = arith.constant 1 : index
    %c2_1007 = arith.constant 2 : index
    %c0_1008 = arith.constant 0 : index
    %c0_1009 = arith.constant 0 : index
    %635 = vector.load %arg3[%c1_1006, %c2_1007, %c0_1008, %c0_1009] : memref<3x3x8x36xf32, #tpu.memory_space<vmem>>, vector<1x1x8x36xf32>
    %636 = vector.shape_cast %635 : vector<1x1x8x36xf32> to vector<8x36xf32>
    %c0_1010 = arith.constant 0 : index
    %c2_1011 = arith.constant 2 : index
    %c4_1012 = arith.constant 4 : index
    %c0_1013 = arith.constant 0 : index
    %c0_1014 = arith.constant 0 : index
    %637 = vector.load %arg2[%c0_1010, %c2_1011, %c4_1012, %c0_1013, %c0_1014] : memref<1x4x10x36x256xf32, #tpu.memory_space<vmem>>, vector<1x1x1x36x256xf32>
    %638 = vector.shape_cast %637 : vector<1x1x1x36x256xf32> to vector<36x256xf32>
    %cst_1015 = arith.constant dense<0.000000e+00> : vector<8x256xf32>
    %639 = tpu.matmul %636, %638, %cst_1015 {dimension_numbers = #tpu.dot_dimension_numbers<[1], [0], [0], [1], [0, 0, 1, 1], [], []>} : vector<8x36xf32>, vector<36x256xf32>, vector<8x256xf32> -> vector<8x256xf32>
    %640 = arith.addf %634, %639 : vector<8x256xf32>
    %c2_1016 = arith.constant 2 : index
    %c0_1017 = arith.constant 0 : index
    %c0_1018 = arith.constant 0 : index
    %c0_1019 = arith.constant 0 : index
    %641 = vector.load %arg3[%c2_1016, %c0_1017, %c0_1018, %c0_1019] : memref<3x3x8x36xf32, #tpu.memory_space<vmem>>, vector<1x1x8x36xf32>
    %642 = vector.shape_cast %641 : vector<1x1x8x36xf32> to vector<8x36xf32>
    %c0_1020 = arith.constant 0 : index
    %c3_1021 = arith.constant 3 : index
    %c2_1022 = arith.constant 2 : index
    %c0_1023 = arith.constant 0 : index
    %c0_1024 = arith.constant 0 : index
    %643 = vector.load %arg2[%c0_1020, %c3_1021, %c2_1022, %c0_1023, %c0_1024] : memref<1x4x10x36x256xf32, #tpu.memory_space<vmem>>, vector<1x1x1x36x256xf32>
    %644 = vector.shape_cast %643 : vector<1x1x1x36x256xf32> to vector<36x256xf32>
    %cst_1025 = arith.constant dense<0.000000e+00> : vector<8x256xf32>
    %645 = tpu.matmul %642, %644, %cst_1025 {dimension_numbers = #tpu.dot_dimension_numbers<[1], [0], [0], [1], [0, 0, 1, 1], [], []>} : vector<8x36xf32>, vector<36x256xf32>, vector<8x256xf32> -> vector<8x256xf32>
    %646 = arith.addf %640, %645 : vector<8x256xf32>
    %c2_1026 = arith.constant 2 : index
    %c1_1027 = arith.constant 1 : index
    %c0_1028 = arith.constant 0 : index
    %c0_1029 = arith.constant 0 : index
    %647 = vector.load %arg3[%c2_1026, %c1_1027, %c0_1028, %c0_1029] : memref<3x3x8x36xf32, #tpu.memory_space<vmem>>, vector<1x1x8x36xf32>
    %648 = vector.shape_cast %647 : vector<1x1x8x36xf32> to vector<8x36xf32>
    %c0_1030 = arith.constant 0 : index
    %c3_1031 = arith.constant 3 : index
    %c3_1032 = arith.constant 3 : index
    %c0_1033 = arith.constant 0 : index
    %c0_1034 = arith.constant 0 : index
    %649 = vector.load %arg2[%c0_1030, %c3_1031, %c3_1032, %c0_1033, %c0_1034] : memref<1x4x10x36x256xf32, #tpu.memory_space<vmem>>, vector<1x1x1x36x256xf32>
    %650 = vector.shape_cast %649 : vector<1x1x1x36x256xf32> to vector<36x256xf32>
    %cst_1035 = arith.constant dense<0.000000e+00> : vector<8x256xf32>
    %651 = tpu.matmul %648, %650, %cst_1035 {dimension_numbers = #tpu.dot_dimension_numbers<[1], [0], [0], [1], [0, 0, 1, 1], [], []>} : vector<8x36xf32>, vector<36x256xf32>, vector<8x256xf32> -> vector<8x256xf32>
    %652 = arith.addf %646, %651 : vector<8x256xf32>
    %c2_1036 = arith.constant 2 : index
    %c2_1037 = arith.constant 2 : index
    %c0_1038 = arith.constant 0 : index
    %c0_1039 = arith.constant 0 : index
    %653 = vector.load %arg3[%c2_1036, %c2_1037, %c0_1038, %c0_1039] : memref<3x3x8x36xf32, #tpu.memory_space<vmem>>, vector<1x1x8x36xf32>
    %654 = vector.shape_cast %653 : vector<1x1x8x36xf32> to vector<8x36xf32>
    %c0_1040 = arith.constant 0 : index
    %c3_1041 = arith.constant 3 : index
    %c4_1042 = arith.constant 4 : index
    %c0_1043 = arith.constant 0 : index
    %c0_1044 = arith.constant 0 : index
    %655 = vector.load %arg2[%c0_1040, %c3_1041, %c4_1042, %c0_1043, %c0_1044] : memref<1x4x10x36x256xf32, #tpu.memory_space<vmem>>, vector<1x1x1x36x256xf32>
    %656 = vector.shape_cast %655 : vector<1x1x1x36x256xf32> to vector<36x256xf32>
    %cst_1045 = arith.constant dense<0.000000e+00> : vector<8x256xf32>
    %657 = tpu.matmul %654, %656, %cst_1045 {dimension_numbers = #tpu.dot_dimension_numbers<[1], [0], [0], [1], [0, 0, 1, 1], [], []>} : vector<8x36xf32>, vector<36x256xf32>, vector<8x256xf32> -> vector<8x256xf32>
    %658 = arith.addf %652, %657 : vector<8x256xf32>
    %659 = vector.broadcast %483 : vector<8x1xf32> to vector<8x256xf32>
    %660 = arith.addf %658, %659 : vector<8x256xf32>
    %c0_1046 = arith.constant 0 : index
    %c1_1047 = arith.constant 1 : index
    %c2_1048 = arith.constant 2 : index
    %c0_1049 = arith.constant 0 : index
    %c0_1050 = arith.constant 0 : index
    %661 = vector.load %arg5[%c0_1046, %c1_1047, %c2_1048, %c0_1049, %c0_1050] : memref<1x2x8x8x256xf32, #tpu.memory_space<vmem>>, vector<1x1x1x8x256xf32>
    %662 = vector.shape_cast %661 : vector<1x1x1x8x256xf32> to vector<8x256xf32>
    %663 = vector.shape_cast %660 : vector<8x256xf32> to vector<1x1x1x8x256xf32>
    tpu.vector_store %arg5[%c0_1046, %c1_1047, %c2_1048, %c0_1049, %c0_1050], %663 {strides = array<i32>} : memref<1x2x8x8x256xf32, #tpu.memory_space<vmem>>, vector<1x1x1x8x256xf32>,
    %cst_1051 = arith.constant 0.000000e+00 : f32
    %664 = vector.broadcast %cst_1051 : f32 to vector<8x256xf32>
    %c0_1052 = arith.constant 0 : index
    %c0_1053 = arith.constant 0 : index
    %c0_1054 = arith.constant 0 : index
    %c0_1055 = arith.constant 0 : index
    %665 = vector.load %arg3[%c0_1052, %c0_1053, %c0_1054, %c0_1055] : memref<3x3x8x36xf32, #tpu.memory_space<vmem>>, vector<1x1x8x36xf32>
    %666 = vector.shape_cast %665 : vector<1x1x8x36xf32> to vector<8x36xf32>
    %c0_1056 = arith.constant 0 : index
    %c1_1057 = arith.constant 1 : index
    %c3_1058 = arith.constant 3 : index
    %c0_1059 = arith.constant 0 : index
    %c0_1060 = arith.constant 0 : index
    %667 = vector.load %arg2[%c0_1056, %c1_1057, %c3_1058, %c0_1059, %c0_1060] : memref<1x4x10x36x256xf32, #tpu.memory_space<vmem>>, vector<1x1x1x36x256xf32>
    %668 = vector.shape_cast %667 : vector<1x1x1x36x256xf32> to vector<36x256xf32>
    %cst_1061 = arith.constant dense<0.000000e+00> : vector<8x256xf32>
    %669 = tpu.matmul %666, %668, %cst_1061 {dimension_numbers = #tpu.dot_dimension_numbers<[1], [0], [0], [1], [0, 0, 1, 1], [], []>} : vector<8x36xf32>, vector<36x256xf32>, vector<8x256xf32> -> vector<8x256xf32>
    %670 = arith.addf %664, %669 : vector<8x256xf32>
    %c0_1062 = arith.constant 0 : index
    %c1_1063 = arith.constant 1 : index
    %c0_1064 = arith.constant 0 : index
    %c0_1065 = arith.constant 0 : index
    %671 = vector.load %arg3[%c0_1062, %c1_1063, %c0_1064, %c0_1065] : memref<3x3x8x36xf32, #tpu.memory_space<vmem>>, vector<1x1x8x36xf32>
    %672 = vector.shape_cast %671 : vector<1x1x8x36xf32> to vector<8x36xf32>
    %c0_1066 = arith.constant 0 : index
    %c1_1067 = arith.constant 1 : index
    %c4_1068 = arith.constant 4 : index
    %c0_1069 = arith.constant 0 : index
    %c0_1070 = arith.constant 0 : index
    %673 = vector.load %arg2[%c0_1066, %c1_1067, %c4_1068, %c0_1069, %c0_1070] : memref<1x4x10x36x256xf32, #tpu.memory_space<vmem>>, vector<1x1x1x36x256xf32>
    %674 = vector.shape_cast %673 : vector<1x1x1x36x256xf32> to vector<36x256xf32>
    %cst_1071 = arith.constant dense<0.000000e+00> : vector<8x256xf32>
    %675 = tpu.matmul %672, %674, %cst_1071 {dimension_numbers = #tpu.dot_dimension_numbers<[1], [0], [0], [1], [0, 0, 1, 1], [], []>} : vector<8x36xf32>, vector<36x256xf32>, vector<8x256xf32> -> vector<8x256xf32>
    %676 = arith.addf %670, %675 : vector<8x256xf32>
    %c0_1072 = arith.constant 0 : index
    %c2_1073 = arith.constant 2 : index
    %c0_1074 = arith.constant 0 : index
    %c0_1075 = arith.constant 0 : index
    %677 = vector.load %arg3[%c0_1072, %c2_1073, %c0_1074, %c0_1075] : memref<3x3x8x36xf32, #tpu.memory_space<vmem>>, vector<1x1x8x36xf32>
    %678 = vector.shape_cast %677 : vector<1x1x8x36xf32> to vector<8x36xf32>
    %c0_1076 = arith.constant 0 : index
    %c1_1077 = arith.constant 1 : index
    %c5_1078 = arith.constant 5 : index
    %c0_1079 = arith.constant 0 : index
    %c0_1080 = arith.constant 0 : index
    %679 = vector.load %arg2[%c0_1076, %c1_1077, %c5_1078, %c0_1079, %c0_1080] : memref<1x4x10x36x256xf32, #tpu.memory_space<vmem>>, vector<1x1x1x36x256xf32>
    %680 = vector.shape_cast %679 : vector<1x1x1x36x256xf32> to vector<36x256xf32>
    %cst_1081 = arith.constant dense<0.000000e+00> : vector<8x256xf32>
    %681 = tpu.matmul %678, %680, %cst_1081 {dimension_numbers = #tpu.dot_dimension_numbers<[1], [0], [0], [1], [0, 0, 1, 1], [], []>} : vector<8x36xf32>, vector<36x256xf32>, vector<8x256xf32> -> vector<8x256xf32>
    %682 = arith.addf %676, %681 : vector<8x256xf32>
    %c1_1082 = arith.constant 1 : index
    %c0_1083 = arith.constant 0 : index
    %c0_1084 = arith.constant 0 : index
    %c0_1085 = arith.constant 0 : index
    %683 = vector.load %arg3[%c1_1082, %c0_1083, %c0_1084, %c0_1085] : memref<3x3x8x36xf32, #tpu.memory_space<vmem>>, vector<1x1x8x36xf32>
    %684 = vector.shape_cast %683 : vector<1x1x8x36xf32> to vector<8x36xf32>
    %c0_1086 = arith.constant 0 : index
    %c2_1087 = arith.constant 2 : index
    %c3_1088 = arith.constant 3 : index
    %c0_1089 = arith.constant 0 : index
    %c0_1090 = arith.constant 0 : index
    %685 = vector.load %arg2[%c0_1086, %c2_1087, %c3_1088, %c0_1089, %c0_1090] : memref<1x4x10x36x256xf32, #tpu.memory_space<vmem>>, vector<1x1x1x36x256xf32>
    %686 = vector.shape_cast %685 : vector<1x1x1x36x256xf32> to vector<36x256xf32>
    %cst_1091 = arith.constant dense<0.000000e+00> : vector<8x256xf32>
    %687 = tpu.matmul %684, %686, %cst_1091 {dimension_numbers = #tpu.dot_dimension_numbers<[1], [0], [0], [1], [0, 0, 1, 1], [], []>} : vector<8x36xf32>, vector<36x256xf32>, vector<8x256xf32> -> vector<8x256xf32>
    %688 = arith.addf %682, %687 : vector<8x256xf32>
    %c1_1092 = arith.constant 1 : index
    %c1_1093 = arith.constant 1 : index
    %c0_1094 = arith.constant 0 : index
    %c0_1095 = arith.constant 0 : index
    %689 = vector.load %arg3[%c1_1092, %c1_1093, %c0_1094, %c0_1095] : memref<3x3x8x36xf32, #tpu.memory_space<vmem>>, vector<1x1x8x36xf32>
    %690 = vector.shape_cast %689 : vector<1x1x8x36xf32> to vector<8x36xf32>
    %c0_1096 = arith.constant 0 : index
    %c2_1097 = arith.constant 2 : index
    %c4_1098 = arith.constant 4 : index
    %c0_1099 = arith.constant 0 : index
    %c0_1100 = arith.constant 0 : index
    %691 = vector.load %arg2[%c0_1096, %c2_1097, %c4_1098, %c0_1099, %c0_1100] : memref<1x4x10x36x256xf32, #tpu.memory_space<vmem>>, vector<1x1x1x36x256xf32>
    %692 = vector.shape_cast %691 : vector<1x1x1x36x256xf32> to vector<36x256xf32>
    %cst_1101 = arith.constant dense<0.000000e+00> : vector<8x256xf32>
    %693 = tpu.matmul %690, %692, %cst_1101 {dimension_numbers = #tpu.dot_dimension_numbers<[1], [0], [0], [1], [0, 0, 1, 1], [], []>} : vector<8x36xf32>, vector<36x256xf32>, vector<8x256xf32> -> vector<8x256xf32>
    %694 = arith.addf %688, %693 : vector<8x256xf32>
    %c1_1102 = arith.constant 1 : index
    %c2_1103 = arith.constant 2 : index
    %c0_1104 = arith.constant 0 : index
    %c0_1105 = arith.constant 0 : index
    %695 = vector.load %arg3[%c1_1102, %c2_1103, %c0_1104, %c0_1105] : memref<3x3x8x36xf32, #tpu.memory_space<vmem>>, vector<1x1x8x36xf32>
    %696 = vector.shape_cast %695 : vector<1x1x8x36xf32> to vector<8x36xf32>
    %c0_1106 = arith.constant 0 : index
    %c2_1107 = arith.constant 2 : index
    %c5_1108 = arith.constant 5 : index
    %c0_1109 = arith.constant 0 : index
    %c0_1110 = arith.constant 0 : index
    %697 = vector.load %arg2[%c0_1106, %c2_1107, %c5_1108, %c0_1109, %c0_1110] : memref<1x4x10x36x256xf32, #tpu.memory_space<vmem>>, vector<1x1x1x36x256xf32>
    %698 = vector.shape_cast %697 : vector<1x1x1x36x256xf32> to vector<36x256xf32>
    %cst_1111 = arith.constant dense<0.000000e+00> : vector<8x256xf32>
    %699 = tpu.matmul %696, %698, %cst_1111 {dimension_numbers = #tpu.dot_dimension_numbers<[1], [0], [0], [1], [0, 0, 1, 1], [], []>} : vector<8x36xf32>, vector<36x256xf32>, vector<8x256xf32> -> vector<8x256xf32>
    %700 = arith.addf %694, %699 : vector<8x256xf32>
    %c2_1112 = arith.constant 2 : index
    %c0_1113 = arith.constant 0 : index
    %c0_1114 = arith.constant 0 : index
    %c0_1115 = arith.constant 0 : index
    %701 = vector.load %arg3[%c2_1112, %c0_1113, %c0_1114, %c0_1115] : memref<3x3x8x36xf32, #tpu.memory_space<vmem>>, vector<1x1x8x36xf32>
    %702 = vector.shape_cast %701 : vector<1x1x8x36xf32> to vector<8x36xf32>
    %c0_1116 = arith.constant 0 : index
    %c3_1117 = arith.constant 3 : index
    %c3_1118 = arith.constant 3 : index
    %c0_1119 = arith.constant 0 : index
    %c0_1120 = arith.constant 0 : index
    %703 = vector.load %arg2[%c0_1116, %c3_1117, %c3_1118, %c0_1119, %c0_1120] : memref<1x4x10x36x256xf32, #tpu.memory_space<vmem>>, vector<1x1x1x36x256xf32>
    %704 = vector.shape_cast %703 : vector<1x1x1x36x256xf32> to vector<36x256xf32>
    %cst_1121 = arith.constant dense<0.000000e+00> : vector<8x256xf32>
    %705 = tpu.matmul %702, %704, %cst_1121 {dimension_numbers = #tpu.dot_dimension_numbers<[1], [0], [0], [1], [0, 0, 1, 1], [], []>} : vector<8x36xf32>, vector<36x256xf32>, vector<8x256xf32> -> vector<8x256xf32>
    %706 = arith.addf %700, %705 : vector<8x256xf32>
    %c2_1122 = arith.constant 2 : index
    %c1_1123 = arith.constant 1 : index
    %c0_1124 = arith.constant 0 : index
    %c0_1125 = arith.constant 0 : index
    %707 = vector.load %arg3[%c2_1122, %c1_1123, %c0_1124, %c0_1125] : memref<3x3x8x36xf32, #tpu.memory_space<vmem>>, vector<1x1x8x36xf32>
    %708 = vector.shape_cast %707 : vector<1x1x8x36xf32> to vector<8x36xf32>
    %c0_1126 = arith.constant 0 : index
    %c3_1127 = arith.constant 3 : index
    %c4_1128 = arith.constant 4 : index
    %c0_1129 = arith.constant 0 : index
    %c0_1130 = arith.constant 0 : index
    %709 = vector.load %arg2[%c0_1126, %c3_1127, %c4_1128, %c0_1129, %c0_1130] : memref<1x4x10x36x256xf32, #tpu.memory_space<vmem>>, vector<1x1x1x36x256xf32>
    %710 = vector.shape_cast %709 : vector<1x1x1x36x256xf32> to vector<36x256xf32>
    %cst_1131 = arith.constant dense<0.000000e+00> : vector<8x256xf32>
    %711 = tpu.matmul %708, %710, %cst_1131 {dimension_numbers = #tpu.dot_dimension_numbers<[1], [0], [0], [1], [0, 0, 1, 1], [], []>} : vector<8x36xf32>, vector<36x256xf32>, vector<8x256xf32> -> vector<8x256xf32>
    %712 = arith.addf %706, %711 : vector<8x256xf32>
    %c2_1132 = arith.constant 2 : index
    %c2_1133 = arith.constant 2 : index
    %c0_1134 = arith.constant 0 : index
    %c0_1135 = arith.constant 0 : index
    %713 = vector.load %arg3[%c2_1132, %c2_1133, %c0_1134, %c0_1135] : memref<3x3x8x36xf32, #tpu.memory_space<vmem>>, vector<1x1x8x36xf32>
    %714 = vector.shape_cast %713 : vector<1x1x8x36xf32> to vector<8x36xf32>
    %c0_1136 = arith.constant 0 : index
    %c3_1137 = arith.constant 3 : index
    %c5_1138 = arith.constant 5 : index
    %c0_1139 = arith.constant 0 : index
    %c0_1140 = arith.constant 0 : index
    %715 = vector.load %arg2[%c0_1136, %c3_1137, %c5_1138, %c0_1139, %c0_1140] : memref<1x4x10x36x256xf32, #tpu.memory_space<vmem>>, vector<1x1x1x36x256xf32>
    %716 = vector.shape_cast %715 : vector<1x1x1x36x256xf32> to vector<36x256xf32>
    %cst_1141 = arith.constant dense<0.000000e+00> : vector<8x256xf32>
    %717 = tpu.matmul %714, %716, %cst_1141 {dimension_numbers = #tpu.dot_dimension_numbers<[1], [0], [0], [1], [0, 0, 1, 1], [], []>} : vector<8x36xf32>, vector<36x256xf32>, vector<8x256xf32> -> vector<8x256xf32>
    %718 = arith.addf %712, %717 : vector<8x256xf32>
    %719 = vector.broadcast %483 : vector<8x1xf32> to vector<8x256xf32>
    %720 = arith.addf %718, %719 : vector<8x256xf32>
    %c0_1142 = arith.constant 0 : index
    %c1_1143 = arith.constant 1 : index
    %c3_1144 = arith.constant 3 : index
    %c0_1145 = arith.constant 0 : index
    %c0_1146 = arith.constant 0 : index
    %721 = vector.load %arg5[%c0_1142, %c1_1143, %c3_1144, %c0_1145, %c0_1146] : memref<1x2x8x8x256xf32, #tpu.memory_space<vmem>>, vector<1x1x1x8x256xf32>
    %722 = vector.shape_cast %721 : vector<1x1x1x8x256xf32> to vector<8x256xf32>
    %723 = vector.shape_cast %720 : vector<8x256xf32> to vector<1x1x1x8x256xf32>
    tpu.vector_store %arg5[%c0_1142, %c1_1143, %c3_1144, %c0_1145, %c0_1146], %723 {strides = array<i32>} : memref<1x2x8x8x256xf32, #tpu.memory_space<vmem>>, vector<1x1x1x8x256xf32>,
    %cst_1147 = arith.constant 0.000000e+00 : f32
    %724 = vector.broadcast %cst_1147 : f32 to vector<8x256xf32>
    %c0_1148 = arith.constant 0 : index
    %c0_1149 = arith.constant 0 : index
    %c0_1150 = arith.constant 0 : index
    %c0_1151 = arith.constant 0 : index
    %725 = vector.load %arg3[%c0_1148, %c0_1149, %c0_1150, %c0_1151] : memref<3x3x8x36xf32, #tpu.memory_space<vmem>>, vector<1x1x8x36xf32>
    %726 = vector.shape_cast %725 : vector<1x1x8x36xf32> to vector<8x36xf32>
    %c0_1152 = arith.constant 0 : index
    %c1_1153 = arith.constant 1 : index
    %c4_1154 = arith.constant 4 : index
    %c0_1155 = arith.constant 0 : index
    %c0_1156 = arith.constant 0 : index
    %727 = vector.load %arg2[%c0_1152, %c1_1153, %c4_1154, %c0_1155, %c0_1156] : memref<1x4x10x36x256xf32, #tpu.memory_space<vmem>>, vector<1x1x1x36x256xf32>
    %728 = vector.shape_cast %727 : vector<1x1x1x36x256xf32> to vector<36x256xf32>
    %cst_1157 = arith.constant dense<0.000000e+00> : vector<8x256xf32>
    %729 = tpu.matmul %726, %728, %cst_1157 {dimension_numbers = #tpu.dot_dimension_numbers<[1], [0], [0], [1], [0, 0, 1, 1], [], []>} : vector<8x36xf32>, vector<36x256xf32>, vector<8x256xf32> -> vector<8x256xf32>
    %730 = arith.addf %724, %729 : vector<8x256xf32>
    %c0_1158 = arith.constant 0 : index
    %c1_1159 = arith.constant 1 : index
    %c0_1160 = arith.constant 0 : index
    %c0_1161 = arith.constant 0 : index
    %731 = vector.load %arg3[%c0_1158, %c1_1159, %c0_1160, %c0_1161] : memref<3x3x8x36xf32, #tpu.memory_space<vmem>>, vector<1x1x8x36xf32>
    %732 = vector.shape_cast %731 : vector<1x1x8x36xf32> to vector<8x36xf32>
    %c0_1162 = arith.constant 0 : index
    %c1_1163 = arith.constant 1 : index
    %c5_1164 = arith.constant 5 : index
    %c0_1165 = arith.constant 0 : index
    %c0_1166 = arith.constant 0 : index
    %733 = vector.load %arg2[%c0_1162, %c1_1163, %c5_1164, %c0_1165, %c0_1166] : memref<1x4x10x36x256xf32, #tpu.memory_space<vmem>>, vector<1x1x1x36x256xf32>
    %734 = vector.shape_cast %733 : vector<1x1x1x36x256xf32> to vector<36x256xf32>
    %cst_1167 = arith.constant dense<0.000000e+00> : vector<8x256xf32>
    %735 = tpu.matmul %732, %734, %cst_1167 {dimension_numbers = #tpu.dot_dimension_numbers<[1], [0], [0], [1], [0, 0, 1, 1], [], []>} : vector<8x36xf32>, vector<36x256xf32>, vector<8x256xf32> -> vector<8x256xf32>
    %736 = arith.addf %730, %735 : vector<8x256xf32>
    %c0_1168 = arith.constant 0 : index
    %c2_1169 = arith.constant 2 : index
    %c0_1170 = arith.constant 0 : index
    %c0_1171 = arith.constant 0 : index
    %737 = vector.load %arg3[%c0_1168, %c2_1169, %c0_1170, %c0_1171] : memref<3x3x8x36xf32, #tpu.memory_space<vmem>>, vector<1x1x8x36xf32>
    %738 = vector.shape_cast %737 : vector<1x1x8x36xf32> to vector<8x36xf32>
    %c0_1172 = arith.constant 0 : index
    %c1_1173 = arith.constant 1 : index
    %c6_1174 = arith.constant 6 : index
    %c0_1175 = arith.constant 0 : index
    %c0_1176 = arith.constant 0 : index
    %739 = vector.load %arg2[%c0_1172, %c1_1173, %c6_1174, %c0_1175, %c0_1176] : memref<1x4x10x36x256xf32, #tpu.memory_space<vmem>>, vector<1x1x1x36x256xf32>
    %740 = vector.shape_cast %739 : vector<1x1x1x36x256xf32> to vector<36x256xf32>
    %cst_1177 = arith.constant dense<0.000000e+00> : vector<8x256xf32>
    %741 = tpu.matmul %738, %740, %cst_1177 {dimension_numbers = #tpu.dot_dimension_numbers<[1], [0], [0], [1], [0, 0, 1, 1], [], []>} : vector<8x36xf32>, vector<36x256xf32>, vector<8x256xf32> -> vector<8x256xf32>
    %742 = arith.addf %736, %741 : vector<8x256xf32>
    %c1_1178 = arith.constant 1 : index
    %c0_1179 = arith.constant 0 : index
    %c0_1180 = arith.constant 0 : index
    %c0_1181 = arith.constant 0 : index
    %743 = vector.load %arg3[%c1_1178, %c0_1179, %c0_1180, %c0_1181] : memref<3x3x8x36xf32, #tpu.memory_space<vmem>>, vector<1x1x8x36xf32>
    %744 = vector.shape_cast %743 : vector<1x1x8x36xf32> to vector<8x36xf32>
    %c0_1182 = arith.constant 0 : index
    %c2_1183 = arith.constant 2 : index
    %c4_1184 = arith.constant 4 : index
    %c0_1185 = arith.constant 0 : index
    %c0_1186 = arith.constant 0 : index
    %745 = vector.load %arg2[%c0_1182, %c2_1183, %c4_1184, %c0_1185, %c0_1186] : memref<1x4x10x36x256xf32, #tpu.memory_space<vmem>>, vector<1x1x1x36x256xf32>
    %746 = vector.shape_cast %745 : vector<1x1x1x36x256xf32> to vector<36x256xf32>
    %cst_1187 = arith.constant dense<0.000000e+00> : vector<8x256xf32>
    %747 = tpu.matmul %744, %746, %cst_1187 {dimension_numbers = #tpu.dot_dimension_numbers<[1], [0], [0], [1], [0, 0, 1, 1], [], []>} : vector<8x36xf32>, vector<36x256xf32>, vector<8x256xf32> -> vector<8x256xf32>
    %748 = arith.addf %742, %747 : vector<8x256xf32>
    %c1_1188 = arith.constant 1 : index
    %c1_1189 = arith.constant 1 : index
    %c0_1190 = arith.constant 0 : index
    %c0_1191 = arith.constant 0 : index
    %749 = vector.load %arg3[%c1_1188, %c1_1189, %c0_1190, %c0_1191] : memref<3x3x8x36xf32, #tpu.memory_space<vmem>>, vector<1x1x8x36xf32>
    %750 = vector.shape_cast %749 : vector<1x1x8x36xf32> to vector<8x36xf32>
    %c0_1192 = arith.constant 0 : index
    %c2_1193 = arith.constant 2 : index
    %c5_1194 = arith.constant 5 : index
    %c0_1195 = arith.constant 0 : index
    %c0_1196 = arith.constant 0 : index
    %751 = vector.load %arg2[%c0_1192, %c2_1193, %c5_1194, %c0_1195, %c0_1196] : memref<1x4x10x36x256xf32, #tpu.memory_space<vmem>>, vector<1x1x1x36x256xf32>
    %752 = vector.shape_cast %751 : vector<1x1x1x36x256xf32> to vector<36x256xf32>
    %cst_1197 = arith.constant dense<0.000000e+00> : vector<8x256xf32>
    %753 = tpu.matmul %750, %752, %cst_1197 {dimension_numbers = #tpu.dot_dimension_numbers<[1], [0], [0], [1], [0, 0, 1, 1], [], []>} : vector<8x36xf32>, vector<36x256xf32>, vector<8x256xf32> -> vector<8x256xf32>
    %754 = arith.addf %748, %753 : vector<8x256xf32>
    %c1_1198 = arith.constant 1 : index
    %c2_1199 = arith.constant 2 : index
    %c0_1200 = arith.constant 0 : index
    %c0_1201 = arith.constant 0 : index
    %755 = vector.load %arg3[%c1_1198, %c2_1199, %c0_1200, %c0_1201] : memref<3x3x8x36xf32, #tpu.memory_space<vmem>>, vector<1x1x8x36xf32>
    %756 = vector.shape_cast %755 : vector<1x1x8x36xf32> to vector<8x36xf32>
    %c0_1202 = arith.constant 0 : index
    %c2_1203 = arith.constant 2 : index
    %c6_1204 = arith.constant 6 : index
    %c0_1205 = arith.constant 0 : index
    %c0_1206 = arith.constant 0 : index
    %757 = vector.load %arg2[%c0_1202, %c2_1203, %c6_1204, %c0_1205, %c0_1206] : memref<1x4x10x36x256xf32, #tpu.memory_space<vmem>>, vector<1x1x1x36x256xf32>
    %758 = vector.shape_cast %757 : vector<1x1x1x36x256xf32> to vector<36x256xf32>
    %cst_1207 = arith.constant dense<0.000000e+00> : vector<8x256xf32>
    %759 = tpu.matmul %756, %758, %cst_1207 {dimension_numbers = #tpu.dot_dimension_numbers<[1], [0], [0], [1], [0, 0, 1, 1], [], []>} : vector<8x36xf32>, vector<36x256xf32>, vector<8x256xf32> -> vector<8x256xf32>
    %760 = arith.addf %754, %759 : vector<8x256xf32>
    %c2_1208 = arith.constant 2 : index
    %c0_1209 = arith.constant 0 : index
    %c0_1210 = arith.constant 0 : index
    %c0_1211 = arith.constant 0 : index
    %761 = vector.load %arg3[%c2_1208, %c0_1209, %c0_1210, %c0_1211] : memref<3x3x8x36xf32, #tpu.memory_space<vmem>>, vector<1x1x8x36xf32>
    %762 = vector.shape_cast %761 : vector<1x1x8x36xf32> to vector<8x36xf32>
    %c0_1212 = arith.constant 0 : index
    %c3_1213 = arith.constant 3 : index
    %c4_1214 = arith.constant 4 : index
    %c0_1215 = arith.constant 0 : index
    %c0_1216 = arith.constant 0 : index
    %763 = vector.load %arg2[%c0_1212, %c3_1213, %c4_1214, %c0_1215, %c0_1216] : memref<1x4x10x36x256xf32, #tpu.memory_space<vmem>>, vector<1x1x1x36x256xf32>
    %764 = vector.shape_cast %763 : vector<1x1x1x36x256xf32> to vector<36x256xf32>
    %cst_1217 = arith.constant dense<0.000000e+00> : vector<8x256xf32>
    %765 = tpu.matmul %762, %764, %cst_1217 {dimension_numbers = #tpu.dot_dimension_numbers<[1], [0], [0], [1], [0, 0, 1, 1], [], []>} : vector<8x36xf32>, vector<36x256xf32>, vector<8x256xf32> -> vector<8x256xf32>
    %766 = arith.addf %760, %765 : vector<8x256xf32>
    %c2_1218 = arith.constant 2 : index
    %c1_1219 = arith.constant 1 : index
    %c0_1220 = arith.constant 0 : index
    %c0_1221 = arith.constant 0 : index
    %767 = vector.load %arg3[%c2_1218, %c1_1219, %c0_1220, %c0_1221] : memref<3x3x8x36xf32, #tpu.memory_space<vmem>>, vector<1x1x8x36xf32>
    %768 = vector.shape_cast %767 : vector<1x1x8x36xf32> to vector<8x36xf32>
    %c0_1222 = arith.constant 0 : index
    %c3_1223 = arith.constant 3 : index
    %c5_1224 = arith.constant 5 : index
    %c0_1225 = arith.constant 0 : index
    %c0_1226 = arith.constant 0 : index
    %769 = vector.load %arg2[%c0_1222, %c3_1223, %c5_1224, %c0_1225, %c0_1226] : memref<1x4x10x36x256xf32, #tpu.memory_space<vmem>>, vector<1x1x1x36x256xf32>
    %770 = vector.shape_cast %769 : vector<1x1x1x36x256xf32> to vector<36x256xf32>
    %cst_1227 = arith.constant dense<0.000000e+00> : vector<8x256xf32>
    %771 = tpu.matmul %768, %770, %cst_1227 {dimension_numbers = #tpu.dot_dimension_numbers<[1], [0], [0], [1], [0, 0, 1, 1], [], []>} : vector<8x36xf32>, vector<36x256xf32>, vector<8x256xf32> -> vector<8x256xf32>
    %772 = arith.addf %766, %771 : vector<8x256xf32>
    %c2_1228 = arith.constant 2 : index
    %c2_1229 = arith.constant 2 : index
    %c0_1230 = arith.constant 0 : index
    %c0_1231 = arith.constant 0 : index
    %773 = vector.load %arg3[%c2_1228, %c2_1229, %c0_1230, %c0_1231] : memref<3x3x8x36xf32, #tpu.memory_space<vmem>>, vector<1x1x8x36xf32>
    %774 = vector.shape_cast %773 : vector<1x1x8x36xf32> to vector<8x36xf32>
    %c0_1232 = arith.constant 0 : index
    %c3_1233 = arith.constant 3 : index
    %c6_1234 = arith.constant 6 : index
    %c0_1235 = arith.constant 0 : index
    %c0_1236 = arith.constant 0 : index
    %775 = vector.load %arg2[%c0_1232, %c3_1233, %c6_1234, %c0_1235, %c0_1236] : memref<1x4x10x36x256xf32, #tpu.memory_space<vmem>>, vector<1x1x1x36x256xf32>
    %776 = vector.shape_cast %775 : vector<1x1x1x36x256xf32> to vector<36x256xf32>
    %cst_1237 = arith.constant dense<0.000000e+00> : vector<8x256xf32>
    %777 = tpu.matmul %774, %776, %cst_1237 {dimension_numbers = #tpu.dot_dimension_numbers<[1], [0], [0], [1], [0, 0, 1, 1], [], []>} : vector<8x36xf32>, vector<36x256xf32>, vector<8x256xf32> -> vector<8x256xf32>
    %778 = arith.addf %772, %777 : vector<8x256xf32>
    %779 = vector.broadcast %483 : vector<8x1xf32> to vector<8x256xf32>
    %780 = arith.addf %778, %779 : vector<8x256xf32>
    %c0_1238 = arith.constant 0 : index
    %c1_1239 = arith.constant 1 : index
    %c4_1240 = arith.constant 4 : index
    %c0_1241 = arith.constant 0 : index
    %c0_1242 = arith.constant 0 : index
    %781 = vector.load %arg5[%c0_1238, %c1_1239, %c4_1240, %c0_1241, %c0_1242] : memref<1x2x8x8x256xf32, #tpu.memory_space<vmem>>, vector<1x1x1x8x256xf32>
    %782 = vector.shape_cast %781 : vector<1x1x1x8x256xf32> to vector<8x256xf32>
    %783 = vector.shape_cast %780 : vector<8x256xf32> to vector<1x1x1x8x256xf32>
    tpu.vector_store %arg5[%c0_1238, %c1_1239, %c4_1240, %c0_1241, %c0_1242], %783 {strides = array<i32>} : memref<1x2x8x8x256xf32, #tpu.memory_space<vmem>>, vector<1x1x1x8x256xf32>,
    %cst_1243 = arith.constant 0.000000e+00 : f32
    %784 = vector.broadcast %cst_1243 : f32 to vector<8x256xf32>
    %c0_1244 = arith.constant 0 : index
    %c0_1245 = arith.constant 0 : index
    %c0_1246 = arith.constant 0 : index
    %c0_1247 = arith.constant 0 : index
    %785 = vector.load %arg3[%c0_1244, %c0_1245, %c0_1246, %c0_1247] : memref<3x3x8x36xf32, #tpu.memory_space<vmem>>, vector<1x1x8x36xf32>
    %786 = vector.shape_cast %785 : vector<1x1x8x36xf32> to vector<8x36xf32>
    %c0_1248 = arith.constant 0 : index
    %c1_1249 = arith.constant 1 : index
    %c5_1250 = arith.constant 5 : index
    %c0_1251 = arith.constant 0 : index
    %c0_1252 = arith.constant 0 : index
    %787 = vector.load %arg2[%c0_1248, %c1_1249, %c5_1250, %c0_1251, %c0_1252] : memref<1x4x10x36x256xf32, #tpu.memory_space<vmem>>, vector<1x1x1x36x256xf32>
    %788 = vector.shape_cast %787 : vector<1x1x1x36x256xf32> to vector<36x256xf32>
    %cst_1253 = arith.constant dense<0.000000e+00> : vector<8x256xf32>
    %789 = tpu.matmul %786, %788, %cst_1253 {dimension_numbers = #tpu.dot_dimension_numbers<[1], [0], [0], [1], [0, 0, 1, 1], [], []>} : vector<8x36xf32>, vector<36x256xf32>, vector<8x256xf32> -> vector<8x256xf32>
    %790 = arith.addf %784, %789 : vector<8x256xf32>
    %c0_1254 = arith.constant 0 : index
    %c1_1255 = arith.constant 1 : index
    %c0_1256 = arith.constant 0 : index
    %c0_1257 = arith.constant 0 : index
    %791 = vector.load %arg3[%c0_1254, %c1_1255, %c0_1256, %c0_1257] : memref<3x3x8x36xf32, #tpu.memory_space<vmem>>, vector<1x1x8x36xf32>
    %792 = vector.shape_cast %791 : vector<1x1x8x36xf32> to vector<8x36xf32>
    %c0_1258 = arith.constant 0 : index
    %c1_1259 = arith.constant 1 : index
    %c6_1260 = arith.constant 6 : index
    %c0_1261 = arith.constant 0 : index
    %c0_1262 = arith.constant 0 : index
    %793 = vector.load %arg2[%c0_1258, %c1_1259, %c6_1260, %c0_1261, %c0_1262] : memref<1x4x10x36x256xf32, #tpu.memory_space<vmem>>, vector<1x1x1x36x256xf32>
    %794 = vector.shape_cast %793 : vector<1x1x1x36x256xf32> to vector<36x256xf32>
    %cst_1263 = arith.constant dense<0.000000e+00> : vector<8x256xf32>
    %795 = tpu.matmul %792, %794, %cst_1263 {dimension_numbers = #tpu.dot_dimension_numbers<[1], [0], [0], [1], [0, 0, 1, 1], [], []>} : vector<8x36xf32>, vector<36x256xf32>, vector<8x256xf32> -> vector<8x256xf32>
    %796 = arith.addf %790, %795 : vector<8x256xf32>
    %c0_1264 = arith.constant 0 : index
    %c2_1265 = arith.constant 2 : index
    %c0_1266 = arith.constant 0 : index
    %c0_1267 = arith.constant 0 : index
    %797 = vector.load %arg3[%c0_1264, %c2_1265, %c0_1266, %c0_1267] : memref<3x3x8x36xf32, #tpu.memory_space<vmem>>, vector<1x1x8x36xf32>
    %798 = vector.shape_cast %797 : vector<1x1x8x36xf32> to vector<8x36xf32>
    %c0_1268 = arith.constant 0 : index
    %c1_1269 = arith.constant 1 : index
    %c7_1270 = arith.constant 7 : index
    %c0_1271 = arith.constant 0 : index
    %c0_1272 = arith.constant 0 : index
    %799 = vector.load %arg2[%c0_1268, %c1_1269, %c7_1270, %c0_1271, %c0_1272] : memref<1x4x10x36x256xf32, #tpu.memory_space<vmem>>, vector<1x1x1x36x256xf32>
    %800 = vector.shape_cast %799 : vector<1x1x1x36x256xf32> to vector<36x256xf32>
    %cst_1273 = arith.constant dense<0.000000e+00> : vector<8x256xf32>
    %801 = tpu.matmul %798, %800, %cst_1273 {dimension_numbers = #tpu.dot_dimension_numbers<[1], [0], [0], [1], [0, 0, 1, 1], [], []>} : vector<8x36xf32>, vector<36x256xf32>, vector<8x256xf32> -> vector<8x256xf32>
    %802 = arith.addf %796, %801 : vector<8x256xf32>
    %c1_1274 = arith.constant 1 : index
    %c0_1275 = arith.constant 0 : index
    %c0_1276 = arith.constant 0 : index
    %c0_1277 = arith.constant 0 : index
    %803 = vector.load %arg3[%c1_1274, %c0_1275, %c0_1276, %c0_1277] : memref<3x3x8x36xf32, #tpu.memory_space<vmem>>, vector<1x1x8x36xf32>
    %804 = vector.shape_cast %803 : vector<1x1x8x36xf32> to vector<8x36xf32>
    %c0_1278 = arith.constant 0 : index
    %c2_1279 = arith.constant 2 : index
    %c5_1280 = arith.constant 5 : index
    %c0_1281 = arith.constant 0 : index
    %c0_1282 = arith.constant 0 : index
    %805 = vector.load %arg2[%c0_1278, %c2_1279, %c5_1280, %c0_1281, %c0_1282] : memref<1x4x10x36x256xf32, #tpu.memory_space<vmem>>, vector<1x1x1x36x256xf32>
    %806 = vector.shape_cast %805 : vector<1x1x1x36x256xf32> to vector<36x256xf32>
    %cst_1283 = arith.constant dense<0.000000e+00> : vector<8x256xf32>
    %807 = tpu.matmul %804, %806, %cst_1283 {dimension_numbers = #tpu.dot_dimension_numbers<[1], [0], [0], [1], [0, 0, 1, 1], [], []>} : vector<8x36xf32>, vector<36x256xf32>, vector<8x256xf32> -> vector<8x256xf32>
    %808 = arith.addf %802, %807 : vector<8x256xf32>
    %c1_1284 = arith.constant 1 : index
    %c1_1285 = arith.constant 1 : index
    %c0_1286 = arith.constant 0 : index
    %c0_1287 = arith.constant 0 : index
    %809 = vector.load %arg3[%c1_1284, %c1_1285, %c0_1286, %c0_1287] : memref<3x3x8x36xf32, #tpu.memory_space<vmem>>, vector<1x1x8x36xf32>
    %810 = vector.shape_cast %809 : vector<1x1x8x36xf32> to vector<8x36xf32>
    %c0_1288 = arith.constant 0 : index
    %c2_1289 = arith.constant 2 : index
    %c6_1290 = arith.constant 6 : index
    %c0_1291 = arith.constant 0 : index
    %c0_1292 = arith.constant 0 : index
    %811 = vector.load %arg2[%c0_1288, %c2_1289, %c6_1290, %c0_1291, %c0_1292] : memref<1x4x10x36x256xf32, #tpu.memory_space<vmem>>, vector<1x1x1x36x256xf32>
    %812 = vector.shape_cast %811 : vector<1x1x1x36x256xf32> to vector<36x256xf32>
    %cst_1293 = arith.constant dense<0.000000e+00> : vector<8x256xf32>
    %813 = tpu.matmul %810, %812, %cst_1293 {dimension_numbers = #tpu.dot_dimension_numbers<[1], [0], [0], [1], [0, 0, 1, 1], [], []>} : vector<8x36xf32>, vector<36x256xf32>, vector<8x256xf32> -> vector<8x256xf32>
    %814 = arith.addf %808, %813 : vector<8x256xf32>
    %c1_1294 = arith.constant 1 : index
    %c2_1295 = arith.constant 2 : index
    %c0_1296 = arith.constant 0 : index
    %c0_1297 = arith.constant 0 : index
    %815 = vector.load %arg3[%c1_1294, %c2_1295, %c0_1296, %c0_1297] : memref<3x3x8x36xf32, #tpu.memory_space<vmem>>, vector<1x1x8x36xf32>
    %816 = vector.shape_cast %815 : vector<1x1x8x36xf32> to vector<8x36xf32>
    %c0_1298 = arith.constant 0 : index
    %c2_1299 = arith.constant 2 : index
    %c7_1300 = arith.constant 7 : index
    %c0_1301 = arith.constant 0 : index
    %c0_1302 = arith.constant 0 : index
    %817 = vector.load %arg2[%c0_1298, %c2_1299, %c7_1300, %c0_1301, %c0_1302] : memref<1x4x10x36x256xf32, #tpu.memory_space<vmem>>, vector<1x1x1x36x256xf32>
    %818 = vector.shape_cast %817 : vector<1x1x1x36x256xf32> to vector<36x256xf32>
    %cst_1303 = arith.constant dense<0.000000e+00> : vector<8x256xf32>
    %819 = tpu.matmul %816, %818, %cst_1303 {dimension_numbers = #tpu.dot_dimension_numbers<[1], [0], [0], [1], [0, 0, 1, 1], [], []>} : vector<8x36xf32>, vector<36x256xf32>, vector<8x256xf32> -> vector<8x256xf32>
    %820 = arith.addf %814, %819 : vector<8x256xf32>
    %c2_1304 = arith.constant 2 : index
    %c0_1305 = arith.constant 0 : index
    %c0_1306 = arith.constant 0 : index
    %c0_1307 = arith.constant 0 : index
    %821 = vector.load %arg3[%c2_1304, %c0_1305, %c0_1306, %c0_1307] : memref<3x3x8x36xf32, #tpu.memory_space<vmem>>, vector<1x1x8x36xf32>
    %822 = vector.shape_cast %821 : vector<1x1x8x36xf32> to vector<8x36xf32>
    %c0_1308 = arith.constant 0 : index
    %c3_1309 = arith.constant 3 : index
    %c5_1310 = arith.constant 5 : index
    %c0_1311 = arith.constant 0 : index
    %c0_1312 = arith.constant 0 : index
    %823 = vector.load %arg2[%c0_1308, %c3_1309, %c5_1310, %c0_1311, %c0_1312] : memref<1x4x10x36x256xf32, #tpu.memory_space<vmem>>, vector<1x1x1x36x256xf32>
    %824 = vector.shape_cast %823 : vector<1x1x1x36x256xf32> to vector<36x256xf32>
    %cst_1313 = arith.constant dense<0.000000e+00> : vector<8x256xf32>
    %825 = tpu.matmul %822, %824, %cst_1313 {dimension_numbers = #tpu.dot_dimension_numbers<[1], [0], [0], [1], [0, 0, 1, 1], [], []>} : vector<8x36xf32>, vector<36x256xf32>, vector<8x256xf32> -> vector<8x256xf32>
    %826 = arith.addf %820, %825 : vector<8x256xf32>
    %c2_1314 = arith.constant 2 : index
    %c1_1315 = arith.constant 1 : index
    %c0_1316 = arith.constant 0 : index
    %c0_1317 = arith.constant 0 : index
    %827 = vector.load %arg3[%c2_1314, %c1_1315, %c0_1316, %c0_1317] : memref<3x3x8x36xf32, #tpu.memory_space<vmem>>, vector<1x1x8x36xf32>
    %828 = vector.shape_cast %827 : vector<1x1x8x36xf32> to vector<8x36xf32>
    %c0_1318 = arith.constant 0 : index
    %c3_1319 = arith.constant 3 : index
    %c6_1320 = arith.constant 6 : index
    %c0_1321 = arith.constant 0 : index
    %c0_1322 = arith.constant 0 : index
    %829 = vector.load %arg2[%c0_1318, %c3_1319, %c6_1320, %c0_1321, %c0_1322] : memref<1x4x10x36x256xf32, #tpu.memory_space<vmem>>, vector<1x1x1x36x256xf32>
    %830 = vector.shape_cast %829 : vector<1x1x1x36x256xf32> to vector<36x256xf32>
    %cst_1323 = arith.constant dense<0.000000e+00> : vector<8x256xf32>
    %831 = tpu.matmul %828, %830, %cst_1323 {dimension_numbers = #tpu.dot_dimension_numbers<[1], [0], [0], [1], [0, 0, 1, 1], [], []>} : vector<8x36xf32>, vector<36x256xf32>, vector<8x256xf32> -> vector<8x256xf32>
    %832 = arith.addf %826, %831 : vector<8x256xf32>
    %c2_1324 = arith.constant 2 : index
    %c2_1325 = arith.constant 2 : index
    %c0_1326 = arith.constant 0 : index
    %c0_1327 = arith.constant 0 : index
    %833 = vector.load %arg3[%c2_1324, %c2_1325, %c0_1326, %c0_1327] : memref<3x3x8x36xf32, #tpu.memory_space<vmem>>, vector<1x1x8x36xf32>
    %834 = vector.shape_cast %833 : vector<1x1x8x36xf32> to vector<8x36xf32>
    %c0_1328 = arith.constant 0 : index
    %c3_1329 = arith.constant 3 : index
    %c7_1330 = arith.constant 7 : index
    %c0_1331 = arith.constant 0 : index
    %c0_1332 = arith.constant 0 : index
    %835 = vector.load %arg2[%c0_1328, %c3_1329, %c7_1330, %c0_1331, %c0_1332] : memref<1x4x10x36x256xf32, #tpu.memory_space<vmem>>, vector<1x1x1x36x256xf32>
    %836 = vector.shape_cast %835 : vector<1x1x1x36x256xf32> to vector<36x256xf32>
    %cst_1333 = arith.constant dense<0.000000e+00> : vector<8x256xf32>
    %837 = tpu.matmul %834, %836, %cst_1333 {dimension_numbers = #tpu.dot_dimension_numbers<[1], [0], [0], [1], [0, 0, 1, 1], [], []>} : vector<8x36xf32>, vector<36x256xf32>, vector<8x256xf32> -> vector<8x256xf32>
    %838 = arith.addf %832, %837 : vector<8x256xf32>
    %839 = vector.broadcast %483 : vector<8x1xf32> to vector<8x256xf32>
    %840 = arith.addf %838, %839 : vector<8x256xf32>
    %c0_1334 = arith.constant 0 : index
    %c1_1335 = arith.constant 1 : index
    %c5_1336 = arith.constant 5 : index
    %c0_1337 = arith.constant 0 : index
    %c0_1338 = arith.constant 0 : index
    %841 = vector.load %arg5[%c0_1334, %c1_1335, %c5_1336, %c0_1337, %c0_1338] : memref<1x2x8x8x256xf32, #tpu.memory_space<vmem>>, vector<1x1x1x8x256xf32>
    %842 = vector.shape_cast %841 : vector<1x1x1x8x256xf32> to vector<8x256xf32>
    %843 = vector.shape_cast %840 : vector<8x256xf32> to vector<1x1x1x8x256xf32>
    tpu.vector_store %arg5[%c0_1334, %c1_1335, %c5_1336, %c0_1337, %c0_1338], %843 {strides = array<i32>} : memref<1x2x8x8x256xf32, #tpu.memory_space<vmem>>, vector<1x1x1x8x256xf32>,
    %cst_1339 = arith.constant 0.000000e+00 : f32
    %844 = vector.broadcast %cst_1339 : f32 to vector<8x256xf32>
    %c0_1340 = arith.constant 0 : index
    %c0_1341 = arith.constant 0 : index
    %c0_1342 = arith.constant 0 : index
    %c0_1343 = arith.constant 0 : index
    %845 = vector.load %arg3[%c0_1340, %c0_1341, %c0_1342, %c0_1343] : memref<3x3x8x36xf32, #tpu.memory_space<vmem>>, vector<1x1x8x36xf32>
    %846 = vector.shape_cast %845 : vector<1x1x8x36xf32> to vector<8x36xf32>
    %c0_1344 = arith.constant 0 : index
    %c1_1345 = arith.constant 1 : index
    %c6_1346 = arith.constant 6 : index
    %c0_1347 = arith.constant 0 : index
    %c0_1348 = arith.constant 0 : index
    %847 = vector.load %arg2[%c0_1344, %c1_1345, %c6_1346, %c0_1347, %c0_1348] : memref<1x4x10x36x256xf32, #tpu.memory_space<vmem>>, vector<1x1x1x36x256xf32>
    %848 = vector.shape_cast %847 : vector<1x1x1x36x256xf32> to vector<36x256xf32>
    %cst_1349 = arith.constant dense<0.000000e+00> : vector<8x256xf32>
    %849 = tpu.matmul %846, %848, %cst_1349 {dimension_numbers = #tpu.dot_dimension_numbers<[1], [0], [0], [1], [0, 0, 1, 1], [], []>} : vector<8x36xf32>, vector<36x256xf32>, vector<8x256xf32> -> vector<8x256xf32>
    %850 = arith.addf %844, %849 : vector<8x256xf32>
    %c0_1350 = arith.constant 0 : index
    %c1_1351 = arith.constant 1 : index
    %c0_1352 = arith.constant 0 : index
    %c0_1353 = arith.constant 0 : index
    %851 = vector.load %arg3[%c0_1350, %c1_1351, %c0_1352, %c0_1353] : memref<3x3x8x36xf32, #tpu.memory_space<vmem>>, vector<1x1x8x36xf32>
    %852 = vector.shape_cast %851 : vector<1x1x8x36xf32> to vector<8x36xf32>
    %c0_1354 = arith.constant 0 : index
    %c1_1355 = arith.constant 1 : index
    %c7_1356 = arith.constant 7 : index
    %c0_1357 = arith.constant 0 : index
    %c0_1358 = arith.constant 0 : index
    %853 = vector.load %arg2[%c0_1354, %c1_1355, %c7_1356, %c0_1357, %c0_1358] : memref<1x4x10x36x256xf32, #tpu.memory_space<vmem>>, vector<1x1x1x36x256xf32>
    %854 = vector.shape_cast %853 : vector<1x1x1x36x256xf32> to vector<36x256xf32>
    %cst_1359 = arith.constant dense<0.000000e+00> : vector<8x256xf32>
    %855 = tpu.matmul %852, %854, %cst_1359 {dimension_numbers = #tpu.dot_dimension_numbers<[1], [0], [0], [1], [0, 0, 1, 1], [], []>} : vector<8x36xf32>, vector<36x256xf32>, vector<8x256xf32> -> vector<8x256xf32>
    %856 = arith.addf %850, %855 : vector<8x256xf32>
    %c0_1360 = arith.constant 0 : index
    %c2_1361 = arith.constant 2 : index
    %c0_1362 = arith.constant 0 : index
    %c0_1363 = arith.constant 0 : index
    %857 = vector.load %arg3[%c0_1360, %c2_1361, %c0_1362, %c0_1363] : memref<3x3x8x36xf32, #tpu.memory_space<vmem>>, vector<1x1x8x36xf32>
    %858 = vector.shape_cast %857 : vector<1x1x8x36xf32> to vector<8x36xf32>
    %c0_1364 = arith.constant 0 : index
    %c1_1365 = arith.constant 1 : index
    %c8_1366 = arith.constant 8 : index
    %c0_1367 = arith.constant 0 : index
    %c0_1368 = arith.constant 0 : index
    %859 = vector.load %arg2[%c0_1364, %c1_1365, %c8_1366, %c0_1367, %c0_1368] : memref<1x4x10x36x256xf32, #tpu.memory_space<vmem>>, vector<1x1x1x36x256xf32>
    %860 = vector.shape_cast %859 : vector<1x1x1x36x256xf32> to vector<36x256xf32>
    %cst_1369 = arith.constant dense<0.000000e+00> : vector<8x256xf32>
    %861 = tpu.matmul %858, %860, %cst_1369 {dimension_numbers = #tpu.dot_dimension_numbers<[1], [0], [0], [1], [0, 0, 1, 1], [], []>} : vector<8x36xf32>, vector<36x256xf32>, vector<8x256xf32> -> vector<8x256xf32>
    %862 = arith.addf %856, %861 : vector<8x256xf32>
    %c1_1370 = arith.constant 1 : index
    %c0_1371 = arith.constant 0 : index
    %c0_1372 = arith.constant 0 : index
    %c0_1373 = arith.constant 0 : index
    %863 = vector.load %arg3[%c1_1370, %c0_1371, %c0_1372, %c0_1373] : memref<3x3x8x36xf32, #tpu.memory_space<vmem>>, vector<1x1x8x36xf32>
    %864 = vector.shape_cast %863 : vector<1x1x8x36xf32> to vector<8x36xf32>
    %c0_1374 = arith.constant 0 : index
    %c2_1375 = arith.constant 2 : index
    %c6_1376 = arith.constant 6 : index
    %c0_1377 = arith.constant 0 : index
    %c0_1378 = arith.constant 0 : index
    %865 = vector.load %arg2[%c0_1374, %c2_1375, %c6_1376, %c0_1377, %c0_1378] : memref<1x4x10x36x256xf32, #tpu.memory_space<vmem>>, vector<1x1x1x36x256xf32>
    %866 = vector.shape_cast %865 : vector<1x1x1x36x256xf32> to vector<36x256xf32>
    %cst_1379 = arith.constant dense<0.000000e+00> : vector<8x256xf32>
    %867 = tpu.matmul %864, %866, %cst_1379 {dimension_numbers = #tpu.dot_dimension_numbers<[1], [0], [0], [1], [0, 0, 1, 1], [], []>} : vector<8x36xf32>, vector<36x256xf32>, vector<8x256xf32> -> vector<8x256xf32>
    %868 = arith.addf %862, %867 : vector<8x256xf32>
    %c1_1380 = arith.constant 1 : index
    %c1_1381 = arith.constant 1 : index
    %c0_1382 = arith.constant 0 : index
    %c0_1383 = arith.constant 0 : index
    %869 = vector.load %arg3[%c1_1380, %c1_1381, %c0_1382, %c0_1383] : memref<3x3x8x36xf32, #tpu.memory_space<vmem>>, vector<1x1x8x36xf32>
    %870 = vector.shape_cast %869 : vector<1x1x8x36xf32> to vector<8x36xf32>
    %c0_1384 = arith.constant 0 : index
    %c2_1385 = arith.constant 2 : index
    %c7_1386 = arith.constant 7 : index
    %c0_1387 = arith.constant 0 : index
    %c0_1388 = arith.constant 0 : index
    %871 = vector.load %arg2[%c0_1384, %c2_1385, %c7_1386, %c0_1387, %c0_1388] : memref<1x4x10x36x256xf32, #tpu.memory_space<vmem>>, vector<1x1x1x36x256xf32>
    %872 = vector.shape_cast %871 : vector<1x1x1x36x256xf32> to vector<36x256xf32>
    %cst_1389 = arith.constant dense<0.000000e+00> : vector<8x256xf32>
    %873 = tpu.matmul %870, %872, %cst_1389 {dimension_numbers = #tpu.dot_dimension_numbers<[1], [0], [0], [1], [0, 0, 1, 1], [], []>} : vector<8x36xf32>, vector<36x256xf32>, vector<8x256xf32> -> vector<8x256xf32>
    %874 = arith.addf %868, %873 : vector<8x256xf32>
    %c1_1390 = arith.constant 1 : index
    %c2_1391 = arith.constant 2 : index
    %c0_1392 = arith.constant 0 : index
    %c0_1393 = arith.constant 0 : index
    %875 = vector.load %arg3[%c1_1390, %c2_1391, %c0_1392, %c0_1393] : memref<3x3x8x36xf32, #tpu.memory_space<vmem>>, vector<1x1x8x36xf32>
    %876 = vector.shape_cast %875 : vector<1x1x8x36xf32> to vector<8x36xf32>
    %c0_1394 = arith.constant 0 : index
    %c2_1395 = arith.constant 2 : index
    %c8_1396 = arith.constant 8 : index
    %c0_1397 = arith.constant 0 : index
    %c0_1398 = arith.constant 0 : index
    %877 = vector.load %arg2[%c0_1394, %c2_1395, %c8_1396, %c0_1397, %c0_1398] : memref<1x4x10x36x256xf32, #tpu.memory_space<vmem>>, vector<1x1x1x36x256xf32>
    %878 = vector.shape_cast %877 : vector<1x1x1x36x256xf32> to vector<36x256xf32>
    %cst_1399 = arith.constant dense<0.000000e+00> : vector<8x256xf32>
    %879 = tpu.matmul %876, %878, %cst_1399 {dimension_numbers = #tpu.dot_dimension_numbers<[1], [0], [0], [1], [0, 0, 1, 1], [], []>} : vector<8x36xf32>, vector<36x256xf32>, vector<8x256xf32> -> vector<8x256xf32>
    %880 = arith.addf %874, %879 : vector<8x256xf32>
    %c2_1400 = arith.constant 2 : index
    %c0_1401 = arith.constant 0 : index
    %c0_1402 = arith.constant 0 : index
    %c0_1403 = arith.constant 0 : index
    %881 = vector.load %arg3[%c2_1400, %c0_1401, %c0_1402, %c0_1403] : memref<3x3x8x36xf32, #tpu.memory_space<vmem>>, vector<1x1x8x36xf32>
    %882 = vector.shape_cast %881 : vector<1x1x8x36xf32> to vector<8x36xf32>
    %c0_1404 = arith.constant 0 : index
    %c3_1405 = arith.constant 3 : index
    %c6_1406 = arith.constant 6 : index
    %c0_1407 = arith.constant 0 : index
    %c0_1408 = arith.constant 0 : index
    %883 = vector.load %arg2[%c0_1404, %c3_1405, %c6_1406, %c0_1407, %c0_1408] : memref<1x4x10x36x256xf32, #tpu.memory_space<vmem>>, vector<1x1x1x36x256xf32>
    %884 = vector.shape_cast %883 : vector<1x1x1x36x256xf32> to vector<36x256xf32>
    %cst_1409 = arith.constant dense<0.000000e+00> : vector<8x256xf32>
    %885 = tpu.matmul %882, %884, %cst_1409 {dimension_numbers = #tpu.dot_dimension_numbers<[1], [0], [0], [1], [0, 0, 1, 1], [], []>} : vector<8x36xf32>, vector<36x256xf32>, vector<8x256xf32> -> vector<8x256xf32>
    %886 = arith.addf %880, %885 : vector<8x256xf32>
    %c2_1410 = arith.constant 2 : index
    %c1_1411 = arith.constant 1 : index
    %c0_1412 = arith.constant 0 : index
    %c0_1413 = arith.constant 0 : index
    %887 = vector.load %arg3[%c2_1410, %c1_1411, %c0_1412, %c0_1413] : memref<3x3x8x36xf32, #tpu.memory_space<vmem>>, vector<1x1x8x36xf32>
    %888 = vector.shape_cast %887 : vector<1x1x8x36xf32> to vector<8x36xf32>
    %c0_1414 = arith.constant 0 : index
    %c3_1415 = arith.constant 3 : index
    %c7_1416 = arith.constant 7 : index
    %c0_1417 = arith.constant 0 : index
    %c0_1418 = arith.constant 0 : index
    %889 = vector.load %arg2[%c0_1414, %c3_1415, %c7_1416, %c0_1417, %c0_1418] : memref<1x4x10x36x256xf32, #tpu.memory_space<vmem>>, vector<1x1x1x36x256xf32>
    %890 = vector.shape_cast %889 : vector<1x1x1x36x256xf32> to vector<36x256xf32>
    %cst_1419 = arith.constant dense<0.000000e+00> : vector<8x256xf32>
    %891 = tpu.matmul %888, %890, %cst_1419 {dimension_numbers = #tpu.dot_dimension_numbers<[1], [0], [0], [1], [0, 0, 1, 1], [], []>} : vector<8x36xf32>, vector<36x256xf32>, vector<8x256xf32> -> vector<8x256xf32>
    %892 = arith.addf %886, %891 : vector<8x256xf32>
    %c2_1420 = arith.constant 2 : index
    %c2_1421 = arith.constant 2 : index
    %c0_1422 = arith.constant 0 : index
    %c0_1423 = arith.constant 0 : index
    %893 = vector.load %arg3[%c2_1420, %c2_1421, %c0_1422, %c0_1423] : memref<3x3x8x36xf32, #tpu.memory_space<vmem>>, vector<1x1x8x36xf32>
    %894 = vector.shape_cast %893 : vector<1x1x8x36xf32> to vector<8x36xf32>
    %c0_1424 = arith.constant 0 : index
    %c3_1425 = arith.constant 3 : index
    %c8_1426 = arith.constant 8 : index
    %c0_1427 = arith.constant 0 : index
    %c0_1428 = arith.constant 0 : index
    %895 = vector.load %arg2[%c0_1424, %c3_1425, %c8_1426, %c0_1427, %c0_1428] : memref<1x4x10x36x256xf32, #tpu.memory_space<vmem>>, vector<1x1x1x36x256xf32>
    %896 = vector.shape_cast %895 : vector<1x1x1x36x256xf32> to vector<36x256xf32>
    %cst_1429 = arith.constant dense<0.000000e+00> : vector<8x256xf32>
    %897 = tpu.matmul %894, %896, %cst_1429 {dimension_numbers = #tpu.dot_dimension_numbers<[1], [0], [0], [1], [0, 0, 1, 1], [], []>} : vector<8x36xf32>, vector<36x256xf32>, vector<8x256xf32> -> vector<8x256xf32>
    %898 = arith.addf %892, %897 : vector<8x256xf32>
    %899 = vector.broadcast %483 : vector<8x1xf32> to vector<8x256xf32>
    %900 = arith.addf %898, %899 : vector<8x256xf32>
    %c0_1430 = arith.constant 0 : index
    %c1_1431 = arith.constant 1 : index
    %c6_1432 = arith.constant 6 : index
    %c0_1433 = arith.constant 0 : index
    %c0_1434 = arith.constant 0 : index
    %901 = vector.load %arg5[%c0_1430, %c1_1431, %c6_1432, %c0_1433, %c0_1434] : memref<1x2x8x8x256xf32, #tpu.memory_space<vmem>>, vector<1x1x1x8x256xf32>
    %902 = vector.shape_cast %901 : vector<1x1x1x8x256xf32> to vector<8x256xf32>
    %903 = vector.shape_cast %900 : vector<8x256xf32> to vector<1x1x1x8x256xf32>
    tpu.vector_store %arg5[%c0_1430, %c1_1431, %c6_1432, %c0_1433, %c0_1434], %903 {strides = array<i32>} : memref<1x2x8x8x256xf32, #tpu.memory_space<vmem>>, vector<1x1x1x8x256xf32>,
    %cst_1435 = arith.constant 0.000000e+00 : f32
    %904 = vector.broadcast %cst_1435 : f32 to vector<8x256xf32>
    %c0_1436 = arith.constant 0 : index
    %c0_1437 = arith.constant 0 : index
    %c0_1438 = arith.constant 0 : index
    %c0_1439 = arith.constant 0 : index
    %905 = vector.load %arg3[%c0_1436, %c0_1437, %c0_1438, %c0_1439] : memref<3x3x8x36xf32, #tpu.memory_space<vmem>>, vector<1x1x8x36xf32>
    %906 = vector.shape_cast %905 : vector<1x1x8x36xf32> to vector<8x36xf32>
    %c0_1440 = arith.constant 0 : index
    %c1_1441 = arith.constant 1 : index
    %c7_1442 = arith.constant 7 : index
    %c0_1443 = arith.constant 0 : index
    %c0_1444 = arith.constant 0 : index
    %907 = vector.load %arg2[%c0_1440, %c1_1441, %c7_1442, %c0_1443, %c0_1444] : memref<1x4x10x36x256xf32, #tpu.memory_space<vmem>>, vector<1x1x1x36x256xf32>
    %908 = vector.shape_cast %907 : vector<1x1x1x36x256xf32> to vector<36x256xf32>
    %cst_1445 = arith.constant dense<0.000000e+00> : vector<8x256xf32>
    %909 = tpu.matmul %906, %908, %cst_1445 {dimension_numbers = #tpu.dot_dimension_numbers<[1], [0], [0], [1], [0, 0, 1, 1], [], []>} : vector<8x36xf32>, vector<36x256xf32>, vector<8x256xf32> -> vector<8x256xf32>
    %910 = arith.addf %904, %909 : vector<8x256xf32>
    %c0_1446 = arith.constant 0 : index
    %c1_1447 = arith.constant 1 : index
    %c0_1448 = arith.constant 0 : index
    %c0_1449 = arith.constant 0 : index
    %911 = vector.load %arg3[%c0_1446, %c1_1447, %c0_1448, %c0_1449] : memref<3x3x8x36xf32, #tpu.memory_space<vmem>>, vector<1x1x8x36xf32>
    %912 = vector.shape_cast %911 : vector<1x1x8x36xf32> to vector<8x36xf32>
    %c0_1450 = arith.constant 0 : index
    %c1_1451 = arith.constant 1 : index
    %c8_1452 = arith.constant 8 : index
    %c0_1453 = arith.constant 0 : index
    %c0_1454 = arith.constant 0 : index
    %913 = vector.load %arg2[%c0_1450, %c1_1451, %c8_1452, %c0_1453, %c0_1454] : memref<1x4x10x36x256xf32, #tpu.memory_space<vmem>>, vector<1x1x1x36x256xf32>
    %914 = vector.shape_cast %913 : vector<1x1x1x36x256xf32> to vector<36x256xf32>
    %cst_1455 = arith.constant dense<0.000000e+00> : vector<8x256xf32>
    %915 = tpu.matmul %912, %914, %cst_1455 {dimension_numbers = #tpu.dot_dimension_numbers<[1], [0], [0], [1], [0, 0, 1, 1], [], []>} : vector<8x36xf32>, vector<36x256xf32>, vector<8x256xf32> -> vector<8x256xf32>
    %916 = arith.addf %910, %915 : vector<8x256xf32>
    %c0_1456 = arith.constant 0 : index
    %c2_1457 = arith.constant 2 : index
    %c0_1458 = arith.constant 0 : index
    %c0_1459 = arith.constant 0 : index
    %917 = vector.load %arg3[%c0_1456, %c2_1457, %c0_1458, %c0_1459] : memref<3x3x8x36xf32, #tpu.memory_space<vmem>>, vector<1x1x8x36xf32>
    %918 = vector.shape_cast %917 : vector<1x1x8x36xf32> to vector<8x36xf32>
    %c0_1460 = arith.constant 0 : index
    %c1_1461 = arith.constant 1 : index
    %c9_1462 = arith.constant 9 : index
    %c0_1463 = arith.constant 0 : index
    %c0_1464 = arith.constant 0 : index
    %919 = vector.load %arg2[%c0_1460, %c1_1461, %c9_1462, %c0_1463, %c0_1464] : memref<1x4x10x36x256xf32, #tpu.memory_space<vmem>>, vector<1x1x1x36x256xf32>
    %920 = vector.shape_cast %919 : vector<1x1x1x36x256xf32> to vector<36x256xf32>
    %cst_1465 = arith.constant dense<0.000000e+00> : vector<8x256xf32>
    %921 = tpu.matmul %918, %920, %cst_1465 {dimension_numbers = #tpu.dot_dimension_numbers<[1], [0], [0], [1], [0, 0, 1, 1], [], []>} : vector<8x36xf32>, vector<36x256xf32>, vector<8x256xf32> -> vector<8x256xf32>
    %922 = arith.addf %916, %921 : vector<8x256xf32>
    %c1_1466 = arith.constant 1 : index
    %c0_1467 = arith.constant 0 : index
    %c0_1468 = arith.constant 0 : index
    %c0_1469 = arith.constant 0 : index
    %923 = vector.load %arg3[%c1_1466, %c0_1467, %c0_1468, %c0_1469] : memref<3x3x8x36xf32, #tpu.memory_space<vmem>>, vector<1x1x8x36xf32>
    %924 = vector.shape_cast %923 : vector<1x1x8x36xf32> to vector<8x36xf32>
    %c0_1470 = arith.constant 0 : index
    %c2_1471 = arith.constant 2 : index
    %c7_1472 = arith.constant 7 : index
    %c0_1473 = arith.constant 0 : index
    %c0_1474 = arith.constant 0 : index
    %925 = vector.load %arg2[%c0_1470, %c2_1471, %c7_1472, %c0_1473, %c0_1474] : memref<1x4x10x36x256xf32, #tpu.memory_space<vmem>>, vector<1x1x1x36x256xf32>
    %926 = vector.shape_cast %925 : vector<1x1x1x36x256xf32> to vector<36x256xf32>
    %cst_1475 = arith.constant dense<0.000000e+00> : vector<8x256xf32>
    %927 = tpu.matmul %924, %926, %cst_1475 {dimension_numbers = #tpu.dot_dimension_numbers<[1], [0], [0], [1], [0, 0, 1, 1], [], []>} : vector<8x36xf32>, vector<36x256xf32>, vector<8x256xf32> -> vector<8x256xf32>
    %928 = arith.addf %922, %927 : vector<8x256xf32>
    %c1_1476 = arith.constant 1 : index
    %c1_1477 = arith.constant 1 : index
    %c0_1478 = arith.constant 0 : index
    %c0_1479 = arith.constant 0 : index
    %929 = vector.load %arg3[%c1_1476, %c1_1477, %c0_1478, %c0_1479] : memref<3x3x8x36xf32, #tpu.memory_space<vmem>>, vector<1x1x8x36xf32>
    %930 = vector.shape_cast %929 : vector<1x1x8x36xf32> to vector<8x36xf32>
    %c0_1480 = arith.constant 0 : index
    %c2_1481 = arith.constant 2 : index
    %c8_1482 = arith.constant 8 : index
    %c0_1483 = arith.constant 0 : index
    %c0_1484 = arith.constant 0 : index
    %931 = vector.load %arg2[%c0_1480, %c2_1481, %c8_1482, %c0_1483, %c0_1484] : memref<1x4x10x36x256xf32, #tpu.memory_space<vmem>>, vector<1x1x1x36x256xf32>
    %932 = vector.shape_cast %931 : vector<1x1x1x36x256xf32> to vector<36x256xf32>
    %cst_1485 = arith.constant dense<0.000000e+00> : vector<8x256xf32>
    %933 = tpu.matmul %930, %932, %cst_1485 {dimension_numbers = #tpu.dot_dimension_numbers<[1], [0], [0], [1], [0, 0, 1, 1], [], []>} : vector<8x36xf32>, vector<36x256xf32>, vector<8x256xf32> -> vector<8x256xf32>
    %934 = arith.addf %928, %933 : vector<8x256xf32>
    %c1_1486 = arith.constant 1 : index
    %c2_1487 = arith.constant 2 : index
    %c0_1488 = arith.constant 0 : index
    %c0_1489 = arith.constant 0 : index
    %935 = vector.load %arg3[%c1_1486, %c2_1487, %c0_1488, %c0_1489] : memref<3x3x8x36xf32, #tpu.memory_space<vmem>>, vector<1x1x8x36xf32>
    %936 = vector.shape_cast %935 : vector<1x1x8x36xf32> to vector<8x36xf32>
    %c0_1490 = arith.constant 0 : index
    %c2_1491 = arith.constant 2 : index
    %c9_1492 = arith.constant 9 : index
    %c0_1493 = arith.constant 0 : index
    %c0_1494 = arith.constant 0 : index
    %937 = vector.load %arg2[%c0_1490, %c2_1491, %c9_1492, %c0_1493, %c0_1494] : memref<1x4x10x36x256xf32, #tpu.memory_space<vmem>>, vector<1x1x1x36x256xf32>
    %938 = vector.shape_cast %937 : vector<1x1x1x36x256xf32> to vector<36x256xf32>
    %cst_1495 = arith.constant dense<0.000000e+00> : vector<8x256xf32>
    %939 = tpu.matmul %936, %938, %cst_1495 {dimension_numbers = #tpu.dot_dimension_numbers<[1], [0], [0], [1], [0, 0, 1, 1], [], []>} : vector<8x36xf32>, vector<36x256xf32>, vector<8x256xf32> -> vector<8x256xf32>
    %940 = arith.addf %934, %939 : vector<8x256xf32>
    %c2_1496 = arith.constant 2 : index
    %c0_1497 = arith.constant 0 : index
    %c0_1498 = arith.constant 0 : index
    %c0_1499 = arith.constant 0 : index
    %941 = vector.load %arg3[%c2_1496, %c0_1497, %c0_1498, %c0_1499] : memref<3x3x8x36xf32, #tpu.memory_space<vmem>>, vector<1x1x8x36xf32>
    %942 = vector.shape_cast %941 : vector<1x1x8x36xf32> to vector<8x36xf32>
    %c0_1500 = arith.constant 0 : index
    %c3_1501 = arith.constant 3 : index
    %c7_1502 = arith.constant 7 : index
    %c0_1503 = arith.constant 0 : index
    %c0_1504 = arith.constant 0 : index
    %943 = vector.load %arg2[%c0_1500, %c3_1501, %c7_1502, %c0_1503, %c0_1504] : memref<1x4x10x36x256xf32, #tpu.memory_space<vmem>>, vector<1x1x1x36x256xf32>
    %944 = vector.shape_cast %943 : vector<1x1x1x36x256xf32> to vector<36x256xf32>
    %cst_1505 = arith.constant dense<0.000000e+00> : vector<8x256xf32>
    %945 = tpu.matmul %942, %944, %cst_1505 {dimension_numbers = #tpu.dot_dimension_numbers<[1], [0], [0], [1], [0, 0, 1, 1], [], []>} : vector<8x36xf32>, vector<36x256xf32>, vector<8x256xf32> -> vector<8x256xf32>
    %946 = arith.addf %940, %945 : vector<8x256xf32>
    %c2_1506 = arith.constant 2 : index
    %c1_1507 = arith.constant 1 : index
    %c0_1508 = arith.constant 0 : index
    %c0_1509 = arith.constant 0 : index
    %947 = vector.load %arg3[%c2_1506, %c1_1507, %c0_1508, %c0_1509] : memref<3x3x8x36xf32, #tpu.memory_space<vmem>>, vector<1x1x8x36xf32>
    %948 = vector.shape_cast %947 : vector<1x1x8x36xf32> to vector<8x36xf32>
    %c0_1510 = arith.constant 0 : index
    %c3_1511 = arith.constant 3 : index
    %c8_1512 = arith.constant 8 : index
    %c0_1513 = arith.constant 0 : index
    %c0_1514 = arith.constant 0 : index
    %949 = vector.load %arg2[%c0_1510, %c3_1511, %c8_1512, %c0_1513, %c0_1514] : memref<1x4x10x36x256xf32, #tpu.memory_space<vmem>>, vector<1x1x1x36x256xf32>
    %950 = vector.shape_cast %949 : vector<1x1x1x36x256xf32> to vector<36x256xf32>
    %cst_1515 = arith.constant dense<0.000000e+00> : vector<8x256xf32>
    %951 = tpu.matmul %948, %950, %cst_1515 {dimension_numbers = #tpu.dot_dimension_numbers<[1], [0], [0], [1], [0, 0, 1, 1], [], []>} : vector<8x36xf32>, vector<36x256xf32>, vector<8x256xf32> -> vector<8x256xf32>
    %952 = arith.addf %946, %951 : vector<8x256xf32>
    %c2_1516 = arith.constant 2 : index
    %c2_1517 = arith.constant 2 : index
    %c0_1518 = arith.constant 0 : index
    %c0_1519 = arith.constant 0 : index
    %953 = vector.load %arg3[%c2_1516, %c2_1517, %c0_1518, %c0_1519] : memref<3x3x8x36xf32, #tpu.memory_space<vmem>>, vector<1x1x8x36xf32>
    %954 = vector.shape_cast %953 : vector<1x1x8x36xf32> to vector<8x36xf32>
    %c0_1520 = arith.constant 0 : index
    %c3_1521 = arith.constant 3 : index
    %c9_1522 = arith.constant 9 : index
    %c0_1523 = arith.constant 0 : index
    %c0_1524 = arith.constant 0 : index
    %955 = vector.load %arg2[%c0_1520, %c3_1521, %c9_1522, %c0_1523, %c0_1524] : memref<1x4x10x36x256xf32, #tpu.memory_space<vmem>>, vector<1x1x1x36x256xf32>
    %956 = vector.shape_cast %955 : vector<1x1x1x36x256xf32> to vector<36x256xf32>
    %cst_1525 = arith.constant dense<0.000000e+00> : vector<8x256xf32>
    %957 = tpu.matmul %954, %956, %cst_1525 {dimension_numbers = #tpu.dot_dimension_numbers<[1], [0], [0], [1], [0, 0, 1, 1], [], []>} : vector<8x36xf32>, vector<36x256xf32>, vector<8x256xf32> -> vector<8x256xf32>
    %958 = arith.addf %952, %957 : vector<8x256xf32>
    %959 = vector.broadcast %483 : vector<8x1xf32> to vector<8x256xf32>
    %960 = arith.addf %958, %959 : vector<8x256xf32>
    %c0_1526 = arith.constant 0 : index
    %c1_1527 = arith.constant 1 : index
    %c7_1528 = arith.constant 7 : index
    %c0_1529 = arith.constant 0 : index
    %c0_1530 = arith.constant 0 : index
    %961 = vector.load %arg5[%c0_1526, %c1_1527, %c7_1528, %c0_1529, %c0_1530] : memref<1x2x8x8x256xf32, #tpu.memory_space<vmem>>, vector<1x1x1x8x256xf32>
    %962 = vector.shape_cast %961 : vector<1x1x1x8x256xf32> to vector<8x256xf32>
    %963 = vector.shape_cast %960 : vector<8x256xf32> to vector<1x1x1x8x256xf32>
    tpu.vector_store %arg5[%c0_1526, %c1_1527, %c7_1528, %c0_1529, %c0_1530], %963 {strides = array<i32>} : memref<1x2x8x8x256xf32, #tpu.memory_space<vmem>>, vector<1x1x1x8x256xf32>,
    return
  }
  func.func @transform_0(%arg0: i32, %arg1: i32) -> (i32, i32, i32, i32, i32) {
    %c0_i32 = arith.constant 0 : i32
    %c0_i32_0 = arith.constant 0 : i32
    %c0_i32_1 = arith.constant 0 : i32
    %c0_i32_2 = arith.constant 0 : i32
    return %arg0, %c0_i32, %c0_i32_0, %c0_i32_1, %arg1 : i32, i32, i32, i32, i32
  }
  func.func @transform_1(%arg0: i32, %arg1: i32) -> (i32, i32, i32, i32) {
    %c0_i32 = arith.constant 0 : i32
    %c0_i32_0 = arith.constant 0 : i32
    %c0_i32_1 = arith.constant 0 : i32
    %c0_i32_2 = arith.constant 0 : i32
    %c0_i32_3 = arith.constant 0 : i32
    return %c0_i32, %c0_i32_0, %c0_i32_1, %c0_i32_2 : i32, i32, i32, i32
  }
  func.func @transform_2(%arg0: i32, %arg1: i32) -> (i32, i32, i32) {
    %c0_i32 = arith.constant 0 : i32
    %c0_i32_0 = arith.constant 0 : i32
    %c0_i32_1 = arith.constant 0 : i32
    %c0_i32_2 = arith.constant 0 : i32
    return %c0_i32, %c0_i32_0, %c0_i32_1 : i32, i32, i32
  }
  func.func @transform_3(%arg0: i32, %arg1: i32) -> (i32, i32, i32, i32, i32) {
    %c0_i32 = arith.constant 0 : i32
    %c0_i32_0 = arith.constant 0 : i32
    %c0_i32_1 = arith.constant 0 : i32
    %c0_i32_2 = arith.constant 0 : i32
    return %arg0, %c0_i32, %c0_i32_0, %c0_i32_1, %arg1 : i32, i32, i32, i32, i32
  }
}

</mosaic_0001>

<bundles_post_ra>
// kernel: conv_layer_forward.1
= control target key start
LH: loop header
LB: loop body
LE: loop exit
PB: predicated region body
PF: predicated region fallthrough
CT: control target
= control target key end

     0   :  { %s15872_s12 = smov 0   ;;  %s15874_s13 = smov 0   ;;  %s19542_s0 = inlined_call_operand.vmem [shape: f32[2,4,10,36,256], index: 0, kind: input, shape index: {}]   ;;  %s19543_s1 = inlined_call_operand.vmem [shape: f32[3,3,8,36], index: 1, kind: input, shape index: {}]   ;;  %s19544_s2 = inlined_call_operand.vmem [shape: f32[2,8,1], index: 2, kind: input, shape index: {}]   ;;  %s19545_s3 = inlined_call_operand.vmem [shape: f32[2,2,8,8,256], index: 3, kind: output, shape index: {}]  }
   0x1   :  { %s15876_s14 = smov 0  }
   0x2 LB: > { %s25_s15 = sadd.s32 1, %s15844_s13  ;;  %p13770_p0 = scmp.ge.s32.totalorder %s15848_s14, 1  ;;  %s15848_s14 = sphi %s15876_s14, %s13_s14   ;;  %s15844_s13 = sphi %s15874_s13, %s19698_s13   ;;  %s15840_s12 = sphi %s15872_s12, %s19697_s12  }
   0x3   : > { %p27_p1 = scmp.ge.s32.totalorder %s25_s15, 2  ;;  %p158_p2 = scmp.lt.s32.totalorder %s15848_s14, 3 }
   0x5   : > { %s19700_s15 = smov (%p27_p1, %s25_s15), 0  ;;  %p159_p3 = pnand %p13770_p0, %p158_p2 }
   0x7   : > { %162 = sbr.rel (%p159_p3) target bundleno = 1084 (0x43c), region = 32 }
   0xc   : > { %p191_p4 = scmp.lt.s32.totalorder %s15840_s12, 1  ;;  %v19547_v0 = vmov 0.0   ;;  %vm239_vm0 = vcmask 1043456   ;;  %v15949_v21 = vld [vmem:[%s19543_s1 + $0x8] sm:$0xff]  ;;  %vm235_vm1 = vcmask 293888   ;;  %v15954_v22 = vld [vmem:[%s19543_s1] sm:$0xff] }
   0xd   : > { %310 = vmatprep.mubr.f32.mxu0 %v19547_v0  ;;  %390 = vmatprep.mubr.f32.mxu1 %v19547_v0  ;;  %v16011_v43 = vld [vmem:[%s19543_s1 + $0x10] sm:$0xff]  ;;  %v16021_v46 = vld [vmem:[%s19543_s1 + $0x18] sm:$0xff] }
   0xe   : > { %s19702_s12 = smov (!%p191_p4, %s15840_s12), 1 }
   0xf   : > { %s15798_s16 = smul.u32 3200, %s19702_s12  ;;  %s15797_s9 = sshll.u32 %s19702_s12, 8 }
  0x10   : > { %s17092_s11 = scalar_lea.vmem %s19545_s3, %s15797_s9 }
  0x11   : > { %s15898_s19 = scalar_lea.vmem %s19542_s0, %s15798_s16 }
  0x12   : > { %v13784_v1 = vld [vmem:[%s15898_s19 + $0x98] sm:$0xf]  ;;  %v221_v2 = vld [vmem:[%s15898_s19 + $0x48] sm:$0xf]  ;;  %v13783_v3 = vld [vmem:[%s15898_s19 + $0x90] sm:$0xf] }
  0x13   : > { %13785 = vmatprep.subr.msk.mxu0 %vm239_vm0, %v13784_v1  ;;  %13788 = vmatprep.subr.msk.mxu1 %vm239_vm0, %v221_v2  ;;  %v220_v4 = vld [vmem:[%s15898_s19 + $0x40] sm:$0xf]  ;;  %v15907_v5 = vld [vmem:[%s15898_s19 + $0x88] sm:$0xff]  ;;  %v219_v6 = vld [vmem:[%s15898_s19 + $0x38] sm:$0xff] }
  0x14   : > { %13786 = vmatpush1.msk.msra.mxu0 %vm239_vm0, %v13783_v3  ;;  %13789 = vmatpush1.msk.msra.mxu1 %vm239_vm0, %v220_v4  ;;  %v15913_v7 = vld [vmem:[%s15898_s19 + $0x80] sm:$0xff]  ;;  %v218_v8 = vld [vmem:[%s15898_s19 + $0x30] sm:$0xff]  ;;  %v15917_v9 = vld [vmem:[%s15898_s19 + $0x78] sm:$0xff] }
  0x15   : > { %270 = vmatprep.subr.mxu0 %v15907_v5  ;;  %350 = vmatprep.subr.mxu1 %v219_v6  ;;  %v217_v10 = vld [vmem:[%s15898_s19 + $0x28] sm:$0xff]  ;;  %v15922_v11 = vld [vmem:[%s15898_s19 + $0x70] sm:$0xff]  ;;  %v216_v12 = vld [vmem:[%s15898_s19 + $0x20] sm:$0xff] }
  0x16   : > { %271 = vmatpush1.msra.mxu0 %v15913_v7  ;;  %351 = vmatpush1.msra.mxu1 %v218_v8  ;;  %v15927_v13 = vld [vmem:[%s15898_s19 + $0x68] sm:$0xff]  ;;  %v215_v14 = vld [vmem:[%s15898_s19 + $0x18] sm:$0xff]  ;;  %v15932_v15 = vld [vmem:[%s15898_s19 + $0x60] sm:$0xff] }
  0x17   : > { %272 = vmatprep.subr.mxu0 %v15917_v9  ;;  %352 = vmatprep.subr.mxu1 %v217_v10  ;;  %v214_v16 = vld [vmem:[%s15898_s19 + $0x10] sm:$0xff]  ;;  %v15937_v17 = vld [vmem:[%s15898_s19 + $0x58] sm:$0xff]  ;;  %v213_v18 = vld [vmem:[%s15898_s19 + $0x8] sm:$0xff] }
  0x18   : > { %273 = vmatpush1.msra.mxu0 %v15922_v11  ;;  %353 = vmatpush1.msra.mxu1 %v216_v12  ;;  %v15942_v19 = vld [vmem:[%s15898_s19 + $0x50] sm:$0xff]  ;;  %v212_v20 = vld [vmem:[%s15898_s19] sm:$0xff]  ;;  %v13801_v23 = vld [vmem:[%s15898_s19 + $0xe8] sm:$0xf] }
  0x19   : > { %274 = vmatprep.subr.mxu0 %v15927_v13  ;;  %354 = vmatprep.subr.mxu1 %v215_v14  ;;  %v13815_v24 = vld [vmem:[%s15898_s19 + $0x368] sm:$0xf]  ;;  %v13800_v25 = vld [vmem:[%s15898_s19 + $0xe0] sm:$0xf]  ;;  %v15967_v27 = vld [vmem:[%s15898_s19 + $0xd8] sm:$0xff] }
  0x1a   : > { %275 = vmatpush1.msra.mxu0 %v15932_v15  ;;  %355 = vmatpush1.msra.mxu1 %v214_v16  ;;  %v13814_v26 = vld [vmem:[%s15898_s19 + $0x360] sm:$0xf]  ;;  %v13813_v28 = vld [vmem:[%s15898_s19 + $0x358] sm:$0xff]  ;;  %v15973_v29 = vld [vmem:[%s15898_s19 + $0xd0] sm:$0xff] }
  0x1b   : > { %276 = vmatprep.subr.mxu0 %v15937_v17  ;;  %356 = vmatprep.subr.mxu1 %v213_v18  ;;  %v13812_v30 = vld [vmem:[%s15898_s19 + $0x350] sm:$0xff]  ;;  %v15979_v31 = vld [vmem:[%s15898_s19 + $0xc8] sm:$0xff]  ;;  %v15984_v33 = vld [vmem:[%s15898_s19 + $0xc0] sm:$0xff] }
  0x1c   : > { %277 = vmatpush1.msra.mxu0 %v15942_v19  ;;  %357 = vmatpush1.msra.mxu1 %v212_v20  ;;  %v13811_v32 = vld [vmem:[%s15898_s19 + $0x348] sm:$0xff]  ;;  %v13810_v34 = vld [vmem:[%s15898_s19 + $0x340] sm:$0xff]  ;;  %v15989_v35 = vld [vmem:[%s15898_s19 + $0xb8] sm:$0xff] }
  0x1d   : > { %13787 = vmatmul.mubr.msk.f32.vlgmr.msra.gmra.mxu0 %vm235_vm1, %v15949_v21  ;;  %13790 = vmatmul.mubr.msk.f32.vlgmr.msra.gmra.mxu1 %vm235_vm1, %v15954_v22  ;;  %v13809_v36 = vld [vmem:[%s15898_s19 + $0x338] sm:$0xff]  ;;  %v15994_v37 = vld [vmem:[%s15898_s19 + $0xb0] sm:$0xff]  ;;  %v15999_v39 = vld [vmem:[%s15898_s19 + $0xa8] sm:$0xff] }
  0x1e   : > { %13802 = vmatprep.subr.msk.mxu0 %vm239_vm0, %v13801_v23  ;;  %13816 = vmatprep.subr.msk.mxu1 %vm239_vm0, %v13815_v24  ;;  %v13808_v38 = vld [vmem:[%s15898_s19 + $0x330] sm:$0xff]  ;;  %v13807_v40 = vld [vmem:[%s15898_s19 + $0x328] sm:$0xff]  ;;  %v16004_v41 = vld [vmem:[%s15898_s19 + $0xa0] sm:$0xff] }
  0x1f   : > { %13803 = vmatpush1.msk.msra.mxu0 %vm239_vm0, %v13800_v25  ;;  %13817 = vmatpush1.msk.msra.mxu1 %vm239_vm0, %v13814_v26  ;;  %19607 = vst [vmem:[#allocation2_spill] sm:$0xff] %v16004_v41  ;;  %v13806_v42 = vld [vmem:[%s15898_s19 + $0x320] sm:$0xff]  ;;  %v13829_v44 = vld [vmem:[%s15898_s19 + $0x3b8] sm:$0xf]  ;;  %v13843_v45 = vld [vmem:[%s15898_s19 + $0x408] sm:$0xf] }
  0x20   : > { %443 = vmatprep.subr.mxu0 %v15967_v27  ;;  %538 = vmatprep.subr.mxu1 %v13813_v28  ;;  %v13828_v47 = vld [vmem:[%s15898_s19 + $0x3b0] sm:$0xf]  ;;  %v13842_v48 = vld [vmem:[%s15898_s19 + $0x400] sm:$0xf]  ;;  %v16030_v49 = vld [vmem:[%s15898_s19 + $0x3a8] sm:$0xff] }
  0x21   : > { %444 = vmatpush1.msra.mxu0 %v15973_v29  ;;  %539 = vmatpush1.msra.mxu1 %v13812_v30  ;;  %v16033_v50 = vld [vmem:[%s15898_s19 + $0x3f8] sm:$0xff]  ;;  %v16039_v51 = vld [vmem:[%s15898_s19 + $0x3a0] sm:$0xff]  ;;  %v16042_v52 = vld [vmem:[%s15898_s19 + $0x3f0] sm:$0xff] }
  0x22   : > { %445 = vmatprep.subr.mxu0 %v15979_v31  ;;  %540 = vmatprep.subr.mxu1 %v13811_v32  ;;  %v16047_v53 = vld [vmem:[%s15898_s19 + $0x398] sm:$0xff]  ;;  %v16050_v54 = vld [vmem:[%s15898_s19 + $0x3e8] sm:$0xff]  ;;  %v16055_v55 = vld [vmem:[%s15898_s19 + $0x390] sm:$0xff] }
  0x23   : > { %446 = vmatpush1.msra.mxu0 %v15984_v33  ;;  %541 = vmatpush1.msra.mxu1 %v13810_v34  ;;  %v16058_v56 = vld [vmem:[%s15898_s19 + $0x3e0] sm:$0xff]  ;;  %v16063_v57 = vld [vmem:[%s15898_s19 + $0x388] sm:$0xff]  ;;  %v16066_v58 = vld [vmem:[%s15898_s19 + $0x3d8] sm:$0xff] }
  0x24   : > { %447 = vmatprep.subr.mxu0 %v15989_v35  ;;  %542 = vmatprep.subr.mxu1 %v13809_v36  ;;  %v16071_v59 = vld [vmem:[%s15898_s19 + $0x380] sm:$0xff]  ;;  %v16074_v60 = vld [vmem:[%s15898_s19 + $0x3d0] sm:$0xff]  ;;  %v16079_v61 = vld [vmem:[%s15898_s19 + $0x378] sm:$0xff] }
  0x25   : > { %448 = vmatpush1.msra.mxu0 %v15994_v37  ;;  %543 = vmatpush1.msra.mxu1 %v13808_v38  ;;  %v16082_v62 = vld [vmem:[%s15898_s19 + $0x3c8] sm:$0xff]  ;;  %v16087_v63 = vld [vmem:[%s15898_s19 + $0x370] sm:$0xff]  ;;  %v16092_v1 = vld [vmem:[%s15898_s19 + $0x3c0] sm:$0xff] }
  0x26   : > { %449 = vmatprep.subr.mxu0 %v15999_v39  ;;  %544 = vmatprep.subr.mxu1 %v13807_v40  ;;  %v16097_v2 = vld [vmem:[%s19543_s1 + $0x20] sm:$0xff]  ;;  %v13857_v3 = vld [vmem:[%s15898_s19 + $0x688] sm:$0xf]  ;;  %v13871_v4 = vld [vmem:[%s15898_s19 + $0x6d8] sm:$0xf] }
  0x27   : > { %450 = vmatpush1.msra.mxu0 %v16004_v41  ;;  %483 = vmatprep.mubr.f32.mxu0 %v19547_v0  ;;  %v16108_v6 = vld [vmem:[%s19543_s1 + $0x28] sm:$0xff]  ;;  %v13856_v8 = vld [vmem:[%s15898_s19 + $0x680] sm:$0xf]  ;;  %v13870_v10 = vld [vmem:[%s15898_s19 + $0x6d0] sm:$0xf] }
  0x28   : > { %545 = vmatpush1.msra.mxu1 %v13806_v42  ;;  %13804 = vmatmul.mubr.msk.f32.vlgmr.msra.gmra.mxu0 %vm235_vm1, %v16011_v43  ;;  %v13855_v12 = vld [vmem:[%s15898_s19 + $0x678] sm:$0xff]  ;;  %v16119_v14 = vld [vmem:[%s15898_s19 + $0x6c8] sm:$0xff]  ;;  %v13854_v16 = vld [vmem:[%s15898_s19 + $0x670] sm:$0xff] }
  0x29   : > { %578 = vmatprep.mubr.f32.mxu1 %v19547_v0  ;;  %13830 = vmatprep.subr.msk.mxu0 %vm239_vm0, %v13829_v44  ;;  %v16126_v18 = vld [vmem:[%s15898_s19 + $0x6c0] sm:$0xff]  ;;  %v13853_v20 = vld [vmem:[%s15898_s19 + $0x668] sm:$0xff]  ;;  %v16132_v23 = vld [vmem:[%s15898_s19 + $0x6b8] sm:$0xff] }
  0x2a   : > { %13844 = vmatprep.subr.msk.mxu1 %vm239_vm0, %v13843_v45  ;;  %13818 = vmatmul.mubr.msk.f32.vlgmr.msra.gmra.mxu1 %vm235_vm1, %v16021_v46  ;;  %v13852_v24 = vld [vmem:[%s15898_s19 + $0x660] sm:$0xff]  ;;  %v16137_v25 = vld [vmem:[%s15898_s19 + $0x6b0] sm:$0xff]  ;;  %v13851_v26 = vld [vmem:[%s15898_s19 + $0x658] sm:$0xff] }
  0x2b   : > { %13831 = vmatpush1.msk.msra.mxu0 %vm239_vm0, %v13828_v47  ;;  %13845 = vmatpush1.msk.msra.mxu1 %vm239_vm0, %v13842_v48  ;;  %v16142_v28 = vld [vmem:[%s15898_s19 + $0x6a8] sm:$0xff]  ;;  %v13850_v30 = vld [vmem:[%s15898_s19 + $0x650] sm:$0xff]  ;;  %v16147_v32 = vld [vmem:[%s15898_s19 + $0x6a0] sm:$0xff] }
  0x2c   : > { %633 = vmatprep.subr.mxu0 %v16030_v49  ;;  %728 = vmatprep.subr.mxu1 %v16033_v50  ;;  %v13849_v34 = vld [vmem:[%s15898_s19 + $0x648] sm:$0xff]  ;;  %v16152_v36 = vld [vmem:[%s15898_s19 + $0x698] sm:$0xff]  ;;  %v13848_v38 = vld [vmem:[%s15898_s19 + $0x640] sm:$0xff] }
  0x2d   : > { %634 = vmatpush1.msra.mxu0 %v16039_v51  ;;  %729 = vmatpush1.msra.mxu1 %v16042_v52  ;;  %v16158_v40 = vld [vmem:[%s15898_s19 + $0x690] sm:$0xff]  ;;  %v13885_v44 = vld [vmem:[%s15898_s19 + $0x728] sm:$0xf]  ;;  %v16172_v47 = vld [vmem:[%s19543_s1 + $0x38] sm:$0xff] }
  0x2e   : > { %635 = vmatprep.subr.mxu0 %v16047_v53  ;;  %730 = vmatprep.subr.mxu1 %v16050_v54  ;;  %v16163_v42 = vld [vmem:[%s19543_s1 + $0x30] sm:$0xff]  ;;  %v13909_v45 = vld [vmem:[%s15898_s19 + $0xe8] sm:$0xf]  ;;  %v13884_v48 = vld [vmem:[%s15898_s19 + $0x720] sm:$0xf] }
  0x2f   : > { %636 = vmatpush1.msra.mxu0 %v16055_v55  ;;  %731 = vmatpush1.msra.mxu1 %v16058_v56 }
  0x30   : > { %637 = vmatprep.subr.mxu0 %v16063_v57  ;;  %732 = vmatprep.subr.mxu1 %v16066_v58 }
  0x31   : > { %638 = vmatpush1.msra.mxu0 %v16071_v59  ;;  %733 = vmatpush1.msra.mxu1 %v16074_v60 }
  0x32   : > { %639 = vmatprep.subr.mxu0 %v16079_v61  ;;  %734 = vmatprep.subr.mxu1 %v16082_v62 }
  0x33   : > { %640 = vmatpush1.msra.mxu0 %v16087_v63  ;;  %673 = vmatprep.mubr.f32.mxu0 %v19547_v0 }
  0x34   : > { %735 = vmatpush1.msra.mxu1 %v16092_v1  ;;  %13832 = vmatmul.mubr.msk.f32.vlgmr.msra.gmra.mxu0 %vm235_vm1, %v16097_v2 }
  0x35   : > { %768 = vmatprep.mubr.f32.mxu1 %v19547_v0  ;;  %13858 = vmatprep.subr.msk.mxu0 %vm239_vm0, %v13857_v3  ;;  %v13908_v3 = vld [vmem:[%s15898_s19 + $0xe0] sm:$0xf] }
  0x36   : > { %13872 = vmatprep.subr.msk.mxu1 %vm239_vm0, %v13871_v4  ;;  %13846 = vmatmul.mubr.msk.f32.vlgmr.msra.gmra.mxu1 %vm235_vm1, %v16108_v6  ;;  %v16182_v4 = vld [vmem:[%s15898_s19 + $0x718] sm:$0xff] }
  0x37   : > { %13859 = vmatpush1.msk.msra.mxu0 %vm239_vm0, %v13856_v8  ;;  %13873 = vmatpush1.msk.msra.mxu1 %vm239_vm0, %v13870_v10  ;;  %v16188_v8 = vld [vmem:[%s15898_s19 + $0x710] sm:$0xff]  ;;  %v16193_v10 = vld [vmem:[%s15898_s19 + $0x708] sm:$0xff] }
  0x38   : > { %823 = vmatprep.subr.mxu0 %v13855_v12  ;;  %918 = vmatprep.subr.mxu1 %v16119_v14  ;;  %v16198_v12 = vld [vmem:[%s15898_s19 + $0x700] sm:$0xff] }
  0x39   : > { %824 = vmatpush1.msra.mxu0 %v13854_v16  ;;  %919 = vmatpush1.msra.mxu1 %v16126_v18  ;;  %v16203_v16 = vld [vmem:[%s15898_s19 + $0x6f8] sm:$0xff] }
  0x3a   : > { %825 = vmatprep.subr.mxu0 %v13853_v20  ;;  %920 = vmatprep.subr.mxu1 %v16132_v23  ;;  %v16208_v20 = vld [vmem:[%s15898_s19 + $0x6f0] sm:$0xff] }
  0x3b   : > { %826 = vmatpush1.msra.mxu0 %v13852_v24  ;;  %921 = vmatpush1.msra.mxu1 %v16137_v25  ;;  %v16213_v24 = vld [vmem:[%s15898_s19 + $0x6e8] sm:$0xff] }
  0x3c   : > { %827 = vmatprep.subr.mxu0 %v13851_v26  ;;  %922 = vmatprep.subr.mxu1 %v16142_v28  ;;  %v16218_v26 = vld [vmem:[%s15898_s19 + $0x6e0] sm:$0xff] }
  0x3d   : > { %828 = vmatpush1.msra.mxu0 %v13850_v30  ;;  %923 = vmatpush1.msra.mxu1 %v16147_v32  ;;  %v16225_v30 = vld [vmem:[%s19543_s1 + $0x40] sm:$0xff] }
  0x3e   : > { %829 = vmatprep.subr.mxu0 %v13849_v34  ;;  %924 = vmatprep.subr.mxu1 %v16152_v36  ;;  %v13898_v34 = vld [vmem:[%s15898_s19 + $0x98] sm:$0xf] }
  0x3f   : > { %830 = vmatpush1.msra.mxu0 %v13848_v38  ;;  %863 = vmatprep.mubr.f32.mxu0 %v19547_v0  ;;  %v13926_v38 = vld [vmem:[%s15898_s19 + $0x138] sm:$0xf] }
  0x40   : > { %925 = vmatpush1.msra.mxu1 %v16158_v40  ;;  %13860 = vmatmul.mubr.msk.f32.vlgmr.msra.gmra.mxu0 %vm235_vm1, %v16163_v42 }
  0x41   : > { %958 = vmatprep.mubr.f32.mxu1 %v19547_v0  ;;  %13886 = vmatprep.subr.msk.mxu0 %vm239_vm0, %v13885_v44  ;;  %v13897_v44 = vld [vmem:[%s15898_s19 + $0x90] sm:$0xf] }
  0x42   : > { %13910 = vmatprep.subr.msk.mxu1 %vm239_vm0, %v13909_v45  ;;  %13874 = vmatmul.mubr.msk.f32.vlgmr.msra.gmra.mxu1 %vm235_vm1, %v16172_v47  ;;  %v13925_v45 = vld [vmem:[%s15898_s19 + $0x130] sm:$0xf] }
  0x43   : > { %13887 = vmatpush1.msk.msra.mxu0 %vm239_vm0, %v13884_v48  ;;  %13911 = vmatpush1.msk.msra.mxu1 %vm239_vm0, %v13908_v3  ;;  %v16241_v48 = vld [vmem:[%s15898_s19 + $0x128] sm:$0xff]  ;;  %v16247_v3 = vld [vmem:[%s15898_s19 + $0x120] sm:$0xff] }
  0x44   : > { %1013 = vmatprep.subr.mxu0 %v16182_v4  ;;  %1126 = vmatprep.subr.mxu1 %v15967_v27 }
  0x45   : > { %1014 = vmatpush1.msra.mxu0 %v16188_v8  ;;  %1127 = vmatpush1.msra.mxu1 %v15973_v29 }
  0x46   : > { %1015 = vmatprep.subr.mxu0 %v16193_v10  ;;  %1128 = vmatprep.subr.mxu1 %v15979_v31 }
  0x47   : > { %1016 = vmatpush1.msra.mxu0 %v16198_v12  ;;  %1129 = vmatpush1.msra.mxu1 %v15984_v33 }
  0x48   : > { %1017 = vmatprep.subr.mxu0 %v16203_v16  ;;  %1130 = vmatprep.subr.mxu1 %v15989_v35 }
  0x49   : > { %1018 = vmatpush1.msra.mxu0 %v16208_v20  ;;  %1131 = vmatpush1.msra.mxu1 %v15994_v37 }
  0x4a   : > { %1019 = vmatprep.subr.mxu0 %v16213_v24  ;;  %1132 = vmatprep.subr.mxu1 %v15999_v39 }
  0x4b   : > { %1020 = vmatpush1.msra.mxu0 %v16218_v26  ;;  %1053 = vmatprep.mubr.f32.mxu0 %v19547_v0 }
  0x4c   : > { %1133 = vmatpush1.msra.mxu1 %v16004_v41  ;;  %13888 = vmatmul.mubr.msk.f32.vlgmr.msra.gmra.mxu0 %vm235_vm1, %v16225_v30  ;;  %v16252_v41 = vld [vmem:[%s15898_s19 + $0x118] sm:$0xff] }
  0x4d   : > { %1166 = vmatprep.mubr.f32.mxu1 %v19547_v0  ;;  %13913 = vmatprep.subr.msk.mxu0 %vm239_vm0, %v13898_v34  ;;  %v16257_v34 = vld [vmem:[%s15898_s19 + $0x110] sm:$0xff] }
  0x4e   : > { %13927 = vmatprep.subr.msk.mxu1 %vm239_vm0, %v13926_v38  ;;  %13912 = vmatmul.mubr.msk.f32.vlgmr.msra.gmra.mxu1 %vm235_vm1, %v15949_v21  ;;  %v16262_v38 = vld [vmem:[%s15898_s19 + $0x108] sm:$0xff] }
  0x4f   : > { %13914 = vmatpush1.msk.msra.mxu0 %vm239_vm0, %v13897_v44  ;;  %13928 = vmatpush1.msk.msra.mxu1 %vm239_vm0, %v13925_v45  ;;  %v16267_v44 = vld [vmem:[%s15898_s19 + $0x100] sm:$0xff]  ;;  %v16390_v45 = vld [vmem:[%s15898_s19 + $0x758] sm:$0xff] }
  0x50   : > { %1206 = vmatprep.subr.mxu0 %v15907_v5  ;;  %1298 = vmatprep.subr.mxu1 %v16241_v48  ;;  %v16272_v5 = vld [vmem:[%s15898_s19 + $0xf8] sm:$0xff] }
  0x51   : > { %1207 = vmatpush1.msra.mxu0 %v15913_v7  ;;  %1299 = vmatpush1.msra.mxu1 %v16247_v3  ;;  %v16279_v7 = vld [vmem:[%s15898_s19 + $0xf0] sm:$0xff] }
  0x52   : > { %1208 = vmatprep.subr.mxu0 %v15917_v9  ;;  %1300 = vmatprep.subr.mxu1 %v16252_v41  ;;  %v13940_v9 = vld [vmem:[%s15898_s19 + $0x3b8] sm:$0xf] }
  0x53   : > { %1209 = vmatpush1.msra.mxu0 %v15922_v11  ;;  %1301 = vmatpush1.msra.mxu1 %v16257_v34  ;;  %v13954_v11 = vld [vmem:[%s15898_s19 + $0x408] sm:$0xf] }
  0x54   : > { %1210 = vmatprep.subr.mxu0 %v15927_v13  ;;  %1302 = vmatprep.subr.mxu1 %v16262_v38  ;;  %v13939_v13 = vld [vmem:[%s15898_s19 + $0x3b0] sm:$0xf] }
  0x55   : > { %1211 = vmatpush1.msra.mxu0 %v15932_v15  ;;  %1303 = vmatpush1.msra.mxu1 %v16267_v44  ;;  %v13953_v15 = vld [vmem:[%s15898_s19 + $0x400] sm:$0xf] }
  0x56   : > { %1212 = vmatprep.subr.mxu0 %v15937_v17  ;;  %1304 = vmatprep.subr.mxu1 %v16272_v5  ;;  %v13968_v17 = vld [vmem:[%s15898_s19 + $0x458] sm:$0xf] }
  0x57   : > { %1213 = vmatpush1.msra.mxu0 %v15942_v19  ;;  %1246 = vmatprep.mubr.f32.mxu0 %v19547_v0  ;;  %v13982_v19 = vld [vmem:[%s15898_s19 + $0x6d8] sm:$0xf] }
  0x58   : > { %1305 = vmatpush1.msra.mxu1 %v16279_v7  ;;  %13915 = vmatmul.mubr.msk.f32.vlgmr.msra.gmra.mxu0 %vm235_vm1, %v15954_v22 }
  0x59   : > { %1338 = vmatprep.mubr.f32.mxu1 %v19547_v0  ;;  %13941 = vmatprep.subr.msk.mxu0 %vm239_vm0, %v13940_v9  ;;  %v16395_v9 = vld [vmem:[%s15898_s19 + $0x750] sm:$0xff] }
  0x5a   : > { %13955 = vmatprep.subr.msk.mxu1 %vm239_vm0, %v13954_v11  ;;  %13929 = vmatmul.mubr.msk.f32.vlgmr.msra.gmra.mxu1 %vm235_vm1, %v16011_v43  ;;  %v16400_v11 = vld [vmem:[%s15898_s19 + $0x748] sm:$0xff] }
  0x5b   : > { %13942 = vmatpush1.msk.msra.mxu0 %vm239_vm0, %v13939_v13  ;;  %13956 = vmatpush1.msk.msra.mxu1 %vm239_vm0, %v13953_v15  ;;  %v16405_v13 = vld [vmem:[%s15898_s19 + $0x740] sm:$0xff]  ;;  %v16410_v15 = vld [vmem:[%s15898_s19 + $0x738] sm:$0xff] }
  0x5c   : > { %1391 = vmatprep.subr.mxu0 %v16030_v49  ;;  %1484 = vmatprep.subr.mxu1 %v16033_v50  ;;  %v13967_v49 = vld [vmem:[%s15898_s19 + $0x450] sm:$0xf] }
  0x5d   : > { %1392 = vmatpush1.msra.mxu0 %v16039_v51  ;;  %1485 = vmatpush1.msra.mxu1 %v16042_v52  ;;  %v13981_v51 = vld [vmem:[%s15898_s19 + $0x6d0] sm:$0xf] }
  0x5e   : > { %1393 = vmatprep.subr.mxu0 %v16047_v53  ;;  %1486 = vmatprep.subr.mxu1 %v16050_v54  ;;  %v16325_v53 = vld [vmem:[%s15898_s19 + $0x448] sm:$0xff] }
  0x5f   : > { %1394 = vmatpush1.msra.mxu0 %v16055_v55  ;;  %1487 = vmatpush1.msra.mxu1 %v16058_v56  ;;  %v16331_v55 = vld [vmem:[%s15898_s19 + $0x440] sm:$0xff] }
  0x60   : > { %1395 = vmatprep.subr.mxu0 %v16063_v57  ;;  %1488 = vmatprep.subr.mxu1 %v16066_v58  ;;  %v16336_v57 = vld [vmem:[%s15898_s19 + $0x438] sm:$0xff] }
  0x61   : > { %1396 = vmatpush1.msra.mxu0 %v16071_v59  ;;  %1489 = vmatpush1.msra.mxu1 %v16074_v60  ;;  %v16341_v59 = vld [vmem:[%s15898_s19 + $0x430] sm:$0xff] }
  0x62   : > { %1397 = vmatprep.subr.mxu0 %v16079_v61  ;;  %1490 = vmatprep.subr.mxu1 %v16082_v62  ;;  %v16346_v61 = vld [vmem:[%s15898_s19 + $0x428] sm:$0xff] }
  0x63   : > { %1398 = vmatpush1.msra.mxu0 %v16087_v63  ;;  %1431 = vmatprep.mubr.f32.mxu0 %v19547_v0  ;;  %v16351_v63 = vld [vmem:[%s15898_s19 + $0x420] sm:$0xff] }
  0x64   : > { %1491 = vmatpush1.msra.mxu1 %v16092_v1  ;;  %13943 = vmatmul.mubr.msk.f32.vlgmr.msra.gmra.mxu0 %vm235_vm1, %v16021_v46 }
  0x65   : > { %1524 = vmatprep.mubr.f32.mxu1 %v19547_v0  ;;  %13969 = vmatprep.subr.msk.mxu0 %vm239_vm0, %v13968_v17  ;;  %v16417_v17 = vld [vmem:[%s15898_s19 + $0x730] sm:$0xff] }
  0x66   : > { %13983 = vmatprep.subr.msk.mxu1 %vm239_vm0, %v13982_v19  ;;  %13957 = vmatmul.mubr.msk.f32.vlgmr.msra.gmra.mxu1 %vm235_vm1, %v16097_v2  ;;  %v14036_v19 = vld [vmem:[%s15898_s19 + $0x138] sm:$0xf] }
  0x67   : > { %13970 = vmatpush1.msk.msra.mxu0 %vm239_vm0, %v13967_v49  ;;  %13984 = vmatpush1.msk.msra.mxu1 %vm239_vm0, %v13981_v51  ;;  %v14025_v49 = vld [vmem:[%s15898_s19 + $0xe8] sm:$0xf]  ;;  %v14035_v51 = vld [vmem:[%s15898_s19 + $0x130] sm:$0xf] }
  0x68   : > { %1578 = vmatprep.subr.mxu0 %v16325_v53  ;;  %1671 = vmatprep.subr.mxu1 %v16119_v14  ;;  %v16356_v14 = vld [vmem:[%s15898_s19 + $0x418] sm:$0xff] }
  0x69   : > { %1579 = vmatpush1.msra.mxu0 %v16331_v55  ;;  %1672 = vmatpush1.msra.mxu1 %v16126_v18  ;;  %v16361_v18 = vld [vmem:[%s15898_s19 + $0x410] sm:$0xff] }
  0x6a   : > { %1580 = vmatprep.subr.mxu0 %v16336_v57  ;;  %1673 = vmatprep.subr.mxu1 %v16132_v23  ;;  %v13996_v23 = vld [vmem:[%s15898_s19 + $0x728] sm:$0xf] }
  0x6b   : > { %1581 = vmatpush1.msra.mxu0 %v16341_v59  ;;  %1674 = vmatpush1.msra.mxu1 %v16137_v25  ;;  %v14010_v25 = vld [vmem:[%s15898_s19 + $0x778] sm:$0xf] }
  0x6c   : > { %1582 = vmatprep.subr.mxu0 %v16346_v61  ;;  %1675 = vmatprep.subr.mxu1 %v16142_v28  ;;  %v13995_v28 = vld [vmem:[%s15898_s19 + $0x720] sm:$0xf] }
  0x6d   : > { %1583 = vmatpush1.msra.mxu0 %v16351_v63  ;;  %1676 = vmatpush1.msra.mxu1 %v16147_v32  ;;  %v14009_v32 = vld [vmem:[%s15898_s19 + $0x770] sm:$0xf] }
  0x6e   : > { %1584 = vmatprep.subr.mxu0 %v16356_v14  ;;  %1677 = vmatprep.subr.mxu1 %v16152_v36  ;;  %v16379_v36 = vld [vmem:[%s15898_s19 + $0x768] sm:$0xff] }
  0x6f   : > { %1585 = vmatpush1.msra.mxu0 %v16361_v18  ;;  %1618 = vmatprep.mubr.f32.mxu0 %v19547_v0 }
  0x70   : > { %1678 = vmatpush1.msra.mxu1 %v16158_v40  ;;  %13971 = vmatmul.mubr.msk.f32.vlgmr.msra.gmra.mxu0 %vm235_vm1, %v16108_v6  ;;  %v16385_v40 = vld [vmem:[%s15898_s19 + $0x760] sm:$0xff] }
  0x71   : > { %1711 = vmatprep.mubr.f32.mxu1 %v19547_v0  ;;  %13997 = vmatprep.subr.msk.mxu0 %vm239_vm0, %v13996_v23  ;;  %v14024_v23 = vld [vmem:[%s15898_s19 + $0xe0] sm:$0xf] }
  0x72   : > { %14011 = vmatprep.subr.msk.mxu1 %vm239_vm0, %v14010_v25  ;;  %13985 = vmatmul.mubr.msk.f32.vlgmr.msra.gmra.mxu1 %vm235_vm1, %v16163_v42  ;;  %v16474_v25 = vld [vmem:[%s15898_s19 + $0x168] sm:$0xff] }
  0x73   : > { %13998 = vmatpush1.msk.msra.mxu0 %vm239_vm0, %v13995_v28  ;;  %14012 = vmatpush1.msk.msra.mxu1 %vm239_vm0, %v14009_v32  ;;  %v16489_v28 = vld [vmem:[%s15898_s19 + $0x150] sm:$0xff]  ;;  %v16533_v32 = vld [vmem:[%s15898_s19 + $0x480] sm:$0xff] }
  0x74   : > { %1764 = vmatprep.subr.mxu0 %v16182_v4  ;;  %1858 = vmatprep.subr.mxu1 %v16379_v36 }
  0x75   : > { %1765 = vmatpush1.msra.mxu0 %v16188_v8  ;;  %1859 = vmatpush1.msra.mxu1 %v16385_v40 }
  0x76   : > { %1766 = vmatprep.subr.mxu0 %v16193_v10  ;;  %1860 = vmatprep.subr.mxu1 %v16390_v45 }
  0x77   : > { %1767 = vmatpush1.msra.mxu0 %v16198_v12  ;;  %1861 = vmatpush1.msra.mxu1 %v16395_v9 }
  0x78   : > { %1768 = vmatprep.subr.mxu0 %v16203_v16  ;;  %1862 = vmatprep.subr.mxu1 %v16400_v11 }
  0x79   : > { %1769 = vmatpush1.msra.mxu0 %v16208_v20  ;;  %1863 = vmatpush1.msra.mxu1 %v16405_v13 }
  0x7a   : > { %1770 = vmatprep.subr.mxu0 %v16213_v24  ;;  %1864 = vmatprep.subr.mxu1 %v16410_v15 }
  0x7b   : > { %1771 = vmatpush1.msra.mxu0 %v16218_v26  ;;  %1804 = vmatprep.mubr.f32.mxu0 %v19547_v0 }
  0x7c   : > { %1865 = vmatpush1.msra.mxu1 %v16417_v17  ;;  %13999 = vmatmul.mubr.msk.f32.vlgmr.msra.gmra.mxu0 %vm235_vm1, %v16172_v47 }
  0x7d   : > { %1898 = vmatprep.mubr.f32.mxu1 %v19547_v0  ;;  %14037 = vmatprep.subr.msk.mxu0 %vm239_vm0, %v14036_v19  ;;  %v16543_v19 = vld [vmem:[%s15898_s19 + $0x470] sm:$0xff] }
  0x7e   : > { %14040 = vmatprep.subr.msk.mxu1 %vm239_vm0, %v14025_v49  ;;  %14013 = vmatmul.mubr.msk.f32.vlgmr.msra.gmra.mxu1 %vm235_vm1, %v16225_v30  ;;  %v16548_v49 = vld [vmem:[%s15898_s19 + $0x468] sm:$0xff] }
  0x7f   : > { %14038 = vmatpush1.msk.msra.mxu0 %vm239_vm0, %v14035_v51  ;;  %14041 = vmatpush1.msk.msra.mxu1 %vm239_vm0, %v14024_v23  ;;  %v16555_v51 = vld [vmem:[%s15898_s19 + $0x460] sm:$0xff]  ;;  %v14109_v23 = vld [vmem:[%s15898_s19 + $0x728] sm:$0xf] }
  0x80   : > { %1967 = vmatprep.subr.mxu0 %v16241_v48  ;;  %2047 = vmatprep.subr.mxu1 %v15967_v27  ;;  %v14053_v27 = vld [vmem:[%s15898_s19 + $0x188] sm:$0xf] }
  0x81   : > { %1968 = vmatpush1.msra.mxu0 %v16247_v3  ;;  %2048 = vmatpush1.msra.mxu1 %v15973_v29  ;;  %v14067_v29 = vld [vmem:[%s15898_s19 + $0x408] sm:$0xf] }
  0x82   : > { %1969 = vmatprep.subr.mxu0 %v16252_v41  ;;  %2049 = vmatprep.subr.mxu1 %v15979_v31  ;;  %v19608_v31 = vld [vmem:[#allocation2_spill] sm:$0xff] }
  0x83   : > { %1970 = vmatpush1.msra.mxu0 %v16257_v34  ;;  %2050 = vmatpush1.msra.mxu1 %v15984_v33  ;;  %v14052_v33 = vld [vmem:[%s15898_s19 + $0x180] sm:$0xf] }
  0x84   : > { %1971 = vmatprep.subr.mxu0 %v16262_v38  ;;  %2051 = vmatprep.subr.mxu1 %v15989_v35  ;;  %v14066_v35 = vld [vmem:[%s15898_s19 + $0x400] sm:$0xf] }
  0x85   : > { %1972 = vmatpush1.msra.mxu0 %v16267_v44  ;;  %2052 = vmatpush1.msra.mxu1 %v15994_v37  ;;  %v16464_v37 = vld [vmem:[%s15898_s19 + $0x178] sm:$0xff] }
  0x86   : > { %1973 = vmatprep.subr.mxu0 %v16272_v5  ;;  %2053 = vmatprep.subr.mxu1 %v15999_v39  ;;  %v16469_v39 = vld [vmem:[%s15898_s19 + $0x170] sm:$0xff] }
  0x87   : > { %1974 = vmatpush1.msra.mxu0 %v16279_v7  ;;  %2007 = vmatprep.mubr.f32.mxu0 %v19547_v0 }
  0x88   : > { %2054 = vmatpush1.msra.mxu1 %v19608_v31  ;;  %2087 = vmatprep.mubr.f32.mxu1 %v19547_v0  ;;  %v210_v31 = vld [vmem:[%s19544_s2] sm:$0xff] }
  0x89   : > { %14039 = vmatmul.mubr.msk.f32.vlgmr.msra.gmra.mxu0 %vm235_vm1, %v15949_v21  ;;  %14042 = vmatmul.mubr.msk.f32.vlgmr.msra.gmra.mxu1 %vm235_vm1, %v15954_v22  ;;  %v16479_v21 = vld [vmem:[%s15898_s19 + $0x160] sm:$0xff]  ;;  %v16484_v22 = vld [vmem:[%s15898_s19 + $0x158] sm:$0xff] }
  0x8a   : > { %14054 = vmatprep.subr.msk.mxu0 %vm239_vm0, %v14053_v27  ;;  %14068 = vmatprep.subr.msk.mxu1 %vm239_vm0, %v14067_v29  ;;  %v14123_v27 = vld [vmem:[%s15898_s19 + $0x778] sm:$0xf]  ;;  %v15851_v29 = vmov 0  }
  0x8b   : > { %14055 = vmatpush1.msk.msra.mxu0 %vm239_vm0, %v14052_v33  ;;  %14069 = vmatpush1.msk.msra.mxu1 %vm239_vm0, %v14066_v35  ;;  %v14108_v33 = vld [vmem:[%s15898_s19 + $0x720] sm:$0xf]  ;;  %v14122_v35 = vld [vmem:[%s15898_s19 + $0x770] sm:$0xf] }
  0x8c   : > { %2139 = vmatprep.subr.mxu0 %v16464_v37  ;;  %2232 = vmatprep.subr.mxu1 %v16033_v50  ;;  %v16494_v50 = vld [vmem:[%s15898_s19 + $0x148] sm:$0xff] }
  0x8d   : > { %2140 = vmatpush1.msra.mxu0 %v16469_v39  ;;  %2233 = vmatpush1.msra.mxu1 %v16042_v52  ;;  %v16499_v52 = vld [vmem:[%s15898_s19 + $0x140] sm:$0xff] }
  0x8e   : > { %2141 = vmatprep.subr.mxu0 %v16474_v25  ;;  %2234 = vmatprep.subr.mxu1 %v16050_v54  ;;  %v14081_v54 = vld [vmem:[%s15898_s19 + $0x458] sm:$0xf] }
  0x8f   : > { %2142 = vmatpush1.msra.mxu0 %v16479_v21  ;;  %2235 = vmatpush1.msra.mxu1 %v16058_v56  ;;  %v14095_v56 = vld [vmem:[%s15898_s19 + $0x4a8] sm:$0xf] }
  0x90   : > { %2143 = vmatprep.subr.mxu0 %v16484_v22  ;;  %2236 = vmatprep.subr.mxu1 %v16066_v58  ;;  %v14080_v58 = vld [vmem:[%s15898_s19 + $0x450] sm:$0xf] }
  0x91   : > { %2144 = vmatpush1.msra.mxu0 %v16489_v28  ;;  %2237 = vmatpush1.msra.mxu1 %v16074_v60  ;;  %v14094_v60 = vld [vmem:[%s15898_s19 + $0x4a0] sm:$0xf] }
  0x92   : > { %2145 = vmatprep.subr.mxu0 %v16494_v50  ;;  %2238 = vmatprep.subr.mxu1 %v16082_v62  ;;  %v16517_v62 = vld [vmem:[%s15898_s19 + $0x498] sm:$0xff] }
  0x93   : > { %2146 = vmatpush1.msra.mxu0 %v16499_v52  ;;  %2179 = vmatprep.mubr.f32.mxu0 %v19547_v0 }
  0x94   : > { %2239 = vmatpush1.msra.mxu1 %v16092_v1  ;;  %14056 = vmatmul.mubr.msk.f32.vlgmr.msra.gmra.mxu0 %vm235_vm1, %v16011_v43  ;;  %v16523_v1 = vld [vmem:[%s15898_s19 + $0x490] sm:$0xff]  ;;  %v16528_v43 = vld [vmem:[%s15898_s19 + $0x488] sm:$0xff] }
  0x95   : > { %2272 = vmatprep.mubr.f32.mxu1 %v19547_v0  ;;  %14082 = vmatprep.subr.msk.mxu0 %vm239_vm0, %v14081_v54  ;;  %v14152_v54 = vld [vmem:[%s15898_s19 + $0x138] sm:$0xf] }
  0x96   : > { %14096 = vmatprep.subr.msk.mxu1 %vm239_vm0, %v14095_v56  ;;  %14070 = vmatmul.mubr.msk.f32.vlgmr.msra.gmra.mxu1 %vm235_vm1, %v16021_v46  ;;  %v16538_v46 = vld [vmem:[%s15898_s19 + $0x478] sm:$0xff] }
  0x97   : > { %14083 = vmatpush1.msk.msra.mxu0 %vm239_vm0, %v14080_v58  ;;  %14097 = vmatpush1.msk.msra.mxu1 %vm239_vm0, %v14094_v60  ;;  %v14180_v56 = vld [vmem:[%s15898_s19 + $0x1d8] sm:$0xf]  ;;  %v16653_v58 = vld [vmem:[%s19543_s1 + $0x8] sm:$0xff]  ;;  %v14151_v60 = vld [vmem:[%s15898_s19 + $0x130] sm:$0xf] }
  0x98   : > { %2325 = vmatprep.subr.mxu0 %v16325_v53  ;;  %2419 = vmatprep.subr.mxu1 %v16517_v62 }
  0x99   : > { %2326 = vmatpush1.msra.mxu0 %v16331_v55  ;;  %2420 = vmatpush1.msra.mxu1 %v16523_v1 }
  0x9a   : > { %2327 = vmatprep.subr.mxu0 %v16336_v57  ;;  %2421 = vmatprep.subr.mxu1 %v16528_v43 }
  0x9b   : > { %2328 = vmatpush1.msra.mxu0 %v16341_v59  ;;  %2422 = vmatpush1.msra.mxu1 %v16533_v32 }
  0x9c   : > { %2329 = vmatprep.subr.mxu0 %v16346_v61  ;;  %2423 = vmatprep.subr.mxu1 %v16538_v46 }
  0x9d   : > { %2330 = vmatpush1.msra.mxu0 %v16351_v63  ;;  %2424 = vmatpush1.msra.mxu1 %v16543_v19 }
  0x9e   : > { %2331 = vmatprep.subr.mxu0 %v16356_v14  ;;  %2425 = vmatprep.subr.mxu1 %v16548_v49 }
  0x9f   : > { %2332 = vmatpush1.msra.mxu0 %v16361_v18  ;;  %2365 = vmatprep.mubr.f32.mxu0 %v19547_v0 }
  0xa0   : > { %2426 = vmatpush1.msra.mxu1 %v16555_v51  ;;  %15825 = vset.pattern.permute.xlu0 %v15851_v29  ;;  %v16669_v29 = vld [vmem:[%s15898_s19 + $0x1c0] sm:$0xff] }
  0xa1   : > { %14084 = vmatmul.mubr.msk.f32.vlgmr.msra.gmra.mxu0 %vm235_vm1, %v16097_v2  ;;  %2459 = vmatprep.mubr.f32.mxu1 %v19547_v0  ;;  %v14137_v2 = vld [vmem:[%s15898_s19 + $0x7c8] sm:$0xf] }
  0xa2   : > { %14110 = vmatprep.subr.msk.mxu0 %vm239_vm0, %v14109_v23  ;;  %14124 = vmatprep.subr.msk.mxu1 %vm239_vm0, %v14123_v27  ;;  %v14179_v23 = vld [vmem:[%s15898_s19 + $0x1d0] sm:$0xf]  ;;  %v16663_v27 = vld [vmem:[%s15898_s19 + $0x1c8] sm:$0xff] }
  0xa3   : > { %1064 = vperm.xlu0 %15825, %v210_v31   ;;  %14098 = vmatmul.mubr.msk.f32.vlgmr.msra.gmra.mxu1 %vm235_vm1, %v16108_v6  ;;  %v14163_v6 = vld [vmem:[%s15898_s19 + $0x188] sm:$0xf]  ;;  %v16679_v31 = vld [vmem:[%s15898_s19 + $0x1b0] sm:$0xff] }
  0xa4   : > { %14111 = vmatpush1.msk.msra.mxu0 %vm239_vm0, %v14108_v33  ;;  %14125 = vmatpush1.msk.msra.mxu1 %vm239_vm0, %v14122_v35  ;;  %v16684_v33 = vld [vmem:[%s15898_s19 + $0x1a8] sm:$0xff]  ;;  %v16689_v35 = vld [vmem:[%s15898_s19 + $0x1a0] sm:$0xff] }
  0xa5   : > { %2512 = vmatprep.subr.mxu0 %v16182_v4  ;;  %2605 = vmatprep.subr.mxu1 %v16379_v36  ;;  %v14136_v4 = vld [vmem:[%s15898_s19 + $0x7c0] sm:$0xf] }
  0xa6   : > { %2513 = vmatpush1.msra.mxu0 %v16188_v8  ;;  %2606 = vmatpush1.msra.mxu1 %v16385_v40  ;;  %v14162_v8 = vld [vmem:[%s15898_s19 + $0x180] sm:$0xf] }
  0xa7   : > { %2514 = vmatprep.subr.mxu0 %v16193_v10  ;;  %2607 = vmatprep.subr.mxu1 %v16390_v45  ;;  %v16604_v10 = vld [vmem:[%s15898_s19 + $0x7b8] sm:$0xff] }
  0xa8   : > { %2515 = vmatpush1.msra.mxu0 %v16198_v12  ;;  %2608 = vmatpush1.msra.mxu1 %v16395_v9  ;;  %v16610_v12 = vld [vmem:[%s15898_s19 + $0x7b0] sm:$0xff] }
  0xa9   : > { %2516 = vmatprep.subr.mxu0 %v16203_v16  ;;  %2609 = vmatprep.subr.mxu1 %v16400_v11  ;;  %v16620_v16 = vld [vmem:[%s15898_s19 + $0x7a0] sm:$0xff] }
  0xaa   : > { %2517 = vmatpush1.msra.mxu0 %v16208_v20  ;;  %2610 = vmatpush1.msra.mxu1 %v16405_v13  ;;  %v16630_v20 = vld [vmem:[%s15898_s19 + $0x790] sm:$0xff] }
  0xab   : > { %2518 = vmatprep.subr.mxu0 %v16213_v24  ;;  %2611 = vmatprep.subr.mxu1 %v16410_v15  ;;  %v16635_v24 = vld [vmem:[%s15898_s19 + $0x788] sm:$0xff] }
  0xac   : > { %2519 = vmatpush1.msra.mxu0 %v16218_v26  ;;  %2552 = vmatprep.mubr.f32.mxu0 %v19547_v0  ;;  %v16640_v26 = vld [vmem:[%s15898_s19 + $0x780] sm:$0xff] }
  0xad   : > { %2612 = vmatpush1.msra.mxu1 %v16417_v17  ;;  %14112 = vmatmul.mubr.msk.f32.vlgmr.msra.gmra.mxu0 %vm235_vm1, %v16163_v42  ;;  %v16615_v42 = vld [vmem:[%s15898_s19 + $0x7a8] sm:$0xff] }
  0xae   : > { %2645 = vmatprep.mubr.f32.mxu1 %v19547_v0  ;;  %14138 = vmatprep.subr.msk.mxu0 %vm239_vm0, %v14137_v2  ;;  %v14193_v2 = vld [vmem:[%s15898_s19 + $0x450] sm:$0xf] }
  0xaf   : > { %14164 = vmatprep.subr.msk.mxu1 %vm239_vm0, %v14163_v6  ;;  %14126 = vmatmul.mubr.msk.f32.vlgmr.msra.gmra.mxu1 %vm235_vm1, %v16172_v47  ;;  %v16625_v47 = vld [vmem:[%s15898_s19 + $0x798] sm:$0xff]  ;;  %v16783_v6 = vld [vmem:[%s15898_s19 + $0x4d0] sm:$0xff] }
  0xb0   : > { %14139 = vmatpush1.msk.msra.mxu0 %vm239_vm0, %v14136_v4  ;;  %14165 = vmatpush1.msk.msra.mxu1 %vm239_vm0, %v14162_v8  ;;  %v16788_v4 = vld [vmem:[%s15898_s19 + $0x4c8] sm:$0xff]  ;;  %v16793_v8 = vld [vmem:[%s15898_s19 + $0x4c0] sm:$0xff] }
  0xb1   : > { %2699 = vmatprep.subr.mxu0 %v16604_v10  ;;  %2808 = vmatprep.subr.mxu1 %v16464_v37  ;;  %19611 = vst [vmem:[#allocation4_spill] sm:$0xff] %v16788_v4  ;;  %19612 = vst [vmem:[#allocation5_spill] sm:$0xff] %v16793_v8 }
  0xb2   : > { %2700 = vmatpush1.msra.mxu0 %v16610_v12  ;;  %2809 = vmatpush1.msra.mxu1 %v16469_v39 }
  0xb3   : > { %2701 = vmatprep.subr.mxu0 %v16615_v42  ;;  %2810 = vmatprep.subr.mxu1 %v16474_v25 }
  0xb4   : > { %2702 = vmatpush1.msra.mxu0 %v16620_v16  ;;  %2811 = vmatpush1.msra.mxu1 %v16479_v21 }
  0xb5   : > { %2703 = vmatprep.subr.mxu0 %v16625_v47  ;;  %2812 = vmatprep.subr.mxu1 %v16484_v22 }
  0xb6   : > { %2704 = vmatpush1.msra.mxu0 %v16630_v20  ;;  %2813 = vmatpush1.msra.mxu1 %v16489_v28 }
  0xb7   : > { %2705 = vmatprep.subr.mxu0 %v16635_v24  ;;  %2814 = vmatprep.subr.mxu1 %v16494_v50 }
  0xb8   : > { %2706 = vmatpush1.msra.mxu0 %v16640_v26  ;;  %2739 = vmatprep.mubr.f32.mxu0 %v19547_v0 }
  0xb9   : > { %2815 = vmatpush1.msra.mxu1 %v16499_v52  ;;  %14140 = vmatmul.mubr.msk.f32.vlgmr.msra.gmra.mxu0 %vm235_vm1, %v16225_v30  ;;  %v16674_v30 = vld [vmem:[%s15898_s19 + $0x1b8] sm:$0xff] }
  0xba   : > { %2848 = vmatprep.mubr.f32.mxu1 %v19547_v0  ;;  %14167 = vmatprep.subr.msk.mxu0 %vm239_vm0, %v14152_v54  ;;  %v14249_v54 = vld [vmem:[%s15898_s19 + $0x7c0] sm:$0xf] }
  0xbb   : > { %14181 = vmatprep.subr.msk.mxu1 %vm239_vm0, %v14180_v56  ;;  %14166 = vmatmul.mubr.msk.f32.vlgmr.msra.gmra.mxu1 %vm235_vm1, %v16653_v58  ;;  %v16831_v56 = vld [vmem:[%s15898_s19 + $0x808] sm:$0xff] }
  0xbc   : > { %14168 = vmatpush1.msk.msra.mxu0 %vm239_vm0, %v14151_v60  ;;  %14182 = vmatpush1.msk.msra.mxu1 %vm239_vm0, %v14179_v23  ;;  %v16842_v60 = vld [vmem:[%s15898_s19 + $0x7f8] sm:$0xff]  ;;  %v16847_v23 = vld [vmem:[%s15898_s19 + $0x7f0] sm:$0xff] }
  0xbd   : > { %2888 = vmatprep.subr.mxu0 %v16241_v48  ;;  %2980 = vmatprep.subr.mxu1 %v16663_v27  ;;  %v16694_v48 = vld [vmem:[%s15898_s19 + $0x198] sm:$0xff] }
  0xbe   : > { %2889 = vmatpush1.msra.mxu0 %v16247_v3  ;;  %2981 = vmatpush1.msra.mxu1 %v16669_v29  ;;  %v16706_v3 = vld [vmem:[%s19543_s1] sm:$0xff] }
  0xbf   : > { %2890 = vmatprep.subr.mxu0 %v16252_v41  ;;  %2982 = vmatprep.subr.mxu1 %v16674_v30  ;;  %v16701_v41 = vld [vmem:[%s15898_s19 + $0x190] sm:$0xff] }
  0xc0   : > { %2891 = vmatpush1.msra.mxu0 %v16257_v34  ;;  %2983 = vmatpush1.msra.mxu1 %v16679_v31  ;;  %v14194_v34 = vld [vmem:[%s15898_s19 + $0x458] sm:$0xf] }
  0xc1   : > { %2892 = vmatprep.subr.mxu0 %v16262_v38  ;;  %2984 = vmatprep.subr.mxu1 %v16684_v33  ;;  %v14208_v38 = vld [vmem:[%s15898_s19 + $0x4a8] sm:$0xf] }
  0xc2   : > { %2893 = vmatpush1.msra.mxu0 %v16267_v44  ;;  %2985 = vmatpush1.msra.mxu1 %v16689_v35  ;;  %v16717_v44 = vld [vmem:[%s19543_s1 + $0x10] sm:$0xff] }
  0xc3   : > { %2894 = vmatprep.subr.mxu0 %v16272_v5  ;;  %2986 = vmatprep.subr.mxu1 %v16694_v48  ;;  %v14207_v5 = vld [vmem:[%s15898_s19 + $0x4a0] sm:$0xf] }
  0xc4   : > { %2895 = vmatpush1.msra.mxu0 %v16279_v7  ;;  %2928 = vmatprep.mubr.f32.mxu0 %v19547_v0  ;;  %v16746_v7 = vld [vmem:[%s19543_s1 + $0x18] sm:$0xff] }
  0xc5   : > { %2987 = vmatpush1.msra.mxu1 %v16701_v41  ;;  %14169 = vmatmul.mubr.msk.f32.vlgmr.msra.gmra.mxu0 %vm235_vm1, %v16706_v3  ;;  %19609 = vst [vmem:[#allocation2_spill] sm:$0xff] %v16746_v7 }
  0xc6   : > { %3020 = vmatprep.mubr.f32.mxu1 %v19547_v0  ;;  %14195 = vmatprep.subr.msk.mxu0 %vm239_vm0, %v14194_v34  ;;  %v16852_v34 = vld [vmem:[%s15898_s19 + $0x7e8] sm:$0xff] }
  0xc7   : > { %14209 = vmatprep.subr.msk.mxu1 %vm239_vm0, %v14208_v38  ;;  %14183 = vmatmul.mubr.msk.f32.vlgmr.msra.gmra.mxu1 %vm235_vm1, %v16717_v44  ;;  %v16857_v38 = vld [vmem:[%s15898_s19 + $0x7e0] sm:$0xff] }
  0xc8   : > { %14196 = vmatpush1.msk.msra.mxu0 %vm239_vm0, %v14193_v2  ;;  %14210 = vmatpush1.msk.msra.mxu1 %vm239_vm0, %v14207_v5  ;;  %v16862_v2 = vld [vmem:[%s15898_s19 + $0x7d8] sm:$0xff]  ;;  %v16869_v5 = vld [vmem:[%s15898_s19 + $0x7d0] sm:$0xff] }
  0xc9   : > { %3073 = vmatprep.subr.mxu0 %v16325_v53  ;;  %3166 = vmatprep.subr.mxu1 %v16517_v62  ;;  %v14222_v53 = vld [vmem:[%s15898_s19 + $0x4f8] sm:$0xf] }
  0xca   : > { %3074 = vmatpush1.msra.mxu0 %v16331_v55  ;;  %3167 = vmatpush1.msra.mxu1 %v16523_v1  ;;  %v14236_v55 = vld [vmem:[%s15898_s19 + $0x778] sm:$0xf] }
  0xcb   : > { %3075 = vmatprep.subr.mxu0 %v16336_v57  ;;  %3168 = vmatprep.subr.mxu1 %v16528_v43  ;;  %v16757_v57 = vld [vmem:[%s19543_s1 + $0x20] sm:$0xff] }
  0xcc   : > { %3076 = vmatpush1.msra.mxu0 %v16341_v59  ;;  %3169 = vmatpush1.msra.mxu1 %v16533_v32  ;;  %19610 = vst [vmem:[#allocation3_spill] sm:$0xff] %v16757_v57  ;;  %v14221_v59 = vld [vmem:[%s15898_s19 + $0x4f0] sm:$0xf] }
  0xcd   : > { %3077 = vmatprep.subr.mxu0 %v16346_v61  ;;  %3170 = vmatprep.subr.mxu1 %v16538_v46  ;;  %v14235_v61 = vld [vmem:[%s15898_s19 + $0x770] sm:$0xf] }
  0xce   : > { %3078 = vmatpush1.msra.mxu0 %v16351_v63  ;;  %3171 = vmatpush1.msra.mxu1 %v16543_v19  ;;  %v16767_v63 = vld [vmem:[%s15898_s19 + $0x4e8] sm:$0xff] }
  0xcf   : > { %3079 = vmatprep.subr.mxu0 %v16356_v14  ;;  %3172 = vmatprep.subr.mxu1 %v16548_v49  ;;  %v16773_v14 = vld [vmem:[%s15898_s19 + $0x4e0] sm:$0xff] }
  0xd0   : > { %3080 = vmatpush1.msra.mxu0 %v16361_v18  ;;  %3113 = vmatprep.mubr.f32.mxu0 %v19547_v0  ;;  %v16778_v18 = vld [vmem:[%s15898_s19 + $0x4d8] sm:$0xff] }
  0xd1   : > { %3173 = vmatpush1.msra.mxu1 %v16555_v51  ;;  %14197 = vmatmul.mubr.msk.f32.vlgmr.msra.gmra.mxu0 %vm235_vm1, %v16746_v7 }
  0xd2   : > { %3206 = vmatprep.mubr.f32.mxu1 %v19547_v0  ;;  %14223 = vmatprep.subr.msk.mxu0 %vm239_vm0, %v14222_v53  ;;  %v16874_v53 = vld [vmem:[%s19543_s1 + $0x38] sm:$0xff] }
  0xd3   : > { %14237 = vmatprep.subr.msk.mxu1 %vm239_vm0, %v14236_v55  ;;  %14211 = vmatmul.mubr.msk.f32.vlgmr.msra.gmra.mxu1 %vm235_vm1, %v16757_v57  ;;  %v14290_v55 = vld [vmem:[%s15898_s19 + $0x1d8] sm:$0xf] }
  0xd4   : > { %14224 = vmatpush1.msk.msra.mxu0 %vm239_vm0, %v14221_v59  ;;  %14238 = vmatpush1.msk.msra.mxu1 %vm239_vm0, %v14235_v61  ;;  %v14279_v59 = vld [vmem:[%s15898_s19 + $0x188] sm:$0xf]  ;;  %v16885_v61 = vld [vmem:[%s19543_s1 + $0x40] sm:$0xff] }
  0xd5   : > { %3260 = vmatprep.subr.mxu0 %v16767_v63  ;;  %3353 = vmatprep.subr.mxu1 %v16379_v36  ;;  %v16798_v36 = vld [vmem:[%s15898_s19 + $0x4b8] sm:$0xff] }
  0xd6   : > { %3261 = vmatpush1.msra.mxu0 %v16773_v14  ;;  %3354 = vmatpush1.msra.mxu1 %v16385_v40  ;;  %19613 = vst [vmem:[#allocation6_spill] sm:$0xff] %v16798_v36  ;;  %v16803_v40 = vld [vmem:[%s15898_s19 + $0x4b0] sm:$0xff] }
  0xd7   : > { %3262 = vmatprep.subr.mxu0 %v16778_v18  ;;  %3355 = vmatprep.subr.mxu1 %v16390_v45  ;;  %19614 = vst [vmem:[#allocation7_spill] sm:$0xff] %v16803_v40  ;;  %v16810_v45 = vld [vmem:[%s19543_s1 + $0x28] sm:$0xff] }
  0xd8   : > { %3263 = vmatpush1.msra.mxu0 %v16783_v6  ;;  %3356 = vmatpush1.msra.mxu1 %v16395_v9  ;;  %v14250_v9 = vld [vmem:[%s15898_s19 + $0x7c8] sm:$0xf] }
  0xd9   : > { %3264 = vmatprep.subr.mxu0 %v16788_v4  ;;  %3357 = vmatprep.subr.mxu1 %v16400_v11  ;;  %v14264_v11 = vld [vmem:[%s15898_s19 + $0x818] sm:$0xf] }
  0xda   : > { %3265 = vmatpush1.msra.mxu0 %v16793_v8  ;;  %3358 = vmatpush1.msra.mxu1 %v16405_v13  ;;  %v16821_v13 = vld [vmem:[%s19543_s1 + $0x30] sm:$0xff] }
  0xdb   : > { %3266 = vmatprep.subr.mxu0 %v16798_v36  ;;  %3359 = vmatprep.subr.mxu1 %v16410_v15  ;;  %v14263_v15 = vld [vmem:[%s15898_s19 + $0x810] sm:$0xf] }
  0xdc   : > { %3267 = vmatpush1.msra.mxu0 %v16803_v40  ;;  %3300 = vmatprep.mubr.f32.mxu0 %v19547_v0 }
  0xdd   : > { %3360 = vmatpush1.msra.mxu1 %v16417_v17  ;;  %14225 = vmatmul.mubr.msk.f32.vlgmr.msra.gmra.mxu0 %vm235_vm1, %v16810_v45  ;;  %v16837_v17 = vld [vmem:[%s15898_s19 + $0x800] sm:$0xff] }
  0xde   : > { %3393 = vmatprep.mubr.f32.mxu1 %v19547_v0  ;;  %14251 = vmatprep.subr.msk.mxu0 %vm239_vm0, %v14250_v9  ;;  %v14289_v9 = vld [vmem:[%s15898_s19 + $0x1d0] sm:$0xf] }
  0xdf   : > { %14265 = vmatprep.subr.msk.mxu1 %vm239_vm0, %v14264_v11  ;;  %14239 = vmatmul.mubr.msk.f32.vlgmr.msra.gmra.mxu1 %vm235_vm1, %v16821_v13  ;;  %v14278_v11 = vld [vmem:[%s15898_s19 + $0x180] sm:$0xf] }
  0xe0   : > { %14252 = vmatpush1.msk.msra.mxu0 %vm239_vm0, %v14249_v54  ;;  %14266 = vmatpush1.msk.msra.mxu1 %vm239_vm0, %v14263_v15  ;;  %v16946_v54 = vld [vmem:[%s15898_s19 + $0x1f8] sm:$0xff]  ;;  %v16951_v15 = vld [vmem:[%s15898_s19 + $0x1f0] sm:$0xff] }
  0xe1   : > { %3446 = vmatprep.subr.mxu0 %v16604_v10  ;;  %3540 = vmatprep.subr.mxu1 %v16831_v56 }
  0xe2   : > { %3447 = vmatpush1.msra.mxu0 %v16610_v12  ;;  %3541 = vmatpush1.msra.mxu1 %v16837_v17 }
  0xe3   : > { %3448 = vmatprep.subr.mxu0 %v16615_v42  ;;  %3542 = vmatprep.subr.mxu1 %v16842_v60 }
  0xe4   : > { %3449 = vmatpush1.msra.mxu0 %v16620_v16  ;;  %3543 = vmatpush1.msra.mxu1 %v16847_v23 }
  0xe5   : > { %3450 = vmatprep.subr.mxu0 %v16625_v47  ;;  %3544 = vmatprep.subr.mxu1 %v16852_v34 }
  0xe6   : > { %3451 = vmatpush1.msra.mxu0 %v16630_v20  ;;  %3545 = vmatpush1.msra.mxu1 %v16857_v38 }
  0xe7   : > { %3452 = vmatprep.subr.mxu0 %v16635_v24  ;;  %3546 = vmatprep.subr.mxu1 %v16862_v2 }
  0xe8   : > { %3453 = vmatpush1.msra.mxu0 %v16640_v26  ;;  %3486 = vmatprep.mubr.f32.mxu0 %v19547_v0 }
  0xe9   : > { %3547 = vmatpush1.msra.mxu1 %v16869_v5  ;;  %14253 = vmatmul.mubr.msk.f32.vlgmr.msra.gmra.mxu0 %vm235_vm1, %v16874_v53 }
  0xea   : > { %3580 = vmatprep.mubr.f32.mxu1 %v19547_v0  ;;  %14291 = vmatprep.subr.msk.mxu0 %vm239_vm0, %v14290_v55  ;;  %v312_v55 = vpop.f32.mrf.mxu0 }
  0xeb   : > { %14294 = vmatprep.subr.msk.mxu1 %vm239_vm0, %v14279_v59  ;;  %14267 = vmatmul.mubr.msk.f32.vlgmr.msra.gmra.mxu1 %vm235_vm1, %v16885_v61  ;;  %v392_v59 = vpop.f32.mrf.mxu1 }
  0xec   : > { %14292 = vmatpush1.msk.msra.mxu0 %vm239_vm0, %v14289_v9  ;;  %14295 = vmatpush1.msk.msra.mxu1 %vm239_vm0, %v14278_v11  ;;  %v14348_v9 = vld [vmem:[%s15898_s19 + $0x540] sm:$0xf] }
  0xed   : > { %3649 = vmatprep.subr.mxu0 %v16663_v27  ;;  %3729 = vmatprep.subr.mxu1 %v16464_v37  ;;  %v14307_v37 = vld [vmem:[%s15898_s19 + $0x228] sm:$0xf] }
  0xee   : > { %3650 = vmatpush1.msra.mxu0 %v16669_v29  ;;  %3730 = vmatpush1.msra.mxu1 %v16469_v39  ;;  %v14321_v39 = vld [vmem:[%s15898_s19 + $0x4a8] sm:$0xf] }
  0xef   : > { %3651 = vmatprep.subr.mxu0 %v16674_v30  ;;  %3731 = vmatprep.subr.mxu1 %v16474_v25  ;;  %v14306_v25 = vld [vmem:[%s15898_s19 + $0x220] sm:$0xf] }
  0xf0   : > { %3652 = vmatpush1.msra.mxu0 %v16679_v31  ;;  %3732 = vmatpush1.msra.mxu1 %v16479_v21  ;;  %v14320_v21 = vld [vmem:[%s15898_s19 + $0x4a0] sm:$0xf] }
  0xf1   : > { %3653 = vmatprep.subr.mxu0 %v16684_v33  ;;  %3733 = vmatprep.subr.mxu1 %v16484_v22  ;;  %v16926_v22 = vld [vmem:[%s15898_s19 + $0x218] sm:$0xff] }
  0xf2   : > { %3654 = vmatpush1.msra.mxu0 %v16689_v35  ;;  %3734 = vmatpush1.msra.mxu1 %v16489_v28  ;;  %v16931_v28 = vld [vmem:[%s15898_s19 + $0x210] sm:$0xff] }
  0xf3   : > { %3655 = vmatprep.subr.mxu0 %v16694_v48  ;;  %3735 = vmatprep.subr.mxu1 %v16494_v50  ;;  %v16936_v50 = vld [vmem:[%s15898_s19 + $0x208] sm:$0xff] }
  0xf4   : > { %3656 = vmatpush1.msra.mxu0 %v16701_v41  ;;  %3689 = vmatprep.mubr.f32.mxu0 %v19547_v0 }
  0xf5   : > { %3736 = vmatpush1.msra.mxu1 %v16499_v52  ;;  %3769 = vmatprep.mubr.f32.mxu1 %v19547_v0  ;;  %v16941_v52 = vld [vmem:[%s15898_s19 + $0x200] sm:$0xff] }
  0xf6   : > { %14293 = vmatmul.mubr.msk.f32.vlgmr.msra.gmra.mxu0 %vm235_vm1, %v16653_v58  ;;  %14296 = vmatmul.mubr.msk.f32.vlgmr.msra.gmra.mxu1 %vm235_vm1, %v16706_v3 }
  0xf7   : > { %14308 = vmatprep.subr.msk.mxu0 %vm239_vm0, %v14307_v37  ;;  %14322 = vmatprep.subr.msk.mxu1 %vm239_vm0, %v14321_v39  ;;  %v394_v37 = vpop.f32.mrf.mxu1  ;;  %v16990_v39 = vld [vmem:[%s15898_s19 + $0x528] sm:$0xff] }
  0xf8   : > { %14309 = vmatpush1.msk.msra.mxu0 %vm239_vm0, %v14306_v25  ;;  %14323 = vmatpush1.msk.msra.mxu1 %vm239_vm0, %v14320_v21  ;;  %v16995_v25 = vld [vmem:[%s15898_s19 + $0x520] sm:$0xff]  ;;  %v17000_v21 = vld [vmem:[%s15898_s19 + $0x518] sm:$0xff] }
  0xf9   : > { %3821 = vmatprep.subr.mxu0 %v16926_v22  ;;  %3914 = vmatprep.subr.mxu1 %v16517_v62  ;;  %v16956_v62 = vld [vmem:[%s15898_s19 + $0x1e8] sm:$0xff]  ;;  %19616 = vst [vmem:[#allocation9_spill] sm:$0xff] %v16995_v25  ;;  %19617 = vst [vmem:[#allocation10_spill] sm:$0xff] %v17000_v21 }
  0xfa   : > { %3822 = vmatpush1.msra.mxu0 %v16931_v28  ;;  %3915 = vmatpush1.msra.mxu1 %v16523_v1  ;;  %v16961_v1 = vld [vmem:[%s15898_s19 + $0x1e0] sm:$0xff] }
  0xfb   : > { %3823 = vmatprep.subr.mxu0 %v16936_v50  ;;  %3916 = vmatprep.subr.mxu1 %v16528_v43  ;;  %v14335_v43 = vld [vmem:[%s15898_s19 + $0x4f8] sm:$0xf] }
  0xfc   : > { %3824 = vmatpush1.msra.mxu0 %v16941_v52  ;;  %3917 = vmatpush1.msra.mxu1 %v16533_v32  ;;  %v14349_v32 = vld [vmem:[%s15898_s19 + $0x548] sm:$0xf] }
  0xfd   : > { %3825 = vmatprep.subr.mxu0 %v16946_v54  ;;  %3918 = vmatprep.subr.mxu1 %v16538_v46  ;;  %v314_v46 = vpop.f32.mrf.mxu0 }
  0xfe   : > { %3826 = vmatpush1.msra.mxu0 %v16951_v15  ;;  %3919 = vmatpush1.msra.mxu1 %v16543_v19  ;;  %v14334_v19 = vld [vmem:[%s15898_s19 + $0x4f0] sm:$0xf] }
  0xff   : > { %3827 = vmatprep.subr.mxu0 %v16956_v62  ;;  %3920 = vmatprep.subr.mxu1 %v16548_v49  ;;  %v16979_v49 = vld [vmem:[%s15898_s19 + $0x538] sm:$0xff]  ;;  %v485_v11 = vpop.f32.mrf.mxu0 }
 0x100   : > { %3828 = vmatpush1.msra.mxu0 %v16961_v1  ;;  %3861 = vmatprep.mubr.f32.mxu0 %v19547_v0 }
 0x101   : > { %3921 = vmatpush1.msra.mxu1 %v16555_v51  ;;  %14310 = vmatmul.mubr.msk.f32.vlgmr.msra.gmra.mxu0 %vm235_vm1, %v16717_v44  ;;  %v16985_v51 = vld [vmem:[%s15898_s19 + $0x530] sm:$0xff] }
 0x102   : > { %3954 = vmatprep.mubr.f32.mxu1 %v19547_v0  ;;  %14336 = vmatprep.subr.msk.mxu0 %vm239_vm0, %v14335_v43  ;;  %19615 = vst [vmem:[#allocation8_spill] sm:$0xff] %v16985_v51  ;;  %v580_v43 = vpop.f32.mrf.mxu1  ;;  %v17005_v0 = vld [vmem:[%s15898_s19 + $0x510] sm:$0xff] }
 0x103   : > { %14350 = vmatprep.subr.msk.mxu1 %vm239_vm0, %v14349_v32  ;;  %14324 = vmatmul.mubr.msk.f32.vlgmr.msra.gmra.mxu1 %vm235_vm1, %v16746_v7  ;;  %v487_v32 = vpop.f32.mrf.mxu0  ;;  %19618 = vst [vmem:[#allocation11_spill] sm:$0xff] %v17005_v0  ;;  %v17010_v7 = vld [vmem:[%s15898_s19 + $0x508] sm:$0xff] }
 0x104   : > { %14337 = vmatpush1.msk.msra.mxu0 %vm239_vm0, %v14334_v19  ;;  %14351 = vmatpush1.msk.msra.mxu1 %vm239_vm0, %v14348_v9  ;;  %v393_v19 = vadd.f32 %v392_v59, %v312_v55  ;;  %v395_v9 = vadd.f32 %v394_v37, %v314_v46  ;;  %19619 = vst [vmem:[#allocation12_spill] sm:$0xff] %v17010_v7  ;;  %v17017_v46 = vld [vmem:[%s15898_s19 + $0x500] sm:$0xff]  ;;  %v582_v37 = vpop.f32.mrf.mxu1 }
 0x105   : > { %4007 = vmatprep.subr.mxu0 %v16767_v63  ;;  %4101 = vmatprep.subr.mxu1 %v16979_v49 }
 0x106   : > { %4008 = vmatpush1.msra.mxu0 %v16773_v14  ;;  %4102 = vmatpush1.msra.mxu1 %v16985_v51  ;;  %v675_v51 = vpop.f32.mrf.mxu0  ;;  %v490_v55 = vadd.f32 %v485_v11, %v393_v19  ;;  %v491_v59 = vadd.f32 %v487_v32, %v395_v9  ;;  %v14377_v11 = vld [vmem:[%s15898_s19 + $0x818] sm:$0xf]  ;;  %v770_v19 = vpop.f32.mrf.mxu1  ;;  %v14362_v9 = vld [vmem:[%s15898_s19 + $0x7c0] sm:$0xf] }
 0x107   : > { %4009 = vmatprep.subr.mxu0 %v16778_v18  ;;  %4103 = vmatprep.subr.mxu1 %v16990_v39 }
 0x108   : > { %4010 = vmatpush1.msra.mxu0 %v16783_v6  ;;  %4104 = vmatpush1.msra.mxu1 %v16995_v25  ;;  %v14363_v25 = vld [vmem:[%s15898_s19 + $0x7c8] sm:$0xf]  ;;  %v677_v32 = vpop.f32.mrf.mxu0 }
 0x109   : > { %4011 = vmatprep.subr.mxu0 %v16788_v4  ;;  %4105 = vmatprep.subr.mxu1 %v17000_v21  ;;  %v19620_v4 = vmov 0.0   ;;  %v586_v21 = vadd.f32 %v582_v37, %v491_v59  ;;  %v17075_v59 = vld [vmem:[%s15898_s19 + $0x848] sm:$0xff]  ;;  %v17080_v37 = vld [vmem:[%s15898_s19 + $0x840] sm:$0xff] }
 0x10a   : > { %4012 = vmatpush1.msra.mxu0 %v16793_v8  ;;  %4106 = vmatpush1.msra.mxu1 %v17005_v0  ;;  %v14376_v0 = vld [vmem:[%s15898_s19 + $0x810] sm:$0xf]  ;;  %v585_v8 = vadd.f32 %v580_v43, %v490_v55 }
 0x10b   : > { %4013 = vmatprep.subr.mxu0 %v16798_v36  ;;  %4107 = vmatprep.subr.mxu1 %v17010_v7  ;;  %v865_v7 = vpop.f32.mrf.mxu0  ;;  %v681_v36 = vadd.f32 %v677_v32, %v586_v21  ;;  %v17097_v32 = vld [vmem:[%s15898_s19 + $0x830] sm:$0xff] }
 0x10c   : > { %4014 = vmatpush1.msra.mxu0 %v16803_v40  ;;  %4047 = vmatprep.mubr.f32.mxu0 %v19620_v4  ;;  %v680_v40 = vadd.f32 %v675_v51, %v585_v8 }
 0x10d   : > { %4108 = vmatpush1.msra.mxu1 %v17017_v46  ;;  %14338 = vmatmul.mubr.msk.f32.vlgmr.msra.gmra.mxu0 %vm235_vm1, %v16757_v57  ;;  %v772_v57 = vpop.f32.mrf.mxu1  ;;  %v867_v43 = vpop.f32.mrf.mxu0 }
 0x10e   : > { %4141 = vmatprep.mubr.f32.mxu1 %v19620_v4  ;;  %14364 = vmatprep.subr.msk.mxu0 %vm239_vm0, %v14363_v25  ;;  %v775_v8 = vadd.f32 %v770_v19, %v680_v40  ;;  %v776_v51 = vadd.f32 %v772_v57, %v681_v36  ;;  %v14416_v57 = vld [vmem:[%s15898_s19 + $0x220] sm:$0xf]  ;;  %v17069_v40 = vld [vmem:[%s15898_s19 + $0x850] sm:$0xff] }
 0x10f   : > { %14378 = vmatprep.subr.msk.mxu1 %vm239_vm0, %v14377_v11  ;;  %14352 = vmatmul.mubr.msk.f32.vlgmr.msra.gmra.mxu1 %vm235_vm1, %v16810_v45  ;;  %v960_v25 = vpop.f32.mrf.mxu1  ;;  %v17085_v11 = vld [vmem:[%s15898_s19 + $0x838] sm:$0xff] }
 0x110   : > { %14365 = vmatpush1.msk.msra.mxu0 %vm239_vm0, %v14362_v9  ;;  %14379 = vmatpush1.msk.msra.mxu1 %vm239_vm0, %v14376_v0  ;;  %v1055_v0 = vpop.f32.mrf.mxu0 }
 0x111   : > { %4194 = vmatprep.subr.mxu0 %v16604_v10  ;;  %4287 = vmatprep.subr.mxu1 %v16831_v56  ;;  %v870_v10 = vadd.f32 %v865_v7, %v775_v8  ;;  %v17109_v8 = vld [vmem:[%s15898_s19 + $0x820] sm:$0xff] }
 0x112   : > { %4195 = vmatpush1.msra.mxu0 %v16610_v12  ;;  %4288 = vmatpush1.msra.mxu1 %v16837_v17  ;;  %v871_v12 = vadd.f32 %v867_v43, %v776_v51  ;;  %v1057_v7 = vpop.f32.mrf.mxu0  ;;  %v17104_v43 = vld [vmem:[%s15898_s19 + $0x828] sm:$0xff]  ;;  %v14406_v51 = vld [vmem:[%s15898_s19 + $0x1d8] sm:$0xf] }
 0x113   : > { %4196 = vmatprep.subr.mxu0 %v16615_v42  ;;  %4289 = vmatprep.subr.mxu1 %v16842_v60  ;;  %v962_v42 = vpop.f32.mrf.mxu1 }
 0x114   : > { %4197 = vmatpush1.msra.mxu0 %v16620_v16  ;;  %4290 = vmatpush1.msra.mxu1 %v16847_v23  ;;  %v14391_v16 = vld [vmem:[%s15898_s19 + $0x868] sm:$0xf]  ;;  %v966_v36 = vadd.f32 %v962_v42, %v871_v12  ;;  %v14405_v12 = vld [vmem:[%s15898_s19 + $0x1d0] sm:$0xf] }
 0x115   : > { %4198 = vmatprep.subr.mxu0 %v16625_v47  ;;  %4291 = vmatprep.subr.mxu1 %v16852_v34  ;;  %v14417_v47 = vld [vmem:[%s15898_s19 + $0x228] sm:$0xf]  ;;  %v14433_v42 = vld [vmem:[%s15898_s19 + $0x270] sm:$0xf] }
 0x116   : > { %4199 = vmatpush1.msra.mxu0 %v16630_v20  ;;  %4292 = vmatpush1.msra.mxu1 %v16857_v38  ;;  %v14390_v20 = vld [vmem:[%s15898_s19 + $0x860] sm:$0xf]  ;;  %v1061_v55 = vadd.f32 %v1057_v7, %v966_v36 }
 0x117   : > { %4200 = vmatprep.subr.mxu0 %v16635_v24  ;;  %4293 = vmatprep.subr.mxu1 %v16862_v2  ;;  %v965_v24 = vadd.f32 %v960_v25, %v870_v10  ;;  %v1168_v10 = vpop.f32.mrf.mxu1  ;;  %v17135_v7 = vld [vmem:[%s15898_s19 + $0x260] sm:$0xff] }
 0x118   : > { %4201 = vmatpush1.msra.mxu0 %v16640_v26  ;;  %4234 = vmatprep.mubr.f32.mxu0 %v19620_v4  ;;  %v17063_v26 = vld [vmem:[%s15898_s19 + $0x858] sm:$0xff] }
 0x119   : > { %4294 = vmatpush1.msra.mxu1 %v16869_v5  ;;  %14366 = vmatmul.mubr.msk.f32.vlgmr.msra.gmra.mxu0 %vm235_vm1, %v16821_v13  ;;  %v1060_v21 = vadd.f32 %v1055_v0, %v965_v24  ;;  %v14434_v0 = vld [vmem:[%s15898_s19 + $0x278] sm:$0xf]  ;;  %v17145_v24 = vld [vmem:[%s15898_s19 + $0x250] sm:$0xff] }
 0x11a   : > { %4327 = vmatprep.mubr.f32.mxu1 %v19620_v4  ;;  %14392 = vmatprep.subr.msk.mxu0 %vm239_vm0, %v14391_v16  ;;  %v17129_v16 = vld [vmem:[%s15898_s19 + $0x268] sm:$0xff] }
 0x11b   : > { %14418 = vmatprep.subr.msk.mxu1 %vm239_vm0, %v14417_v47  ;;  %14380 = vmatmul.mubr.msk.f32.vlgmr.msra.gmra.mxu1 %vm235_vm1, %v16874_v53  ;;  %v1248_v47 = vpop.f32.mrf.mxu0 }
 0x11c   : > { %14393 = vmatpush1.msk.msra.mxu0 %vm239_vm0, %v14390_v20  ;;  %14419 = vmatpush1.msk.msra.mxu1 %vm239_vm0, %v14416_v57  ;;  %v17140_v20 = vld [vmem:[%s15898_s19 + $0x258] sm:$0xff]  ;;  %v1170_v57 = vpop.f32.mrf.mxu1 }
 0x11d   : > { %4381 = vmatprep.subr.mxu0 %v17063_v26  ;;  %4490 = vmatprep.subr.mxu1 %v16926_v22 }
 0x11e   : > { %4382 = vmatpush1.msra.mxu0 %v17069_v40  ;;  %4491 = vmatpush1.msra.mxu1 %v16931_v28  ;;  %v17087_v19 = vpop.permute.xlu0 %1064  ;;  %v1340_v36 = vpop.f32.mrf.mxu1 }
 0x11f   : > { %4383 = vmatprep.subr.mxu0 %v17075_v59  ;;  %4492 = vmatprep.subr.mxu1 %v16936_v50  ;;  %v1067_v9 = vadd.f32 %v17087_v19, %v1060_v21  ;;  %v1068_v25 = vadd.f32 %v17087_v19, %v1061_v55  ;;  %v1250_v21 = vpop.f32.mrf.mxu0  ;;  %v17155_v55 = vld [vmem:[%s15898_s19 + $0x240] sm:$0xff] }
 0x120   : > { %4384 = vmatpush1.msra.mxu0 %v17080_v37  ;;  %4493 = vmatpush1.msra.mxu1 %v16941_v52 }
 0x121   : > { %4385 = vmatprep.subr.mxu0 %v17085_v11  ;;  %4494 = vmatprep.subr.mxu1 %v16946_v54  ;;  %1069 = vst [vmem:[%s17092_s11] sm:$0xff] %v1067_v9  ;;  %1070 = vst [vmem:[%s17092_s11 + $0x8] sm:$0xff] %v1068_v25  ;;  %v1251_v25 = vadd.f32 %v1250_v21, %v1170_v57  ;;  %v19621_v21 = vld [vmem:[#allocation8_spill] sm:$0xff] }
 0x122   : > { %4386 = vmatpush1.msra.mxu0 %v17097_v32  ;;  %4495 = vmatpush1.msra.mxu1 %v16951_v15 }
 0x123   : > { %4387 = vmatprep.subr.mxu0 %v17104_v43  ;;  %4496 = vmatprep.subr.mxu1 %v16956_v62 }
 0x124   : > { %4388 = vmatpush1.msra.mxu0 %v17109_v8  ;;  %4421 = vmatprep.mubr.f32.mxu0 %v19620_v4  ;;  %v1433_v9 = vpop.f32.mrf.mxu0 }
 0x125   : > { %4497 = vmatpush1.msra.mxu1 %v16961_v1  ;;  %14394 = vmatmul.mubr.msk.f32.vlgmr.msra.gmra.mxu0 %vm235_vm1, %v16885_v61 }
 0x126   : > { %4530 = vmatprep.mubr.f32.mxu1 %v19620_v4  ;;  %14421 = vmatprep.subr.msk.mxu0 %vm239_vm0, %v14406_v51  ;;  %v14448_v51 = vld [vmem:[%s15898_s19 + $0x4f8] sm:$0xf] }
 0x127   : > { %14435 = vmatprep.subr.msk.mxu1 %vm239_vm0, %v14434_v0  ;;  %14420 = vmatmul.mubr.msk.f32.vlgmr.msra.gmra.mxu1 %vm235_vm1, %v16653_v58  ;;  %v17150_v58 = vld [vmem:[%s15898_s19 + $0x248] sm:$0xff] }
 0x128   : > { %14422 = vmatpush1.msk.msra.mxu0 %vm239_vm0, %v14405_v12  ;;  %14436 = vmatpush1.msk.msra.mxu1 %vm239_vm0, %v14433_v42  ;;  %v1435_v12 = vpop.f32.mrf.mxu0  ;;  %v14461_v42 = vld [vmem:[%s15898_s19 + $0x540] sm:$0xf] }
 0x129   : > { %4570 = vmatprep.subr.mxu0 %v16663_v27  ;;  %4662 = vmatprep.subr.mxu1 %v17129_v16  ;;  %v1249_v27 = vadd.f32 %v1248_v47, %v1168_v10 }
 0x12a   : > { %4571 = vmatpush1.msra.mxu0 %v16669_v29  ;;  %4663 = vmatpush1.msra.mxu1 %v17135_v7  ;;  %v17160_v29 = vld [vmem:[%s15898_s19 + $0x238] sm:$0xff] }
 0x12b   : > { %4572 = vmatprep.subr.mxu0 %v16674_v30  ;;  %4664 = vmatprep.subr.mxu1 %v17140_v20  ;;  %v17167_v30 = vld [vmem:[%s15898_s19 + $0x230] sm:$0xff]  ;;  %v1345_v0 = vadd.f32 %v1340_v36, %v1249_v27 }
 0x12c   : > { %4573 = vmatpush1.msra.mxu0 %v16679_v31  ;;  %4665 = vmatpush1.msra.mxu1 %v17145_v24  ;;  %v1342_v31 = vpop.f32.mrf.mxu1 }
 0x12d   : > { %4574 = vmatprep.subr.mxu0 %v16684_v33  ;;  %4666 = vmatprep.subr.mxu1 %v17150_v58  ;;  %v14462_v33 = vld [vmem:[%s15898_s19 + $0x548] sm:$0xf]  ;;  %v1346_v47 = vadd.f32 %v1342_v31, %v1251_v25  ;;  %v19623_v31 = vld [vmem:[#allocation4_spill] sm:$0xff] }
 0x12e   : > { %4575 = vmatpush1.msra.mxu0 %v16689_v35  ;;  %4667 = vmatpush1.msra.mxu1 %v17155_v55  ;;  %v1526_v10 = vpop.f32.mrf.mxu1  ;;  %v14447_v35 = vld [vmem:[%s15898_s19 + $0x4f0] sm:$0xf] }
 0x12f   : > { %4576 = vmatprep.subr.mxu0 %v16694_v48  ;;  %4668 = vmatprep.subr.mxu1 %v17160_v29  ;;  %v1438_v48 = vadd.f32 %v1433_v9, %v1345_v0  ;;  %v19625_v0 = vld [vmem:[#allocation5_spill] sm:$0xff] }
 0x130   : > { %4577 = vmatpush1.msra.mxu0 %v16701_v41  ;;  %4610 = vmatprep.mubr.f32.mxu0 %v19620_v4  ;;  %v1620_v57 = vpop.f32.mrf.mxu0  ;;  %v1439_v41 = vadd.f32 %v1435_v12, %v1346_v47  ;;  %v19628_v12 = vld [vmem:[#allocation12_spill] sm:$0xff]  ;;  %v14490_v47 = vld [vmem:[%s15898_s19 + $0x818] sm:$0xf] }
 0x131   : > { %4669 = vmatpush1.msra.mxu1 %v17167_v30  ;;  %14423 = vmatmul.mubr.msk.f32.vlgmr.msra.gmra.mxu0 %vm235_vm1, %v16706_v3  ;;  %v1528_v3 = vpop.f32.mrf.mxu1  ;;  %v1531_v36 = vadd.f32 %v1526_v10, %v1438_v48  ;;  %v19627_v10 = vld [vmem:[#allocation6_spill] sm:$0xff] }
 0x132   : > { %4702 = vmatprep.mubr.f32.mxu1 %v19620_v4  ;;  %14449 = vmatprep.subr.msk.mxu0 %vm239_vm0, %v14448_v51  ;;  %v1622_v9 = vpop.f32.mrf.mxu0  ;;  %v19624_v51 = vld [vmem:[#allocation10_spill] sm:$0xff] }
 0x133   : > { %14463 = vmatprep.subr.msk.mxu1 %vm239_vm0, %v14462_v33  ;;  %14437 = vmatmul.mubr.msk.f32.vlgmr.msra.gmra.mxu1 %vm235_vm1, %v16717_v44  ;;  %v1713_v27 = vpop.f32.mrf.mxu1  ;;  %v1532_v44 = vadd.f32 %v1528_v3, %v1439_v41  ;;  %v1625_v25 = vadd.f32 %v1620_v57, %v1531_v36  ;;  %v19626_v33 = vld [vmem:[#allocation11_spill] sm:$0xff]  ;;  %v19630_v57 = vld [vmem:[#allocation2_spill] sm:$0xff]  ;;  %v14475_v41 = vld [vmem:[%s15898_s19 + $0x590] sm:$0xf] }
 0x134   : > { %14450 = vmatpush1.msk.msra.mxu0 %vm239_vm0, %v14447_v35  ;;  %14464 = vmatpush1.msk.msra.mxu1 %vm239_vm0, %v14461_v42  ;;  %v19629_v42 = vld [vmem:[#allocation7_spill] sm:$0xff]  ;;  %v14489_v3 = vld [vmem:[%s15898_s19 + $0x810] sm:$0xf] }
 0x135   : > { %4755 = vmatprep.subr.mxu0 %v16767_v63  ;;  %4848 = vmatprep.subr.mxu1 %v16979_v49  ;;  %v19622_v63 = vld [vmem:[#allocation9_spill] sm:$0xff]  ;;  %v1718_v35 = vadd.f32 %v1713_v27, %v1625_v25  ;;  %v17213_v27 = vld [vmem:[%s15898_s19 + $0x588] sm:$0xff] }
 0x136   : > { %4756 = vmatpush1.msra.mxu0 %v16773_v14  ;;  %4849 = vmatpush1.msra.mxu1 %v19621_v21  ;;  %v1626_v14 = vadd.f32 %v1622_v9, %v1532_v44 }
 0x137   : > { %4757 = vmatprep.subr.mxu0 %v16778_v18  ;;  %4850 = vmatprep.subr.mxu1 %v16990_v39  ;;  %v1715_v18 = vpop.f32.mrf.mxu1 }
 0x138   : > { %4758 = vmatpush1.msra.mxu0 %v16783_v6  ;;  %4851 = vmatpush1.msra.mxu1 %v19622_v63  ;;  %v14476_v6 = vld [vmem:[%s15898_s19 + $0x598] sm:$0xf]  ;;  %v1719_v36 = vadd.f32 %v1715_v18, %v1626_v14 }
 0x139   : > { %4759 = vmatprep.subr.mxu0 %v19623_v31  ;;  %4852 = vmatprep.subr.mxu1 %v19624_v51  ;;  %v19631_v31 = vld [vmem:[#allocation3_spill] sm:$0xff]  ;;  %v17224_v18 = vld [vmem:[%s15898_s19 + $0x578] sm:$0xff] }
 0x13a   : > { %4760 = vmatpush1.msra.mxu0 %v19625_v0  ;;  %4853 = vmatpush1.msra.mxu1 %v19626_v33  ;;  %v17219_v0 = vld [vmem:[%s15898_s19 + $0x580] sm:$0xff] }
 0x13b   : > { %4761 = vmatprep.subr.mxu0 %v19627_v10  ;;  %4854 = vmatprep.subr.mxu1 %v19628_v12 }
 0x13c   : > { %4762 = vmatpush1.msra.mxu0 %v19629_v42  ;;  %4795 = vmatprep.mubr.f32.mxu0 %v19620_v4  ;;  %v1806_v48 = vpop.f32.mrf.mxu0 }
 0x13d   : > { %4855 = vmatpush1.msra.mxu1 %v17017_v46  ;;  %14451 = vmatmul.mubr.msk.f32.vlgmr.msra.gmra.mxu0 %vm235_vm1, %v19630_v57  ;;  %v1811_v9 = vadd.f32 %v1806_v48, %v1718_v35  ;;  %v17229_v35 = vld [vmem:[%s15898_s19 + $0x570] sm:$0xff]  ;;  %v17235_v48 = vld [vmem:[%s15898_s19 + $0x568] sm:$0xff]  ;;  %v17240_v57 = vld [vmem:[%s15898_s19 + $0x560] sm:$0xff] }
 0x13e   : > { %4888 = vmatprep.mubr.f32.mxu1 %v19620_v4  ;;  %14477 = vmatprep.subr.msk.mxu0 %vm239_vm0, %v14476_v6  ;;  %v1900_v44 = vpop.f32.mrf.mxu1  ;;  %v1808_v25 = vpop.f32.mrf.mxu0 }
 0x13f   : > { %14491 = vmatprep.subr.msk.mxu1 %vm239_vm0, %v14490_v47  ;;  %14465 = vmatmul.mubr.msk.f32.vlgmr.msra.gmra.mxu1 %vm235_vm1, %v19631_v31  ;;  %v1905_v10 = vadd.f32 %v1900_v44, %v1811_v9  ;;  %v1812_v14 = vadd.f32 %v1808_v25, %v1719_v36  ;;  %v17297_v36 = vld [vmem:[%s15898_s19 + $0x880] sm:$0xff]  ;;  %v17302_v9 = vld [vmem:[%s15898_s19 + $0x878] sm:$0xff]  ;;  %v17309_v44 = vld [vmem:[%s15898_s19 + $0x870] sm:$0xff] }
 0x140   : > { %14478 = vmatpush1.msk.msra.mxu0 %vm239_vm0, %v14475_v41  ;;  %14492 = vmatpush1.msk.msra.mxu1 %vm239_vm0, %v14489_v3  ;;  %v1902_v6 = vpop.f32.mrf.mxu1  ;;  %v17247_v41 = vld [vmem:[%s15898_s19 + $0x558] sm:$0xff]  ;;  %v17287_v3 = vld [vmem:[%s15898_s19 + $0x890] sm:$0xff]  ;;  %v14533_v31 = vld [vmem:[%s15898_s19 + $0x228] sm:$0xf] }
 0x141   : > { %4942 = vmatprep.subr.mxu0 %v17213_v27  ;;  %5035 = vmatprep.subr.mxu1 %v16831_v56  ;;  %v1907_v42 = vadd.f32 %v1905_v10, %v17087_v19  ;;  %v1906_v47 = vadd.f32 %v1902_v6, %v1812_v14  ;;  %19632 = vst [vmem:[#allocation8_spill] sm:$0xff] %v17247_v41  ;;  %v14544_v25 = vld [vmem:[%s15898_s19 + $0x278] sm:$0xf]  ;;  %v14543_v10 = vld [vmem:[%s15898_s19 + $0x270] sm:$0xf] }
 0x142   : > { %4943 = vmatpush1.msra.mxu0 %v17219_v0  ;;  %5036 = vmatpush1.msra.mxu1 %v16837_v17  ;;  %v17252_v17 = vld [vmem:[%s15898_s19 + $0x550] sm:$0xff]  ;;  %v14532_v14 = vld [vmem:[%s15898_s19 + $0x220] sm:$0xf]  ;;  %v17366_v6 = vld [vmem:[%s15898_s19 + $0x2b8] sm:$0xff] }
 0x143   : > { %4944 = vmatprep.subr.mxu0 %v17224_v18  ;;  %5037 = vmatprep.subr.mxu1 %v16842_v60  ;;  %14014 = vst [vmem:[%s17092_s11 + $0x10] sm:$0xff] %v1907_v42  ;;  %v1908_v56 = vadd.f32 %v1906_v47, %v17087_v19  ;;  %19633 = vst [vmem:[#allocation9_spill] sm:$0xff] %v17252_v17  ;;  %v14504_v60 = vld [vmem:[%s15898_s19 + $0x868] sm:$0xf] }
 0x144   : > { %4945 = vmatpush1.msra.mxu0 %v17229_v35  ;;  %5038 = vmatpush1.msra.mxu1 %v16847_v23  ;;  %v14518_v23 = vld [vmem:[%s15898_s19 + $0x8b8] sm:$0xf]  ;;  %v17376_v47 = vld [vmem:[%s15898_s19 + $0x2a8] sm:$0xff] }
 0x145   : > { %4946 = vmatprep.subr.mxu0 %v17235_v48  ;;  %5039 = vmatprep.subr.mxu1 %v16852_v34  ;;  %14015 = vst [vmem:[%s17092_s11 + $0x18] sm:$0xff] %v1908_v56  ;;  %v14503_v34 = vld [vmem:[%s15898_s19 + $0x860] sm:$0xf] }
 0x146   : > { %4947 = vmatpush1.msra.mxu0 %v17240_v57  ;;  %5040 = vmatpush1.msra.mxu1 %v16857_v38  ;;  %v14517_v38 = vld [vmem:[%s15898_s19 + $0x8b0] sm:$0xf]  ;;  %v17381_v56 = vld [vmem:[%s15898_s19 + $0x2a0] sm:$0xff] }
 0x147   : > { %4948 = vmatprep.subr.mxu0 %v17247_v41  ;;  %5041 = vmatprep.subr.mxu1 %v16862_v2  ;;  %v17271_v2 = vld [vmem:[%s15898_s19 + $0x8a8] sm:$0xff] }
 0x148   : > { %4949 = vmatpush1.msra.mxu0 %v17252_v17  ;;  %4982 = vmatprep.mubr.f32.mxu0 %v19620_v4 }
 0x149   : > { %5042 = vmatpush1.msra.mxu1 %v16869_v5  ;;  %14479 = vmatmul.mubr.msk.f32.vlgmr.msra.gmra.mxu0 %vm235_vm1, %v16810_v45  ;;  %v17277_v5 = vld [vmem:[%s15898_s19 + $0x8a0] sm:$0xff]  ;;  %v17282_v45 = vld [vmem:[%s15898_s19 + $0x898] sm:$0xff] }
 0x14a   : > { %5075 = vmatprep.mubr.f32.mxu1 %v19620_v4  ;;  %14505 = vmatprep.subr.msk.mxu0 %vm239_vm0, %v14504_v60 }
 0x14b   : > { %14519 = vmatprep.subr.msk.mxu1 %vm239_vm0, %v14518_v23  ;;  %14493 = vmatmul.mubr.msk.f32.vlgmr.msra.gmra.mxu1 %vm235_vm1, %v16821_v13  ;;  %v17292_v13 = vld [vmem:[%s15898_s19 + $0x888] sm:$0xff]  ;;  %v17386_v23 = vld [vmem:[%s15898_s19 + $0x298] sm:$0xff] }
 0x14c   : > { %14506 = vmatpush1.msk.msra.mxu0 %vm239_vm0, %v14503_v34  ;;  %14520 = vmatpush1.msk.msra.mxu1 %vm239_vm0, %v14517_v38  ;;  %v17391_v38 = vld [vmem:[%s15898_s19 + $0x290] sm:$0xff] }
 0x14d   : > { %5128 = vmatprep.subr.mxu0 %v17063_v26  ;;  %5222 = vmatprep.subr.mxu1 %v17271_v2 }
 0x14e   : > { %5129 = vmatpush1.msra.mxu0 %v17069_v40  ;;  %5223 = vmatpush1.msra.mxu1 %v17277_v5 }
 0x14f   : > { %5130 = vmatprep.subr.mxu0 %v17075_v59  ;;  %5224 = vmatprep.subr.mxu1 %v17282_v45 }
 0x150   : > { %5131 = vmatpush1.msra.mxu0 %v17080_v37  ;;  %5225 = vmatpush1.msra.mxu1 %v17287_v3 }
 0x151   : > { %5132 = vmatprep.subr.mxu0 %v17085_v11  ;;  %5226 = vmatprep.subr.mxu1 %v17292_v13 }
 0x152   : > { %5133 = vmatpush1.msra.mxu0 %v17097_v32  ;;  %5227 = vmatpush1.msra.mxu1 %v17297_v36 }
 0x153   : > { %5134 = vmatprep.subr.mxu0 %v17104_v43  ;;  %5228 = vmatprep.subr.mxu1 %v17302_v9 }
 0x154   : > { %5135 = vmatpush1.msra.mxu0 %v17109_v8  ;;  %5168 = vmatprep.mubr.f32.mxu0 %v19620_v4 }
 0x155   : > { %5229 = vmatpush1.msra.mxu1 %v17309_v44  ;;  %14507 = vmatmul.mubr.msk.f32.vlgmr.msra.gmra.mxu0 %vm235_vm1, %v16874_v53  ;;  %v2009_v53 = vpop.f32.mrf.mxu0 }
 0x156   : > { %5262 = vmatprep.mubr.f32.mxu1 %v19620_v4  ;;  %14545 = vmatprep.subr.msk.mxu0 %vm239_vm0, %v14544_v25 }
 0x157   : > { %14548 = vmatprep.subr.msk.mxu1 %vm239_vm0, %v14533_v31  ;;  %14521 = vmatmul.mubr.msk.f32.vlgmr.msra.gmra.mxu1 %vm235_vm1, %v16885_v61  ;;  %v17346_v61 = vld [vmem:[%s19543_s1 + $0x8] sm:$0xff] }
 0x158   : > { %14546 = vmatpush1.msk.msra.mxu0 %vm239_vm0, %v14543_v10  ;;  %14549 = vmatpush1.msk.msra.mxu1 %vm239_vm0, %v14532_v14  ;;  %v17401_v14 = vld [vmem:[%s15898_s19 + $0x280] sm:$0xff] }
 0x159   : > { %5331 = vmatprep.subr.mxu0 %v17129_v16  ;;  %5411 = vmatprep.subr.mxu1 %v16926_v22  ;;  %v17351_v22 = vld [vmem:[%s19543_s1] sm:$0xff] }
 0x15a   : > { %5332 = vmatpush1.msra.mxu0 %v17135_v7  ;;  %5412 = vmatpush1.msra.mxu1 %v16931_v28  ;;  %v14561_v28 = vld [vmem:[%s15898_s19 + $0x2c8] sm:$0xf] }
 0x15b   : > { %5333 = vmatprep.subr.mxu0 %v17140_v20  ;;  %5413 = vmatprep.subr.mxu1 %v16936_v50  ;;  %v14575_v50 = vld [vmem:[%s15898_s19 + $0x548] sm:$0xf] }
 0x15c   : > { %5334 = vmatpush1.msra.mxu0 %v17145_v24  ;;  %5414 = vmatpush1.msra.mxu1 %v16941_v52  ;;  %v14560_v52 = vld [vmem:[%s15898_s19 + $0x2c0] sm:$0xf] }
 0x15d   : > { %5335 = vmatprep.subr.mxu0 %v17150_v58  ;;  %5415 = vmatprep.subr.mxu1 %v16946_v54  ;;  %v14574_v54 = vld [vmem:[%s15898_s19 + $0x540] sm:$0xf] }
 0x15e   : > { %5336 = vmatpush1.msra.mxu0 %v17155_v55  ;;  %5416 = vmatpush1.msra.mxu1 %v16951_v15  ;;  %v2089_v15 = vpop.f32.mrf.mxu1 }
 0x15f   : > { %5337 = vmatprep.subr.mxu0 %v17160_v29  ;;  %5417 = vmatprep.subr.mxu1 %v16956_v62  ;;  %v2011_v62 = vpop.f32.mrf.mxu0  ;;  %v2090_v34 = vadd.f32 %v2089_v15, %v2009_v53 }
 0x160   : > { %5338 = vmatpush1.msra.mxu0 %v17167_v30  ;;  %5371 = vmatprep.mubr.f32.mxu0 %v19620_v4  ;;  %v2091_v60 = vpop.f32.mrf.mxu1 }
 0x161   : > { %5418 = vmatpush1.msra.mxu1 %v16961_v1  ;;  %5451 = vmatprep.mubr.f32.mxu1 %v19620_v4  ;;  %v17371_v1 = vld [vmem:[%s15898_s19 + $0x2b0] sm:$0xff]  ;;  %v2181_v42 = vpop.f32.mrf.mxu0  ;;  %v2092_v10 = vadd.f32 %v2091_v60, %v2011_v62 }
 0x162   : > { %14547 = vmatmul.mubr.msk.f32.vlgmr.msra.gmra.mxu0 %vm235_vm1, %v17346_v61  ;;  %14550 = vmatmul.mubr.msk.f32.vlgmr.msra.gmra.mxu1 %vm235_vm1, %v17351_v22  ;;  %v2274_v25 = vpop.f32.mrf.mxu1 }
 0x163   : > { %14562 = vmatprep.subr.msk.mxu0 %vm239_vm0, %v14561_v28  ;;  %14576 = vmatprep.subr.msk.mxu1 %vm239_vm0, %v14575_v50  ;;  %v2183_v31 = vpop.f32.mrf.mxu0  ;;  %v14603_v50 = vld [vmem:[%s15898_s19 + $0x5e8] sm:$0xf] }
 0x164   : > { %14563 = vmatpush1.msk.msra.mxu0 %vm239_vm0, %v14560_v52  ;;  %14577 = vmatpush1.msk.msra.mxu1 %vm239_vm0, %v14574_v54  ;;  %v2187_v53 = vadd.f32 %v2183_v31, %v2092_v10  ;;  %v2276_v28 = vpop.f32.mrf.mxu1  ;;  %v14602_v54 = vld [vmem:[%s15898_s19 + $0x5e0] sm:$0xf]  ;;  %v17440_v31 = vld [vmem:[%s15898_s19 + $0x5c8] sm:$0xff] }
 0x165   : > { %5503 = vmatprep.subr.mxu0 %v17366_v6  ;;  %5596 = vmatprep.subr.mxu1 %v16979_v49  ;;  %v17396_v49 = vld [vmem:[%s15898_s19 + $0x288] sm:$0xff] }
 0x166   : > { %5504 = vmatpush1.msra.mxu0 %v17371_v1  ;;  %5597 = vmatpush1.msra.mxu1 %v19621_v21  ;;  %v2186_v21 = vadd.f32 %v2181_v42, %v2090_v34  ;;  %v2461_v15 = vpop.f32.mrf.mxu1  ;;  %v17429_v42 = vld [vmem:[%s15898_s19 + $0x5d8] sm:$0xff]  ;;  %v2280_v60 = vadd.f32 %v2276_v28, %v2187_v53  ;;  %v17455_v28 = vld [vmem:[%s15898_s19 + $0x5b0] sm:$0xff] }
 0x167   : > { %5505 = vmatprep.subr.mxu0 %v17376_v47  ;;  %5598 = vmatprep.subr.mxu1 %v16990_v39  ;;  %v2367_v39 = vpop.f32.mrf.mxu0  ;;  %v17450_v53 = vld [vmem:[%s15898_s19 + $0x5b8] sm:$0xff] }
 0x168   : > { %5506 = vmatpush1.msra.mxu0 %v17381_v56  ;;  %5599 = vmatpush1.msra.mxu1 %v19622_v63  ;;  %v17408_v63 = vld [vmem:[%s19543_s1 + $0x10] sm:$0xff]  ;;  %v2279_v52 = vadd.f32 %v2274_v25, %v2186_v21  ;;  %v17445_v21 = vld [vmem:[%s15898_s19 + $0x5c0] sm:$0xff] }
 0x169   : > { %5507 = vmatprep.subr.mxu0 %v17386_v23  ;;  %5600 = vmatprep.subr.mxu1 %v19624_v51  ;;  %v14589_v51 = vld [vmem:[%s15898_s19 + $0x598] sm:$0xf]  ;;  %v2369_v62 = vpop.f32.mrf.mxu0 }
 0x16a   : > { %5508 = vmatpush1.msra.mxu0 %v17391_v38  ;;  %5601 = vmatpush1.msra.mxu1 %v19626_v33  ;;  %v17419_v33 = vld [vmem:[%s19543_s1 + $0x18] sm:$0xff]  ;;  %v2372_v34 = vadd.f32 %v2367_v39, %v2279_v52  ;;  %v2373_v10 = vadd.f32 %v2369_v62, %v2280_v60  ;;  %v2463_v39 = vpop.f32.mrf.mxu1  ;;  %v17472_v60 = vld [vmem:[%s19543_s1 + $0x20] sm:$0xff] }
 0x16b   : > { %5509 = vmatprep.subr.mxu0 %v17396_v49  ;;  %5602 = vmatprep.subr.mxu1 %v19628_v12  ;;  %19634 = vst [vmem:[#allocation4_spill] sm:$0xff] %v17419_v33  ;;  %v14588_v12 = vld [vmem:[%s15898_s19 + $0x590] sm:$0xf]  ;;  %19636 = vst [vmem:[#allocation5_spill] sm:$0xff] %v17472_v60 }
 0x16c   : > { %5510 = vmatpush1.msra.mxu0 %v17401_v14  ;;  %5543 = vmatprep.mubr.f32.mxu0 %v19620_v4 }
 0x16d   : > { %5603 = vmatpush1.msra.mxu1 %v17017_v46  ;;  %14564 = vmatmul.mubr.msk.f32.vlgmr.msra.gmra.mxu0 %vm235_vm1, %v17408_v63  ;;  %v17435_v46 = vld [vmem:[%s15898_s19 + $0x5d0] sm:$0xff]  ;;  %v2554_v25 = vpop.f32.mrf.mxu0 }
 0x16e   : > { %5636 = vmatprep.mubr.f32.mxu1 %v19620_v4  ;;  %14590 = vmatprep.subr.msk.mxu0 %vm239_vm0, %v14589_v51  ;;  %v2466_v51 = vadd.f32 %v2461_v15, %v2372_v34  ;;  %v17467_v15 = vld [vmem:[%s15898_s19 + $0x5a0] sm:$0xff] }
 0x16f   : > { %14604 = vmatprep.subr.msk.mxu1 %vm239_vm0, %v14603_v50  ;;  %14578 = vmatmul.mubr.msk.f32.vlgmr.msra.gmra.mxu1 %vm235_vm1, %v17419_v33  ;;  %v2647_v50 = vpop.f32.mrf.mxu1  ;;  %v2556_v52 = vpop.f32.mrf.mxu0 }
 0x170   : > { %14591 = vmatpush1.msk.msra.mxu0 %vm239_vm0, %v14588_v12  ;;  %14605 = vmatpush1.msk.msra.mxu1 %vm239_vm0, %v14602_v54  ;;  %v17460_v12 = vld [vmem:[%s15898_s19 + $0x5a8] sm:$0xff]  ;;  %v2467_v54 = vadd.f32 %v2463_v39, %v2373_v10  ;;  %v2559_v62 = vadd.f32 %v2554_v25, %v2466_v51  ;;  %v14631_v39 = vld [vmem:[%s15898_s19 + $0x8b8] sm:$0xf] }
 0x171   : > { %5689 = vmatprep.subr.mxu0 %v17213_v27  ;;  %5783 = vmatprep.subr.mxu1 %v17429_v42  ;;  %19635 = vst [vmem:[#allocation10_spill] sm:$0xff] %v17460_v12  ;;  %v14617_v25 = vld [vmem:[%s15898_s19 + $0x868] sm:$0xf]  ;;  %v2649_v10 = vpop.f32.mrf.mxu1 }
 0x172   : > { %5690 = vmatpush1.msra.mxu0 %v17219_v0  ;;  %5784 = vmatpush1.msra.mxu1 %v17435_v46  ;;  %v2560_v34 = vadd.f32 %v2556_v52, %v2467_v54  ;;  %v17483_v51 = vld [vmem:[%s19543_s1 + $0x28] sm:$0xff]  ;;  %v2652_v33 = vadd.f32 %v2647_v50, %v2559_v62  ;;  %v14616_v52 = vld [vmem:[%s15898_s19 + $0x860] sm:$0xf]  ;;  %v14630_v54 = vld [vmem:[%s15898_s19 + $0x8b0] sm:$0xf] }
 0x173   : > { %5691 = vmatprep.subr.mxu0 %v17224_v18  ;;  %5785 = vmatprep.subr.mxu1 %v17440_v31 }
 0x174   : > { %5692 = vmatpush1.msra.mxu0 %v17229_v35  ;;  %5786 = vmatpush1.msra.mxu1 %v17445_v21 }
 0x175   : > { %5693 = vmatprep.subr.mxu0 %v17235_v48  ;;  %5787 = vmatprep.subr.mxu1 %v17450_v53 }
 0x176   : > { %5694 = vmatpush1.msra.mxu0 %v17240_v57  ;;  %5788 = vmatpush1.msra.mxu1 %v17455_v28 }
 0x177   : > { %5695 = vmatprep.subr.mxu0 %v17247_v41  ;;  %5789 = vmatprep.subr.mxu1 %v17460_v12 }
 0x178   : > { %5696 = vmatpush1.msra.mxu0 %v17252_v17  ;;  %5729 = vmatprep.mubr.f32.mxu0 %v19620_v4  ;;  %v2653_v17 = vadd.f32 %v2649_v10, %v2560_v34  ;;  %v14687_v34 = vld [vmem:[%s15898_s19 + $0x310] sm:$0xf] }
 0x179   : > { %5790 = vmatpush1.msra.mxu1 %v17467_v15  ;;  %14592 = vmatmul.mubr.msk.f32.vlgmr.msra.gmra.mxu0 %vm235_vm1, %v17472_v60  ;;  %v2741_v12 = vpop.f32.mrf.mxu0 }
 0x17a   : > { %5823 = vmatprep.mubr.f32.mxu1 %v19620_v4  ;;  %14618 = vmatprep.subr.msk.mxu0 %vm239_vm0, %v14617_v25  ;;  %v2746_v41 = vadd.f32 %v2741_v12, %v2652_v33  ;;  %v17558_v12 = vld [vmem:[%s15898_s19 + $0x8d8] sm:$0xff] }
 0x17b   : > { %14632 = vmatprep.subr.msk.mxu1 %vm239_vm0, %v14631_v39  ;;  %14606 = vmatmul.mubr.msk.f32.vlgmr.msra.gmra.mxu1 %vm235_vm1, %v17483_v51  ;;  %v2743_v50 = vpop.f32.mrf.mxu0  ;;  %v2850_v25 = vpop.f32.mrf.mxu1  ;;  %v14684_v39 = vld [vmem:[%s15898_s19 + $0x2f8] sm:$0xff] }
 0x17c   : > { %14619 = vmatpush1.msk.msra.mxu0 %vm239_vm0, %v14616_v52  ;;  %14633 = vmatpush1.msk.msra.mxu1 %vm239_vm0, %v14630_v54  ;;  %v2748_v62 = vadd.f32 %v2746_v41, %v17087_v19  ;;  %v2747_v60 = vadd.f32 %v2743_v50, %v2653_v17  ;;  %v17548_v41 = vld [vmem:[%s15898_s19 + $0x8e8] sm:$0xff]  ;;  %v17553_v17 = vld [vmem:[%s15898_s19 + $0x8e0] sm:$0xff]  ;;  %v14683_v52 = vld [vmem:[%s15898_s19 + $0x2f0] sm:$0xff] }
 0x17d   : > { %5876 = vmatprep.subr.mxu0 %v17063_v26  ;;  %5969 = vmatprep.subr.mxu1 %v17271_v2  ;;  %v17516_v26 = vld [vmem:[%s19543_s1 + $0x30] sm:$0xff]  ;;  %v2852_v54 = vpop.f32.mrf.mxu1  ;;  %v14682_v50 = vld [vmem:[%s15898_s19 + $0x2e8] sm:$0xff] }
 0x17e   : > { %5877 = vmatpush1.msra.mxu0 %v17069_v40  ;;  %5970 = vmatpush1.msra.mxu1 %v17277_v5  ;;  %14141 = vst [vmem:[%s17092_s11 + $0x20] sm:$0xff] %v2748_v62  ;;  %v2749_v33 = vadd.f32 %v2747_v60, %v17087_v19  ;;  %v14645_v40 = vld [vmem:[%s15898_s19 + $0x908] sm:$0xf]  ;;  %v17563_v60 = vld [vmem:[%s15898_s19 + $0x8d0] sm:$0xff]  ;;  %v14681_v62 = vld [vmem:[%s15898_s19 + $0x2e0] sm:$0xff] }
 0x17f   : > { %5878 = vmatprep.subr.mxu0 %v17075_v59  ;;  %5971 = vmatprep.subr.mxu1 %v17282_v45  ;;  %v14671_v59 = vld [vmem:[%s15898_s19 + $0x2c8] sm:$0xf] }
 0x180   : > { %5879 = vmatpush1.msra.mxu0 %v17080_v37  ;;  %5972 = vmatpush1.msra.mxu1 %v17287_v3  ;;  %14142 = vst [vmem:[%s17092_s11 + $0x28] sm:$0xff] %v2749_v33  ;;  %v17527_v37 = vld [vmem:[%s19543_s1 + $0x38] sm:$0xff] }
 0x181   : > { %5880 = vmatprep.subr.mxu0 %v17085_v11  ;;  %5973 = vmatprep.subr.mxu1 %v17292_v13  ;;  %v14644_v11 = vld [vmem:[%s15898_s19 + $0x900] sm:$0xf] }
 0x182   : > { %5881 = vmatpush1.msra.mxu0 %v17097_v32  ;;  %5974 = vmatpush1.msra.mxu1 %v17297_v36  ;;  %v14670_v32 = vld [vmem:[%s15898_s19 + $0x2c0] sm:$0xf] }
 0x183   : > { %5882 = vmatprep.subr.mxu0 %v17104_v43  ;;  %5975 = vmatprep.subr.mxu1 %v17302_v9  ;;  %v17537_v43 = vld [vmem:[%s15898_s19 + $0x8f8] sm:$0xff] }
 0x184   : > { %5883 = vmatpush1.msra.mxu0 %v17109_v8  ;;  %5916 = vmatprep.mubr.f32.mxu0 %v19620_v4  ;;  %v17543_v8 = vld [vmem:[%s15898_s19 + $0x8f0] sm:$0xff] }
 0x185   : > { %5976 = vmatpush1.msra.mxu1 %v17309_v44  ;;  %14620 = vmatmul.mubr.msk.f32.vlgmr.msra.gmra.mxu0 %vm235_vm1, %v17516_v26  ;;  %v2930_v10 = vpop.f32.mrf.mxu0 }
 0x186   : > { %6009 = vmatprep.mubr.f32.mxu1 %v19620_v4  ;;  %14646 = vmatprep.subr.msk.mxu0 %vm239_vm0, %v14645_v40 }
 0x187   : > { %14672 = vmatprep.subr.msk.mxu1 %vm239_vm0, %v14671_v59  ;;  %14634 = vmatmul.mubr.msk.f32.vlgmr.msra.gmra.mxu1 %vm235_vm1, %v17527_v37  ;;  %v3022_v33 = vpop.f32.mrf.mxu1  ;;  %v2932_v40 = vpop.f32.mrf.mxu0  ;;  %v2931_v59 = vadd.f32 %v2930_v10, %v2850_v25 }
 0x188   : > { %14647 = vmatpush1.msk.msra.mxu0 %vm239_vm0, %v14644_v11  ;;  %14673 = vmatpush1.msk.msra.mxu1 %vm239_vm0, %v14670_v32  ;;  %v2933_v11 = vadd.f32 %v2932_v40, %v2852_v54  ;;  %v14702_v32 = vld [vmem:[%s15898_s19 + $0x598] sm:$0xf] }
 0x189   : > { %6063 = vmatprep.subr.mxu0 %v17537_v43  ;;  %6172 = vmatprep.subr.mxu1 %v17366_v6  ;;  %v17568_v6 = vld [vmem:[%s15898_s19 + $0x8c8] sm:$0xff] }
 0x18a   : > { %6064 = vmatpush1.msra.mxu0 %v17543_v8  ;;  %6173 = vmatpush1.msra.mxu1 %v17371_v1  ;;  %v17573_v1 = vld [vmem:[%s15898_s19 + $0x8c0] sm:$0xff] }
 0x18b   : > { %6065 = vmatprep.subr.mxu0 %v17548_v41  ;;  %6174 = vmatprep.subr.mxu1 %v17376_v47  ;;  %v17580_v47 = vld [vmem:[%s19543_s1 + $0x40] sm:$0xff] }
 0x18c   : > { %6066 = vmatpush1.msra.mxu0 %v17553_v17  ;;  %6175 = vmatpush1.msra.mxu1 %v17381_v56  ;;  %v14660_v56 = vld [vmem:[%s15898_s19 + $0x278] sm:$0xf] }
 0x18d   : > { %6067 = vmatprep.subr.mxu0 %v17558_v12  ;;  %6176 = vmatprep.subr.mxu1 %v17386_v23  ;;  %v14688_v23 = vld [vmem:[%s15898_s19 + $0x318] sm:$0xf] }
 0x18e   : > { %6068 = vmatpush1.msra.mxu0 %v17563_v60  ;;  %6177 = vmatpush1.msra.mxu1 %v17391_v38  ;;  %v14659_v38 = vld [vmem:[%s15898_s19 + $0x270] sm:$0xf] }
 0x18f   : > { %6069 = vmatprep.subr.mxu0 %v17568_v6  ;;  %6178 = vmatprep.subr.mxu1 %v17396_v49  ;;  %v14686_v49 = vld [vmem:[%s15898_s19 + $0x308] sm:$0xff] }
 0x190   : > { %6070 = vmatpush1.msra.mxu0 %v17573_v1  ;;  %6103 = vmatprep.mubr.f32.mxu0 %v19620_v4 }
 0x191   : > { %6179 = vmatpush1.msra.mxu1 %v17401_v14  ;;  %14648 = vmatmul.mubr.msk.f32.vlgmr.msra.gmra.mxu0 %vm235_vm1, %v17580_v47  ;;  %v14685_v14 = vld [vmem:[%s15898_s19 + $0x300] sm:$0xff] }
 0x192   : > { %6212 = vmatprep.mubr.f32.mxu1 %v19620_v4  ;;  %14675 = vmatprep.subr.msk.mxu0 %vm239_vm0, %v14660_v56  ;;  %v14716_v56 = vld [vmem:[%s15898_s19 + $0x5e8] sm:$0xf] }
 0x193   : > { %14689 = vmatprep.subr.msk.mxu1 %vm239_vm0, %v14688_v23  ;;  %14674 = vmatmul.mubr.msk.f32.vlgmr.msra.gmra.mxu1 %vm235_vm1, %v17346_v61  ;;  %v14701_v23 = vld [vmem:[%s15898_s19 + $0x590] sm:$0xf] }
 0x194   : > { %14676 = vmatpush1.msk.msra.mxu0 %vm239_vm0, %v14659_v38  ;;  %14690 = vmatpush1.msk.msra.mxu1 %vm239_vm0, %v14687_v34 }
 0x195   : > { %6252 = vmatprep.subr.mxu0 %v17129_v16  ;;  %6344 = vmatprep.subr.mxu1 %v14686_v49  ;;  %v14680_v16 = vld [vmem:[%s15898_s19 + $0x2d8] sm:$0xff] }
 0x196   : > { %6253 = vmatpush1.msra.mxu0 %v17135_v7  ;;  %6345 = vmatpush1.msra.mxu1 %v14685_v14  ;;  %v3115_v7 = vpop.f32.mrf.mxu0 }
 0x197   : > { %6254 = vmatprep.subr.mxu0 %v17140_v20  ;;  %6346 = vmatprep.subr.mxu1 %v14684_v39  ;;  %v14679_v20 = vld [vmem:[%s15898_s19 + $0x2d0] sm:$0xff] }
 0x198   : > { %6255 = vmatpush1.msra.mxu0 %v17145_v24  ;;  %6347 = vmatpush1.msra.mxu1 %v14683_v52  ;;  %v3024_v24 = vpop.f32.mrf.mxu1  ;;  %v3117_v34 = vpop.f32.mrf.mxu0 }
 0x199   : > { %6256 = vmatprep.subr.mxu0 %v17150_v58  ;;  %6348 = vmatprep.subr.mxu1 %v14682_v50  ;;  %v3027_v58 = vadd.f32 %v3022_v33, %v2931_v59 }
 0x19a   : > { %6257 = vmatpush1.msra.mxu0 %v17155_v55  ;;  %6349 = vmatpush1.msra.mxu1 %v14681_v62  ;;  %v14715_v55 = vld [vmem:[%s15898_s19 + $0x5e0] sm:$0xf]  ;;  %v3208_v38 = vpop.f32.mrf.mxu1  ;;  %v14728_v62 = vld [vmem:[%s15898_s19 + $0x628] sm:$0xff] }
 0x19b   : > { %6258 = vmatprep.subr.mxu0 %v17160_v29  ;;  %6350 = vmatprep.subr.mxu1 %v14680_v16  ;;  %v3028_v29 = vadd.f32 %v3024_v24, %v2933_v11  ;;  %v3120_v25 = vadd.f32 %v3115_v7, %v3027_v58  ;;  %v19641_v16 = vld [vmem:[#allocation5_spill] sm:$0xff]  ;;  %v14725_v24 = vld [vmem:[%s15898_s19 + $0x610] sm:$0xff]  ;;  %v14724_v58 = vld [vmem:[%s15898_s19 + $0x608] sm:$0xff] }
 0x19c   : > { %6259 = vmatpush1.msra.mxu0 %v17167_v30  ;;  %6292 = vmatprep.mubr.f32.mxu0 %v19620_v4  ;;  %v3210_v14 = vpop.f32.mrf.mxu1 }
 0x19d   : > { %6351 = vmatpush1.msra.mxu1 %v14679_v20  ;;  %14677 = vmatmul.mubr.msk.f32.vlgmr.msra.gmra.mxu0 %vm235_vm1, %v17351_v22  ;;  %v3302_v30 = vpop.f32.mrf.mxu0  ;;  %v3121_v49 = vadd.f32 %v3117_v34, %v3028_v29  ;;  %v3213_v10 = vadd.f32 %v3208_v38, %v3120_v25  ;;  %v14726_v20 = vld [vmem:[%s15898_s19 + $0x618] sm:$0xff]  ;;  %v14723_v38 = vld [vmem:[%s15898_s19 + $0x600] sm:$0xff]  ;;  %v14767_v25 = vld [vmem:[%s15898_s19 + $0x930] sm:$0xff] }
 0x19e   : > { %6384 = vmatprep.mubr.f32.mxu1 %v19620_v4  ;;  %14703 = vmatprep.subr.msk.mxu0 %vm239_vm0, %v14702_v32  ;;  %v14769_v29 = vld [vmem:[%s15898_s19 + $0x940] sm:$0xff] }
 0x19f   : > { %14717 = vmatprep.subr.msk.mxu1 %vm239_vm0, %v14716_v56  ;;  %14691 = vmatmul.mubr.msk.f32.vlgmr.msra.gmra.mxu1 %vm235_vm1, %v17408_v63  ;;  %v3395_v39 = vpop.f32.mrf.mxu1  ;;  %v3304_v52 = vpop.f32.mrf.mxu0 }
 0x1a0   : > { %14704 = vmatpush1.msk.msra.mxu0 %vm239_vm0, %v14701_v23  ;;  %14718 = vmatpush1.msk.msra.mxu1 %vm239_vm0, %v14715_v55 }
 0x1a1   : > { %6437 = vmatprep.subr.mxu0 %v17213_v27  ;;  %6530 = vmatprep.subr.mxu1 %v17429_v42  ;;  %v3214_v27 = vadd.f32 %v3210_v14, %v3121_v49  ;;  %v3307_v42 = vadd.f32 %v3302_v30, %v3213_v10  ;;  %v14766_v30 = vld [vmem:[%s15898_s19 + $0x928] sm:$0xff]  ;;  %v14765_v49 = vld [vmem:[%s15898_s19 + $0x920] sm:$0xff]  ;;  %v14764_v14 = vld [vmem:[%s15898_s19 + $0x918] sm:$0xff] }
 0x1a2   : > { %6438 = vmatpush1.msra.mxu0 %v17219_v0  ;;  %6531 = vmatpush1.msra.mxu1 %v17435_v46  ;;  %v19638_v46 = vld [vmem:[#allocation10_spill] sm:$0xff]  ;;  %v14785_v10 = vld [vmem:[%s15898_s19 + $0x350] sm:$0xff] }
 0x1a3   : > { %6439 = vmatprep.subr.mxu0 %v17224_v18  ;;  %6532 = vmatprep.subr.mxu1 %v17440_v31  ;;  %v3308_v0 = vadd.f32 %v3304_v52, %v3214_v27  ;;  %v19637_v18 = vld [vmem:[#allocation8_spill] sm:$0xff]  ;;  %v3397_v31 = vpop.f32.mrf.mxu1  ;;  %v3400_v54 = vadd.f32 %v3395_v39, %v3307_v42  ;;  %v17733_v39 = vld [vmem:[%s15898_s19 + $0x398] sm:$0xff]  ;;  %v14784_v52 = vld [vmem:[%s15898_s19 + $0x348] sm:$0xff] }
 0x1a4   : > { %6440 = vmatpush1.msra.mxu0 %v17229_v35  ;;  %6533 = vmatpush1.msra.mxu1 %v17445_v21  ;;  %v14730_v35 = vld [vmem:[%s15898_s19 + $0x638] sm:$0xf]  ;;  %v17738_v27 = vld [vmem:[%s15898_s19 + $0x390] sm:$0xff]  ;;  %v14783_v42 = vld [vmem:[%s15898_s19 + $0x340] sm:$0xff] }
 0x1a5   : > { %6441 = vmatprep.subr.mxu0 %v17235_v48  ;;  %6534 = vmatprep.subr.mxu1 %v17450_v53  ;;  %v19639_v21 = vld [vmem:[#allocation9_spill] sm:$0xff]  ;;  %v14729_v53 = vld [vmem:[%s15898_s19 + $0x630] sm:$0xf]  ;;  %v3401_v33 = vadd.f32 %v3397_v31, %v3308_v0  ;;  %v17743_v0 = vld [vmem:[%s15898_s19 + $0x388] sm:$0xff] }
 0x1a6   : > { %6442 = vmatpush1.msra.mxu0 %v17240_v57  ;;  %6535 = vmatpush1.msra.mxu1 %v17455_v28  ;;  %v14744_v48 = vld [vmem:[%s15898_s19 + $0x8b8] sm:$0xf]  ;;  %v19640_v57 = vld [vmem:[#allocation4_spill] sm:$0xff] }
 0x1a7   : > { %6443 = vmatprep.subr.mxu0 %v19637_v18  ;;  %6536 = vmatprep.subr.mxu1 %v19638_v46  ;;  %v14743_v28 = vld [vmem:[%s15898_s19 + $0x8b0] sm:$0xf]  ;;  %v14782_v18 = vld [vmem:[%s15898_s19 + $0x338] sm:$0xff]  ;;  %v17748_v46 = vld [vmem:[%s15898_s19 + $0x380] sm:$0xff] }
 0x1a8   : > { %6444 = vmatpush1.msra.mxu0 %v19639_v21  ;;  %6477 = vmatprep.mubr.f32.mxu0 %v19620_v4  ;;  %v17753_v31 = vld [vmem:[%s15898_s19 + $0x378] sm:$0xff]  ;;  %v14780_v21 = vld [vmem:[%s15898_s19 + $0x328] sm:$0xff] }
 0x1a9   : > { %6537 = vmatpush1.msra.mxu1 %v17467_v15  ;;  %14705 = vmatmul.mubr.msk.f32.vlgmr.msra.gmra.mxu0 %vm235_vm1, %v19640_v57  ;;  %v3488_v50 = vpop.f32.mrf.mxu0  ;;  %v14727_v15 = vld [vmem:[%s15898_s19 + $0x620] sm:$0xff] }
 0x1aa   : > { %6570 = vmatprep.mubr.f32.mxu1 %v19620_v4  ;;  %14731 = vmatprep.subr.msk.mxu0 %vm239_vm0, %v14730_v35  ;;  %v3493_v40 = vadd.f32 %v3488_v50, %v3400_v54  ;;  %v14781_v35 = vld [vmem:[%s15898_s19 + $0x330] sm:$0xff]  ;;  %v14830_v50 = vld [vmem:[%s15898_s19 + $0x688] sm:$0xf] }
 0x1ab   : > { %14745 = vmatprep.subr.msk.mxu1 %vm239_vm0, %v14744_v48  ;;  %14719 = vmatmul.mubr.msk.f32.vlgmr.msra.gmra.mxu1 %vm235_vm1, %v19641_v16  ;;  %v3582_v59 = vpop.f32.mrf.mxu1  ;;  %v3490_v7 = vpop.f32.mrf.mxu0  ;;  %v17758_v48 = vld [vmem:[%s15898_s19 + $0x370] sm:$0xff] }
 0x1ac   : > { %14732 = vmatpush1.msk.msra.mxu0 %vm239_vm0, %v14729_v53  ;;  %14746 = vmatpush1.msk.msra.mxu1 %vm239_vm0, %v14743_v28  ;;  %v3587_v11 = vadd.f32 %v3582_v59, %v3493_v40  ;;  %v3494_v32 = vadd.f32 %v3490_v7, %v3401_v33  ;;  %v14779_v53 = vld [vmem:[%s15898_s19 + $0x320] sm:$0xff]  ;;  %v14816_v28 = vld [vmem:[%s15898_s19 + $0x408] sm:$0xf]  ;;  %v17775_v59 = vld [vmem:[%s15898_s19 + $0x3f8] sm:$0xff] }
 0x1ad   : > { %6624 = vmatprep.subr.mxu0 %v14728_v62  ;;  %6717 = vmatprep.subr.mxu1 %v17271_v2  ;;  %v3584_v56 = vpop.f32.mrf.mxu1  ;;  %v14722_v2 = vld [vmem:[%s15898_s19 + $0x5f8] sm:$0xff]  ;;  %v14815_v62 = vld [vmem:[%s15898_s19 + $0x400] sm:$0xf] }
 0x1ae   : > { %6625 = vmatpush1.msra.mxu0 %v14727_v15  ;;  %6718 = vmatpush1.msra.mxu1 %v17277_v5  ;;  %v3589_v23 = vadd.f32 %v3587_v11, %v17087_v19  ;;  %v3588_v55 = vadd.f32 %v3584_v56, %v3494_v32  ;;  %v14721_v5 = vld [vmem:[%s15898_s19 + $0x5f0] sm:$0xff]  ;;  %v14829_v33 = vld [vmem:[%s15898_s19 + $0x680] sm:$0xf]  ;;  %v14828_v7 = vld [vmem:[%s15898_s19 + $0x678] sm:$0xff] }
 0x1af   : > { %6626 = vmatprep.subr.mxu0 %v14726_v20  ;;  %6719 = vmatprep.subr.mxu1 %v17282_v45  ;;  %v14758_v45 = vld [vmem:[%s15898_s19 + $0x908] sm:$0xf]  ;;  %v17781_v20 = vld [vmem:[%s15898_s19 + $0x3f0] sm:$0xff]  ;;  %v14825_v56 = vld [vmem:[%s15898_s19 + $0x660] sm:$0xff] }
 0x1b0   : > { %6627 = vmatpush1.msra.mxu0 %v14725_v24  ;;  %6720 = vmatpush1.msra.mxu1 %v17287_v3  ;;  %14268 = vst [vmem:[%s17092_s11 + $0x30] sm:$0xff] %v3589_v23  ;;  %v3590_v34 = vadd.f32 %v3588_v55, %v17087_v19  ;;  %v14772_v3 = vld [vmem:[%s15898_s19 + $0x958] sm:$0xf]  ;;  %v14827_v11 = vld [vmem:[%s15898_s19 + $0x670] sm:$0xff]  ;;  %v17792_v24 = vld [vmem:[%s15898_s19 + $0x3e0] sm:$0xff] }
 0x1b1   : > { %6628 = vmatprep.subr.mxu0 %v14724_v58  ;;  %6721 = vmatprep.subr.mxu1 %v17292_v13  ;;  %v14757_v13 = vld [vmem:[%s15898_s19 + $0x900] sm:$0xf]  ;;  %v17797_v23 = vld [vmem:[%s15898_s19 + $0x3d8] sm:$0xff] }
 0x1b2   : > { %6629 = vmatpush1.msra.mxu0 %v14723_v38  ;;  %6722 = vmatpush1.msra.mxu1 %v17297_v36  ;;  %14269 = vst [vmem:[%s17092_s11 + $0x38] sm:$0xff] %v3590_v34  ;;  %v14771_v36 = vld [vmem:[%s15898_s19 + $0x950] sm:$0xf]  ;;  %v14824_v55 = vld [vmem:[%s15898_s19 + $0x658] sm:$0xff] }
 0x1b3   : > { %6630 = vmatprep.subr.mxu0 %v14722_v2  ;;  %6723 = vmatprep.subr.mxu1 %v17302_v9  ;;  %v14770_v9 = vld [vmem:[%s15898_s19 + $0x948] sm:$0xff]  ;;  %v17802_v2 = vld [vmem:[%s15898_s19 + $0x3d0] sm:$0xff] }
 0x1b4   : > { %6631 = vmatpush1.msra.mxu0 %v14721_v5  ;;  %6664 = vmatprep.mubr.f32.mxu0 %v19620_v4  ;;  %v14823_v34 = vld [vmem:[%s15898_s19 + $0x650] sm:$0xff] }
 0x1b5   : > { %6724 = vmatpush1.msra.mxu1 %v17309_v44  ;;  %14733 = vmatmul.mubr.msk.f32.vlgmr.msra.gmra.mxu0 %vm235_vm1, %v17483_v51  ;;  %v14768_v44 = vld [vmem:[%s15898_s19 + $0x938] sm:$0xff] }
 0x1b6   : > { %6757 = vmatprep.mubr.f32.mxu1 %v19620_v4  ;;  %14759 = vmatprep.subr.msk.mxu0 %vm239_vm0, %v14758_v45  ;;  %v3691_v54 = vpop.f32.mrf.mxu0  ;;  %v3771_v40 = vpop.f32.mrf.mxu1 }
 0x1b7   : > { %14773 = vmatprep.subr.msk.mxu1 %vm239_vm0, %v14772_v3  ;;  %14747 = vmatmul.mubr.msk.f32.vlgmr.msra.gmra.mxu1 %vm235_vm1, %v17516_v26  ;;  %v3772_v38 = vadd.f32 %v3771_v40, %v3691_v54  ;;  %v17807_v3 = vld [vmem:[%s15898_s19 + $0x3c8] sm:$0xff]  ;;  %v17845_v54 = vld [vmem:[%s15898_s19 + $0x6b8] sm:$0xff] }
 0x1b8   : > { %14760 = vmatpush1.msk.msra.mxu0 %vm239_vm0, %v14757_v13  ;;  %14774 = vmatpush1.msk.msra.mxu1 %vm239_vm0, %v14771_v36  ;;  %v3693_v15 = vpop.f32.mrf.mxu0  ;;  %v3773_v58 = vpop.f32.mrf.mxu1  ;;  %19642 = vst [vmem:[#allocation11_spill] sm:$0xff] %v17807_v3  ;;  %v14822_v13 = vld [vmem:[%s15898_s19 + $0x648] sm:$0xff]  ;;  %v17864_v40 = vld [vmem:[%s15898_s19 + $0x6f8] sm:$0xff] }
 0x1b9   : > { %6810 = vmatprep.subr.mxu0 %v17537_v43  ;;  %6904 = vmatprep.subr.mxu1 %v14770_v9  ;;  %v14763_v43 = vld [vmem:[%s15898_s19 + $0x910] sm:$0xff]  ;;  %v3774_v36 = vadd.f32 %v3773_v58, %v3693_v15  ;;  %v17880_v58 = vld [vmem:[%s15898_s19 + $0x6e8] sm:$0xff] }
 0x1ba   : > { %6811 = vmatpush1.msra.mxu0 %v17543_v8  ;;  %6905 = vmatpush1.msra.mxu1 %v14769_v29  ;;  %v14799_v8 = vld [vmem:[%s15898_s19 + $0x3b8] sm:$0xf]  ;;  %v17812_v29 = vld [vmem:[%s15898_s19 + $0x3c0] sm:$0xff] }
 0x1bb   : > { %6812 = vmatprep.subr.mxu0 %v17548_v41  ;;  %6906 = vmatprep.subr.mxu1 %v14768_v44  ;;  %v14788_v41 = vld [vmem:[%s15898_s19 + $0x368] sm:$0xf]  ;;  %19643 = vst [vmem:[#allocation6_spill] sm:$0xff] %v17812_v29 }
 0x1bc   : > { %6813 = vmatpush1.msra.mxu0 %v17553_v17  ;;  %6907 = vmatpush1.msra.mxu1 %v14767_v25  ;;  %v14798_v17 = vld [vmem:[%s15898_s19 + $0x3b0] sm:$0xf]  ;;  %v14821_v25 = vld [vmem:[%s15898_s19 + $0x640] sm:$0xff] }
 0x1bd   : > { %6814 = vmatprep.subr.mxu0 %v17558_v12  ;;  %6908 = vmatprep.subr.mxu1 %v14766_v30  ;;  %v14787_v12 = vld [vmem:[%s15898_s19 + $0x360] sm:$0xf] }
 0x1be   : > { %6815 = vmatpush1.msra.mxu0 %v17563_v60  ;;  %6909 = vmatpush1.msra.mxu1 %v14765_v49  ;;  %v17720_v60 = vld [vmem:[%s15898_s19 + $0x3a8] sm:$0xff]  ;;  %v14844_v49 = vld [vmem:[%s15898_s19 + $0x6d8] sm:$0xf] }
 0x1bf   : > { %6816 = vmatprep.subr.mxu0 %v17568_v6  ;;  %6910 = vmatprep.subr.mxu1 %v14764_v14  ;;  %v14786_v6 = vld [vmem:[%s15898_s19 + $0x358] sm:$0xff] }
 0x1c0   : > { %6817 = vmatpush1.msra.mxu0 %v17573_v1  ;;  %6850 = vmatprep.mubr.f32.mxu0 %v19620_v4  ;;  %v17727_v1 = vld [vmem:[%s15898_s19 + $0x3a0] sm:$0xff] }
 0x1c1   : > { %6911 = vmatpush1.msra.mxu1 %v14763_v43  ;;  %14761 = vmatmul.mubr.msk.f32.vlgmr.msra.gmra.mxu0 %vm235_vm1, %v17527_v37  ;;  %v3863_v32 = vpop.f32.mrf.mxu0  ;;  %v14858_v43 = vld [vmem:[%s15898_s19 + $0x728] sm:$0xf] }
 0x1c2   : > { %6944 = vmatprep.mubr.f32.mxu1 %v19620_v4  ;;  %14800 = vmatprep.subr.msk.mxu0 %vm239_vm0, %v14799_v8  ;;  %v3868_v9 = vadd.f32 %v3863_v32, %v3772_v38 }
 0x1c3   : > { %14803 = vmatprep.subr.msk.mxu1 %vm239_vm0, %v14788_v41  ;;  %14775 = vmatmul.mubr.msk.f32.vlgmr.msra.gmra.mxu1 %vm235_vm1, %v17580_v47  ;;  %v3956_v5 = vpop.f32.mrf.mxu1  ;;  %v3865_v45 = vpop.f32.mrf.mxu0  ;;  %v14843_v41 = vld [vmem:[%s15898_s19 + $0x6d0] sm:$0xf] }
 0x1c4   : > { %14801 = vmatpush1.msk.msra.mxu0 %vm239_vm0, %v14798_v17  ;;  %14804 = vmatpush1.msk.msra.mxu1 %vm239_vm0, %v14787_v12  ;;  %v3869_v30 = vadd.f32 %v3865_v45, %v3774_v36  ;;  %v3961_v8 = vadd.f32 %v3956_v5, %v3868_v9  ;;  %v14857_v17 = vld [vmem:[%s15898_s19 + $0x720] sm:$0xf]  ;;  %v14886_v9 = vld [vmem:[%s15898_s19 + $0x9f8] sm:$0xf] }
 0x1c5   : > { %7015 = vmatprep.subr.mxu0 %v17720_v60  ;;  %7095 = vmatprep.subr.mxu1 %v14786_v6  ;;  %v3958_v14 = vpop.f32.mrf.mxu1  ;;  %v17890_v5 = vld [vmem:[%s15898_s19 + $0x6e0] sm:$0xff] }
 0x1c6   : > { %7016 = vmatpush1.msra.mxu0 %v17727_v1  ;;  %7096 = vmatpush1.msra.mxu1 %v14785_v10  ;;  %v17828_v10 = vld [vmem:[%s15898_s19 + $0x6c8] sm:$0xff] }
 0x1c7   : > { %7017 = vmatprep.subr.mxu0 %v17733_v39  ;;  %7097 = vmatprep.subr.mxu1 %v14784_v52  ;;  %v17831_v52 = vld [vmem:[%s15898_s19 + $0x718] sm:$0xff] }
 0x1c8   : > { %7018 = vmatpush1.msra.mxu0 %v17738_v27  ;;  %7098 = vmatpush1.msra.mxu1 %v14783_v42  ;;  %v3962_v42 = vadd.f32 %v3958_v14, %v3869_v30  ;;  %v14885_v30 = vld [vmem:[%s15898_s19 + $0x9f0] sm:$0xf]  ;;  %v14870_v14 = vld [vmem:[%s15898_s19 + $0x998] sm:$0xff] }
 0x1c9   : > { %7019 = vmatprep.subr.mxu0 %v17743_v0  ;;  %7099 = vmatprep.subr.mxu1 %v14782_v18 }
 0x1ca   : > { %7020 = vmatpush1.msra.mxu0 %v17748_v46  ;;  %7100 = vmatpush1.msra.mxu1 %v14781_v35  ;;  %v17840_v35 = vld [vmem:[%s15898_s19 + $0x710] sm:$0xff] }
 0x1cb   : > { %7021 = vmatprep.subr.mxu0 %v17753_v31  ;;  %7101 = vmatprep.subr.mxu1 %v14780_v21 }
 0x1cc   : > { %7022 = vmatpush1.msra.mxu0 %v17758_v48  ;;  %7055 = vmatprep.mubr.f32.mxu0 %v19620_v4 }
 0x1cd   : > { %7102 = vmatpush1.msra.mxu1 %v14779_v53  ;;  %7135 = vmatprep.mubr.f32.mxu1 %v19620_v4  ;;  %v4049_v44 = vpop.f32.mrf.mxu0  ;;  %v17848_v53 = vld [vmem:[%s15898_s19 + $0x708] sm:$0xff] }
 0x1ce   : > { %14802 = vmatmul.mubr.msk.f32.vlgmr.msra.gmra.mxu0 %vm235_vm1, %v17346_v61  ;;  %14805 = vmatmul.mubr.msk.f32.vlgmr.msra.gmra.mxu1 %vm235_vm1, %v17351_v22  ;;  %v17787_v61 = vld [vmem:[%s15898_s19 + $0x3e8] sm:$0xff]  ;;  %v4054_v18 = vadd.f32 %v4049_v44, %v3961_v8 }
 0x1cf   : > { %14817 = vmatprep.subr.msk.mxu0 %vm239_vm0, %v14816_v28  ;;  %14831 = vmatprep.subr.msk.mxu1 %vm239_vm0, %v14830_v50  ;;  %v14826_v22 = vld [vmem:[%s15898_s19 + $0x668] sm:$0xff]  ;;  %v4143_v12 = vpop.f32.mrf.mxu1  ;;  %v4051_v6 = vpop.f32.mrf.mxu0  ;;  %v17856_v50 = vld [vmem:[%s15898_s19 + $0x700] sm:$0xff] }
 0x1d0   : > { %14818 = vmatpush1.msk.msra.mxu0 %vm239_vm0, %v14815_v62  ;;  %14832 = vmatpush1.msk.msra.mxu1 %vm239_vm0, %v14829_v33  ;;  %v4055_v28 = vadd.f32 %v4051_v6, %v3962_v42  ;;  %v17861_v33 = vld [vmem:[%s15898_s19 + $0x6a8] sm:$0xff]  ;;  %v4148_v15 = vadd.f32 %v4143_v12, %v4054_v18  ;;  %v17920_v42 = vld [vmem:[%s15898_s19 + $0x9d8] sm:$0xff] }
 0x1d1   : > { %7186 = vmatprep.subr.mxu0 %v17775_v59  ;;  %7279 = vmatprep.subr.mxu1 %v14828_v7  ;;  %v4145_v62 = vpop.f32.mrf.mxu1  ;;  %v17869_v7 = vld [vmem:[%s15898_s19 + $0x6a0] sm:$0xff]  ;;  %v14868_v6 = vld [vmem:[%s15898_s19 + $0x988] sm:$0xff] }
 0x1d2   : > { %7187 = vmatpush1.msra.mxu0 %v17781_v20  ;;  %7280 = vmatpush1.msra.mxu1 %v14827_v11  ;;  %v17872_v11 = vld [vmem:[%s15898_s19 + $0x6f0] sm:$0xff] }
 0x1d3   : > { %7188 = vmatprep.subr.mxu0 %v17787_v61  ;;  %7281 = vmatprep.subr.mxu1 %v14826_v22 }
 0x1d4   : > { %7189 = vmatpush1.msra.mxu0 %v17792_v24  ;;  %7282 = vmatpush1.msra.mxu1 %v14825_v56  ;;  %v17877_v56 = vld [vmem:[%s15898_s19 + $0x698] sm:$0xff] }
 0x1d5   : > { %7190 = vmatprep.subr.mxu0 %v17797_v23  ;;  %7283 = vmatprep.subr.mxu1 %v14824_v55  ;;  %v4149_v55 = vadd.f32 %v4145_v62, %v4055_v28  ;;  %v17926_v28 = vld [vmem:[%s15898_s19 + $0x9d0] sm:$0xff]  ;;  %v14866_v62 = vld [vmem:[%s15898_s19 + $0x978] sm:$0xff] }
 0x1d6   : > { %7191 = vmatpush1.msra.mxu0 %v17802_v2  ;;  %7284 = vmatpush1.msra.mxu1 %v14823_v34  ;;  %v17885_v34 = vld [vmem:[%s15898_s19 + $0x690] sm:$0xff] }
 0x1d7   : > { %7192 = vmatprep.subr.mxu0 %v17807_v3  ;;  %7285 = vmatprep.subr.mxu1 %v14822_v13  ;;  %v14872_v13 = vld [vmem:[%s15898_s19 + $0x9a8] sm:$0xf] }
 0x1d8   : > { %7193 = vmatpush1.msra.mxu0 %v17812_v29  ;;  %7226 = vmatprep.mubr.f32.mxu0 %v19620_v4 }
 0x1d9   : > { %7286 = vmatpush1.msra.mxu1 %v14821_v25  ;;  %14819 = vmatmul.mubr.msk.f32.vlgmr.msra.gmra.mxu0 %vm235_vm1, %v17408_v63  ;;  %v17837_v63 = vld [vmem:[%s15898_s19 + $0x6c0] sm:$0xff]  ;;  %v4236_v21 = vpop.f32.mrf.mxu0 }
 0x1da   : > { %7319 = vmatprep.mubr.f32.mxu1 %v19620_v4  ;;  %14845 = vmatprep.subr.msk.mxu0 %vm239_vm0, %v14844_v49  ;;  %v4241_v38 = vadd.f32 %v4236_v21, %v4148_v15  ;;  %v14871_v25 = vld [vmem:[%s15898_s19 + $0x9a0] sm:$0xf]  ;;  %v17931_v15 = vld [vmem:[%s15898_s19 + $0x9c8] sm:$0xff] }
 0x1db   : > { %14859 = vmatprep.subr.msk.mxu1 %vm239_vm0, %v14858_v43  ;;  %14833 = vmatmul.mubr.msk.f32.vlgmr.msra.gmra.mxu1 %vm235_vm1, %v19640_v57  ;;  %v17853_v57 = vld [vmem:[%s15898_s19 + $0x6b0] sm:$0xff]  ;;  %v4329_v32 = vpop.f32.mrf.mxu1  ;;  %v4238_v22 = vpop.f32.mrf.mxu0  ;;  %v17907_v43 = vld [vmem:[%s15898_s19 + $0x9e8] sm:$0xff] }
 0x1dc   : > { %14846 = vmatpush1.msk.msra.mxu0 %vm239_vm0, %v14843_v41  ;;  %14860 = vmatpush1.msk.msra.mxu1 %vm239_vm0, %v14857_v17  ;;  %v4242_v45 = vadd.f32 %v4238_v22, %v4149_v55  ;;  %v4334_v44 = vadd.f32 %v4329_v32, %v4241_v38  ;;  %v17914_v17 = vld [vmem:[%s15898_s19 + $0x9e0] sm:$0xff]  ;;  %v14865_v22 = vld [vmem:[%s15898_s19 + $0x970] sm:$0xff]  ;;  %v14864_v38 = vld [vmem:[%s15898_s19 + $0x968] sm:$0xff] }
 0x1dd   : > { %7372 = vmatprep.subr.mxu0 %v17828_v10  ;;  %7465 = vmatprep.subr.mxu1 %v17831_v52  ;;  %v4331_v36 = vpop.f32.mrf.mxu1  ;;  %v17938_v55 = vld [vmem:[%s15898_s19 + $0x9c0] sm:$0xff] }
 0x1de   : > { %7373 = vmatpush1.msra.mxu0 %v17837_v63  ;;  %7466 = vmatpush1.msra.mxu1 %v17840_v35  ;;  %v4335_v8 = vadd.f32 %v4331_v36, %v4242_v45  ;;  %v17943_v45 = vld [vmem:[%s15898_s19 + $0x9b8] sm:$0xff]  ;;  %v17950_v36 = vld [vmem:[%s15898_s19 + $0x9b0] sm:$0xff] }
 0x1df   : > { %7374 = vmatprep.subr.mxu0 %v17845_v54  ;;  %7467 = vmatprep.subr.mxu1 %v17848_v53 }
 0x1e0   : > { %7375 = vmatpush1.msra.mxu0 %v17853_v57  ;;  %7468 = vmatpush1.msra.mxu1 %v17856_v50 }
 0x1e1   : > { %7376 = vmatprep.subr.mxu0 %v17861_v33  ;;  %7469 = vmatprep.subr.mxu1 %v17864_v40 }
 0x1e2   : > { %7377 = vmatpush1.msra.mxu0 %v17869_v7  ;;  %7470 = vmatpush1.msra.mxu1 %v17872_v11 }
 0x1e3   : > { %7378 = vmatprep.subr.mxu0 %v17877_v56  ;;  %7471 = vmatprep.subr.mxu1 %v17880_v58 }
 0x1e4   : > { %7379 = vmatpush1.msra.mxu0 %v17885_v34  ;;  %7412 = vmatprep.mubr.f32.mxu0 %v19620_v4 }
 0x1e5   : > { %7472 = vmatpush1.msra.mxu1 %v17890_v5  ;;  %14847 = vmatmul.mubr.msk.f32.vlgmr.msra.gmra.mxu0 %vm235_vm1, %v19641_v16  ;;  %v4423_v49 = vpop.f32.mrf.mxu0  ;;  %v14869_v16 = vld [vmem:[%s15898_s19 + $0x990] sm:$0xff] }
 0x1e6   : > { %7505 = vmatprep.mubr.f32.mxu1 %v19620_v4  ;;  %14873 = vmatprep.subr.msk.mxu0 %vm239_vm0, %v14872_v13  ;;  %v4428_v41 = vadd.f32 %v4423_v49, %v4334_v44  ;;  %v14863_v13 = vld [vmem:[%s15898_s19 + $0x960] sm:$0xff]  ;;  %v14926_v44 = vld [vmem:[%s15898_s19 + $0x408] sm:$0xf]  ;;  %v17964_v49 = vld [vmem:[%s15898_s19 + $0xa38] sm:$0xff] }
 0x1e7   : > { %14887 = vmatprep.subr.msk.mxu1 %vm239_vm0, %v14886_v9  ;;  %14861 = vmatmul.mubr.msk.f32.vlgmr.msra.gmra.mxu1 %vm235_vm1, %v17483_v51  ;;  %v4425_v12 = vpop.f32.mrf.mxu0  ;;  %v14867_v51 = vld [vmem:[%s15898_s19 + $0x980] sm:$0xff]  ;;  %v14900_v9 = vld [vmem:[%s15898_s19 + $0xa48] sm:$0xf] }
 0x1e8   : > { %14874 = vmatpush1.msk.msra.mxu0 %vm239_vm0, %v14871_v25  ;;  %14888 = vmatpush1.msk.msra.mxu1 %vm239_vm0, %v14885_v30  ;;  %v4430_v18 = vadd.f32 %v4428_v41, %v17087_v19  ;;  %v4429_v21 = vadd.f32 %v4425_v12, %v4335_v8  ;;  %v14899_v25 = vld [vmem:[%s15898_s19 + $0xa40] sm:$0xf]  ;;  %v17990_v41 = vld [vmem:[%s15898_s19 + $0xa10] sm:$0xff] }
 0x1e9   : > { %7559 = vmatprep.subr.mxu0 %v14870_v14  ;;  %7653 = vmatprep.subr.mxu1 %v17907_v43  ;;  %v14925_v30 = vld [vmem:[%s15898_s19 + $0x400] sm:$0xf]  ;;  %v17970_v14 = vld [vmem:[%s15898_s19 + $0xa30] sm:$0xff] }
 0x1ea   : > { %7560 = vmatpush1.msra.mxu0 %v14869_v16  ;;  %7654 = vmatpush1.msra.mxu1 %v17914_v17  ;;  %14395 = vst [vmem:[%s17092_s11 + $0x40] sm:$0xff] %v4430_v18  ;;  %v4431_v32 = vadd.f32 %v4429_v21, %v17087_v19  ;;  %v17980_v8 = vld [vmem:[%s15898_s19 + $0xa20] sm:$0xff]  ;;  %v17995_v16 = vld [vmem:[%s15898_s19 + $0xa08] sm:$0xff]  ;;  %v14943_v18 = vld [vmem:[%s15898_s19 + $0x458] sm:$0xf] }
 0x1eb   : > { %7561 = vmatprep.subr.mxu0 %v14868_v6  ;;  %7655 = vmatprep.subr.mxu1 %v17920_v42  ;;  %v18000_v12 = vld [vmem:[%s15898_s19 + $0xa00] sm:$0xff]  ;;  %v14915_v6 = vld [vmem:[%s15898_s19 + $0x3b8] sm:$0xf]  ;;  %v18013_v21 = vld [vmem:[%s19543_s1 + $0x8] sm:$0xff] }
 0x1ec   : > { %7562 = vmatpush1.msra.mxu0 %v14867_v51  ;;  %7656 = vmatpush1.msra.mxu1 %v17926_v28  ;;  %14396 = vst [vmem:[%s17092_s11 + $0x48] sm:$0xff] %v4431_v32  ;;  %19644 = vst [vmem:[#allocation12_spill] sm:$0xff] %v18013_v21  ;;  %v14914_v51 = vld [vmem:[%s15898_s19 + $0x3b0] sm:$0xf]  ;;  %v4532_v32 = vpop.f32.mrf.mxu1 }
 0x1ed   : > { %7563 = vmatprep.subr.mxu0 %v14866_v62  ;;  %7657 = vmatprep.subr.mxu1 %v17931_v15  ;;  %v14942_v62 = vld [vmem:[%s15898_s19 + $0x450] sm:$0xf] }
 0x1ee   : > { %7564 = vmatpush1.msra.mxu0 %v14865_v22  ;;  %7658 = vmatpush1.msra.mxu1 %v17938_v55  ;;  %v18023_v22 = vld [vmem:[%s15898_s19 + $0x448] sm:$0xff] }
 0x1ef   : > { %7565 = vmatprep.subr.mxu0 %v14864_v38  ;;  %7659 = vmatprep.subr.mxu1 %v17943_v45  ;;  %v18029_v38 = vld [vmem:[%s15898_s19 + $0x440] sm:$0xff] }
 0x1f0   : > { %7566 = vmatpush1.msra.mxu0 %v14863_v13  ;;  %7599 = vmatprep.mubr.f32.mxu0 %v19620_v4  ;;  %v18034_v13 = vld [vmem:[%s15898_s19 + $0x438] sm:$0xff] }
 0x1f1   : > { %7660 = vmatpush1.msra.mxu1 %v17950_v36  ;;  %14875 = vmatmul.mubr.msk.f32.vlgmr.msra.gmra.mxu0 %vm235_vm1, %v17516_v26  ;;  %v17975_v26 = vld [vmem:[%s15898_s19 + $0xa28] sm:$0xff] }
 0x1f2   : > { %7693 = vmatprep.mubr.f32.mxu1 %v19620_v4  ;;  %14901 = vmatprep.subr.msk.mxu0 %vm239_vm0, %v14900_v9  ;;  %v18039_v9 = vld [vmem:[%s15898_s19 + $0x430] sm:$0xff] }
 0x1f3   : > { %14927 = vmatprep.subr.msk.mxu1 %vm239_vm0, %v14926_v44  ;;  %14889 = vmatmul.mubr.msk.f32.vlgmr.msra.gmra.mxu1 %vm235_vm1, %v17527_v37  ;;  %v17985_v37 = vld [vmem:[%s15898_s19 + $0xa18] sm:$0xff]  ;;  %v4534_v44 = vpop.f32.mrf.mxu1 }
 0x1f4   : > { %14902 = vmatpush1.msk.msra.mxu0 %vm239_vm0, %v14899_v25  ;;  %14928 = vmatpush1.msk.msra.mxu1 %vm239_vm0, %v14925_v30  ;;  %v18044_v25 = vld [vmem:[%s15898_s19 + $0x428] sm:$0xff]  ;;  %v18049_v30 = vld [vmem:[%s15898_s19 + $0x420] sm:$0xff] }
 0x1f5   : > { %7747 = vmatprep.subr.mxu0 %v17964_v49  ;;  %7861 = vmatprep.subr.mxu1 %v17775_v59 }
 0x1f6   : > { %7748 = vmatpush1.msra.mxu0 %v17970_v14  ;;  %7862 = vmatpush1.msra.mxu1 %v17781_v20 }
 0x1f7   : > { %7749 = vmatprep.subr.mxu0 %v17975_v26  ;;  %7863 = vmatprep.subr.mxu1 %v17787_v61 }
 0x1f8   : > { %7750 = vmatpush1.msra.mxu0 %v17980_v8  ;;  %7864 = vmatpush1.msra.mxu1 %v17792_v24 }
 0x1f9   : > { %7751 = vmatprep.subr.mxu0 %v17985_v37  ;;  %7865 = vmatprep.subr.mxu1 %v17797_v23 }
 0x1fa   : > { %7752 = vmatpush1.msra.mxu0 %v17990_v41  ;;  %7866 = vmatpush1.msra.mxu1 %v17802_v2 }
 0x1fb   : > { %7753 = vmatprep.subr.mxu0 %v17995_v16  ;;  %7867 = vmatprep.subr.mxu1 %v17807_v3 }
 0x1fc   : > { %7754 = vmatpush1.msra.mxu0 %v18000_v12  ;;  %7787 = vmatprep.mubr.f32.mxu0 %v19620_v4 }
 0x1fd   : > { %7868 = vmatpush1.msra.mxu1 %v17812_v29  ;;  %14903 = vmatmul.mubr.msk.f32.vlgmr.msra.gmra.mxu0 %vm235_vm1, %v17580_v47  ;;  %v4612_v47 = vpop.f32.mrf.mxu0 }
 0x1fe   : > { %7901 = vmatprep.mubr.f32.mxu1 %v19620_v4  ;;  %14930 = vmatprep.subr.msk.mxu0 %vm239_vm0, %v14915_v6  ;;  %v4704_v6 = vpop.f32.mrf.mxu1 }
 0x1ff   : > { %14944 = vmatprep.subr.msk.mxu1 %vm239_vm0, %v14943_v18  ;;  %14929 = vmatmul.mubr.msk.f32.vlgmr.msra.gmra.mxu1 %vm235_vm1, %v18013_v21  ;;  %v18054_v18 = vld [vmem:[%s15898_s19 + $0x418] sm:$0xff] }
 0x200   : > { %14931 = vmatpush1.msk.msra.mxu0 %vm239_vm0, %v14914_v51  ;;  %14945 = vmatpush1.msk.msra.mxu1 %vm239_vm0, %v14942_v62  ;;  %v18061_v51 = vld [vmem:[%s15898_s19 + $0x410] sm:$0xff] }
 0x201   : > { %7941 = vmatprep.subr.mxu0 %v17720_v60  ;;  %8032 = vmatprep.subr.mxu1 %v18023_v22  ;;  %v4614_v60 = vpop.f32.mrf.mxu0  ;;  %19645 = vst [vmem:[#allocation7_spill] sm:$0xff] %v18061_v51 }
 0x202   : > { %7942 = vmatpush1.msra.mxu0 %v17727_v1  ;;  %8033 = vmatpush1.msra.mxu1 %v18029_v38  ;;  %v4613_v1 = vadd.f32 %v4612_v47, %v4532_v32  ;;  %v4615_v62 = vadd.f32 %v4614_v60, %v4534_v44  ;;  %v4706_v32 = vpop.f32.mrf.mxu1  ;;  %v18077_v47 = vld [vmem:[%s19543_s1 + $0x10] sm:$0xff]  ;;  %v14970_v44 = vld [vmem:[%s15898_s19 + $0x720] sm:$0xf] }
 0x203   : > { %7943 = vmatprep.subr.mxu0 %v17733_v39  ;;  %8034 = vmatprep.subr.mxu1 %v18034_v13  ;;  %v4797_v39 = vpop.f32.mrf.mxu0  ;;  %19647 = vst [vmem:[#allocation3_spill] sm:$0xff] %v18077_v47 }
 0x204   : > { %7944 = vmatpush1.msra.mxu0 %v17738_v27  ;;  %8035 = vmatpush1.msra.mxu1 %v18039_v9  ;;  %v18066_v27 = vld [vmem:[%s19543_s1] sm:$0xff]  ;;  %v4709_v21 = vadd.f32 %v4704_v6, %v4613_v1  ;;  %v4890_v60 = vpop.f32.mrf.mxu1 }
 0x205   : > { %7945 = vmatprep.subr.mxu0 %v17743_v0  ;;  %8036 = vmatprep.subr.mxu1 %v18044_v25  ;;  %19646 = vst [vmem:[#allocation2_spill] sm:$0xff] %v18066_v27  ;;  %v14957_v0 = vld [vmem:[%s15898_s19 + $0x6d8] sm:$0xf]  ;;  %v4799_v29 = vpop.f32.mrf.mxu0 }
 0x206   : > { %7946 = vmatpush1.msra.mxu0 %v17748_v46  ;;  %8037 = vmatpush1.msra.mxu1 %v18049_v30  ;;  %v14971_v46 = vld [vmem:[%s15898_s19 + $0x728] sm:$0xf]  ;;  %v4802_v3 = vadd.f32 %v4797_v39, %v4709_v21 }
 0x207   : > { %7947 = vmatprep.subr.mxu0 %v17753_v31  ;;  %8038 = vmatprep.subr.mxu1 %v18054_v18  ;;  %v14956_v31 = vld [vmem:[%s15898_s19 + $0x6d0] sm:$0xf] }
 0x208   : > { %7948 = vmatpush1.msra.mxu0 %v17758_v48  ;;  %7981 = vmatprep.mubr.f32.mxu0 %v19620_v4  ;;  %v4710_v48 = vadd.f32 %v4706_v32, %v4615_v62  ;;  %v4895_v21 = vadd.f32 %v4890_v60, %v4802_v3  ;;  %v18106_v3 = vld [vmem:[%s19543_s1 + $0x18] sm:$0xff] }
 0x209   : > { %8039 = vmatpush1.msra.mxu1 %v18061_v51  ;;  %14932 = vmatmul.mubr.msk.f32.vlgmr.msra.gmra.mxu0 %vm235_vm1, %v18066_v27  ;;  %v4984_v6 = vpop.f32.mrf.mxu0  ;;  %v4892_v27 = vpop.f32.mrf.mxu1  ;;  %19648 = vst [vmem:[#allocation8_spill] sm:$0xff] %v18106_v3 }
 0x20a   : > { %8072 = vmatprep.mubr.f32.mxu1 %v19620_v4  ;;  %14958 = vmatprep.subr.msk.mxu0 %vm239_vm0, %v14957_v0  ;;  %v4803_v1 = vadd.f32 %v4799_v29, %v4710_v48  ;;  %v14998_v0 = vld [vmem:[%s15898_s19 + $0x9f0] sm:$0xf] }
 0x20b   : > { %14972 = vmatprep.subr.msk.mxu1 %vm239_vm0, %v14971_v46  ;;  %14946 = vmatmul.mubr.msk.f32.vlgmr.msra.gmra.mxu1 %vm235_vm1, %v18077_v47  ;;  %v5077_v39 = vpop.f32.mrf.mxu1  ;;  %v4986_v62 = vpop.f32.mrf.mxu0 }
 0x20c   : > { %14959 = vmatpush1.msk.msra.mxu0 %vm239_vm0, %v14956_v31  ;;  %14973 = vmatpush1.msk.msra.mxu1 %vm239_vm0, %v14970_v44  ;;  %v4896_v29 = vadd.f32 %v4892_v27, %v4803_v1  ;;  %v18133_v44 = vld [vmem:[%s15898_s19 + $0x760] sm:$0xff] }
 0x20d   : > { %8125 = vmatprep.subr.mxu0 %v17828_v10  ;;  %8218 = vmatprep.subr.mxu1 %v17831_v52  ;;  %v4989_v10 = vadd.f32 %v4984_v6, %v4895_v21  ;;  %v18138_v6 = vld [vmem:[%s15898_s19 + $0x758] sm:$0xff] }
 0x20e   : > { %8126 = vmatpush1.msra.mxu0 %v17837_v63  ;;  %8219 = vmatpush1.msra.mxu1 %v17840_v35  ;;  %v4990_v63 = vadd.f32 %v4986_v62, %v4896_v29  ;;  %v18148_v29 = vld [vmem:[%s15898_s19 + $0x748] sm:$0xff] }
 0x20f   : > { %8127 = vmatprep.subr.mxu0 %v17845_v54  ;;  %8220 = vmatprep.subr.mxu1 %v17848_v53  ;;  %v14985_v54 = vld [vmem:[%s15898_s19 + $0x778] sm:$0xf]  ;;  %v5082_v27 = vadd.f32 %v5077_v39, %v4989_v10  ;;  %v18143_v39 = vld [vmem:[%s15898_s19 + $0x750] sm:$0xff] }
 0x210   : > { %8128 = vmatpush1.msra.mxu0 %v17853_v57  ;;  %8221 = vmatpush1.msra.mxu1 %v17856_v50  ;;  %v5079_v57 = vpop.f32.mrf.mxu1 }
 0x211   : > { %8129 = vmatprep.subr.mxu0 %v17861_v33  ;;  %8222 = vmatprep.subr.mxu1 %v17864_v40  ;;  %v14999_v33 = vld [vmem:[%s15898_s19 + $0x9f8] sm:$0xf]  ;;  %v5083_v46 = vadd.f32 %v5079_v57, %v4990_v63 }
 0x212   : > { %8130 = vmatpush1.msra.mxu0 %v17869_v7  ;;  %8223 = vmatpush1.msra.mxu1 %v17872_v11  ;;  %v18117_v7 = vld [vmem:[%s19543_s1 + $0x20] sm:$0xff]  ;;  %v15027_v57 = vld [vmem:[%s15898_s19 + $0xa98] sm:$0xf] }
 0x213   : > { %8131 = vmatprep.subr.mxu0 %v17877_v56  ;;  %8224 = vmatprep.subr.mxu1 %v17880_v58  ;;  %19649 = vst [vmem:[#allocation10_spill] sm:$0xff] %v18117_v7  ;;  %v14984_v56 = vld [vmem:[%s15898_s19 + $0x770] sm:$0xf] }
 0x214   : > { %8132 = vmatpush1.msra.mxu0 %v17885_v34  ;;  %8165 = vmatprep.mubr.f32.mxu0 %v19620_v4  ;;  %v18127_v34 = vld [vmem:[%s15898_s19 + $0x768] sm:$0xff] }
 0x215   : > { %8225 = vmatpush1.msra.mxu1 %v17890_v5  ;;  %14960 = vmatmul.mubr.msk.f32.vlgmr.msra.gmra.mxu0 %vm235_vm1, %v18106_v3  ;;  %v5170_v32 = vpop.f32.mrf.mxu0 }
 0x216   : > { %8258 = vmatprep.mubr.f32.mxu1 %v19620_v4  ;;  %14986 = vmatprep.subr.msk.mxu0 %vm239_vm0, %v14985_v54  ;;  %v5175_v31 = vadd.f32 %v5170_v32, %v5082_v27  ;;  %v18159_v54 = vld [vmem:[%s15898_s19 + $0x738] sm:$0xff]  ;;  %v18195_v27 = vld [vmem:[%s15898_s19 + $0xa88] sm:$0xff] }
 0x217   : > { %15000 = vmatprep.subr.msk.mxu1 %vm239_vm0, %v14999_v33  ;;  %14974 = vmatmul.mubr.msk.f32.vlgmr.msra.gmra.mxu1 %vm235_vm1, %v18117_v7  ;;  %v5264_v60 = vpop.f32.mrf.mxu1  ;;  %v5172_v48 = vpop.f32.mrf.mxu0  ;;  %19650 = vst [vmem:[#allocation9_spill] sm:$0xff] %v18159_v54  ;;  %v15012_v33 = vld [vmem:[%s15898_s19 + $0xa40] sm:$0xf]  ;;  %v18216_v32 = vld [vmem:[%s15898_s19 + $0xa68] sm:$0xff] }
 0x218   : > { %14987 = vmatpush1.msk.msra.mxu0 %vm239_vm0, %v14984_v56  ;;  %15001 = vmatpush1.msk.msra.mxu1 %vm239_vm0, %v14998_v0  ;;  %v5269_v1 = vadd.f32 %v5264_v60, %v5175_v31  ;;  %v5176_v21 = vadd.f32 %v5172_v48, %v5083_v46  ;;  %v18206_v56 = vld [vmem:[%s15898_s19 + $0xa78] sm:$0xff]  ;;  %v18211_v0 = vld [vmem:[%s15898_s19 + $0xa70] sm:$0xff]  ;;  %v18221_v46 = vld [vmem:[%s15898_s19 + $0xa60] sm:$0xff] }
 0x219   : > { %8311 = vmatprep.subr.mxu0 %v18127_v34  ;;  %8404 = vmatprep.subr.mxu1 %v17907_v43  ;;  %v5266_v62 = vpop.f32.mrf.mxu1  ;;  %v18154_v43 = vld [vmem:[%s15898_s19 + $0x740] sm:$0xff]  ;;  %v18226_v31 = vld [vmem:[%s15898_s19 + $0xa58] sm:$0xff]  ;;  %v18233_v60 = vld [vmem:[%s15898_s19 + $0xa50] sm:$0xff] }
 0x21a   : > { %8312 = vmatpush1.msra.mxu0 %v18133_v44  ;;  %8405 = vmatpush1.msra.mxu1 %v17914_v17  ;;  %v5271_v10 = vadd.f32 %v5269_v1, %v17087_v19  ;;  %v5270_v63 = vadd.f32 %v5266_v62, %v5176_v21  ;;  %v18238_v48 = vld [vmem:[%s19543_s1 + $0x38] sm:$0xff]  ;;  %v15042_v21 = vld [vmem:[%s15898_s19 + $0x408] sm:$0xf]  ;;  %v18249_v62 = vld [vmem:[%s19543_s1 + $0x40] sm:$0xff] }
 0x21b   : > { %8313 = vmatprep.subr.mxu0 %v18138_v6  ;;  %8406 = vmatprep.subr.mxu1 %v17920_v42  ;;  %v18166_v42 = vld [vmem:[%s15898_s19 + $0x730] sm:$0xff]  ;;  %v15053_v1 = vld [vmem:[%s15898_s19 + $0x458] sm:$0xf] }
 0x21c   : > { %8314 = vmatpush1.msra.mxu0 %v18143_v39  ;;  %8407 = vmatpush1.msra.mxu1 %v17926_v28  ;;  %14522 = vst [vmem:[%s17092_s11 + $0x50] sm:$0xff] %v5271_v10  ;;  %v5272_v17 = vadd.f32 %v5270_v63, %v17087_v19  ;;  %19651 = vst [vmem:[#allocation4_spill] sm:$0xff] %v18166_v42  ;;  %v18173_v28 = vld [vmem:[%s19543_s1 + $0x28] sm:$0xff]  ;;  %v15052_v10 = vld [vmem:[%s15898_s19 + $0x450] sm:$0xf] }
 0x21d   : > { %8315 = vmatprep.subr.mxu0 %v18148_v29  ;;  %8408 = vmatprep.subr.mxu1 %v17931_v15  ;;  %v15013_v15 = vld [vmem:[%s15898_s19 + $0xa48] sm:$0xf]  ;;  %v15041_v63 = vld [vmem:[%s15898_s19 + $0x400] sm:$0xf] }
 0x21e   : > { %8316 = vmatpush1.msra.mxu0 %v18154_v43  ;;  %8409 = vmatpush1.msra.mxu1 %v17938_v55  ;;  %14523 = vst [vmem:[%s17092_s11 + $0x58] sm:$0xff] %v5272_v17  ;;  %v18185_v55 = vld [vmem:[%s19543_s1 + $0x30] sm:$0xff]  ;;  %v19653_v17 = vld [vmem:[#allocation6_spill] sm:$0xff] }
 0x21f   : > { %8317 = vmatprep.subr.mxu0 %v18159_v54  ;;  %8410 = vmatprep.subr.mxu1 %v17943_v45  ;;  %v15026_v45 = vld [vmem:[%s15898_s19 + $0xa90] sm:$0xf] }
 0x220   : > { %8318 = vmatpush1.msra.mxu0 %v18166_v42  ;;  %8351 = vmatprep.mubr.f32.mxu0 %v19620_v4 }
 0x221   : > { %8411 = vmatpush1.msra.mxu1 %v17950_v36  ;;  %14988 = vmatmul.mubr.msk.f32.vlgmr.msra.gmra.mxu0 %vm235_vm1, %v18173_v28  ;;  %v18201_v36 = vld [vmem:[%s15898_s19 + $0xa80] sm:$0xff] }
 0x222   : > { %8444 = vmatprep.mubr.f32.mxu1 %v19620_v4  ;;  %15014 = vmatprep.subr.msk.mxu0 %vm239_vm0, %v15013_v15  ;;  %v15083_v15 = vld [vmem:[%s15898_s19 + $0x720] sm:$0xf] }
 0x223   : > { %15028 = vmatprep.subr.msk.mxu1 %vm239_vm0, %v15027_v57  ;;  %15002 = vmatmul.mubr.msk.f32.vlgmr.msra.gmra.mxu1 %vm235_vm1, %v18185_v55 }
 0x224   : > { %15015 = vmatpush1.msk.msra.mxu0 %vm239_vm0, %v15012_v33  ;;  %15029 = vmatpush1.msk.msra.mxu1 %vm239_vm0, %v15026_v45  ;;  %v19654_v33 = vld [vmem:[#allocation12_spill] sm:$0xff]  ;;  %v19655_v45 = vld [vmem:[#allocation2_spill] sm:$0xff] }
 0x225   : > { %8497 = vmatprep.subr.mxu0 %v17964_v49  ;;  %8591 = vmatprep.subr.mxu1 %v18195_v27 }
 0x226   : > { %8498 = vmatpush1.msra.mxu0 %v17970_v14  ;;  %8592 = vmatpush1.msra.mxu1 %v18201_v36 }
 0x227   : > { %8499 = vmatprep.subr.mxu0 %v17975_v26  ;;  %8593 = vmatprep.subr.mxu1 %v18206_v56 }
 0x228   : > { %8500 = vmatpush1.msra.mxu0 %v17980_v8  ;;  %8594 = vmatpush1.msra.mxu1 %v18211_v0 }
 0x229   : > { %8501 = vmatprep.subr.mxu0 %v17985_v37  ;;  %8595 = vmatprep.subr.mxu1 %v18216_v32 }
 0x22a   : > { %8502 = vmatpush1.msra.mxu0 %v17990_v41  ;;  %8596 = vmatpush1.msra.mxu1 %v18221_v46 }
 0x22b   : > { %8503 = vmatprep.subr.mxu0 %v17995_v16  ;;  %8597 = vmatprep.subr.mxu1 %v18226_v31 }
 0x22c   : > { %8504 = vmatpush1.msra.mxu0 %v18000_v12  ;;  %8537 = vmatprep.mubr.f32.mxu0 %v19620_v4 }
 0x22d   : > { %8598 = vmatpush1.msra.mxu1 %v18233_v60  ;;  %15016 = vmatmul.mubr.msk.f32.vlgmr.msra.gmra.mxu0 %vm235_vm1, %v18238_v48 }
 0x22e   : > { %8631 = vmatprep.mubr.f32.mxu1 %v19620_v4  ;;  %15054 = vmatprep.subr.msk.mxu0 %vm239_vm0, %v15053_v1  ;;  %v18290_v1 = vld [vmem:[%s15898_s19 + $0x498] sm:$0xff] }
 0x22f   : > { %15057 = vmatprep.subr.msk.mxu1 %vm239_vm0, %v15042_v21  ;;  %15030 = vmatmul.mubr.msk.f32.vlgmr.msra.gmra.mxu1 %vm235_vm1, %v18249_v62  ;;  %v18295_v21 = vld [vmem:[%s15898_s19 + $0x490] sm:$0xff] }
 0x230   : > { %15055 = vmatpush1.msk.msra.mxu0 %vm239_vm0, %v15052_v10  ;;  %15058 = vmatpush1.msk.msra.mxu1 %vm239_vm0, %v15041_v63  ;;  %v18300_v63 = vld [vmem:[%s15898_s19 + $0x488] sm:$0xff] }
 0x231   : > { %8700 = vmatprep.subr.mxu0 %v18023_v22  ;;  %8780 = vmatprep.subr.mxu1 %v17775_v59  ;;  %v5373_v59 = vpop.f32.mrf.mxu0 }
 0x232   : > { %8701 = vmatpush1.msra.mxu0 %v18029_v38  ;;  %8781 = vmatpush1.msra.mxu1 %v17781_v20  ;;  %v19652_v20 = vld [vmem:[#allocation11_spill] sm:$0xff] }
 0x233   : > { %8702 = vmatprep.subr.mxu0 %v18034_v13  ;;  %8782 = vmatprep.subr.mxu1 %v17787_v61  ;;  %v15070_v61 = vld [vmem:[%s15898_s19 + $0x4a8] sm:$0xf]  ;;  %v5375_v57 = vpop.f32.mrf.mxu0 }
 0x234   : > { %8703 = vmatpush1.msra.mxu0 %v18039_v9  ;;  %8783 = vmatpush1.msra.mxu1 %v17792_v24  ;;  %v15084_v24 = vld [vmem:[%s15898_s19 + $0x728] sm:$0xf] }
 0x235   : > { %8704 = vmatprep.subr.mxu0 %v18044_v25  ;;  %8784 = vmatprep.subr.mxu1 %v17797_v23  ;;  %v15069_v23 = vld [vmem:[%s15898_s19 + $0x4a0] sm:$0xf]  ;;  %v5545_v10 = vpop.f32.mrf.mxu0 }
 0x236   : > { %8705 = vmatpush1.msra.mxu0 %v18049_v30  ;;  %8785 = vmatpush1.msra.mxu1 %v17802_v2  ;;  %v5453_v2 = vpop.f32.mrf.mxu1 }
 0x237   : > { %8706 = vmatprep.subr.mxu0 %v18054_v18  ;;  %8786 = vmatprep.subr.mxu1 %v19652_v20  ;;  %v18305_v20 = vld [vmem:[%s15898_s19 + $0x480] sm:$0xff] }
 0x238   : > { %8707 = vmatpush1.msra.mxu0 %v18061_v51  ;;  %8740 = vmatprep.mubr.f32.mxu0 %v19620_v4 }
 0x239   : > { %8787 = vmatpush1.msra.mxu1 %v19653_v17  ;;  %8820 = vmatprep.mubr.f32.mxu1 %v19620_v4  ;;  %v5454_v17 = vadd.f32 %v5453_v2, %v5373_v59 }
 0x23a   : > { %15056 = vmatmul.mubr.msk.f32.vlgmr.msra.gmra.mxu0 %vm235_vm1, %v19654_v33  ;;  %15059 = vmatmul.mubr.msk.f32.vlgmr.msra.gmra.mxu1 %vm235_vm1, %v19655_v45  ;;  %v18320_v45 = vld [vmem:[%s15898_s19 + $0x468] sm:$0xff] }
 0x23b   : > { %15071 = vmatprep.subr.msk.mxu0 %vm239_vm0, %v15070_v61  ;;  %15085 = vmatprep.subr.msk.mxu1 %vm239_vm0, %v15084_v24  ;;  %v5455_v61 = vpop.f32.mrf.mxu1  ;;  %v18310_v24 = vld [vmem:[%s15898_s19 + $0x478] sm:$0xff]  ;;  %19656 = vst [vmem:[#allocation5_spill] sm:$0xff] %v18320_v45  ;;  %v5550_v51 = vadd.f32 %v5545_v10, %v5454_v17 }
 0x23c   : > { %15072 = vmatpush1.msk.msra.mxu0 %vm239_vm0, %v15069_v23  ;;  %15086 = vmatpush1.msk.msra.mxu1 %vm239_vm0, %v15083_v15  ;;  %v18315_v23 = vld [vmem:[%s15898_s19 + $0x470] sm:$0xff] }
 0x23d   : > { %8871 = vmatprep.subr.mxu0 %v18290_v1  ;;  %8964 = vmatprep.subr.mxu1 %v17831_v52  ;;  %v5638_v15 = vpop.f32.mrf.mxu1  ;;  %v5547_v52 = vpop.f32.mrf.mxu0 }
 0x23e   : > { %8872 = vmatpush1.msra.mxu0 %v18295_v21  ;;  %8965 = vmatpush1.msra.mxu1 %v17840_v35  ;;  %v5456_v35 = vadd.f32 %v5455_v61, %v5375_v57  ;;  %v5643_v10 = vadd.f32 %v5638_v15, %v5550_v51  ;;  %v15111_v61 = vld [vmem:[%s15898_s19 + $0x7c0] sm:$0xf] }
 0x23f   : > { %8873 = vmatprep.subr.mxu0 %v18300_v63  ;;  %8966 = vmatprep.subr.mxu1 %v17848_v53  ;;  %v18325_v53 = vld [vmem:[%s15898_s19 + $0x460] sm:$0xff]  ;;  %v5731_v59 = vpop.f32.mrf.mxu0  ;;  %v5640_v57 = vpop.f32.mrf.mxu1 }
 0x240   : > { %8874 = vmatpush1.msra.mxu0 %v18305_v20  ;;  %8967 = vmatpush1.msra.mxu1 %v17856_v50  ;;  %19657 = vst [vmem:[#allocation11_spill] sm:$0xff] %v18325_v53  ;;  %v5551_v2 = vadd.f32 %v5547_v52, %v5456_v35  ;;  %v15098_v50 = vld [vmem:[%s15898_s19 + $0x778] sm:$0xf]  ;;  %v5736_v51 = vadd.f32 %v5731_v59, %v5643_v10  ;;  %v18359_v59 = vld [vmem:[%s15898_s19 + $0x7a0] sm:$0xff]  ;;  %v18369_v10 = vld [vmem:[%s15898_s19 + $0x790] sm:$0xff] }
 0x241   : > { %8875 = vmatprep.subr.mxu0 %v18310_v24  ;;  %8968 = vmatprep.subr.mxu1 %v17864_v40  ;;  %v15112_v40 = vld [vmem:[%s15898_s19 + $0x7c8] sm:$0xf]  ;;  %v5825_v17 = vpop.f32.mrf.mxu1  ;;  %v5733_v52 = vpop.f32.mrf.mxu0  ;;  %19658 = vst [vmem:[#allocation6_spill] sm:$0xff] %v18359_v59 }
 0x242   : > { %8876 = vmatpush1.msra.mxu0 %v18315_v23  ;;  %8969 = vmatpush1.msra.mxu1 %v17872_v11  ;;  %v15097_v11 = vld [vmem:[%s15898_s19 + $0x770] sm:$0xf]  ;;  %v5644_v35 = vadd.f32 %v5640_v57, %v5551_v2  ;;  %v18364_v57 = vld [vmem:[%s15898_s19 + $0x798] sm:$0xff] }
 0x243   : > { %8877 = vmatprep.subr.mxu0 %v18320_v45  ;;  %8970 = vmatprep.subr.mxu1 %v17880_v58  ;;  %v18343_v58 = vld [vmem:[%s15898_s19 + $0x7b8] sm:$0xff]  ;;  %v5827_v2 = vpop.f32.mrf.mxu1 }
 0x244   : > { %8878 = vmatpush1.msra.mxu0 %v18325_v53  ;;  %8911 = vmatprep.mubr.f32.mxu0 %v19620_v4 }
 0x245   : > { %8971 = vmatpush1.msra.mxu1 %v17890_v5  ;;  %15073 = vmatmul.mubr.msk.f32.vlgmr.msra.gmra.mxu0 %vm235_vm1, %v18077_v47  ;;  %v18349_v5 = vld [vmem:[%s15898_s19 + $0x7b0] sm:$0xff]  ;;  %v5918_v15 = vpop.f32.mrf.mxu0  ;;  %v18354_v47 = vld [vmem:[%s15898_s19 + $0x7a8] sm:$0xff] }
 0x246   : > { %9004 = vmatprep.mubr.f32.mxu1 %v19620_v4  ;;  %15099 = vmatprep.subr.msk.mxu0 %vm239_vm0, %v15098_v50  ;;  %v5737_v50 = vadd.f32 %v5733_v52, %v5644_v35  ;;  %v18374_v52 = vld [vmem:[%s15898_s19 + $0x788] sm:$0xff] }
 0x247   : > { %15113 = vmatprep.subr.msk.mxu1 %vm239_vm0, %v15112_v40  ;;  %15087 = vmatmul.mubr.msk.f32.vlgmr.msra.gmra.mxu1 %vm235_vm1, %v18106_v3  ;;  %v5830_v40 = vadd.f32 %v5825_v17, %v5736_v51  ;;  %19659 = vst [vmem:[#allocation12_spill] sm:$0xff] %v18374_v52  ;;  %v18381_v17 = vld [vmem:[%s15898_s19 + $0x780] sm:$0xff] }
 0x248   : > { %15100 = vmatpush1.msk.msra.mxu0 %vm239_vm0, %v15097_v11  ;;  %15114 = vmatpush1.msk.msra.mxu1 %vm239_vm0, %v15111_v61  ;;  %v6011_v11 = vpop.f32.mrf.mxu1  ;;  %v5920_v61 = vpop.f32.mrf.mxu0  ;;  %v5831_v35 = vadd.f32 %v5827_v2, %v5737_v50  ;;  %v14778_v2 = vld [vmem:[%s19544_s2 + $0x8] sm:$0xff] }
 0x249   : > { %9057 = vmatprep.subr.mxu0 %v18127_v34  ;;  %9150 = vmatprep.subr.mxu1 %v18343_v58  ;;  %v5923_v3 = vadd.f32 %v5918_v15, %v5830_v40  ;;  %v15140_v15 = vld [vmem:[%s15898_s19 + $0xa98] sm:$0xf] }
 0x24a   : > { %9058 = vmatpush1.msra.mxu0 %v18133_v44  ;;  %9151 = vmatpush1.msra.mxu1 %v18349_v5  ;;  %v5924_v51 = vadd.f32 %v5920_v61, %v5831_v35  ;;  %v6013_v50 = vpop.f32.mrf.mxu1  ;;  %v15125_v61 = vld [vmem:[%s15898_s19 + $0xa40] sm:$0xf] }
 0x24b   : > { %9059 = vmatprep.subr.mxu0 %v18138_v6  ;;  %9152 = vmatprep.subr.mxu1 %v18354_v47  ;;  %v6016_v40 = vadd.f32 %v6011_v11, %v5923_v3 }
 0x24c   : > { %9060 = vmatpush1.msra.mxu0 %v18143_v39  ;;  %9153 = vmatpush1.msra.mxu1 %v18359_v59  ;;  %v15126_v59 = vld [vmem:[%s15898_s19 + $0xa48] sm:$0xf] }
 0x24d   : > { %9061 = vmatprep.subr.mxu0 %v18148_v29  ;;  %9154 = vmatprep.subr.mxu1 %v18364_v57 }
 0x24e   : > { %9062 = vmatpush1.msra.mxu0 %v18154_v43  ;;  %9155 = vmatpush1.msra.mxu1 %v18369_v10 }
 0x24f   : > { %9063 = vmatprep.subr.mxu0 %v18159_v54  ;;  %9156 = vmatprep.subr.mxu1 %v18374_v52  ;;  %v6017_v52 = vadd.f32 %v6013_v50, %v5924_v51  ;;  %v15169_v51 = vld [vmem:[%s15898_s19 + $0x458] sm:$0xf] }
 0x250   : > { %9064 = vmatpush1.msra.mxu0 %v18166_v42  ;;  %9097 = vmatprep.mubr.f32.mxu0 %v19620_v4  ;;  %v15139_v42 = vld [vmem:[%s15898_s19 + $0xa90] sm:$0xf]  ;;  %v15197_v50 = vld [vmem:[%s15898_s19 + $0x4f8] sm:$0xf] }
 0x251   : > { %9157 = vmatpush1.msra.mxu1 %v18381_v17  ;;  %15101 = vmatmul.mubr.msk.f32.vlgmr.msra.gmra.mxu0 %vm235_vm1, %v18117_v7  ;;  %v6105_v35 = vpop.f32.mrf.mxu0 }
 0x252   : > { %9190 = vmatprep.mubr.f32.mxu1 %v19620_v4  ;;  %15127 = vmatprep.subr.msk.mxu0 %vm239_vm0, %v15126_v59  ;;  %v6110_v54 = vadd.f32 %v6105_v35, %v6016_v40  ;;  %v15196_v40 = vld [vmem:[%s15898_s19 + $0x4f0] sm:$0xf] }
 0x253   : > { %15141 = vmatprep.subr.msk.mxu1 %vm239_vm0, %v15140_v15  ;;  %7798 = vperm.xlu0 %15825, %v14778_v2   ;;  %v6107_v3 = vpop.f32.mrf.mxu0  ;;  %v15168_v15 = vld [vmem:[%s15898_s19 + $0x450] sm:$0xf]  ;;  %v6214_v2 = vpop.f32.mrf.mxu1 }
 0x254   : > { %15115 = vmatmul.mubr.msk.f32.vlgmr.msra.gmra.mxu1 %vm235_vm1, %v18173_v28  ;;  %15128 = vmatpush1.msk.msra.mxu0 %vm239_vm0, %v15125_v61  ;;  %v6112_v11 = vadd.f32 %v6110_v54, %v17087_v19  ;;  %v6111_v7 = vadd.f32 %v6107_v3, %v6017_v52  ;;  %v18459_v54 = vld [vmem:[%s15898_s19 + $0xab0] sm:$0xff]  ;;  %v18469_v52 = vld [vmem:[%s15898_s19 + $0xaa0] sm:$0xff]  ;;  %v18489_v61 = vld [vmem:[%s15898_s19 + $0x4e8] sm:$0xff] }
 0x255   : > { %15142 = vmatpush1.msk.msra.mxu1 %vm239_vm0, %v15139_v42  ;;  %9243 = vmatprep.subr.mxu0 %v17964_v49  ;;  %v15154_v49 = vld [vmem:[%s15898_s19 + $0xae8] sm:$0xf]  ;;  %v18495_v3 = vld [vmem:[%s15898_s19 + $0x4e0] sm:$0xff] }
 0x256   : > { %9336 = vmatprep.subr.mxu1 %v18195_v27  ;;  %9244 = vmatpush1.msra.mxu0 %v17970_v14  ;;  %14649 = vst [vmem:[%s17092_s11 + $0x60] sm:$0xff] %v6112_v11  ;;  %v6113_v59 = vadd.f32 %v6111_v7, %v17087_v19  ;;  %v15180_v14 = vld [vmem:[%s15898_s19 + $0x4a8] sm:$0xf]  ;;  %v18454_v7 = vld [vmem:[%s15898_s19 + $0xab8] sm:$0xff] }
 0x257   : > { %9337 = vmatpush1.msra.mxu1 %v18201_v36  ;;  %9245 = vmatprep.subr.mxu0 %v17975_v26  ;;  %v15153_v26 = vld [vmem:[%s15898_s19 + $0xae0] sm:$0xf]  ;;  %v18464_v42 = vld [vmem:[%s15898_s19 + $0xaa8] sm:$0xff]  ;;  %v18500_v11 = vld [vmem:[%s15898_s19 + $0x4d8] sm:$0xff] }
 0x258   : > { %9338 = vmatprep.subr.mxu1 %v18206_v56  ;;  %9246 = vmatpush1.msra.mxu0 %v17980_v8  ;;  %14650 = vst [vmem:[%s17092_s11 + $0x68] sm:$0xff] %v6113_v59  ;;  %v15179_v8 = vld [vmem:[%s15898_s19 + $0x4a0] sm:$0xf]  ;;  %v6216_v59 = vpop.f32.mrf.mxu1 }
 0x259   : > { %9339 = vmatpush1.msra.mxu1 %v18211_v0  ;;  %9247 = vmatprep.subr.mxu0 %v17985_v37  ;;  %v18433_v37 = vld [vmem:[%s15898_s19 + $0xad8] sm:$0xff] }
 0x25a   : > { %9340 = vmatprep.subr.mxu1 %v18216_v32  ;;  %9248 = vmatpush1.msra.mxu0 %v17990_v41  ;;  %v18438_v41 = vld [vmem:[%s15898_s19 + $0xad0] sm:$0xff] }
 0x25b   : > { %9341 = vmatpush1.msra.mxu1 %v18221_v46  ;;  %9249 = vmatprep.subr.mxu0 %v17995_v16  ;;  %v18444_v16 = vld [vmem:[%s15898_s19 + $0xac8] sm:$0xff] }
 0x25c   : > { %9342 = vmatprep.subr.mxu1 %v18226_v31  ;;  %9250 = vmatpush1.msra.mxu0 %v18000_v12  ;;  %v18449_v12 = vld [vmem:[%s15898_s19 + $0xac0] sm:$0xff] }
 0x25d   : > { %9283 = vmatprep.mubr.f32.mxu0 %v19620_v4  ;;  %9343 = vmatpush1.msra.mxu1 %v18233_v60  ;;  %v6294_v35 = vpop.f32.mrf.mxu0 }
 0x25e   : > { %15129 = vmatmul.mubr.msk.f32.vlgmr.msra.gmra.mxu0 %vm235_vm1, %v18185_v55  ;;  %9376 = vmatprep.mubr.f32.mxu1 %v19620_v4 }
 0x25f   : > { %15155 = vmatprep.subr.msk.mxu0 %vm239_vm0, %v15154_v49  ;;  %15181 = vmatprep.subr.msk.mxu1 %vm239_vm0, %v15180_v14  ;;  %v18505_v49 = vld [vmem:[%s15898_s19 + $0x4d0] sm:$0xff]  ;;  %v6386_v14 = vpop.f32.mrf.mxu1 }
 0x260   : > { %15143 = vmatmul.mubr.msk.f32.vlgmr.msra.gmra.mxu1 %vm235_vm1, %v18238_v48  ;;  %15156 = vmatpush1.msk.msra.mxu0 %vm239_vm0, %v15153_v26  ;;  %v6296_v26 = vpop.f32.mrf.mxu0 }
 0x261   : > { %15182 = vmatpush1.msk.msra.mxu1 %vm239_vm0, %v15179_v8  ;;  %9430 = vmatprep.subr.mxu0 %v18433_v37  ;;  %v18520_v8 = vld [vmem:[%s15898_s19 + $0x4b8] sm:$0xff] }
 0x262   : > { %9539 = vmatprep.subr.mxu1 %v18290_v1  ;;  %9431 = vmatpush1.msra.mxu0 %v18438_v41 }
 0x263   : > { %9540 = vmatpush1.msra.mxu1 %v18295_v21  ;;  %9432 = vmatprep.subr.mxu0 %v18444_v16 }
 0x264   : > { %9541 = vmatprep.subr.mxu1 %v18300_v63  ;;  %9433 = vmatpush1.msra.mxu0 %v18449_v12 }
 0x265   : > { %9542 = vmatpush1.msra.mxu1 %v18305_v20  ;;  %9434 = vmatprep.subr.mxu0 %v18454_v7 }
 0x266   : > { %9543 = vmatprep.subr.mxu1 %v18310_v24  ;;  %9435 = vmatpush1.msra.mxu0 %v18459_v54 }
 0x267   : > { %9544 = vmatpush1.msra.mxu1 %v18315_v23  ;;  %9436 = vmatprep.subr.mxu0 %v18464_v42 }
 0x268   : > { %9545 = vmatprep.subr.mxu1 %v18320_v45  ;;  %9437 = vmatpush1.msra.mxu0 %v18469_v52 }
 0x269   : > { %9470 = vmatprep.mubr.f32.mxu0 %v19620_v4  ;;  %9546 = vmatpush1.msra.mxu1 %v18325_v53 }
 0x26a   : > { %15157 = vmatmul.mubr.msk.f32.vlgmr.msra.gmra.mxu0 %vm235_vm1, %v18249_v62  ;;  %9579 = vmatprep.mubr.f32.mxu1 %v19620_v4 }
 0x26b   : > { %15184 = vmatprep.subr.msk.mxu0 %vm239_vm0, %v15169_v51  ;;  %15198 = vmatprep.subr.msk.mxu1 %vm239_vm0, %v15197_v50  ;;  %v18525_v51 = vld [vmem:[%s15898_s19 + $0x4b0] sm:$0xff]  ;;  %v6388_v50 = vpop.f32.mrf.mxu1 }
 0x26c   : > { %15183 = vmatmul.mubr.msk.f32.vlgmr.msra.gmra.mxu1 %vm235_vm1, %v19654_v33  ;;  %15185 = vmatpush1.msk.msra.mxu0 %vm239_vm0, %v15168_v15  ;;  %v18510_v33 = vld [vmem:[%s15898_s19 + $0x4c8] sm:$0xff]  ;;  %v15211_v15 = vld [vmem:[%s15898_s19 + $0x778] sm:$0xf] }
 0x26d   : > { %15199 = vmatpush1.msk.msra.mxu1 %vm239_vm0, %v15196_v40  ;;  %9619 = vmatprep.subr.mxu0 %v18023_v22  ;;  %v18515_v22 = vld [vmem:[%s15898_s19 + $0x4c0] sm:$0xff] }
 0x26e   : > { %9710 = vmatprep.subr.mxu1 %v18489_v61  ;;  %9620 = vmatpush1.msra.mxu0 %v18029_v38  ;;  %v6295_v38 = vadd.f32 %v6294_v35, %v6214_v2  ;;  %v15225_v2 = vld [vmem:[%s15898_s19 + $0x7c8] sm:$0xf]  ;;  %v6572_v35 = vpop.f32.mrf.mxu1 }
 0x26f   : > { %9711 = vmatpush1.msra.mxu1 %v18495_v3  ;;  %9621 = vmatprep.subr.mxu0 %v18034_v13  ;;  %v6479_v13 = vpop.f32.mrf.mxu0 }
 0x270   : > { %9712 = vmatprep.subr.mxu1 %v18500_v11  ;;  %9622 = vmatpush1.msra.mxu0 %v18039_v9  ;;  %v6297_v9 = vadd.f32 %v6296_v26, %v6216_v59  ;;  %v6391_v40 = vadd.f32 %v6386_v14, %v6295_v38  ;;  %v19661_v26 = vld [vmem:[#allocation2_spill] sm:$0xff]  ;;  %v19662_v38 = vld [vmem:[#allocation3_spill] sm:$0xff] }
 0x271   : > { %9713 = vmatpush1.msra.mxu1 %v18505_v49  ;;  %9623 = vmatprep.subr.mxu0 %v18044_v25  ;;  %v19660_v25 = vld [vmem:[#allocation7_spill] sm:$0xff]  ;;  %v6481_v59 = vpop.f32.mrf.mxu0 }
 0x272   : > { %9714 = vmatprep.subr.mxu1 %v18510_v33  ;;  %9624 = vmatpush1.msra.mxu0 %v18049_v30  ;;  %v15210_v30 = vld [vmem:[%s15898_s19 + $0x770] sm:$0xf]  ;;  %v6392_v53 = vadd.f32 %v6388_v50, %v6297_v9  ;;  %v6484_v45 = vadd.f32 %v6479_v13, %v6391_v40  ;;  %v15239_v40 = vld [vmem:[%s15898_s19 + $0x818] sm:$0xf] }
 0x273   : > { %9715 = vmatpush1.msra.mxu1 %v18515_v22  ;;  %9625 = vmatprep.subr.mxu0 %v18054_v18  ;;  %v15224_v18 = vld [vmem:[%s15898_s19 + $0x7c0] sm:$0xf] }
 0x274   : > { %9716 = vmatprep.subr.mxu1 %v18520_v8  ;;  %9626 = vmatpush1.msra.mxu0 %v19660_v25  ;;  %v6485_v25 = vadd.f32 %v6481_v59, %v6392_v53  ;;  %v6577_v13 = vadd.f32 %v6572_v35, %v6484_v45  ;;  %v19667_v59 = vld [vmem:[#allocation8_spill] sm:$0xff] }
 0x275   : > { %9659 = vmatprep.mubr.f32.mxu0 %v19620_v4  ;;  %9717 = vmatpush1.msra.mxu1 %v18525_v51  ;;  %v6666_v14 = vpop.f32.mrf.mxu0 }
 0x276   : > { %15186 = vmatmul.mubr.msk.f32.vlgmr.msra.gmra.mxu0 %vm235_vm1, %v19661_v26  ;;  %9750 = vmatprep.mubr.f32.mxu1 %v19620_v4  ;;  %v6574_v26 = vpop.f32.mrf.mxu1 }
 0x277   : > { %15212 = vmatprep.subr.msk.mxu0 %vm239_vm0, %v15211_v15  ;;  %15226 = vmatprep.subr.msk.mxu1 %vm239_vm0, %v15225_v2  ;;  %v6668_v50 = vpop.f32.mrf.mxu0  ;;  %v6578_v53 = vadd.f32 %v6574_v26, %v6485_v25  ;;  %v19663_v15 = vld [vmem:[#allocation6_spill] sm:$0xff]  ;;  %v19666_v2 = vld [vmem:[#allocation4_spill] sm:$0xff] }
 0x278   : > { %15200 = vmatmul.mubr.msk.f32.vlgmr.msra.gmra.mxu1 %vm235_vm1, %v19662_v38  ;;  %15213 = vmatpush1.msk.msra.mxu0 %vm239_vm0, %v15210_v30  ;;  %v6759_v9 = vpop.f32.mrf.mxu1  ;;  %v15253_v30 = vld [vmem:[%s15898_s19 + $0xa98] sm:$0xf]  ;;  %v18576_v26 = vld [vmem:[%s15898_s19 + $0x800] sm:$0xff] }
 0x279   : > { %15227 = vmatpush1.msk.msra.mxu1 %vm239_vm0, %v15224_v18  ;;  %9803 = vmatprep.subr.mxu0 %v18127_v34  ;;  %v6671_v34 = vadd.f32 %v6666_v14, %v6577_v13  ;;  %v15252_v18 = vld [vmem:[%s15898_s19 + $0xa90] sm:$0xf]  ;;  %v18571_v14 = vld [vmem:[%s15898_s19 + $0x808] sm:$0xff] }
 0x27a   : > { %9896 = vmatprep.subr.mxu1 %v18343_v58  ;;  %9804 = vmatpush1.msra.mxu0 %v18133_v44  ;;  %v6672_v44 = vadd.f32 %v6668_v50, %v6578_v53  ;;  %v6761_v45 = vpop.f32.mrf.mxu1  ;;  %v19668_v50 = vld [vmem:[#allocation10_spill] sm:$0xff]  ;;  %v18582_v53 = vld [vmem:[%s15898_s19 + $0x7f8] sm:$0xff] }
 0x27b   : > { %9897 = vmatpush1.msra.mxu1 %v18349_v5  ;;  %9805 = vmatprep.subr.mxu0 %v18138_v6  ;;  %v19664_v6 = vld [vmem:[#allocation9_spill] sm:$0xff] }
 0x27c   : > { %9898 = vmatprep.subr.mxu1 %v18354_v47  ;;  %9806 = vmatpush1.msra.mxu0 %v18143_v39  ;;  %v19665_v39 = vld [vmem:[#allocation12_spill] sm:$0xff]  ;;  %v6765_v38 = vadd.f32 %v6761_v45, %v6672_v44 }
 0x27d   : > { %9899 = vmatpush1.msra.mxu1 %v19663_v15  ;;  %9807 = vmatprep.subr.mxu0 %v18148_v29  ;;  %v6764_v29 = vadd.f32 %v6759_v9, %v6671_v34 }
 0x27e   : > { %9900 = vmatprep.subr.mxu1 %v18364_v57  ;;  %9808 = vmatpush1.msra.mxu0 %v18154_v43  ;;  %v15238_v43 = vld [vmem:[%s15898_s19 + $0x810] sm:$0xf] }
 0x27f   : > { %9901 = vmatpush1.msra.mxu1 %v18369_v10  ;;  %9809 = vmatprep.subr.mxu0 %v19664_v6  ;;  %v18587_v6 = vld [vmem:[%s15898_s19 + $0x7f0] sm:$0xff] }
 0x280   : > { %9902 = vmatprep.subr.mxu1 %v19665_v39  ;;  %9810 = vmatpush1.msra.mxu0 %v19666_v2  ;;  %v18592_v2 = vld [vmem:[%s15898_s19 + $0x7e8] sm:$0xff] }
 0x281   : > { %9843 = vmatprep.mubr.f32.mxu0 %v19620_v4  ;;  %9903 = vmatpush1.msra.mxu1 %v18381_v17  ;;  %v6852_v35 = vpop.f32.mrf.mxu0 }
 0x282   : > { %15214 = vmatmul.mubr.msk.f32.vlgmr.msra.gmra.mxu0 %vm235_vm1, %v19667_v59  ;;  %9936 = vmatprep.mubr.f32.mxu1 %v19620_v4  ;;  %v6857_v25 = vadd.f32 %v6852_v35, %v6764_v29  ;;  %v18598_v29 = vld [vmem:[%s15898_s19 + $0x7e0] sm:$0xff]  ;;  %v18662_v59 = vld [vmem:[%s15898_s19 + $0xaf8] sm:$0xff] }
 0x283   : > { %15240 = vmatprep.subr.msk.mxu0 %vm239_vm0, %v15239_v40  ;;  %15254 = vmatprep.subr.msk.mxu1 %vm239_vm0, %v15253_v30  ;;  %v6946_v13 = vpop.f32.mrf.mxu1  ;;  %v6854_v9 = vpop.f32.mrf.mxu0  ;;  %19669 = vst [vmem:[#allocation7_spill] sm:$0xff] %v18598_v29  ;;  %v18657_v35 = vld [vmem:[%s15898_s19 + $0xb00] sm:$0xff] }
 0x284   : > { %15228 = vmatmul.mubr.msk.f32.vlgmr.msra.gmra.mxu1 %vm235_vm1, %v19668_v50  ;;  %15241 = vmatpush1.msk.msra.mxu0 %vm239_vm0, %v15238_v43  ;;  %v6951_v34 = vadd.f32 %v6946_v13, %v6857_v25  ;;  %v6858_v44 = vadd.f32 %v6854_v9, %v6765_v38  ;;  %v15307_v38 = vld [vmem:[%s15898_s19 + $0x4f8] sm:$0xf]  ;;  %v15296_v25 = vld [vmem:[%s15898_s19 + $0x4a8] sm:$0xf]  ;;  %v15306_v13 = vld [vmem:[%s15898_s19 + $0x4f0] sm:$0xf] }
 0x285   : > { %15255 = vmatpush1.msk.msra.mxu1 %vm239_vm0, %v15252_v18  ;;  %9989 = vmatprep.subr.mxu0 %v18571_v14  ;;  %v6948_v45 = vpop.f32.mrf.mxu1  ;;  %v18667_v18 = vld [vmem:[%s15898_s19 + $0xaf0] sm:$0xff]  ;;  %v15295_v9 = vld [vmem:[%s15898_s19 + $0x4a0] sm:$0xf]  ;;  %v18723_v50 = vld [vmem:[%s15898_s19 + $0x538] sm:$0xff] }
 0x286   : > { %10082 = vmatprep.subr.mxu1 %v18195_v27  ;;  %9990 = vmatpush1.msra.mxu0 %v18576_v26  ;;  %v6953_v40 = vadd.f32 %v6951_v34, %v17087_v19  ;;  %v6952_v30 = vadd.f32 %v6948_v45, %v6858_v44  ;;  %v18603_v27 = vld [vmem:[%s15898_s19 + $0x7d8] sm:$0xff]  ;;  %v18729_v34 = vld [vmem:[%s15898_s19 + $0x530] sm:$0xff]  ;;  %v18734_v44 = vld [vmem:[%s15898_s19 + $0x528] sm:$0xff] }
 0x287   : > { %10083 = vmatpush1.msra.mxu1 %v18201_v36  ;;  %9991 = vmatprep.subr.mxu0 %v18582_v53  ;;  %19670 = vst [vmem:[#allocation2_spill] sm:$0xff] %v18603_v27  ;;  %v18610_v36 = vld [vmem:[%s15898_s19 + $0x7d0] sm:$0xff]  ;;  %v18739_v45 = vld [vmem:[%s15898_s19 + $0x520] sm:$0xff] }
 0x288   : > { %10084 = vmatprep.subr.mxu1 %v18206_v56  ;;  %9992 = vmatpush1.msra.mxu0 %v18587_v6  ;;  %14776 = vst [vmem:[%s17092_s11 + $0x70] sm:$0xff] %v6953_v40  ;;  %v6954_v43 = vadd.f32 %v6952_v30, %v17087_v19  ;;  %19671 = vst [vmem:[#allocation3_spill] sm:$0xff] %v18610_v36  ;;  %v15267_v19 = vld [vmem:[%s15898_s19 + $0xae8] sm:$0xf]  ;;  %v15281_v56 = vld [vmem:[%s15898_s19 + $0xb38] sm:$0xf] }
 0x289   : > { %10085 = vmatpush1.msra.mxu1 %v18211_v0  ;;  %9993 = vmatprep.subr.mxu0 %v18592_v2  ;;  %v15266_v0 = vld [vmem:[%s15898_s19 + $0xae0] sm:$0xf]  ;;  %v18744_v40 = vld [vmem:[%s15898_s19 + $0x518] sm:$0xff]  ;;  %v18749_v30 = vld [vmem:[%s15898_s19 + $0x510] sm:$0xff] }
 0x28a   : > { %10086 = vmatprep.subr.mxu1 %v18216_v32  ;;  %9994 = vmatpush1.msra.mxu0 %v18598_v29  ;;  %14777 = vst [vmem:[%s17092_s11 + $0x78] sm:$0xff] %v6954_v43  ;;  %v15280_v32 = vld [vmem:[%s15898_s19 + $0xb30] sm:$0xf]  ;;  %v18754_v43 = vld [vmem:[%s15898_s19 + $0x508] sm:$0xff] }
 0x28b   : > { %10087 = vmatpush1.msra.mxu1 %v18221_v46  ;;  %9995 = vmatprep.subr.mxu0 %v18603_v27  ;;  %v18631_v46 = vld [vmem:[%s15898_s19 + $0xb28] sm:$0xff]  ;;  %19675 = vst [vmem:[#allocation9_spill] sm:$0xff] %v18754_v43 }
 0x28c   : > { %10088 = vmatprep.subr.mxu1 %v18226_v31  ;;  %9996 = vmatpush1.msra.mxu0 %v18610_v36  ;;  %v18637_v31 = vld [vmem:[%s15898_s19 + $0xb20] sm:$0xff] }
 0x28d   : > { %10029 = vmatprep.mubr.f32.mxu0 %v19620_v4  ;;  %10089 = vmatpush1.msra.mxu1 %v18233_v60  ;;  %v18647_v60 = vld [vmem:[%s15898_s19 + $0xb10] sm:$0xff] }
 0x28e   : > { %15242 = vmatmul.mubr.msk.f32.vlgmr.msra.gmra.mxu0 %vm235_vm1, %v18173_v28  ;;  %10122 = vmatprep.mubr.f32.mxu1 %v19620_v4  ;;  %v18642_v28 = vld [vmem:[%s15898_s19 + $0xb18] sm:$0xff] }
 0x28f   : > { %15268 = vmatprep.subr.msk.mxu0 %vm239_vm0, %v15267_v19  ;;  %15282 = vmatprep.subr.msk.mxu1 %vm239_vm0, %v15281_v56  ;;  %v7057_v19 = vpop.f32.mrf.mxu0 }
 0x290   : > { %15256 = vmatmul.mubr.msk.f32.vlgmr.msra.gmra.mxu1 %vm235_vm1, %v18185_v55  ;;  %15269 = vmatpush1.msk.msra.mxu0 %vm239_vm0, %v15266_v0  ;;  %v18652_v55 = vld [vmem:[%s15898_s19 + $0xb08] sm:$0xff]  ;;  %v15351_v0 = vld [vmem:[%s15898_s19 + $0x810] sm:$0xf] }
 0x291   : > { %15283 = vmatpush1.msk.msra.mxu1 %vm239_vm0, %v15280_v32  ;;  %10175 = vmatprep.subr.mxu0 %v18433_v37  ;;  %v7059_v56 = vpop.f32.mrf.mxu0 }
 0x292   : > { %10269 = vmatprep.subr.mxu1 %v18631_v46  ;;  %10176 = vmatpush1.msra.mxu0 %v18438_v41 }
 0x293   : > { %10270 = vmatpush1.msra.mxu1 %v18637_v31  ;;  %10177 = vmatprep.subr.mxu0 %v18444_v16 }
 0x294   : > { %10271 = vmatprep.subr.mxu1 %v18642_v28  ;;  %10178 = vmatpush1.msra.mxu0 %v18449_v12 }
 0x295   : > { %10272 = vmatpush1.msra.mxu1 %v18647_v60  ;;  %10179 = vmatprep.subr.mxu0 %v18454_v7 }
 0x296   : > { %10273 = vmatprep.subr.mxu1 %v18652_v55  ;;  %10180 = vmatpush1.msra.mxu0 %v18459_v54 }
 0x297   : > { %10274 = vmatpush1.msra.mxu1 %v18657_v35  ;;  %10181 = vmatprep.subr.mxu0 %v18464_v42 }
 0x298   : > { %10275 = vmatprep.subr.mxu1 %v18662_v59  ;;  %10182 = vmatpush1.msra.mxu0 %v18469_v52 }
 0x299   : > { %10215 = vmatprep.mubr.f32.mxu0 %v19620_v4  ;;  %10276 = vmatpush1.msra.mxu1 %v18667_v18  ;;  %v7228_v32 = vpop.f32.mrf.mxu0 }
 0x29a   : > { %15270 = vmatmul.mubr.msk.f32.vlgmr.msra.gmra.mxu0 %vm235_vm1, %v18238_v48  ;;  %10309 = vmatprep.mubr.f32.mxu1 %v19620_v4  ;;  %v18704_v48 = vld [vmem:[%s19543_s1 + $0x8] sm:$0xff] }
 0x29b   : > { %15308 = vmatprep.subr.msk.mxu0 %vm239_vm0, %v15307_v38  ;;  %15311 = vmatprep.subr.msk.mxu1 %vm239_vm0, %v15296_v25  ;;  %19672 = vst [vmem:[#allocation6_spill] sm:$0xff] %v18704_v48  ;;  %v18795_v38 = vld [vmem:[%s15898_s19 + $0x850] sm:$0xff] }
 0x29c   : > { %15284 = vmatmul.mubr.msk.f32.vlgmr.msra.gmra.mxu1 %vm235_vm1, %v18249_v62  ;;  %15309 = vmatpush1.msk.msra.mxu0 %vm239_vm0, %v15306_v13  ;;  %v19673_v62 = vld [vmem:[#allocation5_spill] sm:$0xff]  ;;  %v18800_v13 = vld [vmem:[%s15898_s19 + $0x848] sm:$0xff] }
 0x29d   : > { %15312 = vmatpush1.msk.msra.mxu1 %vm239_vm0, %v15295_v9  ;;  %10378 = vmatprep.subr.mxu0 %v18489_v61  ;;  %v18805_v9 = vld [vmem:[%s15898_s19 + $0x840] sm:$0xff] }
 0x29e   : > { %10458 = vmatprep.subr.mxu1 %v18290_v1  ;;  %10379 = vmatpush1.msra.mxu0 %v18495_v3  ;;  %v18711_v1 = vld [vmem:[%s19543_s1] sm:$0xff] }
 0x29f   : > { %10459 = vmatpush1.msra.mxu1 %v18295_v21  ;;  %10380 = vmatprep.subr.mxu0 %v18500_v11  ;;  %v15324_v21 = vld [vmem:[%s15898_s19 + $0x548] sm:$0xf] }
 0x2a0   : > { %10460 = vmatprep.subr.mxu1 %v18300_v63  ;;  %10381 = vmatpush1.msra.mxu0 %v18505_v49  ;;  %v19674_v63 = vld [vmem:[#allocation11_spill] sm:$0xff] }
 0x2a1   : > { %10461 = vmatpush1.msra.mxu1 %v18305_v20  ;;  %10382 = vmatprep.subr.mxu0 %v18510_v33  ;;  %v15338_v20 = vld [vmem:[%s15898_s19 + $0x7c8] sm:$0xf] }
 0x2a2   : > { %10462 = vmatprep.subr.mxu1 %v18310_v24  ;;  %10383 = vmatpush1.msra.mxu0 %v18515_v22  ;;  %v15323_v24 = vld [vmem:[%s15898_s19 + $0x540] sm:$0xf] }
 0x2a3   : > { %10463 = vmatpush1.msra.mxu1 %v18315_v23  ;;  %10384 = vmatprep.subr.mxu0 %v18520_v8  ;;  %v15337_v23 = vld [vmem:[%s15898_s19 + $0x7c0] sm:$0xf] }
 0x2a4   : > { %10464 = vmatprep.subr.mxu1 %v19673_v62  ;;  %10385 = vmatpush1.msra.mxu0 %v18525_v51 }
 0x2a5   : > { %10418 = vmatprep.mubr.f32.mxu0 %v19620_v4  ;;  %10465 = vmatpush1.msra.mxu1 %v19674_v63 }
 0x2a6   : > { %10498 = vmatprep.mubr.f32.mxu1 %v19620_v4  ;;  %15310 = vmatmul.mubr.msk.f32.vlgmr.msra.gmra.mxu0 %vm235_vm1, %v18704_v48 }
 0x2a7   : > { %15313 = vmatmul.mubr.msk.f32.vlgmr.msra.gmra.mxu1 %vm235_vm1, %v18711_v1  ;;  %15325 = vmatprep.subr.msk.mxu0 %vm239_vm0, %v15324_v21  ;;  %v7230_v21 = vpop.f32.mrf.mxu0 }
 0x2a8   : > { %15339 = vmatprep.subr.msk.mxu1 %vm239_vm0, %v15338_v20  ;;  %15326 = vmatpush1.msk.msra.mxu0 %vm239_vm0, %v15323_v24  ;;  %v18810_v24 = vld [vmem:[%s15898_s19 + $0x838] sm:$0xff] }
 0x2a9   : > { %15340 = vmatpush1.msk.msra.mxu1 %vm239_vm0, %v15337_v23  ;;  %10549 = vmatprep.subr.mxu0 %v18723_v50  ;;  %v18815_v23 = vld [vmem:[%s15898_s19 + $0x830] sm:$0xff] }
 0x2aa   : > { %10642 = vmatprep.subr.mxu1 %v18343_v58  ;;  %10550 = vmatpush1.msra.mxu0 %v18729_v34  ;;  %v18759_v58 = vld [vmem:[%s15898_s19 + $0x500] sm:$0xff]  ;;  %19678 = vst [vmem:[#allocation8_spill] sm:$0xff] %v18815_v23 }
 0x2ab   : > { %10643 = vmatpush1.msra.mxu1 %v18349_v5  ;;  %10551 = vmatprep.subr.mxu0 %v18734_v44  ;;  %19676 = vst [vmem:[#allocation12_spill] sm:$0xff] %v18759_v58  ;;  %v15352_v5 = vld [vmem:[%s15898_s19 + $0x818] sm:$0xf] }
 0x2ac   : > { %10644 = vmatprep.subr.mxu1 %v18354_v47  ;;  %10552 = vmatpush1.msra.mxu0 %v18739_v45  ;;  %v18768_v47 = vld [vmem:[%s19543_s1 + $0x10] sm:$0xff] }
 0x2ad   : > { %10645 = vmatpush1.msra.mxu1 %v19663_v15  ;;  %10553 = vmatprep.subr.mxu0 %v18744_v40  ;;  %v15366_v15 = vld [vmem:[%s15898_s19 + $0x868] sm:$0xf] }
 0x2ae   : > { %10646 = vmatprep.subr.mxu1 %v18364_v57  ;;  %10554 = vmatpush1.msra.mxu0 %v18749_v30  ;;  %v7137_v57 = vpop.f32.mrf.mxu1 }
 0x2af   : > { %10647 = vmatpush1.msra.mxu1 %v18369_v10  ;;  %10555 = vmatprep.subr.mxu0 %v18754_v43  ;;  %v18779_v10 = vld [vmem:[%s19543_s1 + $0x18] sm:$0xff]  ;;  %v7138_v63 = vadd.f32 %v7137_v57, %v7057_v19  ;;  %v18820_v19 = vld [vmem:[%s15898_s19 + $0x828] sm:$0xff] }
 0x2b0   : > { %10648 = vmatprep.subr.mxu1 %v19665_v39  ;;  %10556 = vmatpush1.msra.mxu0 %v18759_v58  ;;  %19677 = vst [vmem:[#allocation4_spill] sm:$0xff] %v18779_v10  ;;  %v15365_v39 = vld [vmem:[%s15898_s19 + $0x860] sm:$0xf]  ;;  %v7139_v25 = vpop.f32.mrf.mxu1  ;;  %19679 = vst [vmem:[#allocation10_spill] sm:$0xff] %v18820_v19 }
 0x2b1   : > { %10589 = vmatprep.mubr.f32.mxu0 %v19620_v4  ;;  %10649 = vmatpush1.msra.mxu1 %v18381_v17  ;;  %v18789_v17 = vld [vmem:[%s15898_s19 + $0x858] sm:$0xff]  ;;  %v7140_v20 = vadd.f32 %v7139_v25, %v7059_v56  ;;  %v18825_v56 = vld [vmem:[%s15898_s19 + $0x820] sm:$0xff] }
 0x2b2   : > { %15327 = vmatmul.mubr.msk.f32.vlgmr.msra.gmra.mxu0 %vm235_vm1, %v18768_v47  ;;  %10682 = vmatprep.mubr.f32.mxu1 %v19620_v4  ;;  %v7321_v62 = vpop.f32.mrf.mxu1  ;;  %19680 = vst [vmem:[#allocation5_spill] sm:$0xff] %v18825_v56  ;;  %v15394_v25 = vld [vmem:[%s15898_s19 + $0xb38] sm:$0xf] }
 0x2b3   : > { %15353 = vmatprep.subr.msk.mxu0 %vm239_vm0, %v15352_v5  ;;  %15367 = vmatprep.subr.msk.mxu1 %vm239_vm0, %v15366_v15  ;;  %v7414_v5 = vpop.f32.mrf.mxu0  ;;  %v7233_v15 = vadd.f32 %v7228_v32, %v7138_v63  ;;  %v7234_v57 = vadd.f32 %v7230_v21, %v7140_v20  ;;  %v15380_v32 = vld [vmem:[%s15898_s19 + $0xae8] sm:$0xf] }
 0x2b4   : > { %15341 = vmatmul.mubr.msk.f32.vlgmr.msra.gmra.mxu1 %vm235_vm1, %v18779_v10  ;;  %15354 = vmatpush1.msk.msra.mxu0 %vm239_vm0, %v15351_v0  ;;  %v7323_v0 = vpop.f32.mrf.mxu1  ;;  %v18843_v20 = vld [vmem:[%s19543_s1 + $0x28] sm:$0xff]  ;;  %v15379_v10 = vld [vmem:[%s15898_s19 + $0xae0] sm:$0xf] }
 0x2b5   : > { %15368 = vmatpush1.msk.msra.mxu1 %vm239_vm0, %v15365_v39  ;;  %10735 = vmatprep.subr.mxu0 %v18571_v14  ;;  %v18832_v39 = vld [vmem:[%s19543_s1 + $0x20] sm:$0xff]  ;;  %v7416_v63 = vpop.f32.mrf.mxu0 }
 0x2b6   : > { %10828 = vmatprep.subr.mxu1 %v18789_v17  ;;  %10736 = vmatpush1.msra.mxu0 %v18576_v26  ;;  %v7507_v21 = vpop.f32.mrf.mxu1 }
 0x2b7   : > { %10829 = vmatpush1.msra.mxu1 %v18795_v38  ;;  %10737 = vmatprep.subr.mxu0 %v18582_v53 }
 0x2b8   : > { %10830 = vmatprep.subr.mxu1 %v18800_v13  ;;  %10738 = vmatpush1.msra.mxu0 %v18587_v6 }
 0x2b9   : > { %10831 = vmatpush1.msra.mxu1 %v18805_v9  ;;  %10739 = vmatprep.subr.mxu0 %v18592_v2 }
 0x2ba   : > { %10832 = vmatprep.subr.mxu1 %v18810_v24  ;;  %10740 = vmatpush1.msra.mxu0 %v18598_v29 }
 0x2bb   : > { %10833 = vmatpush1.msra.mxu1 %v18815_v23  ;;  %10741 = vmatprep.subr.mxu0 %v18603_v27  ;;  %v7326_v27 = vadd.f32 %v7321_v62, %v7233_v15  ;;  %v7327_v23 = vadd.f32 %v7323_v0, %v7234_v57  ;;  %v7509_v62 = vpop.f32.mrf.mxu1  ;;  %v18896_v0 = vld [vmem:[%s15898_s19 + $0xb70] sm:$0xff] }
 0x2bc   : > { %10834 = vmatprep.subr.mxu1 %v18820_v19  ;;  %10742 = vmatpush1.msra.mxu0 %v18610_v36  ;;  %v15393_v36 = vld [vmem:[%s15898_s19 + $0xb30] sm:$0xf]  ;;  %v7601_v19 = vpop.f32.mrf.mxu0 }
 0x2bd   : > { %10775 = vmatprep.mubr.f32.mxu0 %v19620_v4  ;;  %10835 = vmatpush1.msra.mxu1 %v18825_v56  ;;  %v7419_v56 = vadd.f32 %v7414_v5, %v7326_v27  ;;  %v7420_v29 = vadd.f32 %v7416_v63, %v7327_v23  ;;  %v7695_v15 = vpop.f32.mrf.mxu1  ;;  %v18907_v63 = vld [vmem:[%s15898_s19 + $0xb60] sm:$0xff] }
 0x2be   : > { %15355 = vmatmul.mubr.msk.f32.vlgmr.msra.gmra.mxu0 %vm235_vm1, %v18832_v39  ;;  %10868 = vmatprep.mubr.f32.mxu1 %v19620_v4  ;;  %v7603_v57 = vpop.f32.mrf.mxu0 }
 0x2bf   : > { %15381 = vmatprep.subr.msk.mxu0 %vm239_vm0, %v15380_v32  ;;  %15395 = vmatprep.subr.msk.mxu1 %vm239_vm0, %v15394_v25  ;;  %v7512_v27 = vadd.f32 %v7507_v21, %v7419_v56  ;;  %v7513_v23 = vadd.f32 %v7509_v62, %v7420_v29  ;;  %v15434_v29 = vld [vmem:[%s15898_s19 + $0x548] sm:$0xf]  ;;  %v18891_v56 = vld [vmem:[%s15898_s19 + $0xb78] sm:$0xff] }
 0x2c0   : > { %15369 = vmatmul.mubr.msk.f32.vlgmr.msra.gmra.mxu1 %vm235_vm1, %v18843_v20  ;;  %15382 = vmatpush1.msk.msra.mxu0 %vm239_vm0, %v15379_v10  ;;  %v15407_v10 = vld [vmem:[%s15898_s19 + $0xb80] sm:$0xf]  ;;  %v18902_v21 = vld [vmem:[%s15898_s19 + $0xb68] sm:$0xff]  ;;  %v18912_v62 = vld [vmem:[%s15898_s19 + $0xb58] sm:$0xff] }
 0x2c1   : > { %15396 = vmatpush1.msk.msra.mxu1 %vm239_vm0, %v15393_v36  ;;  %10921 = vmatprep.subr.mxu0 %v18433_v37  ;;  %v7789_v36 = vpop.f32.mrf.mxu0  ;;  %v7606_v37 = vadd.f32 %v7601_v19, %v7512_v27 }
 0x2c2   : > { %11014 = vmatprep.subr.mxu1 %v18631_v46  ;;  %10922 = vmatpush1.msra.mxu0 %v18438_v41  ;;  %v7607_v41 = vadd.f32 %v7603_v57, %v7513_v23  ;;  %v18919_v57 = vld [vmem:[%s15898_s19 + $0xb50] sm:$0xff] }
 0x2c3   : > { %11015 = vmatpush1.msra.mxu1 %v18637_v31  ;;  %10923 = vmatprep.subr.mxu0 %v18444_v16  ;;  %v7697_v16 = vpop.f32.mrf.mxu1  ;;  %v7700_v5 = vadd.f32 %v7695_v15, %v7606_v37  ;;  %v18931_v37 = vld [vmem:[%s15898_s19 + $0xb40] sm:$0xff] }
 0x2c4   : > { %11016 = vmatprep.subr.mxu1 %v18642_v28  ;;  %10924 = vmatpush1.msra.mxu0 %v18449_v12  ;;  %v18872_v12 = vld [vmem:[%s19543_s1 + $0x30] sm:$0xff]  ;;  %v7701_v19 = vadd.f32 %v7697_v16, %v7607_v41  ;;  %v18942_v41 = vld [vmem:[%s19543_s1 + $0x40] sm:$0xff]  ;;  %v15423_v16 = vld [vmem:[%s15898_s19 + $0x4f8] sm:$0xf] }
 0x2c5   : > { %11017 = vmatpush1.msra.mxu1 %v18647_v60  ;;  %10925 = vmatprep.subr.mxu0 %v18454_v7  ;;  %v15408_v7 = vld [vmem:[%s15898_s19 + $0xb88] sm:$0xf]  ;;  %v7794_v32 = vadd.f32 %v7789_v36, %v7700_v5 }
 0x2c6   : > { %11018 = vmatprep.subr.mxu1 %v18652_v55  ;;  %10926 = vmatpush1.msra.mxu0 %v18459_v54  ;;  %v7791_v54 = vpop.f32.mrf.mxu0  ;;  %v18926_v36 = vld [vmem:[%s15898_s19 + $0xb48] sm:$0xff] }
 0x2c7   : > { %11019 = vmatpush1.msra.mxu1 %v18657_v35  ;;  %10927 = vmatprep.subr.mxu0 %v18464_v42  ;;  %v18883_v42 = vld [vmem:[%s19543_s1 + $0x38] sm:$0xff]  ;;  %v7795_v25 = vadd.f32 %v7791_v54, %v7701_v19  ;;  %v7903_v54 = vpop.f32.mrf.mxu1  ;;  %v18958_v5 = vld [vmem:[%s15898_s19 + $0x588] sm:$0xff] }
 0x2c8   : > { %11020 = vmatprep.subr.mxu1 %v18662_v59  ;;  %10928 = vmatpush1.msra.mxu0 %v18469_v52  ;;  %v15433_v52 = vld [vmem:[%s15898_s19 + $0x540] sm:$0xf] }
 0x2c9   : > { %10961 = vmatprep.mubr.f32.mxu0 %v19620_v4  ;;  %11021 = vmatpush1.msra.mxu1 %v18667_v18  ;;  %v7983_v19 = vpop.f32.mrf.mxu0 }
 0x2ca   : > { %15383 = vmatmul.mubr.msk.f32.vlgmr.msra.gmra.mxu0 %vm235_vm1, %v18872_v12  ;;  %11054 = vmatprep.mubr.f32.mxu1 %v19620_v4 }
 0x2cb   : > { %15409 = vmatprep.subr.msk.mxu0 %vm239_vm0, %v15408_v7  ;;  %15435 = vmatprep.subr.msk.mxu1 %vm239_vm0, %v15434_v29  ;;  %v15451_v7 = vld [vmem:[%s15898_s19 + $0x598] sm:$0xf]  ;;  %v15422_v29 = vld [vmem:[%s15898_s19 + $0x4f0] sm:$0xf] }
 0x2cc   : > { %15397 = vmatmul.mubr.msk.f32.vlgmr.msra.gmra.mxu1 %vm235_vm1, %v18883_v42  ;;  %15410 = vmatpush1.msk.msra.mxu0 %vm239_vm0, %v15407_v10  ;;  %v15450_v10 = vld [vmem:[%s15898_s19 + $0x590] sm:$0xf] }
 0x2cd   : > { %15436 = vmatpush1.msk.msra.mxu1 %vm239_vm0, %v15433_v52  ;;  %11108 = vmatprep.subr.mxu0 %v18891_v56  ;;  %v18964_v52 = vld [vmem:[%s15898_s19 + $0x580] sm:$0xff] }
 0x2ce   : > { %11217 = vmatprep.subr.mxu1 %v18723_v50  ;;  %11109 = vmatpush1.msra.mxu0 %v18896_v0  ;;  %v18914_v15 = vpop.permute.xlu0 %7798 }
 0x2cf   : > { %11218 = vmatpush1.msra.mxu1 %v18729_v34  ;;  %11110 = vmatprep.subr.mxu0 %v18902_v21  ;;  %v7801_v27 = vadd.f32 %v18914_v15, %v7794_v32  ;;  %v7802_v23 = vadd.f32 %v18914_v15, %v7795_v25  ;;  %v18969_v32 = vld [vmem:[%s15898_s19 + $0x578] sm:$0xff]  ;;  %v7905_v25 = vpop.f32.mrf.mxu1 }
 0x2d0   : > { %11219 = vmatprep.subr.mxu1 %v18734_v44  ;;  %11111 = vmatpush1.msra.mxu0 %v18907_v63 }
 0x2d1   : > { %11220 = vmatpush1.msra.mxu1 %v18739_v45  ;;  %11112 = vmatprep.subr.mxu0 %v18912_v62  ;;  %14904 = vst [vmem:[%s17092_s11 + $0x80] sm:$0xff] %v7801_v27  ;;  %14905 = vst [vmem:[%s17092_s11 + $0x88] sm:$0xff] %v7802_v23  ;;  %v18974_v27 = vld [vmem:[%s15898_s19 + $0x570] sm:$0xff]  ;;  %v18979_v23 = vld [vmem:[%s15898_s19 + $0x568] sm:$0xff] }
 0x2d2   : > { %11221 = vmatprep.subr.mxu1 %v18744_v40  ;;  %11113 = vmatpush1.msra.mxu0 %v18919_v57 }
 0x2d3   : > { %11222 = vmatpush1.msra.mxu1 %v18749_v30  ;;  %11114 = vmatprep.subr.mxu0 %v18926_v36 }
 0x2d4   : > { %11223 = vmatprep.subr.mxu1 %v18754_v43  ;;  %11115 = vmatpush1.msra.mxu0 %v18931_v37 }
 0x2d5   : > { %11148 = vmatprep.mubr.f32.mxu0 %v19620_v4  ;;  %11224 = vmatpush1.msra.mxu1 %v18759_v58 }
 0x2d6   : > { %15411 = vmatmul.mubr.msk.f32.vlgmr.msra.gmra.mxu0 %vm235_vm1, %v18942_v41  ;;  %11257 = vmatprep.mubr.f32.mxu1 %v19620_v4 }
 0x2d7   : > { %15438 = vmatprep.subr.msk.mxu0 %vm239_vm0, %v15423_v16  ;;  %15452 = vmatprep.subr.msk.mxu1 %vm239_vm0, %v15451_v7  ;;  %v8074_v16 = vpop.f32.mrf.mxu1  ;;  %v7985_v7 = vpop.f32.mrf.mxu0 }
 0x2d8   : > { %15437 = vmatmul.mubr.msk.f32.vlgmr.msra.gmra.mxu1 %vm235_vm1, %v18704_v48  ;;  %15439 = vmatpush1.msk.msra.mxu0 %vm239_vm0, %v15422_v29  ;;  %v18989_v29 = vld [vmem:[%s15898_s19 + $0x558] sm:$0xff] }
 0x2d9   : > { %15453 = vmatpush1.msk.msra.mxu1 %vm239_vm0, %v15450_v10  ;;  %11297 = vmatprep.subr.mxu0 %v18489_v61  ;;  %v18984_v61 = vld [vmem:[%s15898_s19 + $0x560] sm:$0xff]  ;;  %v18994_v10 = vld [vmem:[%s15898_s19 + $0x550] sm:$0xff] }
 0x2da   : > { %11388 = vmatprep.subr.mxu1 %v18958_v5  ;;  %11298 = vmatpush1.msra.mxu0 %v18495_v3  ;;  %v7984_v3 = vadd.f32 %v7983_v19, %v7903_v54  ;;  %19681 = vst [vmem:[#allocation11_spill] sm:$0xff] %v18994_v10  ;;  %v8076_v54 = vpop.f32.mrf.mxu1  ;;  %v15479_v19 = vld [vmem:[%s15898_s19 + $0x868] sm:$0xf] }
 0x2db   : > { %11389 = vmatpush1.msra.mxu1 %v18964_v52  ;;  %11299 = vmatprep.subr.mxu0 %v18500_v11  ;;  %v8167_v11 = vpop.f32.mrf.mxu0 }
 0x2dc   : > { %11390 = vmatprep.subr.mxu1 %v18969_v32  ;;  %11300 = vmatpush1.msra.mxu0 %v18505_v49  ;;  %v7986_v49 = vadd.f32 %v7985_v7, %v7905_v25  ;;  %v8079_v48 = vadd.f32 %v8074_v16, %v7984_v3  ;;  %v8260_v58 = vpop.f32.mrf.mxu1 }
 0x2dd   : > { %11391 = vmatpush1.msra.mxu1 %v18974_v27  ;;  %11301 = vmatprep.subr.mxu0 %v18510_v33  ;;  %v15465_v33 = vld [vmem:[%s15898_s19 + $0x818] sm:$0xf]  ;;  %v8169_v25 = vpop.f32.mrf.mxu0 }
 0x2de   : > { %11392 = vmatprep.subr.mxu1 %v18979_v23  ;;  %11302 = vmatpush1.msra.mxu0 %v18515_v22  ;;  %v15464_v22 = vld [vmem:[%s15898_s19 + $0x810] sm:$0xf]  ;;  %v8080_v7 = vadd.f32 %v8076_v54, %v7986_v49  ;;  %v8172_v43 = vadd.f32 %v8167_v11, %v8079_v48  ;;  %v8262_v3 = vpop.f32.mrf.mxu1 }
 0x2df   : > { %11393 = vmatpush1.msra.mxu1 %v18984_v61  ;;  %11303 = vmatprep.subr.mxu0 %v18520_v8  ;;  %v15478_v8 = vld [vmem:[%s15898_s19 + $0x860] sm:$0xf] }
 0x2e0   : > { %11394 = vmatprep.subr.mxu1 %v18989_v29  ;;  %11304 = vmatpush1.msra.mxu0 %v18525_v51  ;;  %v8173_v16 = vadd.f32 %v8169_v25, %v8080_v7  ;;  %v8265_v48 = vadd.f32 %v8260_v58, %v8172_v43  ;;  %v19683_v43 = vld [vmem:[#allocation8_spill] sm:$0xff]  ;;  %v19684_v58 = vld [vmem:[#allocation2_spill] sm:$0xff]  ;;  %v15507_v25 = vld [vmem:[%s15898_s19 + $0xb38] sm:$0xf] }
 0x2e1   : > { %11337 = vmatprep.mubr.f32.mxu0 %v19620_v4  ;;  %11395 = vmatpush1.msra.mxu1 %v18994_v10  ;;  %v8353_v51 = vpop.f32.mrf.mxu0  ;;  %v15492_v7 = vld [vmem:[%s15898_s19 + $0x8b0] sm:$0xf] }
 0x2e2   : > { %15440 = vmatmul.mubr.msk.f32.vlgmr.msra.gmra.mxu0 %vm235_vm1, %v18711_v1  ;;  %11428 = vmatprep.mubr.f32.mxu1 %v19620_v4  ;;  %v8266_v54 = vadd.f32 %v8262_v3, %v8173_v16  ;;  %v19688_v16 = vld [vmem:[#allocation4_spill] sm:$0xff] }
 0x2e3   : > { %15466 = vmatprep.subr.msk.mxu0 %vm239_vm0, %v15465_v33  ;;  %15480 = vmatprep.subr.msk.mxu1 %vm239_vm0, %v15479_v19  ;;  %v8446_v11 = vpop.f32.mrf.mxu1  ;;  %v8355_v49 = vpop.f32.mrf.mxu0  ;;  %v19686_v19 = vld [vmem:[#allocation3_spill] sm:$0xff]  ;;  %v15506_v3 = vld [vmem:[%s15898_s19 + $0xb30] sm:$0xf] }
 0x2e4   : > { %15454 = vmatmul.mubr.msk.f32.vlgmr.msra.gmra.mxu1 %vm235_vm1, %v18768_v47  ;;  %15467 = vmatpush1.msk.msra.mxu0 %vm239_vm0, %v15464_v22  ;;  %v15493_v22 = vld [vmem:[%s15898_s19 + $0x8b8] sm:$0xf] }
 0x2e5   : > { %15481 = vmatpush1.msk.msra.mxu1 %vm239_vm0, %v15478_v8  ;;  %11481 = vmatprep.subr.mxu0 %v18571_v14  ;;  %v8358_v14 = vadd.f32 %v8353_v51, %v8265_v48  ;;  %v8448_v33 = vpop.f32.mrf.mxu1  ;;  %v19687_v8 = vld [vmem:[#allocation5_spill] sm:$0xff]  ;;  %v19040_v48 = vld [vmem:[%s15898_s19 + $0x8a8] sm:$0xff] }
 0x2e6   : > { %11574 = vmatprep.subr.mxu1 %v18789_v17  ;;  %11482 = vmatpush1.msra.mxu0 %v18576_v26  ;;  %v19682_v26 = vld [vmem:[#allocation7_spill] sm:$0xff] }
 0x2e7   : > { %11575 = vmatpush1.msra.mxu1 %v18795_v38  ;;  %11483 = vmatprep.subr.mxu0 %v18582_v53  ;;  %v8359_v53 = vadd.f32 %v8355_v49, %v8266_v54 }
 0x2e8   : > { %11576 = vmatprep.subr.mxu1 %v18800_v13  ;;  %11484 = vmatpush1.msra.mxu0 %v18587_v6  ;;  %v19685_v6 = vld [vmem:[#allocation10_spill] sm:$0xff] }
 0x2e9   : > { %11577 = vmatpush1.msra.mxu1 %v18805_v9  ;;  %11485 = vmatprep.subr.mxu0 %v18592_v2  ;;  %v8451_v2 = vadd.f32 %v8446_v11, %v8358_v14  ;;  %v8452_v49 = vadd.f32 %v8448_v33, %v8359_v53  ;;  %v19045_v11 = vld [vmem:[%s15898_s19 + $0x8a0] sm:$0xff]  ;;  %v19056_v33 = vld [vmem:[%s15898_s19 + $0x890] sm:$0xff] }
 0x2ea   : > { %11578 = vmatprep.subr.mxu1 %v18810_v24  ;;  %11486 = vmatpush1.msra.mxu0 %v19682_v26 }
 0x2eb   : > { %11579 = vmatpush1.msra.mxu1 %v19683_v43  ;;  %11487 = vmatprep.subr.mxu0 %v19684_v58  ;;  %v19051_v58 = vld [vmem:[%s15898_s19 + $0x898] sm:$0xff] }
 0x2ec   : > { %11580 = vmatprep.subr.mxu1 %v19685_v6  ;;  %11488 = vmatpush1.msra.mxu0 %v19686_v19 }
 0x2ed   : > { %11521 = vmatprep.mubr.f32.mxu0 %v19620_v4  ;;  %11581 = vmatpush1.msra.mxu1 %v19687_v8  ;;  %v8539_v51 = vpop.f32.mrf.mxu0 }
 0x2ee   : > { %15468 = vmatmul.mubr.msk.f32.vlgmr.msra.gmra.mxu0 %vm235_vm1, %v19688_v16  ;;  %11614 = vmatprep.mubr.f32.mxu1 %v19620_v4  ;;  %v8544_v54 = vadd.f32 %v8539_v51, %v8451_v2  ;;  %v19067_v51 = vld [vmem:[%s15898_s19 + $0x880] sm:$0xff] }
 0x2ef   : > { %15494 = vmatprep.subr.msk.mxu0 %vm239_vm0, %v15493_v22  ;;  %15508 = vmatprep.subr.msk.mxu1 %vm239_vm0, %v15507_v25  ;;  %v8633_v14 = vpop.f32.mrf.mxu1  ;;  %v8541_v26 = vpop.f32.mrf.mxu0  ;;  %v19061_v25 = vld [vmem:[%s15898_s19 + $0x888] sm:$0xff] }
 0x2f0   : > { %15482 = vmatmul.mubr.msk.f32.vlgmr.msra.gmra.mxu1 %vm235_vm1, %v18832_v39  ;;  %15495 = vmatpush1.msk.msra.mxu0 %vm239_vm0, %v15492_v7  ;;  %v8638_v19 = vadd.f32 %v8633_v14, %v8544_v54  ;;  %v8545_v53 = vadd.f32 %v8541_v26, %v8452_v49  ;;  %19689 = vst [vmem:[#allocation7_spill] sm:$0xff] %v19061_v25  ;;  %v19111_v49 = vld [vmem:[%s15898_s19 + $0xbb8] sm:$0xff]  ;;  %v19116_v54 = vld [vmem:[%s15898_s19 + $0xbb0] sm:$0xff]  ;;  %v19121_v14 = vld [vmem:[%s15898_s19 + $0xba8] sm:$0xff] }
 0x2f1   : > { %15509 = vmatpush1.msk.msra.mxu1 %vm239_vm0, %v15506_v3  ;;  %11667 = vmatprep.subr.mxu0 %v19040_v48  ;;  %v8635_v22 = vpop.f32.mrf.mxu1  ;;  %v19126_v26 = vld [vmem:[%s15898_s19 + $0xba0] sm:$0xff] }
 0x2f2   : > { %11760 = vmatprep.subr.mxu1 %v18631_v46  ;;  %11668 = vmatpush1.msra.mxu0 %v19045_v11  ;;  %v8640_v2 = vadd.f32 %v8638_v19, %v18914_v15  ;;  %v8639_v7 = vadd.f32 %v8635_v22, %v8545_v53  ;;  %v19072_v46 = vld [vmem:[%s15898_s19 + $0x878] sm:$0xff]  ;;  %v19136_v53 = vld [vmem:[%s15898_s19 + $0xb90] sm:$0xff] }
 0x2f3   : > { %11761 = vmatpush1.msra.mxu1 %v18637_v31  ;;  %11669 = vmatprep.subr.mxu0 %v19051_v58  ;;  %v19079_v31 = vld [vmem:[%s15898_s19 + $0x870] sm:$0xff]  ;;  %v19131_v19 = vld [vmem:[%s15898_s19 + $0xb98] sm:$0xff] }
 0x2f4   : > { %11762 = vmatprep.subr.mxu1 %v18642_v28  ;;  %11670 = vmatpush1.msra.mxu0 %v19056_v33  ;;  %15031 = vst [vmem:[%s17092_s11 + $0x90] sm:$0xff] %v8640_v2  ;;  %v8641_v3 = vadd.f32 %v8639_v7, %v18914_v15  ;;  %19690 = vst [vmem:[#allocation8_spill] sm:$0xff] %v19079_v31  ;;  %v15521_v28 = vld [vmem:[%s15898_s19 + $0xb88] sm:$0xf]  ;;  %v15561_v22 = vld [vmem:[%s15898_s19 + $0x598] sm:$0xf] }
 0x2f5   : > { %11763 = vmatpush1.msra.mxu1 %v18647_v60  ;;  %11671 = vmatprep.subr.mxu0 %v19061_v25  ;;  %v15535_v60 = vld [vmem:[%s15898_s19 + $0xbd8] sm:$0xf]  ;;  %v15550_v2 = vld [vmem:[%s15898_s19 + $0x548] sm:$0xf]  ;;  %v15560_v7 = vld [vmem:[%s15898_s19 + $0x590] sm:$0xf] }
 0x2f6   : > { %11764 = vmatprep.subr.mxu1 %v18652_v55  ;;  %11672 = vmatpush1.msra.mxu0 %v19067_v51  ;;  %15032 = vst [vmem:[%s17092_s11 + $0x98] sm:$0xff] %v8641_v3  ;;  %v15520_v55 = vld [vmem:[%s15898_s19 + $0xb80] sm:$0xf] }
 0x2f7   : > { %11765 = vmatpush1.msra.mxu1 %v18657_v35  ;;  %11673 = vmatprep.subr.mxu0 %v19072_v46  ;;  %v15534_v35 = vld [vmem:[%s15898_s19 + $0xbd0] sm:$0xf]  ;;  %v15549_v3 = vld [vmem:[%s15898_s19 + $0x540] sm:$0xf] }
 0x2f8   : > { %11766 = vmatprep.subr.mxu1 %v18662_v59  ;;  %11674 = vmatpush1.msra.mxu0 %v19079_v31  ;;  %v19100_v59 = vld [vmem:[%s15898_s19 + $0xbc8] sm:$0xff] }
 0x2f9   : > { %11707 = vmatprep.mubr.f32.mxu0 %v19620_v4  ;;  %11767 = vmatpush1.msra.mxu1 %v18667_v18  ;;  %v19106_v18 = vld [vmem:[%s15898_s19 + $0xbc0] sm:$0xff] }
 0x2fa   : > { %15496 = vmatmul.mubr.msk.f32.vlgmr.msra.gmra.mxu0 %vm235_vm1, %v18843_v20  ;;  %11800 = vmatprep.mubr.f32.mxu1 %v19620_v4 }
 0x2fb   : > { %15522 = vmatprep.subr.msk.mxu0 %vm239_vm0, %v15521_v28  ;;  %15536 = vmatprep.subr.msk.mxu1 %vm239_vm0, %v15535_v60  ;;  %v15592_v28 = vld [vmem:[%s15898_s19 + $0x868] sm:$0xf]  ;;  %v19693_v60 = vld [vmem:[#allocation6_spill] sm:$0xff] }
 0x2fc   : > { %15510 = vmatmul.mubr.msk.f32.vlgmr.msra.gmra.mxu1 %vm235_vm1, %v18872_v12  ;;  %15523 = vmatpush1.msk.msra.mxu0 %vm239_vm0, %v15520_v55  ;;  %v19182_v55 = vld [vmem:[%s15898_s19 + $0x5d8] sm:$0xff] }
 0x2fd   : > { %15537 = vmatpush1.msk.msra.mxu1 %vm239_vm0, %v15534_v35  ;;  %11853 = vmatprep.subr.mxu0 %v18891_v56  ;;  %v8822_v35 = vpop.f32.mrf.mxu1 }
 0x2fe   : > { %11947 = vmatprep.subr.mxu1 %v19100_v59  ;;  %11854 = vmatpush1.msra.mxu0 %v18896_v0 }
 0x2ff   : > { %11948 = vmatpush1.msra.mxu1 %v19106_v18  ;;  %11855 = vmatprep.subr.mxu0 %v18902_v21 }
 0x300   : > { %11949 = vmatprep.subr.mxu1 %v19111_v49  ;;  %11856 = vmatpush1.msra.mxu0 %v18907_v63 }
 0x301   : > { %11950 = vmatpush1.msra.mxu1 %v19116_v54  ;;  %11857 = vmatprep.subr.mxu0 %v18912_v62 }
 0x302   : > { %11951 = vmatprep.subr.mxu1 %v19121_v14  ;;  %11858 = vmatpush1.msra.mxu0 %v18919_v57 }
 0x303   : > { %11952 = vmatpush1.msra.mxu1 %v19126_v26  ;;  %11859 = vmatprep.subr.mxu0 %v18926_v36 }
 0x304   : > { %11953 = vmatprep.subr.mxu1 %v19131_v19  ;;  %11860 = vmatpush1.msra.mxu0 %v18931_v37 }
 0x305   : > { %11893 = vmatprep.mubr.f32.mxu0 %v19620_v4  ;;  %11954 = vmatpush1.msra.mxu1 %v19136_v53 }
 0x306   : > { %15524 = vmatmul.mubr.msk.f32.vlgmr.msra.gmra.mxu0 %vm235_vm1, %v18883_v42  ;;  %11987 = vmatprep.mubr.f32.mxu1 %v19620_v4 }
 0x307   : > { %15562 = vmatprep.subr.msk.mxu0 %vm239_vm0, %v15561_v22  ;;  %15565 = vmatprep.subr.msk.mxu1 %vm239_vm0, %v15550_v2  ;;  %v19188_v2 = vld [vmem:[%s15898_s19 + $0x5d0] sm:$0xff] }
 0x308   : > { %15538 = vmatmul.mubr.msk.f32.vlgmr.msra.gmra.mxu1 %vm235_vm1, %v18942_v41  ;;  %15563 = vmatpush1.msk.msra.mxu0 %vm239_vm0, %v15560_v7  ;;  %v19193_v7 = vld [vmem:[%s15898_s19 + $0x5c8] sm:$0xff] }
 0x309   : > { %15566 = vmatpush1.msk.msra.mxu1 %vm239_vm0, %v15549_v3  ;;  %12056 = vmatprep.subr.mxu0 %v18958_v5 }
 0x30a   : > { %12136 = vmatprep.subr.mxu1 %v18723_v50  ;;  %12057 = vmatpush1.msra.mxu0 %v18964_v52  ;;  %v8742_v50 = vpop.f32.mrf.mxu0 }
 0x30b   : > { %12137 = vmatpush1.msra.mxu1 %v18729_v34  ;;  %12058 = vmatprep.subr.mxu0 %v18969_v32  ;;  %v19691_v34 = vld [vmem:[#allocation9_spill] sm:$0xff] }
 0x30c   : > { %12138 = vmatprep.subr.mxu1 %v18734_v44  ;;  %12059 = vmatpush1.msra.mxu0 %v18974_v27  ;;  %v15578_v44 = vld [vmem:[%s15898_s19 + $0x5e8] sm:$0xf]  ;;  %v8744_v22 = vpop.f32.mrf.mxu0 }
 0x30d   : > { %12139 = vmatpush1.msra.mxu1 %v18739_v45  ;;  %12060 = vmatprep.subr.mxu0 %v18979_v23  ;;  %v19692_v45 = vld [vmem:[#allocation12_spill] sm:$0xff] }
 0x30e   : > { %12140 = vmatprep.subr.mxu1 %v18744_v40  ;;  %12061 = vmatpush1.msra.mxu0 %v18984_v61  ;;  %v15577_v40 = vld [vmem:[%s15898_s19 + $0x5e0] sm:$0xf]  ;;  %v8913_v3 = vpop.f32.mrf.mxu0 }
 0x30f   : > { %12141 = vmatpush1.msra.mxu1 %v18749_v30  ;;  %12062 = vmatprep.subr.mxu0 %v18989_v29  ;;  %v15591_v30 = vld [vmem:[%s15898_s19 + $0x860] sm:$0xf] }
 0x310   : > { %12142 = vmatprep.subr.mxu1 %v19691_v34  ;;  %12063 = vmatpush1.msra.mxu0 %v18994_v10  ;;  %v19198_v34 = vld [vmem:[%s15898_s19 + $0x5c0] sm:$0xff] }
 0x311   : > { %12096 = vmatprep.mubr.f32.mxu0 %v19620_v4  ;;  %12143 = vmatpush1.msra.mxu1 %v19692_v45  ;;  %v19208_v45 = vld [vmem:[%s15898_s19 + $0x5b0] sm:$0xff] }
 0x312   : > { %12176 = vmatprep.mubr.f32.mxu1 %v19620_v4  ;;  %15564 = vmatmul.mubr.msk.f32.vlgmr.msra.gmra.mxu0 %vm235_vm1, %v19693_v60  ;;  %v8915_v60 = vpop.f32.mrf.mxu0 }
 0x313   : > { %15567 = vmatmul.mubr.msk.f32.vlgmr.msra.gmra.mxu1 %vm235_vm1, %v18711_v1  ;;  %15579 = vmatprep.subr.msk.mxu0 %vm239_vm0, %v15578_v44  ;;  %v19203_v1 = vld [vmem:[%s15898_s19 + $0x5b8] sm:$0xff]  ;;  %v8824_v44 = vpop.f32.mrf.mxu1 }
 0x314   : > { %15593 = vmatprep.subr.msk.mxu1 %vm239_vm0, %v15592_v28  ;;  %15580 = vmatpush1.msk.msra.mxu0 %vm239_vm0, %v15577_v40  ;;  %v8823_v28 = vadd.f32 %v8822_v35, %v8742_v50  ;;  %v19213_v40 = vld [vmem:[%s15898_s19 + $0x5a8] sm:$0xff] }
 0x315   : > { %15594 = vmatpush1.msk.msra.mxu1 %vm239_vm0, %v15591_v30  ;;  %12227 = vmatprep.subr.mxu0 %v19182_v55  ;;  %v8825_v30 = vadd.f32 %v8824_v44, %v8744_v22  ;;  %v15620_v35 = vld [vmem:[%s15898_s19 + $0x908] sm:$0xf] }
 0x316   : > { %12320 = vmatprep.subr.mxu1 %v18789_v17  ;;  %12228 = vmatpush1.msra.mxu0 %v19188_v2  ;;  %v9006_v17 = vpop.f32.mrf.mxu1  ;;  %v8918_v10 = vadd.f32 %v8913_v3, %v8823_v28  ;;  %v19238_v28 = vld [vmem:[%s15898_s19 + $0x8f8] sm:$0xff] }
 0x317   : > { %12321 = vmatpush1.msra.mxu1 %v18795_v38  ;;  %12229 = vmatprep.subr.mxu0 %v19193_v7  ;;  %v19218_v38 = vld [vmem:[%s15898_s19 + $0x5a0] sm:$0xff]  ;;  %v8919_v50 = vadd.f32 %v8915_v60, %v8825_v30 }
 0x318   : > { %12322 = vmatprep.subr.mxu1 %v18800_v13  ;;  %12230 = vmatpush1.msra.mxu0 %v19198_v34  ;;  %v9099_v13 = vpop.f32.mrf.mxu0  ;;  %v9008_v22 = vpop.f32.mrf.mxu1  ;;  %v9011_v3 = vadd.f32 %v9006_v17, %v8918_v10  ;;  %v19249_v17 = vld [vmem:[%s15898_s19 + $0x8e8] sm:$0xff] }
 0x319   : > { %12323 = vmatpush1.msra.mxu1 %v18805_v9  ;;  %12231 = vmatprep.subr.mxu0 %v19203_v1  ;;  %v15606_v9 = vld [vmem:[%s15898_s19 + $0x8b8] sm:$0xf]  ;;  %v9012_v60 = vadd.f32 %v9008_v22, %v8919_v50 }
 0x31a   : > { %12324 = vmatprep.subr.mxu1 %v18810_v24  ;;  %12232 = vmatpush1.msra.mxu0 %v19208_v45  ;;  %v15605_v24 = vld [vmem:[%s15898_s19 + $0x8b0] sm:$0xf]  ;;  %v9101_v44 = vpop.f32.mrf.mxu0  ;;  %v19259_v50 = vld [vmem:[%s15898_s19 + $0x8d8] sm:$0xff] }
 0x31b   : > { %12325 = vmatpush1.msra.mxu1 %v19683_v43  ;;  %12233 = vmatprep.subr.mxu0 %v19213_v40  ;;  %v15619_v43 = vld [vmem:[%s15898_s19 + $0x900] sm:$0xf]  ;;  %v9105_v30 = vadd.f32 %v9101_v44, %v9012_v60 }
 0x31c   : > { %12326 = vmatprep.subr.mxu1 %v19685_v6  ;;  %12234 = vmatpush1.msra.mxu0 %v19218_v38  ;;  %v9192_v6 = vpop.f32.mrf.mxu1 }
 0x31d   : > { %12267 = vmatprep.mubr.f32.mxu0 %v19620_v4  ;;  %12327 = vmatpush1.msra.mxu1 %v19687_v8  ;;  %v9104_v8 = vadd.f32 %v9099_v13, %v9011_v3  ;;  %v19254_v13 = vld [vmem:[%s15898_s19 + $0x8e0] sm:$0xff]  ;;  %v19269_v3 = vld [vmem:[%s15898_s19 + $0x8c8] sm:$0xff] }
 0x31e   : > { %15581 = vmatmul.mubr.msk.f32.vlgmr.msra.gmra.mxu0 %vm235_vm1, %v18768_v47  ;;  %12360 = vmatprep.mubr.f32.mxu1 %v19620_v4  ;;  %v19244_v47 = vld [vmem:[%s15898_s19 + $0x8f0] sm:$0xff]  ;;  %v9285_v10 = vpop.f32.mrf.mxu0 }
 0x31f   : > { %15607 = vmatprep.subr.msk.mxu0 %vm239_vm0, %v15606_v9  ;;  %15621 = vmatprep.subr.msk.mxu1 %vm239_vm0, %v15620_v35  ;;  %v9197_v9 = vadd.f32 %v9192_v6, %v9104_v8  ;;  %v19264_v35 = vld [vmem:[%s15898_s19 + $0x8d0] sm:$0xff]  ;;  %v19274_v6 = vld [vmem:[%s15898_s19 + $0x8c0] sm:$0xff]  ;;  %v15634_v8 = vld [vmem:[%s15898_s19 + $0xb88] sm:$0xf] }
 0x320   : > { %15595 = vmatmul.mubr.msk.f32.vlgmr.msra.gmra.mxu1 %vm235_vm1, %v19688_v16  ;;  %15608 = vmatpush1.msk.msra.mxu0 %vm239_vm0, %v15605_v24  ;;  %v9194_v16 = vpop.f32.mrf.mxu1  ;;  %v9287_v24 = vpop.f32.mrf.mxu0 }
 0x321   : > { %15622 = vmatpush1.msk.msra.mxu1 %vm239_vm0, %v15619_v43  ;;  %12413 = vmatprep.subr.mxu0 %v19040_v48  ;;  %v9198_v43 = vadd.f32 %v9194_v16, %v9105_v30  ;;  %v9290_v44 = vadd.f32 %v9285_v10, %v9197_v9  ;;  %v15633_v10 = vld [vmem:[%s15898_s19 + $0xb80] sm:$0xf]  ;;  %v15647_v9 = vld [vmem:[%s15898_s19 + $0xbd0] sm:$0xf] }
 0x322   : > { %12506 = vmatprep.subr.mxu1 %v19238_v28  ;;  %12414 = vmatpush1.msra.mxu0 %v19045_v11  ;;  %v9378_v22 = vpop.f32.mrf.mxu1 }
 0x323   : > { %12507 = vmatpush1.msra.mxu1 %v19244_v47  ;;  %12415 = vmatprep.subr.mxu0 %v19051_v58  ;;  %v9291_v60 = vadd.f32 %v9287_v24, %v9198_v43  ;;  %v9383_v16 = vadd.f32 %v9378_v22, %v9290_v44 }
 0x324   : > { %12508 = vmatprep.subr.mxu1 %v19249_v17  ;;  %12416 = vmatpush1.msra.mxu0 %v19056_v33  ;;  %v9380_v30 = vpop.f32.mrf.mxu1 }
 0x325   : > { %12509 = vmatpush1.msra.mxu1 %v19254_v13  ;;  %12417 = vmatprep.subr.mxu0 %v19061_v25  ;;  %v15648_v25 = vld [vmem:[%s15898_s19 + $0xbd8] sm:$0xf]  ;;  %v9384_v43 = vadd.f32 %v9380_v30, %v9291_v60 }
 0x326   : > { %12510 = vmatprep.subr.mxu1 %v19259_v50  ;;  %12418 = vmatpush1.msra.mxu0 %v19067_v51 }
 0x327   : > { %12511 = vmatpush1.msra.mxu1 %v19264_v35  ;;  %12419 = vmatprep.subr.mxu0 %v19072_v46 }
 0x328   : > { %12512 = vmatprep.subr.mxu1 %v19269_v3  ;;  %12420 = vmatpush1.msra.mxu0 %v19079_v31 }
 0x329   : > { %12453 = vmatprep.mubr.f32.mxu0 %v19620_v4  ;;  %12513 = vmatpush1.msra.mxu1 %v19274_v6 }
 0x32a   : > { %15609 = vmatmul.mubr.msk.f32.vlgmr.msra.gmra.mxu0 %vm235_vm1, %v18832_v39  ;;  %12546 = vmatprep.mubr.f32.mxu1 %v19620_v4  ;;  %v9472_v24 = vpop.f32.mrf.mxu0 }
 0x32b   : > { %15635 = vmatprep.subr.msk.mxu0 %vm239_vm0, %v15634_v8  ;;  %15649 = vmatprep.subr.msk.mxu1 %vm239_vm0, %v15648_v25  ;;  %v9477_v31 = vadd.f32 %v9472_v24, %v9383_v16  ;;  %v19355_v25 = vld [vmem:[%s15898_s19 + $0xbe8] sm:$0xff]  ;;  %v15700_v8 = vld [vmem:[%s15898_s19 + $0x610] sm:$0xff]  ;;  %v15698_v16 = vld [vmem:[%s15898_s19 + $0x600] sm:$0xff] }
 0x32c   : > { %15623 = vmatmul.mubr.msk.f32.vlgmr.msra.gmra.mxu1 %vm235_vm1, %v18843_v20  ;;  %15636 = vmatpush1.msk.msra.mxu0 %vm239_vm0, %v15633_v10  ;;  %v9474_v22 = vpop.f32.mrf.mxu0  ;;  %v15699_v10 = vld [vmem:[%s15898_s19 + $0x608] sm:$0xff] }
 0x32d   : > { %15650 = vmatpush1.msk.msra.mxu1 %vm239_vm0, %v15647_v9  ;;  %12599 = vmatprep.subr.mxu0 %v18891_v56  ;;  %v9479_v39 = vadd.f32 %v9477_v31, %v18914_v15  ;;  %v9478_v44 = vadd.f32 %v9474_v22, %v9384_v43  ;;  %v15662_v56 = vld [vmem:[%s15898_s19 + $0xc28] sm:$0xf]  ;;  %v19360_v31 = vld [vmem:[%s15898_s19 + $0xbe0] sm:$0xff]  ;;  %v15696_v43 = vld [vmem:[%s15898_s19 + $0x5f0] sm:$0xff] }
 0x32e   : > { %12692 = vmatprep.subr.mxu1 %v19100_v59  ;;  %12600 = vmatpush1.msra.mxu0 %v18896_v0  ;;  %v15688_v0 = vld [vmem:[%s15898_s19 + $0x5e8] sm:$0xf] }
 0x32f   : > { %12693 = vmatpush1.msra.mxu1 %v19106_v18  ;;  %12601 = vmatprep.subr.mxu0 %v18902_v21  ;;  %15158 = vst [vmem:[%s17092_s11 + $0xa0] sm:$0xff] %v9479_v39  ;;  %v9480_v20 = vadd.f32 %v9478_v44, %v18914_v15  ;;  %v15661_v21 = vld [vmem:[%s15898_s19 + $0xc20] sm:$0xf]  ;;  %v19694_v39 = vld [vmem:[#allocation11_spill] sm:$0xff] }
 0x330   : > { %12694 = vmatprep.subr.mxu1 %v19111_v49  ;;  %12602 = vmatpush1.msra.mxu0 %v18907_v63  ;;  %v15687_v63 = vld [vmem:[%s15898_s19 + $0x5e0] sm:$0xf]  ;;  %v15733_v44 = vld [vmem:[%s15898_s19 + $0x908] sm:$0xf] }
 0x331   : > { %12695 = vmatpush1.msra.mxu1 %v19116_v54  ;;  %12603 = vmatprep.subr.mxu0 %v18912_v62  ;;  %15159 = vst [vmem:[%s17092_s11 + $0xa8] sm:$0xff] %v9480_v20  ;;  %v19324_v62 = vld [vmem:[%s15898_s19 + $0xc18] sm:$0xff] }
 0x332   : > { %12696 = vmatprep.subr.mxu1 %v19121_v14  ;;  %12604 = vmatpush1.msra.mxu0 %v18919_v57  ;;  %v19329_v57 = vld [vmem:[%s15898_s19 + $0xc10] sm:$0xff] }
 0x333   : > { %12697 = vmatpush1.msra.mxu1 %v19126_v26  ;;  %12605 = vmatprep.subr.mxu0 %v18926_v36  ;;  %v19340_v36 = vld [vmem:[%s15898_s19 + $0xc00] sm:$0xff] }
 0x334   : > { %12698 = vmatprep.subr.mxu1 %v19131_v19  ;;  %12606 = vmatpush1.msra.mxu0 %v18931_v37  ;;  %v19345_v37 = vld [vmem:[%s15898_s19 + $0xbf8] sm:$0xff] }
 0x335   : > { %12639 = vmatprep.mubr.f32.mxu0 %v19620_v4  ;;  %12699 = vmatpush1.msra.mxu1 %v19136_v53 }
 0x336   : > { %15637 = vmatmul.mubr.msk.f32.vlgmr.msra.gmra.mxu0 %vm235_vm1, %v18872_v12  ;;  %12732 = vmatprep.mubr.f32.mxu1 %v19620_v4  ;;  %v19335_v12 = vld [vmem:[%s15898_s19 + $0xc08] sm:$0xff]  ;;  %v9661_v60 = vpop.f32.mrf.mxu0 }
 0x337   : > { %15663 = vmatprep.subr.msk.mxu0 %vm239_vm0, %v15662_v56  ;;  %15689 = vmatprep.subr.msk.mxu1 %vm239_vm0, %v15688_v0  ;;  %v15718_v56 = vld [vmem:[%s15898_s19 + $0x8b0] sm:$0xf]  ;;  %v15732_v0 = vld [vmem:[%s15898_s19 + $0x900] sm:$0xf] }
 0x338   : > { %15651 = vmatmul.mubr.msk.f32.vlgmr.msra.gmra.mxu1 %vm235_vm1, %v18883_v42  ;;  %15664 = vmatpush1.msk.msra.mxu0 %vm239_vm0, %v15661_v21  ;;  %v19350_v42 = vld [vmem:[%s15898_s19 + $0xbf0] sm:$0xff]  ;;  %v9663_v24 = vpop.f32.mrf.mxu0 }
 0x339   : > { %15690 = vmatpush1.msk.msra.mxu1 %vm239_vm0, %v15687_v63  ;;  %12786 = vmatprep.subr.mxu0 %v19324_v62 }
 0x33a   : > { %12895 = vmatprep.subr.mxu1 %v19182_v55  ;;  %12787 = vmatpush1.msra.mxu0 %v19329_v57  ;;  %v15677_v55 = vld [vmem:[%s15898_s19 + $0x598] sm:$0xf] }
 0x33b   : > { %12896 = vmatpush1.msra.mxu1 %v19188_v2  ;;  %12788 = vmatprep.subr.mxu0 %v19335_v12  ;;  %v15705_v2 = vld [vmem:[%s15898_s19 + $0x638] sm:$0xf] }
 0x33c   : > { %12897 = vmatprep.subr.mxu1 %v19193_v7  ;;  %12789 = vmatpush1.msra.mxu0 %v19340_v36  ;;  %v15678_v7 = vld [vmem:[%s19543_s1 + $0x8] sm:$0xff] }
 0x33d   : > { %12898 = vmatpush1.msra.mxu1 %v19198_v34  ;;  %12790 = vmatprep.subr.mxu0 %v19345_v37  ;;  %v15676_v34 = vld [vmem:[%s15898_s19 + $0x590] sm:$0xf] }
 0x33e   : > { %12899 = vmatprep.subr.mxu1 %v19203_v1  ;;  %12791 = vmatpush1.msra.mxu0 %v19350_v42  ;;  %v15704_v1 = vld [vmem:[%s15898_s19 + $0x630] sm:$0xf] }
 0x33f   : > { %12900 = vmatpush1.msra.mxu1 %v19208_v45  ;;  %12792 = vmatprep.subr.mxu0 %v19355_v25  ;;  %v9581_v45 = vpop.f32.mrf.mxu1 }
 0x340   : > { %12901 = vmatprep.subr.mxu1 %v19213_v40  ;;  %12793 = vmatpush1.msra.mxu0 %v19360_v31  ;;  %v15703_v40 = vld [vmem:[%s15898_s19 + $0x628] sm:$0xff] }
 0x341   : > { %12826 = vmatprep.mubr.f32.mxu0 %v19620_v4  ;;  %12902 = vmatpush1.msra.mxu1 %v19218_v38  ;;  %v15702_v38 = vld [vmem:[%s15898_s19 + $0x620] sm:$0xff]  ;;  %v9583_v30 = vpop.f32.mrf.mxu1 }
 0x342   : > { %15665 = vmatmul.mubr.msk.f32.vlgmr.msra.gmra.mxu0 %vm235_vm1, %v18942_v41  ;;  %12935 = vmatprep.mubr.f32.mxu1 %v19620_v4  ;;  %v15701_v41 = vld [vmem:[%s15898_s19 + $0x618] sm:$0xff]  ;;  %v9664_v22 = vadd.f32 %v9663_v24, %v9583_v30  ;;  %v15742_v24 = vld [vmem:[%s15898_s19 + $0x930] sm:$0xff] }
 0x343   : > { %15692 = vmatprep.subr.msk.mxu0 %vm239_vm0, %v15677_v55  ;;  %15706 = vmatprep.subr.msk.mxu1 %vm239_vm0, %v15705_v2  ;;  %v9752_v9 = vpop.f32.mrf.mxu1 }
 0x344   : > { %15691 = vmatmul.mubr.msk.f32.vlgmr.msra.gmra.mxu1 %vm235_vm1, %v15678_v7  ;;  %15693 = vmatpush1.msk.msra.mxu0 %vm239_vm0, %v15676_v34 }
 0x345   : > { %15707 = vmatpush1.msk.msra.mxu1 %vm239_vm0, %v15704_v1  ;;  %12975 = vmatprep.subr.mxu0 %v18958_v5  ;;  %v15697_v5 = vld [vmem:[%s15898_s19 + $0x5f8] sm:$0xff]  ;;  %v9754_v20 = vpop.f32.mrf.mxu1 }
 0x346   : > { %13066 = vmatprep.subr.mxu1 %v15703_v40  ;;  %12976 = vmatpush1.msra.mxu0 %v18964_v52  ;;  %v9662_v52 = vadd.f32 %v9661_v60, %v9581_v45  ;;  %v9758_v55 = vadd.f32 %v9754_v20, %v9664_v22  ;;  %v15745_v60 = vld [vmem:[%s15898_s19 + $0x948] sm:$0xff] }
 0x347   : > { %13067 = vmatpush1.msra.mxu1 %v15702_v38  ;;  %12977 = vmatprep.subr.mxu0 %v18969_v32  ;;  %v9845_v32 = vpop.f32.mrf.mxu0  ;;  %v9938_v21 = vpop.f32.mrf.mxu1  ;;  %v15787_v20 = vld [vmem:[%s15898_s19 + $0xc68] sm:$0xff] }
 0x348   : > { %13068 = vmatprep.subr.mxu1 %v15701_v41  ;;  %12978 = vmatpush1.msra.mxu0 %v18974_v27  ;;  %v12840_v27 = vld [vmem:[%s19543_s1] sm:$0xff] }
 0x349   : > { %13069 = vmatpush1.msra.mxu1 %v15700_v8  ;;  %12979 = vmatprep.subr.mxu0 %v18979_v23  ;;  %v15719_v23 = vld [vmem:[%s15898_s19 + $0x8b8] sm:$0xf]  ;;  %v9847_v63 = vpop.f32.mrf.mxu0  ;;  %v9940_v1 = vpop.f32.mrf.mxu1 }
 0x34a   : > { %13070 = vmatprep.subr.mxu1 %v15699_v10  ;;  %12980 = vmatpush1.msra.mxu0 %v18984_v61  ;;  %v15695_v61 = vld [vmem:[%s19543_s1 + $0x10] sm:$0xff]  ;;  %v9851_v34 = vadd.f32 %v9847_v63, %v9758_v55  ;;  %v15743_v10 = vld [vmem:[%s15898_s19 + $0x938] sm:$0xff] }
 0x34b   : > { %13071 = vmatpush1.msra.mxu1 %v15698_v16  ;;  %12981 = vmatprep.subr.mxu0 %v18989_v29  ;;  %v9757_v29 = vadd.f32 %v9752_v9, %v9662_v52 }
 0x34c   : > { %13072 = vmatprep.subr.mxu1 %v15697_v5  ;;  %12982 = vmatpush1.msra.mxu0 %v19694_v39 }
 0x34d   : > { %13015 = vmatprep.mubr.f32.mxu0 %v19620_v4  ;;  %13073 = vmatpush1.msra.mxu1 %v15696_v43  ;;  %v9850_v2 = vadd.f32 %v9845_v32, %v9757_v29  ;;  %v15741_v43 = vld [vmem:[%s15898_s19 + $0x928] sm:$0xff] }
 0x34e   : > { %15694 = vmatmul.mubr.msk.f32.vlgmr.msra.gmra.mxu0 %vm235_vm1, %v12840_v27  ;;  %13106 = vmatprep.mubr.f32.mxu1 %v19620_v4  ;;  %v10031_v7 = vpop.f32.mrf.mxu0  ;;  %v15740_v27 = vld [vmem:[%s15898_s19 + $0x920] sm:$0xff]  ;;  %v15783_v29 = vld [vmem:[%s15898_s19 + $0xc48] sm:$0xff] }
 0x34f   : > { %15720 = vmatprep.subr.msk.mxu0 %vm239_vm0, %v15719_v23  ;;  %15734 = vmatprep.subr.msk.mxu1 %vm239_vm0, %v15733_v44  ;;  %v9943_v45 = vadd.f32 %v9938_v21, %v9850_v2  ;;  %v15739_v23 = vld [vmem:[%s15898_s19 + $0x918] sm:$0xff] }
 0x350   : > { %15708 = vmatmul.mubr.msk.f32.vlgmr.msra.gmra.mxu1 %vm235_vm1, %v15695_v61  ;;  %15721 = vmatpush1.msk.msra.mxu0 %vm239_vm0, %v15718_v56  ;;  %v10124_v40 = vpop.f32.mrf.mxu1  ;;  %v10033_v38 = vpop.f32.mrf.mxu0  ;;  %v15789_v44 = vld [vmem:[%s15898_s19 + $0xc78] sm:$0xf]  ;;  %v15784_v56 = vld [vmem:[%s15898_s19 + $0xc50] sm:$0xff] }
 0x351   : > { %15735 = vmatpush1.msk.msra.mxu1 %vm239_vm0, %v15732_v0  ;;  %13159 = vmatprep.subr.mxu0 %v19040_v48  ;;  %v19695_v48 = vld [vmem:[#allocation7_spill] sm:$0xff]  ;;  %v15785_v61 = vld [vmem:[%s15898_s19 + $0xc58] sm:$0xff]  ;;  %v15782_v0 = vld [vmem:[%s15898_s19 + $0xc40] sm:$0xff] }
 0x352   : > { %13252 = vmatprep.subr.mxu1 %v19238_v28  ;;  %13160 = vmatpush1.msra.mxu0 %v19045_v11  ;;  %v9944_v28 = vadd.f32 %v9940_v1, %v9851_v34  ;;  %v10036_v11 = vadd.f32 %v10031_v7, %v9943_v45  ;;  %v15781_v21 = vld [vmem:[%s15898_s19 + $0xc38] sm:$0xff] }
 0x353   : > { %13253 = vmatpush1.msra.mxu1 %v19244_v47  ;;  %13161 = vmatprep.subr.mxu0 %v19051_v58  ;;  %v15709_v58 = vld [vmem:[%s19543_s1 + $0x18] sm:$0xff]  ;;  %v19696_v47 = vld [vmem:[#allocation8_spill] sm:$0xff] }
 0x354   : > { %13254 = vmatprep.subr.mxu1 %v19249_v17  ;;  %13162 = vmatpush1.msra.mxu0 %v19056_v33  ;;  %v10037_v33 = vadd.f32 %v10033_v38, %v9944_v28  ;;  %v15747_v17 = vld [vmem:[%s15898_s19 + $0x958] sm:$0xf] }
 0x355   : > { %13255 = vmatpush1.msra.mxu1 %v19254_v13  ;;  %13163 = vmatprep.subr.mxu0 %v19695_v48  ;;  %v15761_v13 = vld [vmem:[%s15898_s19 + $0xbd8] sm:$0xf] }
 0x356   : > { %13256 = vmatprep.subr.mxu1 %v19259_v50  ;;  %13164 = vmatpush1.msra.mxu0 %v19067_v51  ;;  %v10126_v50 = vpop.f32.mrf.mxu1  ;;  %v15723_v51 = vld [vmem:[%s19543_s1 + $0x20] sm:$0xff] }
 0x357   : > { %13257 = vmatpush1.msra.mxu1 %v19264_v35  ;;  %13165 = vmatprep.subr.mxu0 %v19072_v46  ;;  %v15746_v46 = vld [vmem:[%s15898_s19 + $0x950] sm:$0xf]  ;;  %v10129_v35 = vadd.f32 %v10124_v40, %v10036_v11  ;;  %v10130_v8 = vadd.f32 %v10126_v50, %v10037_v33 }
 0x358   : > { %13258 = vmatprep.subr.mxu1 %v19269_v3  ;;  %13166 = vmatpush1.msra.mxu0 %v19696_v47  ;;  %v15760_v3 = vld [vmem:[%s15898_s19 + $0xbd0] sm:$0xf] }
 0x359   : > { %13199 = vmatprep.mubr.f32.mxu0 %v19620_v4  ;;  %13259 = vmatpush1.msra.mxu1 %v19274_v6  ;;  %v15744_v6 = vld [vmem:[%s15898_s19 + $0x940] sm:$0xff] }
 0x35a   : > { %15722 = vmatmul.mubr.msk.f32.vlgmr.msra.gmra.mxu0 %vm235_vm1, %v15709_v58  ;;  %13292 = vmatprep.mubr.f32.mxu1 %v19620_v4  ;;  %v10217_v41 = vpop.f32.mrf.mxu0 }
 0x35b   : > { %15748 = vmatprep.subr.msk.mxu0 %vm239_vm0, %v15747_v17  ;;  %15762 = vmatprep.subr.msk.mxu1 %vm239_vm0, %v15761_v13  ;;  %v10222_v30 = vadd.f32 %v10217_v41, %v10129_v35 }
 0x35c   : > { %15736 = vmatmul.mubr.msk.f32.vlgmr.msra.gmra.mxu1 %vm235_vm1, %v15723_v51  ;;  %15749 = vmatpush1.msk.msra.mxu0 %vm239_vm0, %v15746_v46  ;;  %v10311_v16 = vpop.f32.mrf.mxu1  ;;  %v10219_v9 = vpop.f32.mrf.mxu0 }
 0x35d   : > { %15763 = vmatpush1.msk.msra.mxu1 %vm239_vm0, %v15760_v3  ;;  %13345 = vmatprep.subr.mxu0 %v15745_v60  ;;  %v10316_v5 = vadd.f32 %v10311_v16, %v10222_v30  ;;  %v10223_v52 = vadd.f32 %v10219_v9, %v10130_v8 }
 0x35e   : > { %13438 = vmatprep.subr.mxu1 %v19100_v59  ;;  %13346 = vmatpush1.msra.mxu0 %v15744_v6  ;;  %v10313_v32 = vpop.f32.mrf.mxu1  ;;  %v15738_v59 = vld [vmem:[%s15898_s19 + $0x910] sm:$0xff] }
 0x35f   : > { %13439 = vmatpush1.msra.mxu1 %v19106_v18  ;;  %13347 = vmatprep.subr.mxu0 %v15743_v10  ;;  %v10318_v22 = vadd.f32 %v10316_v5, %v18914_v15  ;;  %v10317_v39 = vadd.f32 %v10313_v32, %v10223_v52 }
 0x360   : > { %13440 = vmatprep.subr.mxu1 %v19111_v49  ;;  %13348 = vmatpush1.msra.mxu0 %v15742_v24  ;;  %v15737_v49 = vld [vmem:[%s19543_s1 + $0x28] sm:$0xff] }
 0x361   : > { %13441 = vmatpush1.msra.mxu1 %v19116_v54  ;;  %13349 = vmatprep.subr.mxu0 %v15741_v43  ;;  %15285 = vst [vmem:[%s17092_s11 + $0xb0] sm:$0xff] %v10318_v22  ;;  %v10319_v18 = vadd.f32 %v10317_v39, %v18914_v15  ;;  %v15775_v54 = vld [vmem:[%s15898_s19 + $0xc28] sm:$0xf] }
 0x362   : > { %13442 = vmatprep.subr.mxu1 %v19121_v14  ;;  %13350 = vmatpush1.msra.mxu0 %v15740_v27  ;;  %v15751_v14 = vld [vmem:[%s19543_s1 + $0x30] sm:$0xff] }
 0x363   : > { %13443 = vmatpush1.msra.mxu1 %v19126_v26  ;;  %13351 = vmatprep.subr.mxu0 %v15739_v23  ;;  %15286 = vst [vmem:[%s17092_s11 + $0xb8] sm:$0xff] %v10319_v18  ;;  %v15774_v26 = vld [vmem:[%s15898_s19 + $0xc20] sm:$0xf] }
 0x364   : > { %13444 = vmatprep.subr.mxu1 %v19131_v19  ;;  %13352 = vmatpush1.msra.mxu0 %v15738_v59  ;;  %v15788_v19 = vld [vmem:[%s15898_s19 + $0xc70] sm:$0xf] }
 0x365   : > { %13385 = vmatprep.mubr.f32.mxu0 %v19620_v4  ;;  %13445 = vmatpush1.msra.mxu1 %v19136_v53  ;;  %v15786_v53 = vld [vmem:[%s15898_s19 + $0xc60] sm:$0xff] }
 0x366   : > { %15750 = vmatmul.mubr.msk.f32.vlgmr.msra.gmra.mxu0 %vm235_vm1, %v15737_v49  ;;  %13478 = vmatprep.mubr.f32.mxu1 %v19620_v4 }
 0x367   : > { %15776 = vmatprep.subr.msk.mxu0 %vm239_vm0, %v15775_v54  ;;  %15790 = vmatprep.subr.msk.mxu1 %vm239_vm0, %v15789_v44 }
 0x368   : > { %15764 = vmatmul.mubr.msk.f32.vlgmr.msra.gmra.mxu1 %vm235_vm1, %v15751_v14  ;;  %15777 = vmatpush1.msk.msra.mxu0 %vm239_vm0, %v15774_v26 }
 0x369   : > { %15791 = vmatpush1.msk.msra.mxu1 %vm239_vm0, %v15788_v19  ;;  %13531 = vmatprep.subr.mxu0 %v19324_v62  ;;  %v15780_v62 = vld [vmem:[%s15898_s19 + $0xc30] sm:$0xff] }
 0x36a   : > { %13625 = vmatprep.subr.mxu1 %v15787_v20  ;;  %13532 = vmatpush1.msra.mxu0 %v19329_v57  ;;  %v15765_v57 = vld [vmem:[%s19543_s1 + $0x38] sm:$0xff] }
 0x36b   : > { %13626 = vmatpush1.msra.mxu1 %v15786_v53  ;;  %13533 = vmatprep.subr.mxu0 %v19335_v12  ;;  %v15779_v12 = vld [vmem:[%s19543_s1 + $0x40] sm:$0xff] }
 0x36c   : > { %13627 = vmatprep.subr.mxu1 %v15785_v61  ;;  %13534 = vmatpush1.msra.mxu0 %v19340_v36  ;;  %v10420_v36 = vpop.f32.mrf.mxu0 }
 0x36d   : > { %13628 = vmatpush1.msra.mxu1 %v15784_v56  ;;  %13535 = vmatprep.subr.mxu0 %v19345_v37  ;;  %v10500_v37 = vpop.f32.mrf.mxu1 }
 0x36e   : > { %13629 = vmatprep.subr.mxu1 %v15783_v29  ;;  %13536 = vmatpush1.msra.mxu0 %v19350_v42  ;;  %v10422_v42 = vpop.f32.mrf.mxu0  ;;  %v10501_v55 = vadd.f32 %v10500_v37, %v10420_v36 }
 0x36f   : > { %13630 = vmatpush1.msra.mxu1 %v15782_v0  ;;  %13537 = vmatprep.subr.mxu0 %v19355_v25  ;;  %v10502_v63 = vpop.f32.mrf.mxu1 }
 0x370   : > { %13631 = vmatprep.subr.mxu1 %v15781_v21  ;;  %13538 = vmatpush1.msra.mxu0 %v19360_v31  ;;  %v10503_v7 = vadd.f32 %v10502_v63, %v10422_v42 }
 0x371   : > { %13571 = vmatprep.mubr.f32.mxu0 %v19620_v4  ;;  %13632 = vmatpush1.msra.mxu1 %v15780_v62 }
 0x372   : > { %13665 = vmatprep.mubr.f32.mxu1 %v19620_v4  ;;  %15778 = vmatmul.mubr.msk.f32.vlgmr.msra.gmra.mxu0 %vm235_vm1, %v15765_v57  ;;  %v10591_v25 = vpop.f32.mrf.mxu0 }
 0x373   : > { %15792 = vmatmul.mubr.msk.f32.vlgmr.msra.gmra.mxu1 %vm235_vm1, %v15779_v12  ;;  %v10596_v34 = vadd.f32 %v10591_v25, %v10501_v55 }
 0x374   : > { %v10684_v31 = vpop.f32.mrf.mxu1  ;;  %v10593_v2 = vpop.f32.mrf.mxu0 }
 0x375   : > { %v10597_v45 = vadd.f32 %v10593_v2, %v10503_v7  ;;  %v10689_v38 = vadd.f32 %v10684_v31, %v10596_v34 }
 0x376   : > { %v10686_v40 = vpop.f32.mrf.mxu1 }
 0x377   : > { %v10690_v28 = vadd.f32 %v10686_v40, %v10597_v45 }
 0x37e   : > { %v10777_v1 = vpop.f32.mrf.mxu0 }
 0x37f   : > { %v10782_v11 = vadd.f32 %v10777_v1, %v10689_v38 }
 0x380   : > { %v10870_v48 = vpop.f32.mrf.mxu1  ;;  %v10779_v4 = vpop.f32.mrf.mxu0 }
 0x381   : > { %v10783_v33 = vadd.f32 %v10779_v4, %v10690_v28  ;;  %v10875_v17 = vadd.f32 %v10870_v48, %v10782_v11 }
 0x382   : > { %v10872_v47 = vpop.f32.mrf.mxu1 }
 0x383   : > { %v10876_v51 = vadd.f32 %v10872_v47, %v10783_v33 }
 0x38a   : > { %v10963_v58 = vpop.f32.mrf.mxu0 }
 0x38b   : > { %v10968_v46 = vadd.f32 %v10963_v58, %v10875_v17 }
 0x38c   : > { %v11056_v13 = vpop.f32.mrf.mxu1  ;;  %v10965_v50 = vpop.f32.mrf.mxu0 }
 0x38d   : > { %v10969_v35 = vadd.f32 %v10965_v50, %v10876_v51  ;;  %v11061_v60 = vadd.f32 %v11056_v13, %v10968_v46 }
 0x38e   : > { %v11058_v3 = vpop.f32.mrf.mxu1 }
 0x38f   : > { %v11062_v6 = vadd.f32 %v11058_v3, %v10969_v35 }
 0x396   : > { %v11150_v41 = vpop.f32.mrf.mxu0 }
 0x397   : > { %v11155_v8 = vadd.f32 %v11150_v41, %v11061_v60 }
 0x398   : > { %v11152_v30 = vpop.f32.mrf.mxu0  ;;  %v11259_v24 = vpop.f32.mrf.mxu1 }
 0x399   : > { %v11157_v10 = vadd.f32 %v11155_v8, %v18914_v15  ;;  %v11156_v16 = vadd.f32 %v11152_v30, %v11062_v6 }
 0x39a   : > { %v11261_v52 = vpop.f32.mrf.mxu1 }
 0x39b   : > { %15412 = vst [vmem:[%s17092_s11 + $0xc0] sm:$0xff] %v11157_v10  ;;  %v11158_v9 = vadd.f32 %v11156_v16, %v18914_v15 }
 0x39d   : > { %15413 = vst [vmem:[%s17092_s11 + $0xc8] sm:$0xff] %v11158_v9 }
 0x3a2   : > { %v11339_v5 = vpop.f32.mrf.mxu0 }
 0x3a3   : > { %v11340_v27 = vadd.f32 %v11339_v5, %v11259_v24 }
 0x3a4   : > { %v11430_v43 = vpop.f32.mrf.mxu1  ;;  %v11341_v32 = vpop.f32.mrf.mxu0 }
 0x3a5   : > { %v11342_v39 = vadd.f32 %v11341_v32, %v11261_v52  ;;  %v11435_v59 = vadd.f32 %v11430_v43, %v11340_v27 }
 0x3a6   : > { %v11432_v23 = vpop.f32.mrf.mxu1 }
 0x3a7   : > { %v11436_v54 = vadd.f32 %v11432_v23, %v11342_v39 }
 0x3ae   : > { %v11523_v22 = vpop.f32.mrf.mxu0 }
 0x3af   : > { %v11528_v44 = vadd.f32 %v11523_v22, %v11435_v59 }
 0x3b0   : > { %v11616_v18 = vpop.f32.mrf.mxu1  ;;  %v11525_v49 = vpop.f32.mrf.mxu0 }
 0x3b1   : > { %v11529_v26 = vadd.f32 %v11525_v49, %v11436_v54  ;;  %v11621_v20 = vadd.f32 %v11616_v18, %v11528_v44 }
 0x3b2   : > { %v11618_v19 = vpop.f32.mrf.mxu1 }
 0x3b3   : > { %v11622_v56 = vadd.f32 %v11618_v19, %v11529_v26 }
 0x3ba   : > { %v11709_v14 = vpop.f32.mrf.mxu0 }
 0x3bb   : > { %v11714_v29 = vadd.f32 %v11709_v14, %v11621_v20 }
 0x3bc   : > { %v11802_v53 = vpop.f32.mrf.mxu1  ;;  %v11711_v61 = vpop.f32.mrf.mxu0 }
 0x3bd   : > { %v11715_v0 = vadd.f32 %v11711_v61, %v11622_v56  ;;  %v11807_v62 = vadd.f32 %v11802_v53, %v11714_v29 }
 0x3be   : > { %v11804_v21 = vpop.f32.mrf.mxu1 }
 0x3bf   : > { %v11808_v12 = vadd.f32 %v11804_v21, %v11715_v0 }
 0x3c6   : > { %v11895_v57 = vpop.f32.mrf.mxu0 }
 0x3c7   : > { %v11900_v36 = vadd.f32 %v11895_v57, %v11807_v62 }
 0x3c8   : > { %v11989_v37 = vpop.f32.mrf.mxu1  ;;  %v11897_v42 = vpop.f32.mrf.mxu0 }
 0x3c9   : > { %v11994_v25 = vadd.f32 %v11989_v37, %v11900_v36  ;;  %v11901_v63 = vadd.f32 %v11897_v42, %v11808_v12 }
 0x3ca   : > { %v11991_v55 = vpop.f32.mrf.mxu1 }
 0x3cb   : > { %v11996_v31 = vadd.f32 %v11994_v25, %v18914_v15  ;;  %v11995_v2 = vadd.f32 %v11991_v55, %v11901_v63 }
 0x3cd   : > { %15539 = vst [vmem:[%s17092_s11 + $0xd0] sm:$0xff] %v11996_v31  ;;  %v11997_v7 = vadd.f32 %v11995_v2, %v18914_v15 }
 0x3cf   : > { %15540 = vst [vmem:[%s17092_s11 + $0xd8] sm:$0xff] %v11997_v7 }
 0x3d2   : > { %v12098_v34 = vpop.f32.mrf.mxu0 }
 0x3d3   : > { %v12178_v1 = vpop.f32.mrf.mxu1 }
 0x3d4   : > { %v12100_v45 = vpop.f32.mrf.mxu0  ;;  %v12179_v48 = vadd.f32 %v12178_v1, %v12098_v34 }
 0x3d5   : > { %v12180_v38 = vpop.f32.mrf.mxu1 }
 0x3d6   : > { %v12181_v11 = vadd.f32 %v12180_v38, %v12100_v45 }
 0x3de   : > { %v12269_v40 = vpop.f32.mrf.mxu0 }
 0x3df   : > { %v12274_v58 = vadd.f32 %v12269_v40, %v12179_v48 }
 0x3e0   : > { %v12362_v4 = vpop.f32.mrf.mxu1  ;;  %v12271_v28 = vpop.f32.mrf.mxu0 }
 0x3e1   : > { %v12275_v47 = vadd.f32 %v12271_v28, %v12181_v11  ;;  %v12367_v13 = vadd.f32 %v12362_v4, %v12274_v58 }
 0x3e2   : > { %v12364_v17 = vpop.f32.mrf.mxu1 }
 0x3e3   : > { %v12368_v46 = vadd.f32 %v12364_v17, %v12275_v47 }
 0x3ea   : > { %v12455_v33 = vpop.f32.mrf.mxu0 }
 0x3eb   : > { %v12460_v35 = vadd.f32 %v12455_v33, %v12367_v13 }
 0x3ec   : > { %v12548_v50 = vpop.f32.mrf.mxu1  ;;  %v12457_v51 = vpop.f32.mrf.mxu0 }
 0x3ed   : > { %v12461_v60 = vadd.f32 %v12457_v51, %v12368_v46  ;;  %v12553_v6 = vadd.f32 %v12548_v50, %v12460_v35 }
 0x3ee   : > { %v12550_v41 = vpop.f32.mrf.mxu1 }
 0x3ef   : > { %v12554_v10 = vadd.f32 %v12550_v41, %v12461_v60 }
 0x3f6   : > { %v12641_v3 = vpop.f32.mrf.mxu0 }
 0x3f7   : > { %v12646_v16 = vadd.f32 %v12641_v3, %v12553_v6 }
 0x3f8   : > { %v12734_v8 = vpop.f32.mrf.mxu1  ;;  %v12643_v30 = vpop.f32.mrf.mxu0 }
 0x3f9   : > { %v12647_v9 = vadd.f32 %v12643_v30, %v12554_v10  ;;  %v12739_v5 = vadd.f32 %v12734_v8, %v12646_v16 }
 0x3fa   : > { %v12736_v24 = vpop.f32.mrf.mxu1 }
 0x3fb   : > { %v12740_v43 = vadd.f32 %v12736_v24, %v12647_v9 }
 0x402   : > { %v12828_v52 = vpop.f32.mrf.mxu0 }
 0x403   : > { %v12833_v32 = vadd.f32 %v12828_v52, %v12739_v5 }
 0x404   : > { %v12830_v27 = vpop.f32.mrf.mxu0  ;;  %v12937_v59 = vpop.f32.mrf.mxu1 }
 0x405   : > { %v12835_v22 = vadd.f32 %v12833_v32, %v18914_v15  ;;  %v12834_v39 = vadd.f32 %v12830_v27, %v12740_v43 }
 0x406   : > { %v12939_v49 = vpop.f32.mrf.mxu1 }
 0x407   : > { %15666 = vst [vmem:[%s17092_s11 + $0xe0] sm:$0xff] %v12835_v22  ;;  %v12836_v23 = vadd.f32 %v12834_v39, %v18914_v15 }
 0x409   : > { %15667 = vst [vmem:[%s17092_s11 + $0xe8] sm:$0xff] %v12836_v23 }
 0x40e   : > { %v13017_v18 = vpop.f32.mrf.mxu0 }
 0x40f   : > { %v13018_v14 = vadd.f32 %v13017_v18, %v12937_v59 }
 0x410   : > { %v13108_v54 = vpop.f32.mrf.mxu1  ;;  %v13019_v44 = vpop.f32.mrf.mxu0 }
 0x411   : > { %v13020_v19 = vadd.f32 %v13019_v44, %v12939_v49  ;;  %v13113_v53 = vadd.f32 %v13108_v54, %v13018_v14 }
 0x412   : > { %v13110_v20 = vpop.f32.mrf.mxu1 }
 0x413   : > { %v13114_v29 = vadd.f32 %v13110_v20, %v13020_v19 }
 0x41a   : > { %v13201_v26 = vpop.f32.mrf.mxu0 }
 0x41b   : > { %v13206_v0 = vadd.f32 %v13201_v26, %v13113_v53 }
 0x41c   : > { %v13294_v61 = vpop.f32.mrf.mxu1  ;;  %v13203_v56 = vpop.f32.mrf.mxu0 }
 0x41d   : > { %v13207_v62 = vadd.f32 %v13203_v56, %v13114_v29  ;;  %v13299_v12 = vadd.f32 %v13294_v61, %v13206_v0 }
 0x41e   : > { %v13296_v57 = vpop.f32.mrf.mxu1 }
 0x41f   : > { %v13300_v42 = vadd.f32 %v13296_v57, %v13207_v62 }
 0x426   : > { %v13387_v21 = vpop.f32.mrf.mxu0 }
 0x427   : > { %v13392_v25 = vadd.f32 %v13387_v21, %v13299_v12 }
 0x428   : > { %v13480_v36 = vpop.f32.mrf.mxu1  ;;  %v13389_v37 = vpop.f32.mrf.mxu0 }
 0x429   : > { %v13393_v63 = vadd.f32 %v13389_v37, %v13300_v42  ;;  %v13485_v31 = vadd.f32 %v13480_v36, %v13392_v25 }
 0x42a   : > { %v13482_v55 = vpop.f32.mrf.mxu1 }
 0x42b   : > { %v13486_v7 = vadd.f32 %v13482_v55, %v13393_v63 }
 0x432   : > { %v13573_v2 = vpop.f32.mrf.mxu0 }
 0x433   : > { %v13578_v34 = vadd.f32 %v13573_v2, %v13485_v31  ;;  %v13667_v1 = vpop.f32.mrf.mxu1 }
 0x434   : > { %v13575_v45 = vpop.f32.mrf.mxu0 }
 0x435   : > { %v13672_v40 = vadd.f32 %v13667_v1, %v13578_v34  ;;  %v13579_v38 = vadd.f32 %v13575_v45, %v13486_v7  ;;  %v13669_v48 = vpop.f32.mrf.mxu1 }
 0x437   : > { %v13674_v4 = vadd.f32 %v13672_v40, %v18914_v15  ;;  %v13673_v28 = vadd.f32 %v13669_v48, %v13579_v38 }
 0x439   : > { %15793 = vst [vmem:[%s17092_s11 + $0xf0] sm:$0xff] %v13674_v4  ;;  %v13675_v11 = vadd.f32 %v13673_v28, %v18914_v15 }
 0x43b   : > { %15794 = vst [vmem:[%s17092_s11 + $0xf8] sm:$0xff] %v13675_v11 }
 0x43c PF: > { %s13_s14 = sadd.s32 1, %s15848_s14   ;;  %s19697_s12 = smov %s15844_s13 }
 0x43d   : > { %p10_p5 = scmp.ge.s32.totalorder %s13_s14, 4   ;;  %s19698_s13 = smov %s19700_s15 }
 0x43f   :  { %12 = sbr.rel (!%p10_p5) target bundleno = 2 (0x2), region = 125 }

</bundles_post_ra>
